<compile_context>
chip_gen: v7x
topology: tpu7x:2x2x1
jax: 0.10.0
libtpu: 0.0.40
codegen_flags: <defaults>
</compile_context>

<pallas_src>
import functools

import numpy as np

import jax
import jax.numpy as jnp
from jax import lax
from jax.experimental import pallas as pl
from jax.experimental.pallas import tpu as pltpu

LANES = 128


def _round_up(x, m):
    return (x + m - 1) // m * m


# ------------------------- in-kernel building blocks -------------------------

def _shift_lanes(x, delta):
    """y[:, m] = x[:, m + delta] (cyclic; wrapped lanes are always masked off)."""
    m = x.shape[1]
    s = (-delta) % m                      # pltpu.roll == jnp.roll, shift >= 0
    if s == 0:
        return x
    return pltpu.roll(x, s, axis=1)


def _border_masks(height, width, m_total):
    """9 x (1, m_total) f32 masks: 1 where tap (kh, kw) stays inside the image."""
    assert width & (width - 1) == 0, "spatial width must be a power of two"
    log_w = width.bit_length() - 1
    lanes = lax.broadcasted_iota(jnp.int32, (1, m_total), 1)
    h = lanes >> log_w                    # power-of-two div/mod -> cheap VPU bit ops
    w = lanes & (width - 1)
    masks = []
    for k in range(9):
        dh, dw = divmod(k, 3)
        dh, dw = dh - 1, dw - 1
        ok = (h + dh >= 0) & (h + dh < height) & (w + dw >= 0) & (w + dw < width)
        masks.append(ok.astype(jnp.float32))
    return masks


def _conv3x3_same(x, w_ref, masks, width):
    """3x3 'same' conv = ONE bf16 MXU matmul over a stacked (9*Cin, M) slab.

    x:     (Cin, M) f32 activations, M = H*W lane-dense (one image).
    w_ref: (Cout, 9*Cin) bf16 weights, column index = (kh*3 + kw)*Cin + cin.
    masks: list of 9 (1, M) f32 border masks.
    """
    pieces = []
    for k in range(9):
        kh, kw = divmod(k, 3)
        xs = _shift_lanes(x, (kh - 1) * width + (kw - 1))
        if k != 4:                        # centre tap never leaves the image
            xs = xs * masks[k]
        pieces.append(xs)
    slab = jnp.concatenate(pieces, axis=0).astype(jnp.bfloat16)   # (9*Cin, M)
    return jnp.dot(w_ref[...], slab, preferred_element_type=jnp.float32)


def _conv1x1(x, w_ref):
    return jnp.dot(w_ref[...], x.astype(jnp.bfloat16),
                   preferred_element_type=jnp.float32)


def _relu_bn(z, a_ref):
    """ReLU then eval-mode BatchNorm folded to y = relu(z) * scale + shift."""
    return jnp.maximum(z, 0.0) * a_ref[0] + a_ref[1]


def _maxpool2x2(x, pool_mat, width):
    """2x2/2 maxpool: max of 4 lane rotations, then per-image 0/1 selection matmul."""
    p = jnp.maximum(jnp.maximum(x, _shift_lanes(x, 1)),
                    jnp.maximum(_shift_lanes(x, width),
                                _shift_lanes(x, width + 1)))
    return jnp.dot(p.astype(jnp.bfloat16), pool_mat,
                   preferred_element_type=jnp.float32)


# ------------------- host-side constants (per image, tiny) -------------------

def _pool_select(height, width, in_lanes, out_lanes):
    """(in_lanes, out_lanes) bf16 0/1 matrix selecting 2x2-pool window origins."""
    ho, wo = height // 2, width // 2
    m = np.arange(height * width)
    h, w = m // width, m % width
    keep = (h % 2 == 0) & (w % 2 == 0)
    mo = (h // 2) * wo + (w // 2)
    mat = np.zeros((in_lanes, out_lanes), np.float32)
    mat[m[keep], mo[keep]] = 1.0
    return jnp.asarray(mat, dtype=jnp.bfloat16)


# ------------------------------ fused forward --------------------------------

def net_s8bn_forward(x_nchw, packed):
    batch, chans, height, width = x_nchw.shape
    assert chans <= 8 and height % 4 == 0 and width % 4 == 0
    height1, width1 = height // 2, width // 2
    height2, width2 = height1 // 2, width1 // 2
    lanes_a = _round_up(height * width, LANES)
    lanes_b = _round_up(height1 * width1, LANES)
    lanes_c = _round_up(height2 * width2, LANES)
    num_classes = packed["c11"].shape[0]
    cin_pad = 8                           # pad 3 input channels -> one sublane tile

    # NCHW -> per-image lane-dense slabs (B, Cpad, lanes_a); no transpose needed.
    x_t = x_nchw.astype(jnp.float32).reshape(batch, chans, height * width)
    x_t = jnp.pad(x_t, ((0, 0), (0, cin_pad - chans),
                        (0, lanes_a - height * width)))

    pool_a = _pool_select(height, width, lanes_a, lanes_b)      # bf16, batch-free
    pool_b = _pool_select(height1, width1, lanes_b, lanes_c)    # (zero-padded cols)

    def kernel(x_ref, pa_ref, pb_ref,
               w1_r, a1_r, w2_r, a2_r, w3_r, a3_r,
               w4_r, a4_r, w5_r, a5_r, w6_r, a6_r, w7_r, a7_r,
               w8_r, a8_r, w9_r, a9_r, w10_r, a10_r, w11_r,
               o_ref):
        # Border masks regenerated from iota: a few VPU vregs, no DMA.
        masks_a = _border_masks(height, width, lanes_a)
        masks_b = _border_masks(height1, width1, lanes_b)
        masks_c = _border_masks(height2, width2, lanes_c)

        # ---- block 1 : H x W -------------------------------------------------
        x = x_ref[...]
        x = _relu_bn(_conv3x3_same(x, w1_r, masks_a, width), a1_r)     # C1
        x = _relu_bn(_conv3x3_same(x, w2_r, masks_a, width), a2_r)     # C2
        x = _relu_bn(_conv1x1(x, w3_r), a3_r)                          # c3
        x = _maxpool2x2(x, pa_ref[...], width)                         # p1

        # ---- block 2 : H/2 x W/2 ---------------------------------------------
        x = _relu_bn(_conv3x3_same(x, w4_r, masks_b, width1), a4_r)    # C4
        x = _relu_bn(_conv3x3_same(x, w5_r, masks_b, width1), a5_r)    # C5
        x = _relu_bn(_conv3x3_same(x, w6_r, masks_b, width1), a6_r)    # C6
        x = _relu_bn(_conv1x1(x, w7_r), a7_r)                          # c7
        x = _maxpool2x2(x, pb_ref[...], width1)                        # p2

        # ---- block 3 : H/4 x W/4 (lane-padded to 128) --------------------------
        x = _relu_bn(_conv3x3_same(x, w8_r, masks_c, width2), a8_r)    # C8
        x = _relu_bn(_conv3x3_same(x, w9_r, masks_c, width2), a9_r)    # C9
        x = _relu_bn(_conv3x3_same(x, w10_r, masks_c, width2), a10_r)  # C10

        # ---- GAP -> 1x1 classifier -> log_softmax ------------------------------
        n_valid = height2 * width2
        lane_id = lax.broadcasted_iota(jnp.int32, (1, lanes_c), 1)
        gap_vec = jnp.where(lane_id < n_valid, 1.0 / n_valid, 0.0
                            ).astype(jnp.float32)                      # masks pad
        gap = lax.dot_general(gap_vec, x, (((1,), (1,)), ((), ())),
                              preferred_element_type=jnp.float32)      # (1, 4n)
        logits = lax.dot_general(gap, w11_r[...], (((1,), (1,)), ((), ())),
                                 preferred_element_type=jnp.float32)   # (1, 10)
        z = logits - jnp.max(logits, axis=-1, keepdims=True)
        o_ref[...] = z - jnp.log(jnp.sum(jnp.exp(z), axis=-1, keepdims=True))

    operands = (
        x_t, pool_a, pool_b,
        *packed["C1"], *packed["C2"], *packed["c3"],
        *packed["C4"], *packed["C5"], *packed["C6"], *packed["c7"],
        *packed["C8"], *packed["C9"], *packed["C10"], packed["c11"],
    )

    # Per-image input block; every other operand is a full, VMEM-resident block
    # with a constant index map (fetched once, reused across the batch grid).
    in_specs = [pl.BlockSpec((None, cin_pad, lanes_a), lambda b: (b, 0, 0))]
    in_specs += [pl.BlockSpec(op.shape, (lambda b, _n=op.ndim: (0,) * _n))
                 for op in operands[1:]]
    out_specs = pl.BlockSpec((None, 1, num_classes), lambda b: (b, 0, 0))

    # Advisory cost hint so XLA schedules the small custom call sensibly.
    conv_m = {"C1": lanes_a, "C2": lanes_a, "c3": lanes_a,
              "C4": lanes_b, "C5": lanes_b, "C6": lanes_b, "c7": lanes_b,
              "C8": lanes_c, "C9": lanes_c, "C10": lanes_c}
    flops = sum(2 * conv_m[k] * packed[k][0].size for k in conv_m)
    flops += 2 * packed["c3"][0].shape[0] * pool_a.size
    flops += 2 * packed["c7"][0].shape[0] * pool_b.size
    flops += 2 * packed["C10"][0].shape[0] * (lanes_c + num_classes)
    flops *= batch
    bytes_accessed = (sum(int(op.size) * op.dtype.itemsize for op in operands)
                      + 4 * batch * num_classes)

    out = pl.pallas_call(
        kernel,
        grid=(batch,),
        out_shape=jax.ShapeDtypeStruct((batch, 1, num_classes), jnp.float32),
        in_specs=in_specs,
        out_specs=out_specs,
        compiler_params=pltpu.CompilerParams(
            dimension_semantics=("parallel",),        # v7x: both TCs split batch
            vmem_limit_bytes=32 * 1024 * 1024),       # well under v7x's 64 MiB
        cost_estimate=pl.CostEstimate(
            flops=int(flops),
            transcendentals=int(batch * (num_classes + 1)),
            bytes_accessed=int(bytes_accessed)),
    )(*operands)
    return out.reshape(batch, num_classes)


# ----------------------------- parameters ------------------------------------

def init_params(key, n=8, num_classes=10):
    """Random conv weights + eval-mode BatchNorm stats (PyTorch-style layout)."""
    keys = iter(jax.random.split(key, 64))

    def conv_w(cout, cin, k):
        fan_in = cin * k * k
        w = jax.random.normal(next(keys), (cout, cin, k, k), jnp.float32)
        return w * (2.0 / fan_in) ** 0.5

    def bn_affine(c, eps=1e-5):
        gamma = 1.0 + 0.1 * jax.random.normal(next(keys), (c,), jnp.float32)
        beta = 0.1 * jax.random.normal(next(keys), (c,), jnp.float32)
        mean = 0.1 * jax.random.normal(next(keys), (c,), jnp.float32)
        var = 1.0 + 0.1 * jax.random.uniform(next(keys), (c,), jnp.float32)
        scale = gamma * lax.rsqrt(var + eps)
        shift = beta - mean * scale
        return scale, shift

    def block(cout, cin, k):
        scale, shift = bn_affine(cout)
        return {"w": conv_w(cout, cin, k), "scale": scale, "shift": shift}

    return {
        "C1": block(2 * n, 3, 3), "C2": block(4 * n, 2 * n, 3), "c3": block(n, 4 * n, 1),
        "C4": block(2 * n, n, 3), "C5": block(4 * n, 2 * n, 3), "C6": block(4 * n, 4 * n, 3),
        "c7": block(n, 4 * n, 1),
        "C8": block(2 * n, n, 3), "C9": block(4 * n, 2 * n, 3), "C10": block(4 * n, 4 * n, 3),
        "c11": {"w": conv_w(num_classes, 4 * n, 1)},
    }


def pack_params(raw, cin_pad=8):
    """PyTorch-layout params -> fused-kernel operand layout (bf16 MXU weights)."""
    def affine(p):
        return jnp.stack([p["scale"], p["shift"]])[..., None]        # (2, C, 1) f32

    def pack3(p, pad_to=None):   # OIHW -> (Cout, 9*Cin), col = (kh*3+kw)*Cin + cin
        w = p["w"]
        cout, cin = w.shape[:2]
        if pad_to is not None and pad_to > cin:
            w = jnp.pad(w, ((0, 0), (0, pad_to - cin), (0, 0), (0, 0)))
            cin = pad_to
        w = jnp.transpose(w, (0, 2, 3, 1)).reshape(cout, 9 * cin)
        return w.astype(jnp.bfloat16), affine(p)

    def pack1(p):                # OI11 -> (Cout, Cin)
        return p["w"][:, :, 0, 0].astype(jnp.bfloat16), affine(p)

    packed = {"C1": pack3(raw["C1"], pad_to=cin_pad)}
    packed.update({k: pack3(raw[k]) for k in
                   ("C2", "C4", "C5", "C6", "C8", "C9", "C10")})
    packed.update({k: pack1(raw[k]) for k in ("c3", "c7")})
    packed["c11"] = raw["c11"]["w"][:, :, 0, 0]                      # (10, 4n) f32
    return packed


# ---------------------- plain-JAX reference (validation) ---------------------

def reference_forward(x, raw):
    def block(y, p, k):
        pad = 1 if k == 3 else 0
        y = lax.conv_general_dilated(
            y, p["w"], window_strides=(1, 1), padding=((pad, pad), (pad, pad)),
            dimension_numbers=("NCHW", "OIHW", "NCHW"),
            precision=lax.Precision.HIGHEST)
        y = jnp.maximum(y, 0.0)
        return y * p["scale"][None, :, None, None] + p["shift"][None, :, None, None]

    def pool(y):
        return lax.reduce_window(y, jnp.array(-jnp.inf, y.dtype), lax.max,
                                 (1, 1, 2, 2), (1, 1, 2, 2), "VALID")

    y = block(x, raw["C1"], 3)
    y = block(y, raw["C2"], 3)
    y = block(y, raw["c3"], 1)
    y = pool(y)
    y = block(y, raw["C4"], 3)
    y = block(y, raw["C5"], 3)
    y = block(y, raw["C6"], 3)
    y = block(y, raw["c7"], 1)
    y = pool(y)
    y = block(y, raw["C8"], 3)
    y = block(y, raw["C9"], 3)
    y = block(y, raw["C10"], 3)
    g = jnp.mean(y, axis=(2, 3))                                    # (B, 4n)
    logits = jnp.einsum("bc,oc->bo", g, raw["c11"]["w"][:, :, 0, 0],
                        precision=lax.Precision.HIGHEST)
    return jax.nn.log_softmax(logits, axis=-1)


# ----------------------------------- main -------------------------------------

if __name__ == "__main__":
    key = jax.random.PRNGKey(0)
    pkey, xkey = jax.random.split(key)
    raw_params = init_params(pkey, n=8, num_classes=10)
    packed = pack_params(raw_params)

    # CIFAR-like batch (module takes 3-channel images), NCHW as in PyTorch.
    x = jax.random.normal(xkey, (2, 3, 32, 32), jnp.float32)

    fwd = jax.jit(functools.partial(net_s8bn_forward, packed=packed))
    out = jax.block_until_ready(fwd(x))
    assert out.shape == (2, 10), out.shape

    # log_softmax rows must (approximately) log-sum-exp to 0.
    row_lse = jax.scipy.special.logsumexp(out, axis=-1)
    assert jnp.all(jnp.abs(row_lse) < 1e-3), row_lse

    # End-to-end numerical check against a plain-JAX/XLA reference.
    # (bf16 MXU inputs -> slightly looser tolerance than the all-f32 variant.)
    ref = jax.block_until_ready(
        jax.jit(functools.partial(reference_forward, raw=raw_params))(x))
    assert jnp.allclose(out, ref, rtol=0.0, atol=1e-1), float(jnp.max(jnp.abs(out - ref)))

    print("KERNEL_OK")
</pallas_src>

<mosaic_0001>
module attributes {stable_mosaic.version = 11 : i64} {
  func.func @kernel(%arg0: i32, %arg1: memref<1x8x1024xf32, #tpu.memory_space<vmem>>, %arg2: memref<1024x256xbf16, #tpu.memory_space<vmem>>, %arg3: memref<256x128xbf16, #tpu.memory_space<vmem>>, %arg4: memref<16x72xbf16, #tpu.memory_space<vmem>>, %arg5: memref<2x16x1xf32, #tpu.memory_space<vmem>>, %arg6: memref<32x144xbf16, #tpu.memory_space<vmem>>, %arg7: memref<2x32x1xf32, #tpu.memory_space<vmem>>, %arg8: memref<8x32xbf16, #tpu.memory_space<vmem>>, %arg9: memref<2x8x1xf32, #tpu.memory_space<vmem>>, %arg10: memref<16x72xbf16, #tpu.memory_space<vmem>>, %arg11: memref<2x16x1xf32, #tpu.memory_space<vmem>>, %arg12: memref<32x144xbf16, #tpu.memory_space<vmem>>, %arg13: memref<2x32x1xf32, #tpu.memory_space<vmem>>, %arg14: memref<32x288xbf16, #tpu.memory_space<vmem>>, %arg15: memref<2x32x1xf32, #tpu.memory_space<vmem>>, %arg16: memref<8x32xbf16, #tpu.memory_space<vmem>>, %arg17: memref<2x8x1xf32, #tpu.memory_space<vmem>>, %arg18: memref<16x72xbf16, #tpu.memory_space<vmem>>, %arg19: memref<2x16x1xf32, #tpu.memory_space<vmem>>, %arg20: memref<32x144xbf16, #tpu.memory_space<vmem>>, %arg21: memref<2x32x1xf32, #tpu.memory_space<vmem>>, %arg22: memref<32x288xbf16, #tpu.memory_space<vmem>>, %arg23: memref<2x32x1xf32, #tpu.memory_space<vmem>>, %arg24: memref<10x32xf32, #tpu.memory_space<vmem>>, %arg25: memref<1x1x10xf32, #tpu.memory_space<vmem>>) attributes {dimension_semantics = [#tpu.dimension_semantics<parallel>], iteration_bounds = array<i64: 2>, scalar_prefetch = 0 : i64, scratch_operands = 0 : i64, tpu.core_type = #tpu.core_type<tc>, window_params = [{transform_indices = @transform_0, window_bounds = array<i64: 1, 8, 1024>}, {pipeline_mode = #tpu.pipeline_mode<synchronous>, transform_indices = @transform_1, window_bounds = array<i64: 1024, 256>}, {pipeline_mode = #tpu.pipeline_mode<synchronous>, transform_indices = @transform_2, window_bounds = array<i64: 256, 128>}, {pipeline_mode = #tpu.pipeline_mode<synchronous>, transform_indices = @transform_3, window_bounds = array<i64: 16, 72>}, {pipeline_mode = #tpu.pipeline_mode<synchronous>, transform_indices = @transform_4, window_bounds = array<i64: 2, 16, 1>}, {pipeline_mode = #tpu.pipeline_mode<synchronous>, transform_indices = @transform_5, window_bounds = array<i64: 32, 144>}, {pipeline_mode = #tpu.pipeline_mode<synchronous>, transform_indices = @transform_6, window_bounds = array<i64: 2, 32, 1>}, {pipeline_mode = #tpu.pipeline_mode<synchronous>, transform_indices = @transform_7, window_bounds = array<i64: 8, 32>}, {pipeline_mode = #tpu.pipeline_mode<synchronous>, transform_indices = @transform_8, window_bounds = array<i64: 2, 8, 1>}, {pipeline_mode = #tpu.pipeline_mode<synchronous>, transform_indices = @transform_9, window_bounds = array<i64: 16, 72>}, {pipeline_mode = #tpu.pipeline_mode<synchronous>, transform_indices = @transform_10, window_bounds = array<i64: 2, 16, 1>}, {pipeline_mode = #tpu.pipeline_mode<synchronous>, transform_indices = @transform_11, window_bounds = array<i64: 32, 144>}, {pipeline_mode = #tpu.pipeline_mode<synchronous>, transform_indices = @transform_12, window_bounds = array<i64: 2, 32, 1>}, {pipeline_mode = #tpu.pipeline_mode<synchronous>, transform_indices = @transform_13, window_bounds = array<i64: 32, 288>}, {pipeline_mode = #tpu.pipeline_mode<synchronous>, transform_indices = @transform_14, window_bounds = array<i64: 2, 32, 1>}, {pipeline_mode = #tpu.pipeline_mode<synchronous>, transform_indices = @transform_15, window_bounds = array<i64: 8, 32>}, {pipeline_mode = #tpu.pipeline_mode<synchronous>, transform_indices = @transform_16, window_bounds = array<i64: 2, 8, 1>}, {pipeline_mode = #tpu.pipeline_mode<synchronous>, transform_indices = @transform_17, window_bounds = array<i64: 16, 72>}, {pipeline_mode = #tpu.pipeline_mode<synchronous>, transform_indices = @transform_18, window_bounds = array<i64: 2, 16, 1>}, {pipeline_mode = #tpu.pipeline_mode<synchronous>, transform_indices = @transform_19, window_bounds = array<i64: 32, 144>}, {pipeline_mode = #tpu.pipeline_mode<synchronous>, transform_indices = @transform_20, window_bounds = array<i64: 2, 32, 1>}, {pipeline_mode = #tpu.pipeline_mode<synchronous>, transform_indices = @transform_21, window_bounds = array<i64: 32, 288>}, {pipeline_mode = #tpu.pipeline_mode<synchronous>, transform_indices = @transform_22, window_bounds = array<i64: 2, 32, 1>}, {pipeline_mode = #tpu.pipeline_mode<synchronous>, transform_indices = @transform_23, window_bounds = array<i64: 10, 32>}, {transform_indices = @transform_24, window_bounds = array<i64: 1, 1, 10>}]} {
    %0 = tpu.iota {dimensions = array<i32: 1>} : vector<1x1024xi32>
    %c5_i32 = arith.constant 5 : i32
    %1 = vector.broadcast %c5_i32 : i32 to vector<1x1024xi32>
    %2 = arith.shrsi %0, %1 : vector<1x1024xi32>
    %c31_i32 = arith.constant 31 : i32
    %3 = vector.broadcast %c31_i32 : i32 to vector<1x1024xi32>
    %4 = arith.andi %0, %3 : vector<1x1024xi32>
    %c-1_i32 = arith.constant -1 : i32
    %5 = vector.broadcast %c-1_i32 : i32 to vector<1x1024xi32>
    %6 = arith.addi %2, %5 : vector<1x1024xi32>
    %c0_i32 = arith.constant 0 : i32
    %7 = vector.broadcast %c0_i32 : i32 to vector<1x1024xi32>
    %8 = arith.cmpi sge, %6, %7 : vector<1x1024xi32>
    %c-1_i32_0 = arith.constant -1 : i32
    %9 = vector.broadcast %c-1_i32_0 : i32 to vector<1x1024xi32>
    %10 = arith.addi %2, %9 : vector<1x1024xi32>
    %c32_i32 = arith.constant 32 : i32
    %11 = vector.broadcast %c32_i32 : i32 to vector<1x1024xi32>
    %12 = arith.cmpi slt, %10, %11 : vector<1x1024xi32>
    %13 = arith.andi %8, %12 : vector<1x1024xi1>
    %c-1_i32_1 = arith.constant -1 : i32
    %14 = vector.broadcast %c-1_i32_1 : i32 to vector<1x1024xi32>
    %15 = arith.addi %4, %14 : vector<1x1024xi32>
    %c0_i32_2 = arith.constant 0 : i32
    %16 = vector.broadcast %c0_i32_2 : i32 to vector<1x1024xi32>
    %17 = arith.cmpi sge, %15, %16 : vector<1x1024xi32>
    %18 = arith.andi %13, %17 : vector<1x1024xi1>
    %c-1_i32_3 = arith.constant -1 : i32
    %19 = vector.broadcast %c-1_i32_3 : i32 to vector<1x1024xi32>
    %20 = arith.addi %4, %19 : vector<1x1024xi32>
    %c32_i32_4 = arith.constant 32 : i32
    %21 = vector.broadcast %c32_i32_4 : i32 to vector<1x1024xi32>
    %22 = arith.cmpi slt, %20, %21 : vector<1x1024xi32>
    %23 = arith.andi %18, %22 : vector<1x1024xi1>
    %24 = arith.extui %23 : vector<1x1024xi1> to vector<1x1024xi32>
    %25 = arith.sitofp %24 : vector<1x1024xi32> to vector<1x1024xf32>
    %c-1_i32_5 = arith.constant -1 : i32
    %26 = vector.broadcast %c-1_i32_5 : i32 to vector<1x1024xi32>
    %27 = arith.addi %2, %26 : vector<1x1024xi32>
    %c0_i32_6 = arith.constant 0 : i32
    %28 = vector.broadcast %c0_i32_6 : i32 to vector<1x1024xi32>
    %29 = arith.cmpi sge, %27, %28 : vector<1x1024xi32>
    %c-1_i32_7 = arith.constant -1 : i32
    %30 = vector.broadcast %c-1_i32_7 : i32 to vector<1x1024xi32>
    %31 = arith.addi %2, %30 : vector<1x1024xi32>
    %c32_i32_8 = arith.constant 32 : i32
    %32 = vector.broadcast %c32_i32_8 : i32 to vector<1x1024xi32>
    %33 = arith.cmpi slt, %31, %32 : vector<1x1024xi32>
    %34 = arith.andi %29, %33 : vector<1x1024xi1>
    %c0_i32_9 = arith.constant 0 : i32
    %35 = vector.broadcast %c0_i32_9 : i32 to vector<1x1024xi32>
    %36 = arith.addi %4, %35 : vector<1x1024xi32>
    %c0_i32_10 = arith.constant 0 : i32
    %37 = vector.broadcast %c0_i32_10 : i32 to vector<1x1024xi32>
    %38 = arith.cmpi sge, %36, %37 : vector<1x1024xi32>
    %39 = arith.andi %34, %38 : vector<1x1024xi1>
    %c0_i32_11 = arith.constant 0 : i32
    %40 = vector.broadcast %c0_i32_11 : i32 to vector<1x1024xi32>
    %41 = arith.addi %4, %40 : vector<1x1024xi32>
    %c32_i32_12 = arith.constant 32 : i32
    %42 = vector.broadcast %c32_i32_12 : i32 to vector<1x1024xi32>
    %43 = arith.cmpi slt, %41, %42 : vector<1x1024xi32>
    %44 = arith.andi %39, %43 : vector<1x1024xi1>
    %45 = arith.extui %44 : vector<1x1024xi1> to vector<1x1024xi32>
    %46 = arith.sitofp %45 : vector<1x1024xi32> to vector<1x1024xf32>
    %c-1_i32_13 = arith.constant -1 : i32
    %47 = vector.broadcast %c-1_i32_13 : i32 to vector<1x1024xi32>
    %48 = arith.addi %2, %47 : vector<1x1024xi32>
    %c0_i32_14 = arith.constant 0 : i32
    %49 = vector.broadcast %c0_i32_14 : i32 to vector<1x1024xi32>
    %50 = arith.cmpi sge, %48, %49 : vector<1x1024xi32>
    %c-1_i32_15 = arith.constant -1 : i32
    %51 = vector.broadcast %c-1_i32_15 : i32 to vector<1x1024xi32>
    %52 = arith.addi %2, %51 : vector<1x1024xi32>
    %c32_i32_16 = arith.constant 32 : i32
    %53 = vector.broadcast %c32_i32_16 : i32 to vector<1x1024xi32>
    %54 = arith.cmpi slt, %52, %53 : vector<1x1024xi32>
    %55 = arith.andi %50, %54 : vector<1x1024xi1>
    %c1_i32 = arith.constant 1 : i32
    %56 = vector.broadcast %c1_i32 : i32 to vector<1x1024xi32>
    %57 = arith.addi %4, %56 : vector<1x1024xi32>
    %c0_i32_17 = arith.constant 0 : i32
    %58 = vector.broadcast %c0_i32_17 : i32 to vector<1x1024xi32>
    %59 = arith.cmpi sge, %57, %58 : vector<1x1024xi32>
    %60 = arith.andi %55, %59 : vector<1x1024xi1>
    %c1_i32_18 = arith.constant 1 : i32
    %61 = vector.broadcast %c1_i32_18 : i32 to vector<1x1024xi32>
    %62 = arith.addi %4, %61 : vector<1x1024xi32>
    %c32_i32_19 = arith.constant 32 : i32
    %63 = vector.broadcast %c32_i32_19 : i32 to vector<1x1024xi32>
    %64 = arith.cmpi slt, %62, %63 : vector<1x1024xi32>
    %65 = arith.andi %60, %64 : vector<1x1024xi1>
    %66 = arith.extui %65 : vector<1x1024xi1> to vector<1x1024xi32>
    %67 = arith.sitofp %66 : vector<1x1024xi32> to vector<1x1024xf32>
    %c0_i32_20 = arith.constant 0 : i32
    %68 = vector.broadcast %c0_i32_20 : i32 to vector<1x1024xi32>
    %69 = arith.addi %2, %68 : vector<1x1024xi32>
    %c0_i32_21 = arith.constant 0 : i32
    %70 = vector.broadcast %c0_i32_21 : i32 to vector<1x1024xi32>
    %71 = arith.cmpi sge, %69, %70 : vector<1x1024xi32>
    %c0_i32_22 = arith.constant 0 : i32
    %72 = vector.broadcast %c0_i32_22 : i32 to vector<1x1024xi32>
    %73 = arith.addi %2, %72 : vector<1x1024xi32>
    %c32_i32_23 = arith.constant 32 : i32
    %74 = vector.broadcast %c32_i32_23 : i32 to vector<1x1024xi32>
    %75 = arith.cmpi slt, %73, %74 : vector<1x1024xi32>
    %76 = arith.andi %71, %75 : vector<1x1024xi1>
    %c-1_i32_24 = arith.constant -1 : i32
    %77 = vector.broadcast %c-1_i32_24 : i32 to vector<1x1024xi32>
    %78 = arith.addi %4, %77 : vector<1x1024xi32>
    %c0_i32_25 = arith.constant 0 : i32
    %79 = vector.broadcast %c0_i32_25 : i32 to vector<1x1024xi32>
    %80 = arith.cmpi sge, %78, %79 : vector<1x1024xi32>
    %81 = arith.andi %76, %80 : vector<1x1024xi1>
    %c-1_i32_26 = arith.constant -1 : i32
    %82 = vector.broadcast %c-1_i32_26 : i32 to vector<1x1024xi32>
    %83 = arith.addi %4, %82 : vector<1x1024xi32>
    %c32_i32_27 = arith.constant 32 : i32
    %84 = vector.broadcast %c32_i32_27 : i32 to vector<1x1024xi32>
    %85 = arith.cmpi slt, %83, %84 : vector<1x1024xi32>
    %86 = arith.andi %81, %85 : vector<1x1024xi1>
    %87 = arith.extui %86 : vector<1x1024xi1> to vector<1x1024xi32>
    %88 = arith.sitofp %87 : vector<1x1024xi32> to vector<1x1024xf32>
    %c0_i32_28 = arith.constant 0 : i32
    %89 = vector.broadcast %c0_i32_28 : i32 to vector<1x1024xi32>
    %90 = arith.addi %2, %89 : vector<1x1024xi32>
    %c0_i32_29 = arith.constant 0 : i32
    %91 = vector.broadcast %c0_i32_29 : i32 to vector<1x1024xi32>
    %92 = arith.cmpi sge, %90, %91 : vector<1x1024xi32>
    %c0_i32_30 = arith.constant 0 : i32
    %93 = vector.broadcast %c0_i32_30 : i32 to vector<1x1024xi32>
    %94 = arith.addi %2, %93 : vector<1x1024xi32>
    %c32_i32_31 = arith.constant 32 : i32
    %95 = vector.broadcast %c32_i32_31 : i32 to vector<1x1024xi32>
    %96 = arith.cmpi slt, %94, %95 : vector<1x1024xi32>
    %97 = arith.andi %92, %96 : vector<1x1024xi1>
    %c1_i32_32 = arith.constant 1 : i32
    %98 = vector.broadcast %c1_i32_32 : i32 to vector<1x1024xi32>
    %99 = arith.addi %4, %98 : vector<1x1024xi32>
    %c0_i32_33 = arith.constant 0 : i32
    %100 = vector.broadcast %c0_i32_33 : i32 to vector<1x1024xi32>
    %101 = arith.cmpi sge, %99, %100 : vector<1x1024xi32>
    %102 = arith.andi %97, %101 : vector<1x1024xi1>
    %c1_i32_34 = arith.constant 1 : i32
    %103 = vector.broadcast %c1_i32_34 : i32 to vector<1x1024xi32>
    %104 = arith.addi %4, %103 : vector<1x1024xi32>
    %c32_i32_35 = arith.constant 32 : i32
    %105 = vector.broadcast %c32_i32_35 : i32 to vector<1x1024xi32>
    %106 = arith.cmpi slt, %104, %105 : vector<1x1024xi32>
    %107 = arith.andi %102, %106 : vector<1x1024xi1>
    %108 = arith.extui %107 : vector<1x1024xi1> to vector<1x1024xi32>
    %109 = arith.sitofp %108 : vector<1x1024xi32> to vector<1x1024xf32>
    %c1_i32_36 = arith.constant 1 : i32
    %110 = vector.broadcast %c1_i32_36 : i32 to vector<1x1024xi32>
    %111 = arith.addi %2, %110 : vector<1x1024xi32>
    %c0_i32_37 = arith.constant 0 : i32
    %112 = vector.broadcast %c0_i32_37 : i32 to vector<1x1024xi32>
    %113 = arith.cmpi sge, %111, %112 : vector<1x1024xi32>
    %c1_i32_38 = arith.constant 1 : i32
    %114 = vector.broadcast %c1_i32_38 : i32 to vector<1x1024xi32>
    %115 = arith.addi %2, %114 : vector<1x1024xi32>
    %c32_i32_39 = arith.constant 32 : i32
    %116 = vector.broadcast %c32_i32_39 : i32 to vector<1x1024xi32>
    %117 = arith.cmpi slt, %115, %116 : vector<1x1024xi32>
    %118 = arith.andi %113, %117 : vector<1x1024xi1>
    %c-1_i32_40 = arith.constant -1 : i32
    %119 = vector.broadcast %c-1_i32_40 : i32 to vector<1x1024xi32>
    %120 = arith.addi %4, %119 : vector<1x1024xi32>
    %c0_i32_41 = arith.constant 0 : i32
    %121 = vector.broadcast %c0_i32_41 : i32 to vector<1x1024xi32>
    %122 = arith.cmpi sge, %120, %121 : vector<1x1024xi32>
    %123 = arith.andi %118, %122 : vector<1x1024xi1>
    %c-1_i32_42 = arith.constant -1 : i32
    %124 = vector.broadcast %c-1_i32_42 : i32 to vector<1x1024xi32>
    %125 = arith.addi %4, %124 : vector<1x1024xi32>
    %c32_i32_43 = arith.constant 32 : i32
    %126 = vector.broadcast %c32_i32_43 : i32 to vector<1x1024xi32>
    %127 = arith.cmpi slt, %125, %126 : vector<1x1024xi32>
    %128 = arith.andi %123, %127 : vector<1x1024xi1>
    %129 = arith.extui %128 : vector<1x1024xi1> to vector<1x1024xi32>
    %130 = arith.sitofp %129 : vector<1x1024xi32> to vector<1x1024xf32>
    %c1_i32_44 = arith.constant 1 : i32
    %131 = vector.broadcast %c1_i32_44 : i32 to vector<1x1024xi32>
    %132 = arith.addi %2, %131 : vector<1x1024xi32>
    %c0_i32_45 = arith.constant 0 : i32
    %133 = vector.broadcast %c0_i32_45 : i32 to vector<1x1024xi32>
    %134 = arith.cmpi sge, %132, %133 : vector<1x1024xi32>
    %c1_i32_46 = arith.constant 1 : i32
    %135 = vector.broadcast %c1_i32_46 : i32 to vector<1x1024xi32>
    %136 = arith.addi %2, %135 : vector<1x1024xi32>
    %c32_i32_47 = arith.constant 32 : i32
    %137 = vector.broadcast %c32_i32_47 : i32 to vector<1x1024xi32>
    %138 = arith.cmpi slt, %136, %137 : vector<1x1024xi32>
    %139 = arith.andi %134, %138 : vector<1x1024xi1>
    %c0_i32_48 = arith.constant 0 : i32
    %140 = vector.broadcast %c0_i32_48 : i32 to vector<1x1024xi32>
    %141 = arith.addi %4, %140 : vector<1x1024xi32>
    %c0_i32_49 = arith.constant 0 : i32
    %142 = vector.broadcast %c0_i32_49 : i32 to vector<1x1024xi32>
    %143 = arith.cmpi sge, %141, %142 : vector<1x1024xi32>
    %144 = arith.andi %139, %143 : vector<1x1024xi1>
    %c0_i32_50 = arith.constant 0 : i32
    %145 = vector.broadcast %c0_i32_50 : i32 to vector<1x1024xi32>
    %146 = arith.addi %4, %145 : vector<1x1024xi32>
    %c32_i32_51 = arith.constant 32 : i32
    %147 = vector.broadcast %c32_i32_51 : i32 to vector<1x1024xi32>
    %148 = arith.cmpi slt, %146, %147 : vector<1x1024xi32>
    %149 = arith.andi %144, %148 : vector<1x1024xi1>
    %150 = arith.extui %149 : vector<1x1024xi1> to vector<1x1024xi32>
    %151 = arith.sitofp %150 : vector<1x1024xi32> to vector<1x1024xf32>
    %c1_i32_52 = arith.constant 1 : i32
    %152 = vector.broadcast %c1_i32_52 : i32 to vector<1x1024xi32>
    %153 = arith.addi %2, %152 : vector<1x1024xi32>
    %c0_i32_53 = arith.constant 0 : i32
    %154 = vector.broadcast %c0_i32_53 : i32 to vector<1x1024xi32>
    %155 = arith.cmpi sge, %153, %154 : vector<1x1024xi32>
    %c1_i32_54 = arith.constant 1 : i32
    %156 = vector.broadcast %c1_i32_54 : i32 to vector<1x1024xi32>
    %157 = arith.addi %2, %156 : vector<1x1024xi32>
    %c32_i32_55 = arith.constant 32 : i32
    %158 = vector.broadcast %c32_i32_55 : i32 to vector<1x1024xi32>
    %159 = arith.cmpi slt, %157, %158 : vector<1x1024xi32>
    %160 = arith.andi %155, %159 : vector<1x1024xi1>
    %c1_i32_56 = arith.constant 1 : i32
    %161 = vector.broadcast %c1_i32_56 : i32 to vector<1x1024xi32>
    %162 = arith.addi %4, %161 : vector<1x1024xi32>
    %c0_i32_57 = arith.constant 0 : i32
    %163 = vector.broadcast %c0_i32_57 : i32 to vector<1x1024xi32>
    %164 = arith.cmpi sge, %162, %163 : vector<1x1024xi32>
    %165 = arith.andi %160, %164 : vector<1x1024xi1>
    %c1_i32_58 = arith.constant 1 : i32
    %166 = vector.broadcast %c1_i32_58 : i32 to vector<1x1024xi32>
    %167 = arith.addi %4, %166 : vector<1x1024xi32>
    %c32_i32_59 = arith.constant 32 : i32
    %168 = vector.broadcast %c32_i32_59 : i32 to vector<1x1024xi32>
    %169 = arith.cmpi slt, %167, %168 : vector<1x1024xi32>
    %170 = arith.andi %165, %169 : vector<1x1024xi1>
    %171 = arith.extui %170 : vector<1x1024xi1> to vector<1x1024xi32>
    %172 = arith.sitofp %171 : vector<1x1024xi32> to vector<1x1024xf32>
    %173 = tpu.iota {dimensions = array<i32: 1>} : vector<1x256xi32>
    %c4_i32 = arith.constant 4 : i32
    %174 = vector.broadcast %c4_i32 : i32 to vector<1x256xi32>
    %175 = arith.shrsi %173, %174 : vector<1x256xi32>
    %c15_i32 = arith.constant 15 : i32
    %176 = vector.broadcast %c15_i32 : i32 to vector<1x256xi32>
    %177 = arith.andi %173, %176 : vector<1x256xi32>
    %c-1_i32_60 = arith.constant -1 : i32
    %178 = vector.broadcast %c-1_i32_60 : i32 to vector<1x256xi32>
    %179 = arith.addi %175, %178 : vector<1x256xi32>
    %c0_i32_61 = arith.constant 0 : i32
    %180 = vector.broadcast %c0_i32_61 : i32 to vector<1x256xi32>
    %181 = arith.cmpi sge, %179, %180 : vector<1x256xi32>
    %c-1_i32_62 = arith.constant -1 : i32
    %182 = vector.broadcast %c-1_i32_62 : i32 to vector<1x256xi32>
    %183 = arith.addi %175, %182 : vector<1x256xi32>
    %c16_i32 = arith.constant 16 : i32
    %184 = vector.broadcast %c16_i32 : i32 to vector<1x256xi32>
    %185 = arith.cmpi slt, %183, %184 : vector<1x256xi32>
    %186 = arith.andi %181, %185 : vector<1x256xi1>
    %c-1_i32_63 = arith.constant -1 : i32
    %187 = vector.broadcast %c-1_i32_63 : i32 to vector<1x256xi32>
    %188 = arith.addi %177, %187 : vector<1x256xi32>
    %c0_i32_64 = arith.constant 0 : i32
    %189 = vector.broadcast %c0_i32_64 : i32 to vector<1x256xi32>
    %190 = arith.cmpi sge, %188, %189 : vector<1x256xi32>
    %191 = arith.andi %186, %190 : vector<1x256xi1>
    %c-1_i32_65 = arith.constant -1 : i32
    %192 = vector.broadcast %c-1_i32_65 : i32 to vector<1x256xi32>
    %193 = arith.addi %177, %192 : vector<1x256xi32>
    %c16_i32_66 = arith.constant 16 : i32
    %194 = vector.broadcast %c16_i32_66 : i32 to vector<1x256xi32>
    %195 = arith.cmpi slt, %193, %194 : vector<1x256xi32>
    %196 = arith.andi %191, %195 : vector<1x256xi1>
    %197 = arith.extui %196 : vector<1x256xi1> to vector<1x256xi32>
    %198 = arith.sitofp %197 : vector<1x256xi32> to vector<1x256xf32>
    %c-1_i32_67 = arith.constant -1 : i32
    %199 = vector.broadcast %c-1_i32_67 : i32 to vector<1x256xi32>
    %200 = arith.addi %175, %199 : vector<1x256xi32>
    %c0_i32_68 = arith.constant 0 : i32
    %201 = vector.broadcast %c0_i32_68 : i32 to vector<1x256xi32>
    %202 = arith.cmpi sge, %200, %201 : vector<1x256xi32>
    %c-1_i32_69 = arith.constant -1 : i32
    %203 = vector.broadcast %c-1_i32_69 : i32 to vector<1x256xi32>
    %204 = arith.addi %175, %203 : vector<1x256xi32>
    %c16_i32_70 = arith.constant 16 : i32
    %205 = vector.broadcast %c16_i32_70 : i32 to vector<1x256xi32>
    %206 = arith.cmpi slt, %204, %205 : vector<1x256xi32>
    %207 = arith.andi %202, %206 : vector<1x256xi1>
    %c0_i32_71 = arith.constant 0 : i32
    %208 = vector.broadcast %c0_i32_71 : i32 to vector<1x256xi32>
    %209 = arith.addi %177, %208 : vector<1x256xi32>
    %c0_i32_72 = arith.constant 0 : i32
    %210 = vector.broadcast %c0_i32_72 : i32 to vector<1x256xi32>
    %211 = arith.cmpi sge, %209, %210 : vector<1x256xi32>
    %212 = arith.andi %207, %211 : vector<1x256xi1>
    %c0_i32_73 = arith.constant 0 : i32
    %213 = vector.broadcast %c0_i32_73 : i32 to vector<1x256xi32>
    %214 = arith.addi %177, %213 : vector<1x256xi32>
    %c16_i32_74 = arith.constant 16 : i32
    %215 = vector.broadcast %c16_i32_74 : i32 to vector<1x256xi32>
    %216 = arith.cmpi slt, %214, %215 : vector<1x256xi32>
    %217 = arith.andi %212, %216 : vector<1x256xi1>
    %218 = arith.extui %217 : vector<1x256xi1> to vector<1x256xi32>
    %219 = arith.sitofp %218 : vector<1x256xi32> to vector<1x256xf32>
    %c-1_i32_75 = arith.constant -1 : i32
    %220 = vector.broadcast %c-1_i32_75 : i32 to vector<1x256xi32>
    %221 = arith.addi %175, %220 : vector<1x256xi32>
    %c0_i32_76 = arith.constant 0 : i32
    %222 = vector.broadcast %c0_i32_76 : i32 to vector<1x256xi32>
    %223 = arith.cmpi sge, %221, %222 : vector<1x256xi32>
    %c-1_i32_77 = arith.constant -1 : i32
    %224 = vector.broadcast %c-1_i32_77 : i32 to vector<1x256xi32>
    %225 = arith.addi %175, %224 : vector<1x256xi32>
    %c16_i32_78 = arith.constant 16 : i32
    %226 = vector.broadcast %c16_i32_78 : i32 to vector<1x256xi32>
    %227 = arith.cmpi slt, %225, %226 : vector<1x256xi32>
    %228 = arith.andi %223, %227 : vector<1x256xi1>
    %c1_i32_79 = arith.constant 1 : i32
    %229 = vector.broadcast %c1_i32_79 : i32 to vector<1x256xi32>
    %230 = arith.addi %177, %229 : vector<1x256xi32>
    %c0_i32_80 = arith.constant 0 : i32
    %231 = vector.broadcast %c0_i32_80 : i32 to vector<1x256xi32>
    %232 = arith.cmpi sge, %230, %231 : vector<1x256xi32>
    %233 = arith.andi %228, %232 : vector<1x256xi1>
    %c1_i32_81 = arith.constant 1 : i32
    %234 = vector.broadcast %c1_i32_81 : i32 to vector<1x256xi32>
    %235 = arith.addi %177, %234 : vector<1x256xi32>
    %c16_i32_82 = arith.constant 16 : i32
    %236 = vector.broadcast %c16_i32_82 : i32 to vector<1x256xi32>
    %237 = arith.cmpi slt, %235, %236 : vector<1x256xi32>
    %238 = arith.andi %233, %237 : vector<1x256xi1>
    %239 = arith.extui %238 : vector<1x256xi1> to vector<1x256xi32>
    %240 = arith.sitofp %239 : vector<1x256xi32> to vector<1x256xf32>
    %c0_i32_83 = arith.constant 0 : i32
    %241 = vector.broadcast %c0_i32_83 : i32 to vector<1x256xi32>
    %242 = arith.addi %175, %241 : vector<1x256xi32>
    %c0_i32_84 = arith.constant 0 : i32
    %243 = vector.broadcast %c0_i32_84 : i32 to vector<1x256xi32>
    %244 = arith.cmpi sge, %242, %243 : vector<1x256xi32>
    %c0_i32_85 = arith.constant 0 : i32
    %245 = vector.broadcast %c0_i32_85 : i32 to vector<1x256xi32>
    %246 = arith.addi %175, %245 : vector<1x256xi32>
    %c16_i32_86 = arith.constant 16 : i32
    %247 = vector.broadcast %c16_i32_86 : i32 to vector<1x256xi32>
    %248 = arith.cmpi slt, %246, %247 : vector<1x256xi32>
    %249 = arith.andi %244, %248 : vector<1x256xi1>
    %c-1_i32_87 = arith.constant -1 : i32
    %250 = vector.broadcast %c-1_i32_87 : i32 to vector<1x256xi32>
    %251 = arith.addi %177, %250 : vector<1x256xi32>
    %c0_i32_88 = arith.constant 0 : i32
    %252 = vector.broadcast %c0_i32_88 : i32 to vector<1x256xi32>
    %253 = arith.cmpi sge, %251, %252 : vector<1x256xi32>
    %254 = arith.andi %249, %253 : vector<1x256xi1>
    %c-1_i32_89 = arith.constant -1 : i32
    %255 = vector.broadcast %c-1_i32_89 : i32 to vector<1x256xi32>
    %256 = arith.addi %177, %255 : vector<1x256xi32>
    %c16_i32_90 = arith.constant 16 : i32
    %257 = vector.broadcast %c16_i32_90 : i32 to vector<1x256xi32>
    %258 = arith.cmpi slt, %256, %257 : vector<1x256xi32>
    %259 = arith.andi %254, %258 : vector<1x256xi1>
    %260 = arith.extui %259 : vector<1x256xi1> to vector<1x256xi32>
    %261 = arith.sitofp %260 : vector<1x256xi32> to vector<1x256xf32>
    %c0_i32_91 = arith.constant 0 : i32
    %262 = vector.broadcast %c0_i32_91 : i32 to vector<1x256xi32>
    %263 = arith.addi %175, %262 : vector<1x256xi32>
    %c0_i32_92 = arith.constant 0 : i32
    %264 = vector.broadcast %c0_i32_92 : i32 to vector<1x256xi32>
    %265 = arith.cmpi sge, %263, %264 : vector<1x256xi32>
    %c0_i32_93 = arith.constant 0 : i32
    %266 = vector.broadcast %c0_i32_93 : i32 to vector<1x256xi32>
    %267 = arith.addi %175, %266 : vector<1x256xi32>
    %c16_i32_94 = arith.constant 16 : i32
    %268 = vector.broadcast %c16_i32_94 : i32 to vector<1x256xi32>
    %269 = arith.cmpi slt, %267, %268 : vector<1x256xi32>
    %270 = arith.andi %265, %269 : vector<1x256xi1>
    %c1_i32_95 = arith.constant 1 : i32
    %271 = vector.broadcast %c1_i32_95 : i32 to vector<1x256xi32>
    %272 = arith.addi %177, %271 : vector<1x256xi32>
    %c0_i32_96 = arith.constant 0 : i32
    %273 = vector.broadcast %c0_i32_96 : i32 to vector<1x256xi32>
    %274 = arith.cmpi sge, %272, %273 : vector<1x256xi32>
    %275 = arith.andi %270, %274 : vector<1x256xi1>
    %c1_i32_97 = arith.constant 1 : i32
    %276 = vector.broadcast %c1_i32_97 : i32 to vector<1x256xi32>
    %277 = arith.addi %177, %276 : vector<1x256xi32>
    %c16_i32_98 = arith.constant 16 : i32
    %278 = vector.broadcast %c16_i32_98 : i32 to vector<1x256xi32>
    %279 = arith.cmpi slt, %277, %278 : vector<1x256xi32>
    %280 = arith.andi %275, %279 : vector<1x256xi1>
    %281 = arith.extui %280 : vector<1x256xi1> to vector<1x256xi32>
    %282 = arith.sitofp %281 : vector<1x256xi32> to vector<1x256xf32>
    %c1_i32_99 = arith.constant 1 : i32
    %283 = vector.broadcast %c1_i32_99 : i32 to vector<1x256xi32>
    %284 = arith.addi %175, %283 : vector<1x256xi32>
    %c0_i32_100 = arith.constant 0 : i32
    %285 = vector.broadcast %c0_i32_100 : i32 to vector<1x256xi32>
    %286 = arith.cmpi sge, %284, %285 : vector<1x256xi32>
    %c1_i32_101 = arith.constant 1 : i32
    %287 = vector.broadcast %c1_i32_101 : i32 to vector<1x256xi32>
    %288 = arith.addi %175, %287 : vector<1x256xi32>
    %c16_i32_102 = arith.constant 16 : i32
    %289 = vector.broadcast %c16_i32_102 : i32 to vector<1x256xi32>
    %290 = arith.cmpi slt, %288, %289 : vector<1x256xi32>
    %291 = arith.andi %286, %290 : vector<1x256xi1>
    %c-1_i32_103 = arith.constant -1 : i32
    %292 = vector.broadcast %c-1_i32_103 : i32 to vector<1x256xi32>
    %293 = arith.addi %177, %292 : vector<1x256xi32>
    %c0_i32_104 = arith.constant 0 : i32
    %294 = vector.broadcast %c0_i32_104 : i32 to vector<1x256xi32>
    %295 = arith.cmpi sge, %293, %294 : vector<1x256xi32>
    %296 = arith.andi %291, %295 : vector<1x256xi1>
    %c-1_i32_105 = arith.constant -1 : i32
    %297 = vector.broadcast %c-1_i32_105 : i32 to vector<1x256xi32>
    %298 = arith.addi %177, %297 : vector<1x256xi32>
    %c16_i32_106 = arith.constant 16 : i32
    %299 = vector.broadcast %c16_i32_106 : i32 to vector<1x256xi32>
    %300 = arith.cmpi slt, %298, %299 : vector<1x256xi32>
    %301 = arith.andi %296, %300 : vector<1x256xi1>
    %302 = arith.extui %301 : vector<1x256xi1> to vector<1x256xi32>
    %303 = arith.sitofp %302 : vector<1x256xi32> to vector<1x256xf32>
    %c1_i32_107 = arith.constant 1 : i32
    %304 = vector.broadcast %c1_i32_107 : i32 to vector<1x256xi32>
    %305 = arith.addi %175, %304 : vector<1x256xi32>
    %c0_i32_108 = arith.constant 0 : i32
    %306 = vector.broadcast %c0_i32_108 : i32 to vector<1x256xi32>
    %307 = arith.cmpi sge, %305, %306 : vector<1x256xi32>
    %c1_i32_109 = arith.constant 1 : i32
    %308 = vector.broadcast %c1_i32_109 : i32 to vector<1x256xi32>
    %309 = arith.addi %175, %308 : vector<1x256xi32>
    %c16_i32_110 = arith.constant 16 : i32
    %310 = vector.broadcast %c16_i32_110 : i32 to vector<1x256xi32>
    %311 = arith.cmpi slt, %309, %310 : vector<1x256xi32>
    %312 = arith.andi %307, %311 : vector<1x256xi1>
    %c0_i32_111 = arith.constant 0 : i32
    %313 = vector.broadcast %c0_i32_111 : i32 to vector<1x256xi32>
    %314 = arith.addi %177, %313 : vector<1x256xi32>
    %c0_i32_112 = arith.constant 0 : i32
    %315 = vector.broadcast %c0_i32_112 : i32 to vector<1x256xi32>
    %316 = arith.cmpi sge, %314, %315 : vector<1x256xi32>
    %317 = arith.andi %312, %316 : vector<1x256xi1>
    %c0_i32_113 = arith.constant 0 : i32
    %318 = vector.broadcast %c0_i32_113 : i32 to vector<1x256xi32>
    %319 = arith.addi %177, %318 : vector<1x256xi32>
    %c16_i32_114 = arith.constant 16 : i32
    %320 = vector.broadcast %c16_i32_114 : i32 to vector<1x256xi32>
    %321 = arith.cmpi slt, %319, %320 : vector<1x256xi32>
    %322 = arith.andi %317, %321 : vector<1x256xi1>
    %323 = arith.extui %322 : vector<1x256xi1> to vector<1x256xi32>
    %324 = arith.sitofp %323 : vector<1x256xi32> to vector<1x256xf32>
    %c1_i32_115 = arith.constant 1 : i32
    %325 = vector.broadcast %c1_i32_115 : i32 to vector<1x256xi32>
    %326 = arith.addi %175, %325 : vector<1x256xi32>
    %c0_i32_116 = arith.constant 0 : i32
    %327 = vector.broadcast %c0_i32_116 : i32 to vector<1x256xi32>
    %328 = arith.cmpi sge, %326, %327 : vector<1x256xi32>
    %c1_i32_117 = arith.constant 1 : i32
    %329 = vector.broadcast %c1_i32_117 : i32 to vector<1x256xi32>
    %330 = arith.addi %175, %329 : vector<1x256xi32>
    %c16_i32_118 = arith.constant 16 : i32
    %331 = vector.broadcast %c16_i32_118 : i32 to vector<1x256xi32>
    %332 = arith.cmpi slt, %330, %331 : vector<1x256xi32>
    %333 = arith.andi %328, %332 : vector<1x256xi1>
    %c1_i32_119 = arith.constant 1 : i32
    %334 = vector.broadcast %c1_i32_119 : i32 to vector<1x256xi32>
    %335 = arith.addi %177, %334 : vector<1x256xi32>
    %c0_i32_120 = arith.constant 0 : i32
    %336 = vector.broadcast %c0_i32_120 : i32 to vector<1x256xi32>
    %337 = arith.cmpi sge, %335, %336 : vector<1x256xi32>
    %338 = arith.andi %333, %337 : vector<1x256xi1>
    %c1_i32_121 = arith.constant 1 : i32
    %339 = vector.broadcast %c1_i32_121 : i32 to vector<1x256xi32>
    %340 = arith.addi %177, %339 : vector<1x256xi32>
    %c16_i32_122 = arith.constant 16 : i32
    %341 = vector.broadcast %c16_i32_122 : i32 to vector<1x256xi32>
    %342 = arith.cmpi slt, %340, %341 : vector<1x256xi32>
    %343 = arith.andi %338, %342 : vector<1x256xi1>
    %344 = arith.extui %343 : vector<1x256xi1> to vector<1x256xi32>
    %345 = arith.sitofp %344 : vector<1x256xi32> to vector<1x256xf32>
    %346 = tpu.iota {dimensions = array<i32: 1>} : vector<1x128xi32>
    %c3_i32 = arith.constant 3 : i32
    %347 = vector.broadcast %c3_i32 : i32 to vector<1x128xi32>
    %348 = arith.shrsi %346, %347 : vector<1x128xi32>
    %c7_i32 = arith.constant 7 : i32
    %349 = vector.broadcast %c7_i32 : i32 to vector<1x128xi32>
    %350 = arith.andi %346, %349 : vector<1x128xi32>
    %c-1_i32_123 = arith.constant -1 : i32
    %351 = vector.broadcast %c-1_i32_123 : i32 to vector<1x128xi32>
    %352 = arith.addi %348, %351 : vector<1x128xi32>
    %c0_i32_124 = arith.constant 0 : i32
    %353 = vector.broadcast %c0_i32_124 : i32 to vector<1x128xi32>
    %354 = arith.cmpi sge, %352, %353 : vector<1x128xi32>
    %c-1_i32_125 = arith.constant -1 : i32
    %355 = vector.broadcast %c-1_i32_125 : i32 to vector<1x128xi32>
    %356 = arith.addi %348, %355 : vector<1x128xi32>
    %c8_i32 = arith.constant 8 : i32
    %357 = vector.broadcast %c8_i32 : i32 to vector<1x128xi32>
    %358 = arith.cmpi slt, %356, %357 : vector<1x128xi32>
    %359 = arith.andi %354, %358 : vector<1x128xi1>
    %c-1_i32_126 = arith.constant -1 : i32
    %360 = vector.broadcast %c-1_i32_126 : i32 to vector<1x128xi32>
    %361 = arith.addi %350, %360 : vector<1x128xi32>
    %c0_i32_127 = arith.constant 0 : i32
    %362 = vector.broadcast %c0_i32_127 : i32 to vector<1x128xi32>
    %363 = arith.cmpi sge, %361, %362 : vector<1x128xi32>
    %364 = arith.andi %359, %363 : vector<1x128xi1>
    %c-1_i32_128 = arith.constant -1 : i32
    %365 = vector.broadcast %c-1_i32_128 : i32 to vector<1x128xi32>
    %366 = arith.addi %350, %365 : vector<1x128xi32>
    %c8_i32_129 = arith.constant 8 : i32
    %367 = vector.broadcast %c8_i32_129 : i32 to vector<1x128xi32>
    %368 = arith.cmpi slt, %366, %367 : vector<1x128xi32>
    %369 = arith.andi %364, %368 : vector<1x128xi1>
    %370 = arith.extui %369 : vector<1x128xi1> to vector<1x128xi32>
    %371 = arith.sitofp %370 : vector<1x128xi32> to vector<1x128xf32>
    %c-1_i32_130 = arith.constant -1 : i32
    %372 = vector.broadcast %c-1_i32_130 : i32 to vector<1x128xi32>
    %373 = arith.addi %348, %372 : vector<1x128xi32>
    %c0_i32_131 = arith.constant 0 : i32
    %374 = vector.broadcast %c0_i32_131 : i32 to vector<1x128xi32>
    %375 = arith.cmpi sge, %373, %374 : vector<1x128xi32>
    %c-1_i32_132 = arith.constant -1 : i32
    %376 = vector.broadcast %c-1_i32_132 : i32 to vector<1x128xi32>
    %377 = arith.addi %348, %376 : vector<1x128xi32>
    %c8_i32_133 = arith.constant 8 : i32
    %378 = vector.broadcast %c8_i32_133 : i32 to vector<1x128xi32>
    %379 = arith.cmpi slt, %377, %378 : vector<1x128xi32>
    %380 = arith.andi %375, %379 : vector<1x128xi1>
    %c0_i32_134 = arith.constant 0 : i32
    %381 = vector.broadcast %c0_i32_134 : i32 to vector<1x128xi32>
    %382 = arith.addi %350, %381 : vector<1x128xi32>
    %c0_i32_135 = arith.constant 0 : i32
    %383 = vector.broadcast %c0_i32_135 : i32 to vector<1x128xi32>
    %384 = arith.cmpi sge, %382, %383 : vector<1x128xi32>
    %385 = arith.andi %380, %384 : vector<1x128xi1>
    %c0_i32_136 = arith.constant 0 : i32
    %386 = vector.broadcast %c0_i32_136 : i32 to vector<1x128xi32>
    %387 = arith.addi %350, %386 : vector<1x128xi32>
    %c8_i32_137 = arith.constant 8 : i32
    %388 = vector.broadcast %c8_i32_137 : i32 to vector<1x128xi32>
    %389 = arith.cmpi slt, %387, %388 : vector<1x128xi32>
    %390 = arith.andi %385, %389 : vector<1x128xi1>
    %391 = arith.extui %390 : vector<1x128xi1> to vector<1x128xi32>
    %392 = arith.sitofp %391 : vector<1x128xi32> to vector<1x128xf32>
    %c-1_i32_138 = arith.constant -1 : i32
    %393 = vector.broadcast %c-1_i32_138 : i32 to vector<1x128xi32>
    %394 = arith.addi %348, %393 : vector<1x128xi32>
    %c0_i32_139 = arith.constant 0 : i32
    %395 = vector.broadcast %c0_i32_139 : i32 to vector<1x128xi32>
    %396 = arith.cmpi sge, %394, %395 : vector<1x128xi32>
    %c-1_i32_140 = arith.constant -1 : i32
    %397 = vector.broadcast %c-1_i32_140 : i32 to vector<1x128xi32>
    %398 = arith.addi %348, %397 : vector<1x128xi32>
    %c8_i32_141 = arith.constant 8 : i32
    %399 = vector.broadcast %c8_i32_141 : i32 to vector<1x128xi32>
    %400 = arith.cmpi slt, %398, %399 : vector<1x128xi32>
    %401 = arith.andi %396, %400 : vector<1x128xi1>
    %c1_i32_142 = arith.constant 1 : i32
    %402 = vector.broadcast %c1_i32_142 : i32 to vector<1x128xi32>
    %403 = arith.addi %350, %402 : vector<1x128xi32>
    %c0_i32_143 = arith.constant 0 : i32
    %404 = vector.broadcast %c0_i32_143 : i32 to vector<1x128xi32>
    %405 = arith.cmpi sge, %403, %404 : vector<1x128xi32>
    %406 = arith.andi %401, %405 : vector<1x128xi1>
    %c1_i32_144 = arith.constant 1 : i32
    %407 = vector.broadcast %c1_i32_144 : i32 to vector<1x128xi32>
    %408 = arith.addi %350, %407 : vector<1x128xi32>
    %c8_i32_145 = arith.constant 8 : i32
    %409 = vector.broadcast %c8_i32_145 : i32 to vector<1x128xi32>
    %410 = arith.cmpi slt, %408, %409 : vector<1x128xi32>
    %411 = arith.andi %406, %410 : vector<1x128xi1>
    %412 = arith.extui %411 : vector<1x128xi1> to vector<1x128xi32>
    %413 = arith.sitofp %412 : vector<1x128xi32> to vector<1x128xf32>
    %c0_i32_146 = arith.constant 0 : i32
    %414 = vector.broadcast %c0_i32_146 : i32 to vector<1x128xi32>
    %415 = arith.addi %348, %414 : vector<1x128xi32>
    %c0_i32_147 = arith.constant 0 : i32
    %416 = vector.broadcast %c0_i32_147 : i32 to vector<1x128xi32>
    %417 = arith.cmpi sge, %415, %416 : vector<1x128xi32>
    %c0_i32_148 = arith.constant 0 : i32
    %418 = vector.broadcast %c0_i32_148 : i32 to vector<1x128xi32>
    %419 = arith.addi %348, %418 : vector<1x128xi32>
    %c8_i32_149 = arith.constant 8 : i32
    %420 = vector.broadcast %c8_i32_149 : i32 to vector<1x128xi32>
    %421 = arith.cmpi slt, %419, %420 : vector<1x128xi32>
    %422 = arith.andi %417, %421 : vector<1x128xi1>
    %c-1_i32_150 = arith.constant -1 : i32
    %423 = vector.broadcast %c-1_i32_150 : i32 to vector<1x128xi32>
    %424 = arith.addi %350, %423 : vector<1x128xi32>
    %c0_i32_151 = arith.constant 0 : i32
    %425 = vector.broadcast %c0_i32_151 : i32 to vector<1x128xi32>
    %426 = arith.cmpi sge, %424, %425 : vector<1x128xi32>
    %427 = arith.andi %422, %426 : vector<1x128xi1>
    %c-1_i32_152 = arith.constant -1 : i32
    %428 = vector.broadcast %c-1_i32_152 : i32 to vector<1x128xi32>
    %429 = arith.addi %350, %428 : vector<1x128xi32>
    %c8_i32_153 = arith.constant 8 : i32
    %430 = vector.broadcast %c8_i32_153 : i32 to vector<1x128xi32>
    %431 = arith.cmpi slt, %429, %430 : vector<1x128xi32>
    %432 = arith.andi %427, %431 : vector<1x128xi1>
    %433 = arith.extui %432 : vector<1x128xi1> to vector<1x128xi32>
    %434 = arith.sitofp %433 : vector<1x128xi32> to vector<1x128xf32>
    %c0_i32_154 = arith.constant 0 : i32
    %435 = vector.broadcast %c0_i32_154 : i32 to vector<1x128xi32>
    %436 = arith.addi %348, %435 : vector<1x128xi32>
    %c0_i32_155 = arith.constant 0 : i32
    %437 = vector.broadcast %c0_i32_155 : i32 to vector<1x128xi32>
    %438 = arith.cmpi sge, %436, %437 : vector<1x128xi32>
    %c0_i32_156 = arith.constant 0 : i32
    %439 = vector.broadcast %c0_i32_156 : i32 to vector<1x128xi32>
    %440 = arith.addi %348, %439 : vector<1x128xi32>
    %c8_i32_157 = arith.constant 8 : i32
    %441 = vector.broadcast %c8_i32_157 : i32 to vector<1x128xi32>
    %442 = arith.cmpi slt, %440, %441 : vector<1x128xi32>
    %443 = arith.andi %438, %442 : vector<1x128xi1>
    %c1_i32_158 = arith.constant 1 : i32
    %444 = vector.broadcast %c1_i32_158 : i32 to vector<1x128xi32>
    %445 = arith.addi %350, %444 : vector<1x128xi32>
    %c0_i32_159 = arith.constant 0 : i32
    %446 = vector.broadcast %c0_i32_159 : i32 to vector<1x128xi32>
    %447 = arith.cmpi sge, %445, %446 : vector<1x128xi32>
    %448 = arith.andi %443, %447 : vector<1x128xi1>
    %c1_i32_160 = arith.constant 1 : i32
    %449 = vector.broadcast %c1_i32_160 : i32 to vector<1x128xi32>
    %450 = arith.addi %350, %449 : vector<1x128xi32>
    %c8_i32_161 = arith.constant 8 : i32
    %451 = vector.broadcast %c8_i32_161 : i32 to vector<1x128xi32>
    %452 = arith.cmpi slt, %450, %451 : vector<1x128xi32>
    %453 = arith.andi %448, %452 : vector<1x128xi1>
    %454 = arith.extui %453 : vector<1x128xi1> to vector<1x128xi32>
    %455 = arith.sitofp %454 : vector<1x128xi32> to vector<1x128xf32>
    %c1_i32_162 = arith.constant 1 : i32
    %456 = vector.broadcast %c1_i32_162 : i32 to vector<1x128xi32>
    %457 = arith.addi %348, %456 : vector<1x128xi32>
    %c0_i32_163 = arith.constant 0 : i32
    %458 = vector.broadcast %c0_i32_163 : i32 to vector<1x128xi32>
    %459 = arith.cmpi sge, %457, %458 : vector<1x128xi32>
    %c1_i32_164 = arith.constant 1 : i32
    %460 = vector.broadcast %c1_i32_164 : i32 to vector<1x128xi32>
    %461 = arith.addi %348, %460 : vector<1x128xi32>
    %c8_i32_165 = arith.constant 8 : i32
    %462 = vector.broadcast %c8_i32_165 : i32 to vector<1x128xi32>
    %463 = arith.cmpi slt, %461, %462 : vector<1x128xi32>
    %464 = arith.andi %459, %463 : vector<1x128xi1>
    %c-1_i32_166 = arith.constant -1 : i32
    %465 = vector.broadcast %c-1_i32_166 : i32 to vector<1x128xi32>
    %466 = arith.addi %350, %465 : vector<1x128xi32>
    %c0_i32_167 = arith.constant 0 : i32
    %467 = vector.broadcast %c0_i32_167 : i32 to vector<1x128xi32>
    %468 = arith.cmpi sge, %466, %467 : vector<1x128xi32>
    %469 = arith.andi %464, %468 : vector<1x128xi1>
    %c-1_i32_168 = arith.constant -1 : i32
    %470 = vector.broadcast %c-1_i32_168 : i32 to vector<1x128xi32>
    %471 = arith.addi %350, %470 : vector<1x128xi32>
    %c8_i32_169 = arith.constant 8 : i32
    %472 = vector.broadcast %c8_i32_169 : i32 to vector<1x128xi32>
    %473 = arith.cmpi slt, %471, %472 : vector<1x128xi32>
    %474 = arith.andi %469, %473 : vector<1x128xi1>
    %475 = arith.extui %474 : vector<1x128xi1> to vector<1x128xi32>
    %476 = arith.sitofp %475 : vector<1x128xi32> to vector<1x128xf32>
    %c1_i32_170 = arith.constant 1 : i32
    %477 = vector.broadcast %c1_i32_170 : i32 to vector<1x128xi32>
    %478 = arith.addi %348, %477 : vector<1x128xi32>
    %c0_i32_171 = arith.constant 0 : i32
    %479 = vector.broadcast %c0_i32_171 : i32 to vector<1x128xi32>
    %480 = arith.cmpi sge, %478, %479 : vector<1x128xi32>
    %c1_i32_172 = arith.constant 1 : i32
    %481 = vector.broadcast %c1_i32_172 : i32 to vector<1x128xi32>
    %482 = arith.addi %348, %481 : vector<1x128xi32>
    %c8_i32_173 = arith.constant 8 : i32
    %483 = vector.broadcast %c8_i32_173 : i32 to vector<1x128xi32>
    %484 = arith.cmpi slt, %482, %483 : vector<1x128xi32>
    %485 = arith.andi %480, %484 : vector<1x128xi1>
    %c0_i32_174 = arith.constant 0 : i32
    %486 = vector.broadcast %c0_i32_174 : i32 to vector<1x128xi32>
    %487 = arith.addi %350, %486 : vector<1x128xi32>
    %c0_i32_175 = arith.constant 0 : i32
    %488 = vector.broadcast %c0_i32_175 : i32 to vector<1x128xi32>
    %489 = arith.cmpi sge, %487, %488 : vector<1x128xi32>
    %490 = arith.andi %485, %489 : vector<1x128xi1>
    %c0_i32_176 = arith.constant 0 : i32
    %491 = vector.broadcast %c0_i32_176 : i32 to vector<1x128xi32>
    %492 = arith.addi %350, %491 : vector<1x128xi32>
    %c8_i32_177 = arith.constant 8 : i32
    %493 = vector.broadcast %c8_i32_177 : i32 to vector<1x128xi32>
    %494 = arith.cmpi slt, %492, %493 : vector<1x128xi32>
    %495 = arith.andi %490, %494 : vector<1x128xi1>
    %496 = arith.extui %495 : vector<1x128xi1> to vector<1x128xi32>
    %497 = arith.sitofp %496 : vector<1x128xi32> to vector<1x128xf32>
    %c1_i32_178 = arith.constant 1 : i32
    %498 = vector.broadcast %c1_i32_178 : i32 to vector<1x128xi32>
    %499 = arith.addi %348, %498 : vector<1x128xi32>
    %c0_i32_179 = arith.constant 0 : i32
    %500 = vector.broadcast %c0_i32_179 : i32 to vector<1x128xi32>
    %501 = arith.cmpi sge, %499, %500 : vector<1x128xi32>
    %c1_i32_180 = arith.constant 1 : i32
    %502 = vector.broadcast %c1_i32_180 : i32 to vector<1x128xi32>
    %503 = arith.addi %348, %502 : vector<1x128xi32>
    %c8_i32_181 = arith.constant 8 : i32
    %504 = vector.broadcast %c8_i32_181 : i32 to vector<1x128xi32>
    %505 = arith.cmpi slt, %503, %504 : vector<1x128xi32>
    %506 = arith.andi %501, %505 : vector<1x128xi1>
    %c1_i32_182 = arith.constant 1 : i32
    %507 = vector.broadcast %c1_i32_182 : i32 to vector<1x128xi32>
    %508 = arith.addi %350, %507 : vector<1x128xi32>
    %c0_i32_183 = arith.constant 0 : i32
    %509 = vector.broadcast %c0_i32_183 : i32 to vector<1x128xi32>
    %510 = arith.cmpi sge, %508, %509 : vector<1x128xi32>
    %511 = arith.andi %506, %510 : vector<1x128xi1>
    %c1_i32_184 = arith.constant 1 : i32
    %512 = vector.broadcast %c1_i32_184 : i32 to vector<1x128xi32>
    %513 = arith.addi %350, %512 : vector<1x128xi32>
    %c8_i32_185 = arith.constant 8 : i32
    %514 = vector.broadcast %c8_i32_185 : i32 to vector<1x128xi32>
    %515 = arith.cmpi slt, %513, %514 : vector<1x128xi32>
    %516 = arith.andi %511, %515 : vector<1x128xi1>
    %517 = arith.extui %516 : vector<1x128xi1> to vector<1x128xi32>
    %518 = arith.sitofp %517 : vector<1x128xi32> to vector<1x128xf32>
    %c0 = arith.constant 0 : index
    %c0_186 = arith.constant 0 : index
    %c0_187 = arith.constant 0 : index
    %519 = vector.load %arg1[%c0, %c0_186, %c0_187] : memref<1x8x1024xf32, #tpu.memory_space<vmem>>, vector<1x8x1024xf32>
    %520 = vector.shape_cast %519 : vector<1x8x1024xf32> to vector<8x1024xf32>
    %c33_i32 = arith.constant 33 : i32
    %521 = tpu.dynamic_rotate %520 by %c33_i32 dim 1 : vector<8x1024xf32>, i32 -> vector<8x1024xf32>
    %522 = vector.broadcast %25 : vector<1x1024xf32> to vector<8x1024xf32>
    %523 = arith.mulf %521, %522 : vector<8x1024xf32>
    %c32_i32_188 = arith.constant 32 : i32
    %524 = tpu.dynamic_rotate %520 by %c32_i32_188 dim 1 : vector<8x1024xf32>, i32 -> vector<8x1024xf32>
    %525 = vector.broadcast %46 : vector<1x1024xf32> to vector<8x1024xf32>
    %526 = arith.mulf %524, %525 : vector<8x1024xf32>
    %c31_i32_189 = arith.constant 31 : i32
    %527 = tpu.dynamic_rotate %520 by %c31_i32_189 dim 1 : vector<8x1024xf32>, i32 -> vector<8x1024xf32>
    %528 = vector.broadcast %67 : vector<1x1024xf32> to vector<8x1024xf32>
    %529 = arith.mulf %527, %528 : vector<8x1024xf32>
    %c1_i32_190 = arith.constant 1 : i32
    %530 = tpu.dynamic_rotate %520 by %c1_i32_190 dim 1 : vector<8x1024xf32>, i32 -> vector<8x1024xf32>
    %531 = vector.broadcast %88 : vector<1x1024xf32> to vector<8x1024xf32>
    %532 = arith.mulf %530, %531 : vector<8x1024xf32>
    %c1023_i32 = arith.constant 1023 : i32
    %533 = tpu.dynamic_rotate %520 by %c1023_i32 dim 1 : vector<8x1024xf32>, i32 -> vector<8x1024xf32>
    %534 = vector.broadcast %109 : vector<1x1024xf32> to vector<8x1024xf32>
    %535 = arith.mulf %533, %534 : vector<8x1024xf32>
    %c993_i32 = arith.constant 993 : i32
    %536 = tpu.dynamic_rotate %520 by %c993_i32 dim 1 : vector<8x1024xf32>, i32 -> vector<8x1024xf32>
    %537 = vector.broadcast %130 : vector<1x1024xf32> to vector<8x1024xf32>
    %538 = arith.mulf %536, %537 : vector<8x1024xf32>
    %c992_i32 = arith.constant 992 : i32
    %539 = tpu.dynamic_rotate %520 by %c992_i32 dim 1 : vector<8x1024xf32>, i32 -> vector<8x1024xf32>
    %540 = vector.broadcast %151 : vector<1x1024xf32> to vector<8x1024xf32>
    %541 = arith.mulf %539, %540 : vector<8x1024xf32>
    %c991_i32 = arith.constant 991 : i32
    %542 = tpu.dynamic_rotate %520 by %c991_i32 dim 1 : vector<8x1024xf32>, i32 -> vector<8x1024xf32>
    %543 = vector.broadcast %172 : vector<1x1024xf32> to vector<8x1024xf32>
    %544 = arith.mulf %542, %543 : vector<8x1024xf32>
    %545 = tpu.concatenate %523, %526, %529, %532, %520, %535, %538, %541, %544 in 0 : vector<8x1024xf32>, vector<8x1024xf32>, vector<8x1024xf32>, vector<8x1024xf32>, vector<8x1024xf32>, vector<8x1024xf32>, vector<8x1024xf32>, vector<8x1024xf32>, vector<8x1024xf32> -> vector<72x1024xf32>
    %546 = arith.truncf %545 : vector<72x1024xf32> to vector<72x1024xbf16>
    %c0_191 = arith.constant 0 : index
    %c0_192 = arith.constant 0 : index
    %547 = vector.load %arg4[%c0_191, %c0_192] : memref<16x72xbf16, #tpu.memory_space<vmem>>, vector<16x72xbf16>
    %cst = arith.constant dense<0.000000e+00> : vector<16x1024xf32>
    %548 = tpu.matmul %547, %546, %cst {dimension_numbers = #tpu.dot_dimension_numbers<[1], [0], [0], [1], [0, 0, 1, 1], [], []>} : vector<16x72xbf16>, vector<72x1024xbf16>, vector<16x1024xf32> -> vector<16x1024xf32>
    %cst_193 = arith.constant 0.000000e+00 : f32
    %549 = vector.broadcast %cst_193 : f32 to vector<16x1024xf32>
    %550 = arith.maximumf %548, %549 : vector<16x1024xf32>
    %c0_194 = arith.constant 0 : index
    %c0_195 = arith.constant 0 : index
    %c0_196 = arith.constant 0 : index
    %551 = vector.load %arg5[%c0_194, %c0_195, %c0_196] : memref<2x16x1xf32, #tpu.memory_space<vmem>>, vector<1x16x1xf32>
    %552 = vector.shape_cast %551 : vector<1x16x1xf32> to vector<16x1xf32>
    %553 = vector.broadcast %552 : vector<16x1xf32> to vector<16x1024xf32>
    %554 = arith.mulf %550, %553 : vector<16x1024xf32>
    %c1 = arith.constant 1 : index
    %c0_197 = arith.constant 0 : index
    %c0_198 = arith.constant 0 : index
    %555 = vector.load %arg5[%c1, %c0_197, %c0_198] : memref<2x16x1xf32, #tpu.memory_space<vmem>>, vector<1x16x1xf32>
    %556 = vector.shape_cast %555 : vector<1x16x1xf32> to vector<16x1xf32>
    %557 = vector.broadcast %556 : vector<16x1xf32> to vector<16x1024xf32>
    %558 = arith.addf %554, %557 : vector<16x1024xf32>
    %c33_i32_199 = arith.constant 33 : i32
    %559 = tpu.dynamic_rotate %558 by %c33_i32_199 dim 1 : vector<16x1024xf32>, i32 -> vector<16x1024xf32>
    %560 = vector.broadcast %25 : vector<1x1024xf32> to vector<16x1024xf32>
    %561 = arith.mulf %559, %560 : vector<16x1024xf32>
    %c32_i32_200 = arith.constant 32 : i32
    %562 = tpu.dynamic_rotate %558 by %c32_i32_200 dim 1 : vector<16x1024xf32>, i32 -> vector<16x1024xf32>
    %563 = vector.broadcast %46 : vector<1x1024xf32> to vector<16x1024xf32>
    %564 = arith.mulf %562, %563 : vector<16x1024xf32>
    %c31_i32_201 = arith.constant 31 : i32
    %565 = tpu.dynamic_rotate %558 by %c31_i32_201 dim 1 : vector<16x1024xf32>, i32 -> vector<16x1024xf32>
    %566 = vector.broadcast %67 : vector<1x1024xf32> to vector<16x1024xf32>
    %567 = arith.mulf %565, %566 : vector<16x1024xf32>
    %c1_i32_202 = arith.constant 1 : i32
    %568 = tpu.dynamic_rotate %558 by %c1_i32_202 dim 1 : vector<16x1024xf32>, i32 -> vector<16x1024xf32>
    %569 = vector.broadcast %88 : vector<1x1024xf32> to vector<16x1024xf32>
    %570 = arith.mulf %568, %569 : vector<16x1024xf32>
    %c1023_i32_203 = arith.constant 1023 : i32
    %571 = tpu.dynamic_rotate %558 by %c1023_i32_203 dim 1 : vector<16x1024xf32>, i32 -> vector<16x1024xf32>
    %572 = vector.broadcast %109 : vector<1x1024xf32> to vector<16x1024xf32>
    %573 = arith.mulf %571, %572 : vector<16x1024xf32>
    %c993_i32_204 = arith.constant 993 : i32
    %574 = tpu.dynamic_rotate %558 by %c993_i32_204 dim 1 : vector<16x1024xf32>, i32 -> vector<16x1024xf32>
    %575 = vector.broadcast %130 : vector<1x1024xf32> to vector<16x1024xf32>
    %576 = arith.mulf %574, %575 : vector<16x1024xf32>
    %c992_i32_205 = arith.constant 992 : i32
    %577 = tpu.dynamic_rotate %558 by %c992_i32_205 dim 1 : vector<16x1024xf32>, i32 -> vector<16x1024xf32>
    %578 = vector.broadcast %151 : vector<1x1024xf32> to vector<16x1024xf32>
    %579 = arith.mulf %577, %578 : vector<16x1024xf32>
    %c991_i32_206 = arith.constant 991 : i32
    %580 = tpu.dynamic_rotate %558 by %c991_i32_206 dim 1 : vector<16x1024xf32>, i32 -> vector<16x1024xf32>
    %581 = vector.broadcast %172 : vector<1x1024xf32> to vector<16x1024xf32>
    %582 = arith.mulf %580, %581 : vector<16x1024xf32>
    %583 = tpu.concatenate %561, %564, %567, %570, %558, %573, %576, %579, %582 in 0 : vector<16x1024xf32>, vector<16x1024xf32>, vector<16x1024xf32>, vector<16x1024xf32>, vector<16x1024xf32>, vector<16x1024xf32>, vector<16x1024xf32>, vector<16x1024xf32>, vector<16x1024xf32> -> vector<144x1024xf32>
    %584 = arith.truncf %583 : vector<144x1024xf32> to vector<144x1024xbf16>
    %c0_207 = arith.constant 0 : index
    %c0_208 = arith.constant 0 : index
    %585 = vector.load %arg6[%c0_207, %c0_208] : memref<32x144xbf16, #tpu.memory_space<vmem>>, vector<32x144xbf16>
    %cst_209 = arith.constant dense<0.000000e+00> : vector<32x1024xf32>
    %586 = tpu.matmul %585, %584, %cst_209 {dimension_numbers = #tpu.dot_dimension_numbers<[1], [0], [0], [1], [0, 0, 1, 1], [], []>} : vector<32x144xbf16>, vector<144x1024xbf16>, vector<32x1024xf32> -> vector<32x1024xf32>
    %cst_210 = arith.constant 0.000000e+00 : f32
    %587 = vector.broadcast %cst_210 : f32 to vector<32x1024xf32>
    %588 = arith.maximumf %586, %587 : vector<32x1024xf32>
    %c0_211 = arith.constant 0 : index
    %c0_212 = arith.constant 0 : index
    %c0_213 = arith.constant 0 : index
    %589 = vector.load %arg7[%c0_211, %c0_212, %c0_213] : memref<2x32x1xf32, #tpu.memory_space<vmem>>, vector<1x32x1xf32>
    %590 = vector.shape_cast %589 : vector<1x32x1xf32> to vector<32x1xf32>
    %591 = vector.broadcast %590 : vector<32x1xf32> to vector<32x1024xf32>
    %592 = arith.mulf %588, %591 : vector<32x1024xf32>
    %c1_214 = arith.constant 1 : index
    %c0_215 = arith.constant 0 : index
    %c0_216 = arith.constant 0 : index
    %593 = vector.load %arg7[%c1_214, %c0_215, %c0_216] : memref<2x32x1xf32, #tpu.memory_space<vmem>>, vector<1x32x1xf32>
    %594 = vector.shape_cast %593 : vector<1x32x1xf32> to vector<32x1xf32>
    %595 = vector.broadcast %594 : vector<32x1xf32> to vector<32x1024xf32>
    %596 = arith.addf %592, %595 : vector<32x1024xf32>
    %c0_217 = arith.constant 0 : index
    %c0_218 = arith.constant 0 : index
    %597 = vector.load %arg8[%c0_217, %c0_218] : memref<8x32xbf16, #tpu.memory_space<vmem>>, vector<8x32xbf16>
    %598 = arith.truncf %596 : vector<32x1024xf32> to vector<32x1024xbf16>
    %cst_219 = arith.constant dense<0.000000e+00> : vector<8x1024xf32>
    %599 = tpu.matmul %597, %598, %cst_219 {dimension_numbers = #tpu.dot_dimension_numbers<[1], [0], [0], [1], [0, 0, 1, 1], [], []>} : vector<8x32xbf16>, vector<32x1024xbf16>, vector<8x1024xf32> -> vector<8x1024xf32>
    %cst_220 = arith.constant 0.000000e+00 : f32
    %600 = vector.broadcast %cst_220 : f32 to vector<8x1024xf32>
    %601 = arith.maximumf %599, %600 : vector<8x1024xf32>
    %c0_221 = arith.constant 0 : index
    %c0_222 = arith.constant 0 : index
    %c0_223 = arith.constant 0 : index
    %602 = vector.load %arg9[%c0_221, %c0_222, %c0_223] : memref<2x8x1xf32, #tpu.memory_space<vmem>>, vector<1x8x1xf32>
    %603 = vector.shape_cast %602 : vector<1x8x1xf32> to vector<8x1xf32>
    %604 = vector.broadcast %603 : vector<8x1xf32> to vector<8x1024xf32>
    %605 = arith.mulf %601, %604 : vector<8x1024xf32>
    %c1_224 = arith.constant 1 : index
    %c0_225 = arith.constant 0 : index
    %c0_226 = arith.constant 0 : index
    %606 = vector.load %arg9[%c1_224, %c0_225, %c0_226] : memref<2x8x1xf32, #tpu.memory_space<vmem>>, vector<1x8x1xf32>
    %607 = vector.shape_cast %606 : vector<1x8x1xf32> to vector<8x1xf32>
    %608 = vector.broadcast %607 : vector<8x1xf32> to vector<8x1024xf32>
    %609 = arith.addf %605, %608 : vector<8x1024xf32>
    %c0_227 = arith.constant 0 : index
    %c0_228 = arith.constant 0 : index
    %610 = vector.load %arg2[%c0_227, %c0_228] : memref<1024x256xbf16, #tpu.memory_space<vmem>>, vector<1024x256xbf16>
    %c1023_i32_229 = arith.constant 1023 : i32
    %611 = tpu.dynamic_rotate %609 by %c1023_i32_229 dim 1 : vector<8x1024xf32>, i32 -> vector<8x1024xf32>
    %612 = arith.maximumf %609, %611 : vector<8x1024xf32>
    %c992_i32_230 = arith.constant 992 : i32
    %613 = tpu.dynamic_rotate %609 by %c992_i32_230 dim 1 : vector<8x1024xf32>, i32 -> vector<8x1024xf32>
    %c991_i32_231 = arith.constant 991 : i32
    %614 = tpu.dynamic_rotate %609 by %c991_i32_231 dim 1 : vector<8x1024xf32>, i32 -> vector<8x1024xf32>
    %615 = arith.maximumf %613, %614 : vector<8x1024xf32>
    %616 = arith.maximumf %612, %615 : vector<8x1024xf32>
    %617 = arith.truncf %616 : vector<8x1024xf32> to vector<8x1024xbf16>
    %cst_232 = arith.constant dense<0.000000e+00> : vector<8x256xf32>
    %618 = tpu.matmul %617, %610, %cst_232 {dimension_numbers = #tpu.dot_dimension_numbers<[1], [0], [0], [1], [0, 0, 1, 1], [], []>} : vector<8x1024xbf16>, vector<1024x256xbf16>, vector<8x256xf32> -> vector<8x256xf32>
    %c17_i32 = arith.constant 17 : i32
    %619 = tpu.dynamic_rotate %618 by %c17_i32 dim 1 : vector<8x256xf32>, i32 -> vector<8x256xf32>
    %620 = vector.broadcast %198 : vector<1x256xf32> to vector<8x256xf32>
    %621 = arith.mulf %619, %620 : vector<8x256xf32>
    %c16_i32_233 = arith.constant 16 : i32
    %622 = tpu.dynamic_rotate %618 by %c16_i32_233 dim 1 : vector<8x256xf32>, i32 -> vector<8x256xf32>
    %623 = vector.broadcast %219 : vector<1x256xf32> to vector<8x256xf32>
    %624 = arith.mulf %622, %623 : vector<8x256xf32>
    %c15_i32_234 = arith.constant 15 : i32
    %625 = tpu.dynamic_rotate %618 by %c15_i32_234 dim 1 : vector<8x256xf32>, i32 -> vector<8x256xf32>
    %626 = vector.broadcast %240 : vector<1x256xf32> to vector<8x256xf32>
    %627 = arith.mulf %625, %626 : vector<8x256xf32>
    %c1_i32_235 = arith.constant 1 : i32
    %628 = tpu.dynamic_rotate %618 by %c1_i32_235 dim 1 : vector<8x256xf32>, i32 -> vector<8x256xf32>
    %629 = vector.broadcast %261 : vector<1x256xf32> to vector<8x256xf32>
    %630 = arith.mulf %628, %629 : vector<8x256xf32>
    %c255_i32 = arith.constant 255 : i32
    %631 = tpu.dynamic_rotate %618 by %c255_i32 dim 1 : vector<8x256xf32>, i32 -> vector<8x256xf32>
    %632 = vector.broadcast %282 : vector<1x256xf32> to vector<8x256xf32>
    %633 = arith.mulf %631, %632 : vector<8x256xf32>
    %c241_i32 = arith.constant 241 : i32
    %634 = tpu.dynamic_rotate %618 by %c241_i32 dim 1 : vector<8x256xf32>, i32 -> vector<8x256xf32>
    %635 = vector.broadcast %303 : vector<1x256xf32> to vector<8x256xf32>
    %636 = arith.mulf %634, %635 : vector<8x256xf32>
    %c240_i32 = arith.constant 240 : i32
    %637 = tpu.dynamic_rotate %618 by %c240_i32 dim 1 : vector<8x256xf32>, i32 -> vector<8x256xf32>
    %638 = vector.broadcast %324 : vector<1x256xf32> to vector<8x256xf32>
    %639 = arith.mulf %637, %638 : vector<8x256xf32>
    %c239_i32 = arith.constant 239 : i32
    %640 = tpu.dynamic_rotate %618 by %c239_i32 dim 1 : vector<8x256xf32>, i32 -> vector<8x256xf32>
    %641 = vector.broadcast %345 : vector<1x256xf32> to vector<8x256xf32>
    %642 = arith.mulf %640, %641 : vector<8x256xf32>
    %643 = tpu.concatenate %621, %624, %627, %630, %618, %633, %636, %639, %642 in 0 : vector<8x256xf32>, vector<8x256xf32>, vector<8x256xf32>, vector<8x256xf32>, vector<8x256xf32>, vector<8x256xf32>, vector<8x256xf32>, vector<8x256xf32>, vector<8x256xf32> -> vector<72x256xf32>
    %644 = arith.truncf %643 : vector<72x256xf32> to vector<72x256xbf16>
    %c0_236 = arith.constant 0 : index
    %c0_237 = arith.constant 0 : index
    %645 = vector.load %arg10[%c0_236, %c0_237] : memref<16x72xbf16, #tpu.memory_space<vmem>>, vector<16x72xbf16>
    %cst_238 = arith.constant dense<0.000000e+00> : vector<16x256xf32>
    %646 = tpu.matmul %645, %644, %cst_238 {dimension_numbers = #tpu.dot_dimension_numbers<[1], [0], [0], [1], [0, 0, 1, 1], [], []>} : vector<16x72xbf16>, vector<72x256xbf16>, vector<16x256xf32> -> vector<16x256xf32>
    %cst_239 = arith.constant 0.000000e+00 : f32
    %647 = vector.broadcast %cst_239 : f32 to vector<16x256xf32>
    %648 = arith.maximumf %646, %647 : vector<16x256xf32>
    %c0_240 = arith.constant 0 : index
    %c0_241 = arith.constant 0 : index
    %c0_242 = arith.constant 0 : index
    %649 = vector.load %arg11[%c0_240, %c0_241, %c0_242] : memref<2x16x1xf32, #tpu.memory_space<vmem>>, vector<1x16x1xf32>
    %650 = vector.shape_cast %649 : vector<1x16x1xf32> to vector<16x1xf32>
    %651 = vector.broadcast %650 : vector<16x1xf32> to vector<16x256xf32>
    %652 = arith.mulf %648, %651 : vector<16x256xf32>
    %c1_243 = arith.constant 1 : index
    %c0_244 = arith.constant 0 : index
    %c0_245 = arith.constant 0 : index
    %653 = vector.load %arg11[%c1_243, %c0_244, %c0_245] : memref<2x16x1xf32, #tpu.memory_space<vmem>>, vector<1x16x1xf32>
    %654 = vector.shape_cast %653 : vector<1x16x1xf32> to vector<16x1xf32>
    %655 = vector.broadcast %654 : vector<16x1xf32> to vector<16x256xf32>
    %656 = arith.addf %652, %655 : vector<16x256xf32>
    %c17_i32_246 = arith.constant 17 : i32
    %657 = tpu.dynamic_rotate %656 by %c17_i32_246 dim 1 : vector<16x256xf32>, i32 -> vector<16x256xf32>
    %658 = vector.broadcast %198 : vector<1x256xf32> to vector<16x256xf32>
    %659 = arith.mulf %657, %658 : vector<16x256xf32>
    %c16_i32_247 = arith.constant 16 : i32
    %660 = tpu.dynamic_rotate %656 by %c16_i32_247 dim 1 : vector<16x256xf32>, i32 -> vector<16x256xf32>
    %661 = vector.broadcast %219 : vector<1x256xf32> to vector<16x256xf32>
    %662 = arith.mulf %660, %661 : vector<16x256xf32>
    %c15_i32_248 = arith.constant 15 : i32
    %663 = tpu.dynamic_rotate %656 by %c15_i32_248 dim 1 : vector<16x256xf32>, i32 -> vector<16x256xf32>
    %664 = vector.broadcast %240 : vector<1x256xf32> to vector<16x256xf32>
    %665 = arith.mulf %663, %664 : vector<16x256xf32>
    %c1_i32_249 = arith.constant 1 : i32
    %666 = tpu.dynamic_rotate %656 by %c1_i32_249 dim 1 : vector<16x256xf32>, i32 -> vector<16x256xf32>
    %667 = vector.broadcast %261 : vector<1x256xf32> to vector<16x256xf32>
    %668 = arith.mulf %666, %667 : vector<16x256xf32>
    %c255_i32_250 = arith.constant 255 : i32
    %669 = tpu.dynamic_rotate %656 by %c255_i32_250 dim 1 : vector<16x256xf32>, i32 -> vector<16x256xf32>
    %670 = vector.broadcast %282 : vector<1x256xf32> to vector<16x256xf32>
    %671 = arith.mulf %669, %670 : vector<16x256xf32>
    %c241_i32_251 = arith.constant 241 : i32
    %672 = tpu.dynamic_rotate %656 by %c241_i32_251 dim 1 : vector<16x256xf32>, i32 -> vector<16x256xf32>
    %673 = vector.broadcast %303 : vector<1x256xf32> to vector<16x256xf32>
    %674 = arith.mulf %672, %673 : vector<16x256xf32>
    %c240_i32_252 = arith.constant 240 : i32
    %675 = tpu.dynamic_rotate %656 by %c240_i32_252 dim 1 : vector<16x256xf32>, i32 -> vector<16x256xf32>
    %676 = vector.broadcast %324 : vector<1x256xf32> to vector<16x256xf32>
    %677 = arith.mulf %675, %676 : vector<16x256xf32>
    %c239_i32_253 = arith.constant 239 : i32
    %678 = tpu.dynamic_rotate %656 by %c239_i32_253 dim 1 : vector<16x256xf32>, i32 -> vector<16x256xf32>
    %679 = vector.broadcast %345 : vector<1x256xf32> to vector<16x256xf32>
    %680 = arith.mulf %678, %679 : vector<16x256xf32>
    %681 = tpu.concatenate %659, %662, %665, %668, %656, %671, %674, %677, %680 in 0 : vector<16x256xf32>, vector<16x256xf32>, vector<16x256xf32>, vector<16x256xf32>, vector<16x256xf32>, vector<16x256xf32>, vector<16x256xf32>, vector<16x256xf32>, vector<16x256xf32> -> vector<144x256xf32>
    %682 = arith.truncf %681 : vector<144x256xf32> to vector<144x256xbf16>
    %c0_254 = arith.constant 0 : index
    %c0_255 = arith.constant 0 : index
    %683 = vector.load %arg12[%c0_254, %c0_255] : memref<32x144xbf16, #tpu.memory_space<vmem>>, vector<32x144xbf16>
    %cst_256 = arith.constant dense<0.000000e+00> : vector<32x256xf32>
    %684 = tpu.matmul %683, %682, %cst_256 {dimension_numbers = #tpu.dot_dimension_numbers<[1], [0], [0], [1], [0, 0, 1, 1], [], []>} : vector<32x144xbf16>, vector<144x256xbf16>, vector<32x256xf32> -> vector<32x256xf32>
    %cst_257 = arith.constant 0.000000e+00 : f32
    %685 = vector.broadcast %cst_257 : f32 to vector<32x256xf32>
    %686 = arith.maximumf %684, %685 : vector<32x256xf32>
    %c0_258 = arith.constant 0 : index
    %c0_259 = arith.constant 0 : index
    %c0_260 = arith.constant 0 : index
    %687 = vector.load %arg13[%c0_258, %c0_259, %c0_260] : memref<2x32x1xf32, #tpu.memory_space<vmem>>, vector<1x32x1xf32>
    %688 = vector.shape_cast %687 : vector<1x32x1xf32> to vector<32x1xf32>
    %689 = vector.broadcast %688 : vector<32x1xf32> to vector<32x256xf32>
    %690 = arith.mulf %686, %689 : vector<32x256xf32>
    %c1_261 = arith.constant 1 : index
    %c0_262 = arith.constant 0 : index
    %c0_263 = arith.constant 0 : index
    %691 = vector.load %arg13[%c1_261, %c0_262, %c0_263] : memref<2x32x1xf32, #tpu.memory_space<vmem>>, vector<1x32x1xf32>
    %692 = vector.shape_cast %691 : vector<1x32x1xf32> to vector<32x1xf32>
    %693 = vector.broadcast %692 : vector<32x1xf32> to vector<32x256xf32>
    %694 = arith.addf %690, %693 : vector<32x256xf32>
    %c17_i32_264 = arith.constant 17 : i32
    %695 = tpu.dynamic_rotate %694 by %c17_i32_264 dim 1 : vector<32x256xf32>, i32 -> vector<32x256xf32>
    %696 = vector.broadcast %198 : vector<1x256xf32> to vector<32x256xf32>
    %697 = arith.mulf %695, %696 : vector<32x256xf32>
    %c16_i32_265 = arith.constant 16 : i32
    %698 = tpu.dynamic_rotate %694 by %c16_i32_265 dim 1 : vector<32x256xf32>, i32 -> vector<32x256xf32>
    %699 = vector.broadcast %219 : vector<1x256xf32> to vector<32x256xf32>
    %700 = arith.mulf %698, %699 : vector<32x256xf32>
    %c15_i32_266 = arith.constant 15 : i32
    %701 = tpu.dynamic_rotate %694 by %c15_i32_266 dim 1 : vector<32x256xf32>, i32 -> vector<32x256xf32>
    %702 = vector.broadcast %240 : vector<1x256xf32> to vector<32x256xf32>
    %703 = arith.mulf %701, %702 : vector<32x256xf32>
    %c1_i32_267 = arith.constant 1 : i32
    %704 = tpu.dynamic_rotate %694 by %c1_i32_267 dim 1 : vector<32x256xf32>, i32 -> vector<32x256xf32>
    %705 = vector.broadcast %261 : vector<1x256xf32> to vector<32x256xf32>
    %706 = arith.mulf %704, %705 : vector<32x256xf32>
    %c255_i32_268 = arith.constant 255 : i32
    %707 = tpu.dynamic_rotate %694 by %c255_i32_268 dim 1 : vector<32x256xf32>, i32 -> vector<32x256xf32>
    %708 = vector.broadcast %282 : vector<1x256xf32> to vector<32x256xf32>
    %709 = arith.mulf %707, %708 : vector<32x256xf32>
    %c241_i32_269 = arith.constant 241 : i32
    %710 = tpu.dynamic_rotate %694 by %c241_i32_269 dim 1 : vector<32x256xf32>, i32 -> vector<32x256xf32>
    %711 = vector.broadcast %303 : vector<1x256xf32> to vector<32x256xf32>
    %712 = arith.mulf %710, %711 : vector<32x256xf32>
    %c240_i32_270 = arith.constant 240 : i32
    %713 = tpu.dynamic_rotate %694 by %c240_i32_270 dim 1 : vector<32x256xf32>, i32 -> vector<32x256xf32>
    %714 = vector.broadcast %324 : vector<1x256xf32> to vector<32x256xf32>
    %715 = arith.mulf %713, %714 : vector<32x256xf32>
    %c239_i32_271 = arith.constant 239 : i32
    %716 = tpu.dynamic_rotate %694 by %c239_i32_271 dim 1 : vector<32x256xf32>, i32 -> vector<32x256xf32>
    %717 = vector.broadcast %345 : vector<1x256xf32> to vector<32x256xf32>
    %718 = arith.mulf %716, %717 : vector<32x256xf32>
    %719 = tpu.concatenate %697, %700, %703, %706, %694, %709, %712, %715, %718 in 0 : vector<32x256xf32>, vector<32x256xf32>, vector<32x256xf32>, vector<32x256xf32>, vector<32x256xf32>, vector<32x256xf32>, vector<32x256xf32>, vector<32x256xf32>, vector<32x256xf32> -> vector<288x256xf32>
    %720 = arith.truncf %719 : vector<288x256xf32> to vector<288x256xbf16>
    %c0_272 = arith.constant 0 : index
    %c0_273 = arith.constant 0 : index
    %721 = vector.load %arg14[%c0_272, %c0_273] : memref<32x288xbf16, #tpu.memory_space<vmem>>, vector<32x288xbf16>
    %cst_274 = arith.constant dense<0.000000e+00> : vector<32x256xf32>
    %722 = tpu.matmul %721, %720, %cst_274 {dimension_numbers = #tpu.dot_dimension_numbers<[1], [0], [0], [1], [0, 0, 1, 1], [], []>} : vector<32x288xbf16>, vector<288x256xbf16>, vector<32x256xf32> -> vector<32x256xf32>
    %cst_275 = arith.constant 0.000000e+00 : f32
    %723 = vector.broadcast %cst_275 : f32 to vector<32x256xf32>
    %724 = arith.maximumf %722, %723 : vector<32x256xf32>
    %c0_276 = arith.constant 0 : index
    %c0_277 = arith.constant 0 : index
    %c0_278 = arith.constant 0 : index
    %725 = vector.load %arg15[%c0_276, %c0_277, %c0_278] : memref<2x32x1xf32, #tpu.memory_space<vmem>>, vector<1x32x1xf32>
    %726 = vector.shape_cast %725 : vector<1x32x1xf32> to vector<32x1xf32>
    %727 = vector.broadcast %726 : vector<32x1xf32> to vector<32x256xf32>
    %728 = arith.mulf %724, %727 : vector<32x256xf32>
    %c1_279 = arith.constant 1 : index
    %c0_280 = arith.constant 0 : index
    %c0_281 = arith.constant 0 : index
    %729 = vector.load %arg15[%c1_279, %c0_280, %c0_281] : memref<2x32x1xf32, #tpu.memory_space<vmem>>, vector<1x32x1xf32>
    %730 = vector.shape_cast %729 : vector<1x32x1xf32> to vector<32x1xf32>
    %731 = vector.broadcast %730 : vector<32x1xf32> to vector<32x256xf32>
    %732 = arith.addf %728, %731 : vector<32x256xf32>
    %c0_282 = arith.constant 0 : index
    %c0_283 = arith.constant 0 : index
    %733 = vector.load %arg16[%c0_282, %c0_283] : memref<8x32xbf16, #tpu.memory_space<vmem>>, vector<8x32xbf16>
    %734 = arith.truncf %732 : vector<32x256xf32> to vector<32x256xbf16>
    %cst_284 = arith.constant dense<0.000000e+00> : vector<8x256xf32>
    %735 = tpu.matmul %733, %734, %cst_284 {dimension_numbers = #tpu.dot_dimension_numbers<[1], [0], [0], [1], [0, 0, 1, 1], [], []>} : vector<8x32xbf16>, vector<32x256xbf16>, vector<8x256xf32> -> vector<8x256xf32>
    %cst_285 = arith.constant 0.000000e+00 : f32
    %736 = vector.broadcast %cst_285 : f32 to vector<8x256xf32>
    %737 = arith.maximumf %735, %736 : vector<8x256xf32>
    %c0_286 = arith.constant 0 : index
    %c0_287 = arith.constant 0 : index
    %c0_288 = arith.constant 0 : index
    %738 = vector.load %arg17[%c0_286, %c0_287, %c0_288] : memref<2x8x1xf32, #tpu.memory_space<vmem>>, vector<1x8x1xf32>
    %739 = vector.shape_cast %738 : vector<1x8x1xf32> to vector<8x1xf32>
    %740 = vector.broadcast %739 : vector<8x1xf32> to vector<8x256xf32>
    %741 = arith.mulf %737, %740 : vector<8x256xf32>
    %c1_289 = arith.constant 1 : index
    %c0_290 = arith.constant 0 : index
    %c0_291 = arith.constant 0 : index
    %742 = vector.load %arg17[%c1_289, %c0_290, %c0_291] : memref<2x8x1xf32, #tpu.memory_space<vmem>>, vector<1x8x1xf32>
    %743 = vector.shape_cast %742 : vector<1x8x1xf32> to vector<8x1xf32>
    %744 = vector.broadcast %743 : vector<8x1xf32> to vector<8x256xf32>
    %745 = arith.addf %741, %744 : vector<8x256xf32>
    %c0_292 = arith.constant 0 : index
    %c0_293 = arith.constant 0 : index
    %746 = vector.load %arg3[%c0_292, %c0_293] : memref<256x128xbf16, #tpu.memory_space<vmem>>, vector<256x128xbf16>
    %c255_i32_294 = arith.constant 255 : i32
    %747 = tpu.dynamic_rotate %745 by %c255_i32_294 dim 1 : vector<8x256xf32>, i32 -> vector<8x256xf32>
    %748 = arith.maximumf %745, %747 : vector<8x256xf32>
    %c240_i32_295 = arith.constant 240 : i32
    %749 = tpu.dynamic_rotate %745 by %c240_i32_295 dim 1 : vector<8x256xf32>, i32 -> vector<8x256xf32>
    %c239_i32_296 = arith.constant 239 : i32
    %750 = tpu.dynamic_rotate %745 by %c239_i32_296 dim 1 : vector<8x256xf32>, i32 -> vector<8x256xf32>
    %751 = arith.maximumf %749, %750 : vector<8x256xf32>
    %752 = arith.maximumf %748, %751 : vector<8x256xf32>
    %753 = arith.truncf %752 : vector<8x256xf32> to vector<8x256xbf16>
    %cst_297 = arith.constant dense<0.000000e+00> : vector<8x128xf32>
    %754 = tpu.matmul %753, %746, %cst_297 {dimension_numbers = #tpu.dot_dimension_numbers<[1], [0], [0], [1], [0, 0, 1, 1], [], []>} : vector<8x256xbf16>, vector<256x128xbf16>, vector<8x128xf32> -> vector<8x128xf32>
    %c9_i32 = arith.constant 9 : i32
    %755 = tpu.dynamic_rotate %754 by %c9_i32 dim 1 : vector<8x128xf32>, i32 -> vector<8x128xf32>
    %756 = vector.broadcast %371 : vector<1x128xf32> to vector<8x128xf32>
    %757 = arith.mulf %755, %756 : vector<8x128xf32>
    %c8_i32_298 = arith.constant 8 : i32
    %758 = tpu.dynamic_rotate %754 by %c8_i32_298 dim 1 : vector<8x128xf32>, i32 -> vector<8x128xf32>
    %759 = vector.broadcast %392 : vector<1x128xf32> to vector<8x128xf32>
    %760 = arith.mulf %758, %759 : vector<8x128xf32>
    %c7_i32_299 = arith.constant 7 : i32
    %761 = tpu.dynamic_rotate %754 by %c7_i32_299 dim 1 : vector<8x128xf32>, i32 -> vector<8x128xf32>
    %762 = vector.broadcast %413 : vector<1x128xf32> to vector<8x128xf32>
    %763 = arith.mulf %761, %762 : vector<8x128xf32>
    %c1_i32_300 = arith.constant 1 : i32
    %764 = tpu.dynamic_rotate %754 by %c1_i32_300 dim 1 : vector<8x128xf32>, i32 -> vector<8x128xf32>
    %765 = vector.broadcast %434 : vector<1x128xf32> to vector<8x128xf32>
    %766 = arith.mulf %764, %765 : vector<8x128xf32>
    %c127_i32 = arith.constant 127 : i32
    %767 = tpu.dynamic_rotate %754 by %c127_i32 dim 1 : vector<8x128xf32>, i32 -> vector<8x128xf32>
    %768 = vector.broadcast %455 : vector<1x128xf32> to vector<8x128xf32>
    %769 = arith.mulf %767, %768 : vector<8x128xf32>
    %c121_i32 = arith.constant 121 : i32
    %770 = tpu.dynamic_rotate %754 by %c121_i32 dim 1 : vector<8x128xf32>, i32 -> vector<8x128xf32>
    %771 = vector.broadcast %476 : vector<1x128xf32> to vector<8x128xf32>
    %772 = arith.mulf %770, %771 : vector<8x128xf32>
    %c120_i32 = arith.constant 120 : i32
    %773 = tpu.dynamic_rotate %754 by %c120_i32 dim 1 : vector<8x128xf32>, i32 -> vector<8x128xf32>
    %774 = vector.broadcast %497 : vector<1x128xf32> to vector<8x128xf32>
    %775 = arith.mulf %773, %774 : vector<8x128xf32>
    %c119_i32 = arith.constant 119 : i32
    %776 = tpu.dynamic_rotate %754 by %c119_i32 dim 1 : vector<8x128xf32>, i32 -> vector<8x128xf32>
    %777 = vector.broadcast %518 : vector<1x128xf32> to vector<8x128xf32>
    %778 = arith.mulf %776, %777 : vector<8x128xf32>
    %779 = tpu.concatenate %757, %760, %763, %766, %754, %769, %772, %775, %778 in 0 : vector<8x128xf32>, vector<8x128xf32>, vector<8x128xf32>, vector<8x128xf32>, vector<8x128xf32>, vector<8x128xf32>, vector<8x128xf32>, vector<8x128xf32>, vector<8x128xf32> -> vector<72x128xf32>
    %780 = arith.truncf %779 : vector<72x128xf32> to vector<72x128xbf16>
    %c0_301 = arith.constant 0 : index
    %c0_302 = arith.constant 0 : index
    %781 = vector.load %arg18[%c0_301, %c0_302] : memref<16x72xbf16, #tpu.memory_space<vmem>>, vector<16x72xbf16>
    %cst_303 = arith.constant dense<0.000000e+00> : vector<16x128xf32>
    %782 = tpu.matmul %781, %780, %cst_303 {dimension_numbers = #tpu.dot_dimension_numbers<[1], [0], [0], [1], [0, 0, 1, 1], [], []>} : vector<16x72xbf16>, vector<72x128xbf16>, vector<16x128xf32> -> vector<16x128xf32>
    %cst_304 = arith.constant 0.000000e+00 : f32
    %783 = vector.broadcast %cst_304 : f32 to vector<16x128xf32>
    %784 = arith.maximumf %782, %783 : vector<16x128xf32>
    %c0_305 = arith.constant 0 : index
    %c0_306 = arith.constant 0 : index
    %c0_307 = arith.constant 0 : index
    %785 = vector.load %arg19[%c0_305, %c0_306, %c0_307] : memref<2x16x1xf32, #tpu.memory_space<vmem>>, vector<1x16x1xf32>
    %786 = vector.shape_cast %785 : vector<1x16x1xf32> to vector<16x1xf32>
    %787 = vector.broadcast %786 : vector<16x1xf32> to vector<16x128xf32>
    %788 = arith.mulf %784, %787 : vector<16x128xf32>
    %c1_308 = arith.constant 1 : index
    %c0_309 = arith.constant 0 : index
    %c0_310 = arith.constant 0 : index
    %789 = vector.load %arg19[%c1_308, %c0_309, %c0_310] : memref<2x16x1xf32, #tpu.memory_space<vmem>>, vector<1x16x1xf32>
    %790 = vector.shape_cast %789 : vector<1x16x1xf32> to vector<16x1xf32>
    %791 = vector.broadcast %790 : vector<16x1xf32> to vector<16x128xf32>
    %792 = arith.addf %788, %791 : vector<16x128xf32>
    %c9_i32_311 = arith.constant 9 : i32
    %793 = tpu.dynamic_rotate %792 by %c9_i32_311 dim 1 : vector<16x128xf32>, i32 -> vector<16x128xf32>
    %794 = vector.broadcast %371 : vector<1x128xf32> to vector<16x128xf32>
    %795 = arith.mulf %793, %794 : vector<16x128xf32>
    %c8_i32_312 = arith.constant 8 : i32
    %796 = tpu.dynamic_rotate %792 by %c8_i32_312 dim 1 : vector<16x128xf32>, i32 -> vector<16x128xf32>
    %797 = vector.broadcast %392 : vector<1x128xf32> to vector<16x128xf32>
    %798 = arith.mulf %796, %797 : vector<16x128xf32>
    %c7_i32_313 = arith.constant 7 : i32
    %799 = tpu.dynamic_rotate %792 by %c7_i32_313 dim 1 : vector<16x128xf32>, i32 -> vector<16x128xf32>
    %800 = vector.broadcast %413 : vector<1x128xf32> to vector<16x128xf32>
    %801 = arith.mulf %799, %800 : vector<16x128xf32>
    %c1_i32_314 = arith.constant 1 : i32
    %802 = tpu.dynamic_rotate %792 by %c1_i32_314 dim 1 : vector<16x128xf32>, i32 -> vector<16x128xf32>
    %803 = vector.broadcast %434 : vector<1x128xf32> to vector<16x128xf32>
    %804 = arith.mulf %802, %803 : vector<16x128xf32>
    %c127_i32_315 = arith.constant 127 : i32
    %805 = tpu.dynamic_rotate %792 by %c127_i32_315 dim 1 : vector<16x128xf32>, i32 -> vector<16x128xf32>
    %806 = vector.broadcast %455 : vector<1x128xf32> to vector<16x128xf32>
    %807 = arith.mulf %805, %806 : vector<16x128xf32>
    %c121_i32_316 = arith.constant 121 : i32
    %808 = tpu.dynamic_rotate %792 by %c121_i32_316 dim 1 : vector<16x128xf32>, i32 -> vector<16x128xf32>
    %809 = vector.broadcast %476 : vector<1x128xf32> to vector<16x128xf32>
    %810 = arith.mulf %808, %809 : vector<16x128xf32>
    %c120_i32_317 = arith.constant 120 : i32
    %811 = tpu.dynamic_rotate %792 by %c120_i32_317 dim 1 : vector<16x128xf32>, i32 -> vector<16x128xf32>
    %812 = vector.broadcast %497 : vector<1x128xf32> to vector<16x128xf32>
    %813 = arith.mulf %811, %812 : vector<16x128xf32>
    %c119_i32_318 = arith.constant 119 : i32
    %814 = tpu.dynamic_rotate %792 by %c119_i32_318 dim 1 : vector<16x128xf32>, i32 -> vector<16x128xf32>
    %815 = vector.broadcast %518 : vector<1x128xf32> to vector<16x128xf32>
    %816 = arith.mulf %814, %815 : vector<16x128xf32>
    %817 = tpu.concatenate %795, %798, %801, %804, %792, %807, %810, %813, %816 in 0 : vector<16x128xf32>, vector<16x128xf32>, vector<16x128xf32>, vector<16x128xf32>, vector<16x128xf32>, vector<16x128xf32>, vector<16x128xf32>, vector<16x128xf32>, vector<16x128xf32> -> vector<144x128xf32>
    %818 = arith.truncf %817 : vector<144x128xf32> to vector<144x128xbf16>
    %c0_319 = arith.constant 0 : index
    %c0_320 = arith.constant 0 : index
    %819 = vector.load %arg20[%c0_319, %c0_320] : memref<32x144xbf16, #tpu.memory_space<vmem>>, vector<32x144xbf16>
    %cst_321 = arith.constant dense<0.000000e+00> : vector<32x128xf32>
    %820 = tpu.matmul %819, %818, %cst_321 {dimension_numbers = #tpu.dot_dimension_numbers<[1], [0], [0], [1], [0, 0, 1, 1], [], []>} : vector<32x144xbf16>, vector<144x128xbf16>, vector<32x128xf32> -> vector<32x128xf32>
    %cst_322 = arith.constant 0.000000e+00 : f32
    %821 = vector.broadcast %cst_322 : f32 to vector<32x128xf32>
    %822 = arith.maximumf %820, %821 : vector<32x128xf32>
    %c0_323 = arith.constant 0 : index
    %c0_324 = arith.constant 0 : index
    %c0_325 = arith.constant 0 : index
    %823 = vector.load %arg21[%c0_323, %c0_324, %c0_325] : memref<2x32x1xf32, #tpu.memory_space<vmem>>, vector<1x32x1xf32>
    %824 = vector.shape_cast %823 : vector<1x32x1xf32> to vector<32x1xf32>
    %825 = vector.broadcast %824 : vector<32x1xf32> to vector<32x128xf32>
    %826 = arith.mulf %822, %825 : vector<32x128xf32>
    %c1_326 = arith.constant 1 : index
    %c0_327 = arith.constant 0 : index
    %c0_328 = arith.constant 0 : index
    %827 = vector.load %arg21[%c1_326, %c0_327, %c0_328] : memref<2x32x1xf32, #tpu.memory_space<vmem>>, vector<1x32x1xf32>
    %828 = vector.shape_cast %827 : vector<1x32x1xf32> to vector<32x1xf32>
    %829 = vector.broadcast %828 : vector<32x1xf32> to vector<32x128xf32>
    %830 = arith.addf %826, %829 : vector<32x128xf32>
    %c9_i32_329 = arith.constant 9 : i32
    %831 = tpu.dynamic_rotate %830 by %c9_i32_329 dim 1 : vector<32x128xf32>, i32 -> vector<32x128xf32>
    %832 = vector.broadcast %371 : vector<1x128xf32> to vector<32x128xf32>
    %833 = arith.mulf %831, %832 : vector<32x128xf32>
    %c8_i32_330 = arith.constant 8 : i32
    %834 = tpu.dynamic_rotate %830 by %c8_i32_330 dim 1 : vector<32x128xf32>, i32 -> vector<32x128xf32>
    %835 = vector.broadcast %392 : vector<1x128xf32> to vector<32x128xf32>
    %836 = arith.mulf %834, %835 : vector<32x128xf32>
    %c7_i32_331 = arith.constant 7 : i32
    %837 = tpu.dynamic_rotate %830 by %c7_i32_331 dim 1 : vector<32x128xf32>, i32 -> vector<32x128xf32>
    %838 = vector.broadcast %413 : vector<1x128xf32> to vector<32x128xf32>
    %839 = arith.mulf %837, %838 : vector<32x128xf32>
    %c1_i32_332 = arith.constant 1 : i32
    %840 = tpu.dynamic_rotate %830 by %c1_i32_332 dim 1 : vector<32x128xf32>, i32 -> vector<32x128xf32>
    %841 = vector.broadcast %434 : vector<1x128xf32> to vector<32x128xf32>
    %842 = arith.mulf %840, %841 : vector<32x128xf32>
    %c127_i32_333 = arith.constant 127 : i32
    %843 = tpu.dynamic_rotate %830 by %c127_i32_333 dim 1 : vector<32x128xf32>, i32 -> vector<32x128xf32>
    %844 = vector.broadcast %455 : vector<1x128xf32> to vector<32x128xf32>
    %845 = arith.mulf %843, %844 : vector<32x128xf32>
    %c121_i32_334 = arith.constant 121 : i32
    %846 = tpu.dynamic_rotate %830 by %c121_i32_334 dim 1 : vector<32x128xf32>, i32 -> vector<32x128xf32>
    %847 = vector.broadcast %476 : vector<1x128xf32> to vector<32x128xf32>
    %848 = arith.mulf %846, %847 : vector<32x128xf32>
    %c120_i32_335 = arith.constant 120 : i32
    %849 = tpu.dynamic_rotate %830 by %c120_i32_335 dim 1 : vector<32x128xf32>, i32 -> vector<32x128xf32>
    %850 = vector.broadcast %497 : vector<1x128xf32> to vector<32x128xf32>
    %851 = arith.mulf %849, %850 : vector<32x128xf32>
    %c119_i32_336 = arith.constant 119 : i32
    %852 = tpu.dynamic_rotate %830 by %c119_i32_336 dim 1 : vector<32x128xf32>, i32 -> vector<32x128xf32>
    %853 = vector.broadcast %518 : vector<1x128xf32> to vector<32x128xf32>
    %854 = arith.mulf %852, %853 : vector<32x128xf32>
    %855 = tpu.concatenate %833, %836, %839, %842, %830, %845, %848, %851, %854 in 0 : vector<32x128xf32>, vector<32x128xf32>, vector<32x128xf32>, vector<32x128xf32>, vector<32x128xf32>, vector<32x128xf32>, vector<32x128xf32>, vector<32x128xf32>, vector<32x128xf32> -> vector<288x128xf32>
    %856 = arith.truncf %855 : vector<288x128xf32> to vector<288x128xbf16>
    %c0_337 = arith.constant 0 : index
    %c0_338 = arith.constant 0 : index
    %857 = vector.load %arg22[%c0_337, %c0_338] : memref<32x288xbf16, #tpu.memory_space<vmem>>, vector<32x288xbf16>
    %cst_339 = arith.constant dense<0.000000e+00> : vector<32x128xf32>
    %858 = tpu.matmul %857, %856, %cst_339 {dimension_numbers = #tpu.dot_dimension_numbers<[1], [0], [0], [1], [0, 0, 1, 1], [], []>} : vector<32x288xbf16>, vector<288x128xbf16>, vector<32x128xf32> -> vector<32x128xf32>
    %cst_340 = arith.constant 0.000000e+00 : f32
    %859 = vector.broadcast %cst_340 : f32 to vector<32x128xf32>
    %860 = arith.maximumf %858, %859 : vector<32x128xf32>
    %c0_341 = arith.constant 0 : index
    %c0_342 = arith.constant 0 : index
    %c0_343 = arith.constant 0 : index
    %861 = vector.load %arg23[%c0_341, %c0_342, %c0_343] : memref<2x32x1xf32, #tpu.memory_space<vmem>>, vector<1x32x1xf32>
    %862 = vector.shape_cast %861 : vector<1x32x1xf32> to vector<32x1xf32>
    %863 = vector.broadcast %862 : vector<32x1xf32> to vector<32x128xf32>
    %864 = arith.mulf %860, %863 : vector<32x128xf32>
    %c1_344 = arith.constant 1 : index
    %c0_345 = arith.constant 0 : index
    %c0_346 = arith.constant 0 : index
    %865 = vector.load %arg23[%c1_344, %c0_345, %c0_346] : memref<2x32x1xf32, #tpu.memory_space<vmem>>, vector<1x32x1xf32>
    %866 = vector.shape_cast %865 : vector<1x32x1xf32> to vector<32x1xf32>
    %867 = vector.broadcast %866 : vector<32x1xf32> to vector<32x128xf32>
    %868 = arith.addf %864, %867 : vector<32x128xf32>
    %869 = tpu.iota {dimensions = array<i32: 1>} : vector<1x128xi32>
    %c64_i32 = arith.constant 64 : i32
    %870 = vector.broadcast %c64_i32 : i32 to vector<1x128xi32>
    %871 = arith.cmpi slt, %869, %870 : vector<1x128xi32>
    %cst_347 = arith.constant 1.562500e-02 : f32
    %cst_348 = arith.constant 0.000000e+00 : f32
    %872 = vector.broadcast %cst_347 : f32 to vector<1x128xf32>
    %873 = vector.broadcast %cst_348 : f32 to vector<1x128xf32>
    %874 = arith.select %871, %872, %873 : vector<1x128xi1>, vector<1x128xf32>
    %cst_349 = arith.constant dense<0.000000e+00> : vector<1x32xf32>
    %875 = tpu.matmul %874, %868, %cst_349 {dimension_numbers = #tpu.dot_dimension_numbers<[1], [1], [0], [0], [0, 0, 1, 0], [], []>} : vector<1x128xf32>, vector<32x128xf32>, vector<1x32xf32> -> vector<1x32xf32>
    %c0_350 = arith.constant 0 : index
    %c0_351 = arith.constant 0 : index
    %876 = vector.load %arg24[%c0_350, %c0_351] : memref<10x32xf32, #tpu.memory_space<vmem>>, vector<10x32xf32>
    %cst_352 = arith.constant dense<0.000000e+00> : vector<1x10xf32>
    %877 = tpu.matmul %875, %876, %cst_352 {dimension_numbers = #tpu.dot_dimension_numbers<[1], [1], [0], [0], [0, 0, 1, 0], [], []>} : vector<1x32xf32>, vector<10x32xf32>, vector<1x10xf32> -> vector<1x10xf32>
    %cst_353 = arith.constant dense<0xFF800000> : vector<1xf32>
    %878 = vector.multi_reduction <maximumf>, %877, %cst_353 [1] : vector<1x10xf32> to vector<1xf32>
    %879 = vector.shape_cast %878 : vector<1xf32> to vector<1x1xf32>
    %880 = vector.broadcast %879 : vector<1x1xf32> to vector<1x10xf32>
    %881 = arith.subf %877, %880 : vector<1x10xf32>
    %882 = math.exp %881 : vector<1x10xf32>
    %cst_354 = arith.constant dense<0.000000e+00> : vector<1xf32>
    %883 = vector.multi_reduction <add>, %882, %cst_354 [1] : vector<1x10xf32> to vector<1xf32>
    %884 = vector.shape_cast %883 : vector<1xf32> to vector<1x1xf32>
    %885 = math.log %884 : vector<1x1xf32>
    %886 = vector.broadcast %885 : vector<1x1xf32> to vector<1x10xf32>
    %887 = arith.subf %881, %886 : vector<1x10xf32>
    %c0_355 = arith.constant 0 : index
    %c0_356 = arith.constant 0 : index
    %c0_357 = arith.constant 0 : index
    %888 = vector.load %arg25[%c0_355, %c0_356, %c0_357] : memref<1x1x10xf32, #tpu.memory_space<vmem>>, vector<1x1x10xf32>
    %889 = vector.shape_cast %888 : vector<1x1x10xf32> to vector<1x10xf32>
    %890 = vector.shape_cast %887 : vector<1x10xf32> to vector<1x1x10xf32>
    tpu.vector_store %arg25[%c0_355, %c0_356, %c0_357], %890 {strides = array<i32>} : memref<1x1x10xf32, #tpu.memory_space<vmem>>, vector<1x1x10xf32>,
    return
  }
  func.func @transform_0(%arg0: i32) -> (i32, i32, i32) {
    %c0_i32 = arith.constant 0 : i32
    %c0_i32_0 = arith.constant 0 : i32
    %c0_i32_1 = arith.constant 0 : i32
    return %arg0, %c0_i32, %c0_i32_0 : i32, i32, i32
  }
  func.func @transform_1(%arg0: i32) -> (i32, i32) {
    %c0_i32 = arith.constant 0 : i32
    %c0_i32_0 = arith.constant 0 : i32
    %c0_i32_1 = arith.constant 0 : i32
    return %c0_i32, %c0_i32_0 : i32, i32
  }
  func.func @transform_2(%arg0: i32) -> (i32, i32) {
    %c0_i32 = arith.constant 0 : i32
    %c0_i32_0 = arith.constant 0 : i32
    %c0_i32_1 = arith.constant 0 : i32
    return %c0_i32, %c0_i32_0 : i32, i32
  }
  func.func @transform_3(%arg0: i32) -> (i32, i32) {
    %c0_i32 = arith.constant 0 : i32
    %c0_i32_0 = arith.constant 0 : i32
    %c0_i32_1 = arith.constant 0 : i32
    return %c0_i32, %c0_i32_0 : i32, i32
  }
  func.func @transform_4(%arg0: i32) -> (i32, i32, i32) {
    %c0_i32 = arith.constant 0 : i32
    %c0_i32_0 = arith.constant 0 : i32
    %c0_i32_1 = arith.constant 0 : i32
    %c0_i32_2 = arith.constant 0 : i32
    return %c0_i32, %c0_i32_0, %c0_i32_1 : i32, i32, i32
  }
  func.func @transform_5(%arg0: i32) -> (i32, i32) {
    %c0_i32 = arith.constant 0 : i32
    %c0_i32_0 = arith.constant 0 : i32
    %c0_i32_1 = arith.constant 0 : i32
    return %c0_i32, %c0_i32_0 : i32, i32
  }
  func.func @transform_6(%arg0: i32) -> (i32, i32, i32) {
    %c0_i32 = arith.constant 0 : i32
    %c0_i32_0 = arith.constant 0 : i32
    %c0_i32_1 = arith.constant 0 : i32
    %c0_i32_2 = arith.constant 0 : i32
    return %c0_i32, %c0_i32_0, %c0_i32_1 : i32, i32, i32
  }
  func.func @transform_7(%arg0: i32) -> (i32, i32) {
    %c0_i32 = arith.constant 0 : i32
    %c0_i32_0 = arith.constant 0 : i32
    %c0_i32_1 = arith.constant 0 : i32
    return %c0_i32, %c0_i32_0 : i32, i32
  }
  func.func @transform_8(%arg0: i32) -> (i32, i32, i32) {
    %c0_i32 = arith.constant 0 : i32
    %c0_i32_0 = arith.constant 0 : i32
    %c0_i32_1 = arith.constant 0 : i32
    %c0_i32_2 = arith.constant 0 : i32
    return %c0_i32, %c0_i32_0, %c0_i32_1 : i32, i32, i32
  }
  func.func @transform_9(%arg0: i32) -> (i32, i32) {
    %c0_i32 = arith.constant 0 : i32
    %c0_i32_0 = arith.constant 0 : i32
    %c0_i32_1 = arith.constant 0 : i32
    return %c0_i32, %c0_i32_0 : i32, i32
  }
  func.func @transform_10(%arg0: i32) -> (i32, i32, i32) {
    %c0_i32 = arith.constant 0 : i32
    %c0_i32_0 = arith.constant 0 : i32
    %c0_i32_1 = arith.constant 0 : i32
    %c0_i32_2 = arith.constant 0 : i32
    return %c0_i32, %c0_i32_0, %c0_i32_1 : i32, i32, i32
  }
  func.func @transform_11(%arg0: i32) -> (i32, i32) {
    %c0_i32 = arith.constant 0 : i32
    %c0_i32_0 = arith.constant 0 : i32
    %c0_i32_1 = arith.constant 0 : i32
    return %c0_i32, %c0_i32_0 : i32, i32
  }
  func.func @transform_12(%arg0: i32) -> (i32, i32, i32) {
    %c0_i32 = arith.constant 0 : i32
    %c0_i32_0 = arith.constant 0 : i32
    %c0_i32_1 = arith.constant 0 : i32
    %c0_i32_2 = arith.constant 0 : i32
    return %c0_i32, %c0_i32_0, %c0_i32_1 : i32, i32, i32
  }
  func.func @transform_13(%arg0: i32) -> (i32, i32) {
    %c0_i32 = arith.constant 0 : i32
    %c0_i32_0 = arith.constant 0 : i32
    %c0_i32_1 = arith.constant 0 : i32
    return %c0_i32, %c0_i32_0 : i32, i32
  }
  func.func @transform_14(%arg0: i32) -> (i32, i32, i32) {
    %c0_i32 = arith.constant 0 : i32
    %c0_i32_0 = arith.constant 0 : i32
    %c0_i32_1 = arith.constant 0 : i32
    %c0_i32_2 = arith.constant 0 : i32
    return %c0_i32, %c0_i32_0, %c0_i32_1 : i32, i32, i32
  }
  func.func @transform_15(%arg0: i32) -> (i32, i32) {
    %c0_i32 = arith.constant 0 : i32
    %c0_i32_0 = arith.constant 0 : i32
    %c0_i32_1 = arith.constant 0 : i32
    return %c0_i32, %c0_i32_0 : i32, i32
  }
  func.func @transform_16(%arg0: i32) -> (i32, i32, i32) {
    %c0_i32 = arith.constant 0 : i32
    %c0_i32_0 = arith.constant 0 : i32
    %c0_i32_1 = arith.constant 0 : i32
    %c0_i32_2 = arith.constant 0 : i32
    return %c0_i32, %c0_i32_0, %c0_i32_1 : i32, i32, i32
  }
  func.func @transform_17(%arg0: i32) -> (i32, i32) {
    %c0_i32 = arith.constant 0 : i32
    %c0_i32_0 = arith.constant 0 : i32
    %c0_i32_1 = arith.constant 0 : i32
    return %c0_i32, %c0_i32_0 : i32, i32
  }
  func.func @transform_18(%arg0: i32) -> (i32, i32, i32) {
    %c0_i32 = arith.constant 0 : i32
    %c0_i32_0 = arith.constant 0 : i32
    %c0_i32_1 = arith.constant 0 : i32
    %c0_i32_2 = arith.constant 0 : i32
    return %c0_i32, %c0_i32_0, %c0_i32_1 : i32, i32, i32
  }
  func.func @transform_19(%arg0: i32) -> (i32, i32) {
    %c0_i32 = arith.constant 0 : i32
    %c0_i32_0 = arith.constant 0 : i32
    %c0_i32_1 = arith.constant 0 : i32
    return %c0_i32, %c0_i32_0 : i32, i32
  }
  func.func @transform_20(%arg0: i32) -> (i32, i32, i32) {
    %c0_i32 = arith.constant 0 : i32
    %c0_i32_0 = arith.constant 0 : i32
    %c0_i32_1 = arith.constant 0 : i32
    %c0_i32_2 = arith.constant 0 : i32
    return %c0_i32, %c0_i32_0, %c0_i32_1 : i32, i32, i32
  }
  func.func @transform_21(%arg0: i32) -> (i32, i32) {
    %c0_i32 = arith.constant 0 : i32
    %c0_i32_0 = arith.constant 0 : i32
    %c0_i32_1 = arith.constant 0 : i32
    return %c0_i32, %c0_i32_0 : i32, i32
  }
  func.func @transform_22(%arg0: i32) -> (i32, i32, i32) {
    %c0_i32 = arith.constant 0 : i32
    %c0_i32_0 = arith.constant 0 : i32
    %c0_i32_1 = arith.constant 0 : i32
    %c0_i32_2 = arith.constant 0 : i32
    return %c0_i32, %c0_i32_0, %c0_i32_1 : i32, i32, i32
  }
  func.func @transform_23(%arg0: i32) -> (i32, i32) {
    %c0_i32 = arith.constant 0 : i32
    %c0_i32_0 = arith.constant 0 : i32
    %c0_i32_1 = arith.constant 0 : i32
    return %c0_i32, %c0_i32_0 : i32, i32
  }
  func.func @transform_24(%arg0: i32) -> (i32, i32, i32) {
    %c0_i32 = arith.constant 0 : i32
    %c0_i32_0 = arith.constant 0 : i32
    %c0_i32_1 = arith.constant 0 : i32
    return %arg0, %c0_i32, %c0_i32_0 : i32, i32, i32
  }
}

</mosaic_0001>

<bundles_post_ra>
// kernel: net_s8bn_forward.1
= control target key start
LH: loop header
LB: loop body
LE: loop exit
PB: predicated region body
PF: predicated region fallthrough
CT: control target
= control target key end

     0   :  { %s11868_s0 = inlined_call_operand.vmem [shape: f32[2,8,1024], index: 0, kind: input, shape index: {}]   ;;  %s11869_s1 = inlined_call_operand.vmem [shape: bf16[1024,256], index: 1, kind: input, shape index: {}]   ;;  %s11870_s2 = inlined_call_operand.vmem [shape: bf16[256,128], index: 2, kind: input, shape index: {}]   ;;  %s11871_s3 = inlined_call_operand.vmem [shape: bf16[16,72], index: 3, kind: input, shape index: {}]   ;;  %s11872_s4 = inlined_call_operand.vmem [shape: f32[2,16,1], index: 4, kind: input, shape index: {}]   ;;  %s11873_s5 = inlined_call_operand.vmem [shape: bf16[32,144], index: 5, kind: input, shape index: {}]   ;;  %s11874_s6 = inlined_call_operand.vmem [shape: f32[2,32,1], index: 6, kind: input, shape index: {}]   ;;  %s11875_s7 = inlined_call_operand.vmem [shape: bf16[8,32], index: 7, kind: input, shape index: {}]   ;;  %s11876_s8 = inlined_call_operand.vmem [shape: f32[2,8,1], index: 8, kind: input, shape index: {}]   ;;  %s11877_s9 = inlined_call_operand.vmem [shape: bf16[16,72], index: 9, kind: input, shape index: {}]   ;;  %s11878_s10 = inlined_call_operand.vmem [shape: f32[2,16,1], index: 10, kind: input, shape index: {}]   ;;  %s11879_s11 = inlined_call_operand.vmem [shape: bf16[32,144], index: 11, kind: input, shape index: {}]   ;;  %s11880_s12 = inlined_call_operand.vmem [shape: f32[2,32,1], index: 12, kind: input, shape index: {}]   ;;  %s11881_s13 = inlined_call_operand.vmem [shape: bf16[32,288], index: 13, kind: input, shape index: {}]   ;;  %s11882_s14 = inlined_call_operand.vmem [shape: f32[2,32,1], index: 14, kind: input, shape index: {}]   ;;  %s11883_s15 = inlined_call_operand.vmem [shape: bf16[8,32], index: 15, kind: input, shape index: {}]   ;;  %s11884_s16 = inlined_call_operand.vmem [shape: f32[2,8,1], index: 16, kind: input, shape index: {}]   ;;  %s11885_s17 = inlined_call_operand.vmem [shape: bf16[16,72], index: 17, kind: input, shape index: {}]   ;;  %s11886_s18 = inlined_call_operand.vmem [shape: f32[2,16,1], index: 18, kind: input, shape index: {}]   ;;  %s11887_s19 = inlined_call_operand.vmem [shape: bf16[32,144], index: 19, kind: input, shape index: {}]   ;;  %s11888_s20 = inlined_call_operand.vmem [shape: f32[2,32,1], index: 20, kind: input, shape index: {}]   ;;  %s11889_s21 = inlined_call_operand.vmem [shape: bf16[32,288], index: 21, kind: input, shape index: {}]   ;;  %s11890_s22 = inlined_call_operand.vmem [shape: f32[2,32,1], index: 22, kind: input, shape index: {}]   ;;  %s11891_s23 = inlined_call_operand.vmem [shape: f32[10,32], index: 23, kind: input, shape index: {}]   ;;  %s11892_s24 = inlined_call_operand.hbm [shape: f32[2,1,10], index: 24, kind: output, shape index: {}]  }
   0x1   :  { %12111 = sst [smem:[#allocation82_spill]] %s11868_s0 }
   0x2   :  { %12112 = sst [smem:[#allocation83_spill]] %s11869_s1 }
   0x3   :  { %12113 = sst [smem:[#allocation84_spill]] %s11870_s2 }
   0x4   :  { %12114 = sst [smem:[#allocation85_spill]] %s11871_s3 }
   0x5   :  { %12115 = sst [smem:[#allocation86_spill]] %s11872_s4 }
   0x6   :  { %12116 = sst [smem:[#allocation87_spill]] %s11873_s5 }
   0x7   :  { %12117 = sst [smem:[#allocation88_spill]] %s11874_s6 }
   0x8   :  { %12118 = sst [smem:[#allocation89_spill]] %s11875_s7 }
   0x9   :  { %12119 = sst [smem:[#allocation90_spill]] %s11876_s8 }
   0xa   :  { %12120 = sst [smem:[#allocation91_spill]] %s11877_s9 }
   0xb   :  { %12121 = sst [smem:[#allocation92_spill]] %s11892_s24 }
   0xc   :  { %29 = vsyncpa [#allocation3], 0 }
   0xd   :  { %31 = vsyncpa [#allocation3 + $0x1], 0  ;;  %s7327_s5 = smov 0   ;;  %s7329_s26 = smov 0  }
   0xe   :  { %s7331_s27 = smov 0   ;;  %s7333_s28 = smov 0  }
   0xf LB: > { %12122 = sst [smem:[#allocation5_spill]] %s7162_s5  ;;  %s7348_s6 = sadd.s32 4294967295, %s7174_s28   ;;  %s7174_s28 = sphi %s7333_s28, %s12694_s28   ;;  %s7170_s27 = sphi %s7331_s27, %s12696_s27   ;;  %s7166_s26 = sphi %s7329_s26, %s12698_s26   ;;  %s7162_s5 = sphi %s7327_s5, %s12697_s5  }
  0x10   : > { %12123 = sst [smem:[#allocation6_spill]] %s7170_s27  ;;  %s6263_s2 = sadd.s32 4294967294, %s7174_s28  }
  0x11   : > { %12124 = sst [smem:[#allocation7_spill]] %s7174_s28  ;;  %s7352_s29 = sadd.s32 1, %s7174_s28  }
  0x12   : > { %12125 = sst [smem:[#allocation8_spill]] %s7348_s6  ;;  %s553_s0 = sadd.s32 1, %s7170_s27 }
  0x13   : > { %12126 = sst [smem:[#allocation9_spill]] %s7352_s29  ;;  %s550_s7 = ssub.s32 %s7174_s28, %s7352_s29 }
  0x14   : > { %p563_p0 = scmp.ne.s32.totalorder %s7170_s27, %s7166_s26  ;;  %p551_p1 = scmp.eq.s32.totalorder %s550_s7, 0 }
  0x15   : > { %p564_p2 = scmp.eq.s32.totalorder %s7348_s6, 1  ;;  %p569_p3 = scmp.ne.s32.totalorder %s7166_s26, %s7162_s5 }
  0x16   : > { %p570_p4 = scmp.eq.s32.totalorder %s6263_s2, 1  ;;  %p6266_p7 = scmp.ge.s32.totalorder %s7174_s28, 1 }
  0x17   : > { %s7363_s30 = scalar_select %p551_p1, %s7170_s27, %s553_s0  }
  0x18   : > { %p7365_p5 = por %p564_p2, %p563_p0  ;;  %p7369_p6 = por %p570_p4, %p569_p3 }
  0x19   : > { %12127 = sst [smem:[#allocation10_spill]] %s7363_s30  ;;  %p665_p8 = scmp.lt.s32.totalorder %s7174_s28, 3 }
  0x1a   : > { %s12128_s3 = scalar_select %p7365_p5, 1, 0 }
  0x1b   : > { %s12130_s25 = scalar_select %p7369_p6, 1, 0 }
  0x1c   : > { %12129 = sst [smem:[#allocation11_spill]] %s12128_s3  ;;  %p666_p9 = pnand %p6266_p7, %p665_p8 }
  0x1d   : > { %12131 = sst [smem:[#allocation12_spill]] %s12130_s25 }
  0x1e   : > { %669 = sbr.rel (%p666_p9) target bundleno = 5498 (0x157a), region = 116 }
  0x25   : > { %p730_p10 = scmp.lt.s32.totalorder %s7348_s6, 1  ;;  %s12132_s0 = sld [smem:[#allocation82_spill]]  ;;  %v11922_v7 = vmov 0   ;;  %v736_v9 = vlaneseq  ;;  %v11942_v25 = vmov 0.0  }
  0x26   : > { %s11910_s30 = smov 32   ;;  %s11912_s27 = smov 33   ;;  %1751 = vmatprep.mubr.bf16.mxu1 %v11922_v7  ;;  %1708 = vmatprep.mubr.bf16.mxu0 %v11922_v7 }
  0x27   : > { %s731_s8 = scalar_select %p730_p10, %s7348_s6, 1  ;;  %6799 = vset.pattern.permute.xlu1 %v11922_v7  ;;  %6798 = vset.pattern.permute.xlu0 %v11922_v7  ;;  %v7506_v10 = vand.u32 127, %v736_v9 }
  0x28   : > { %s11904_s1 = smov 127   ;;  %s11908_s2 = smov 97  }
  0x29   : > { %s6595_s4 = sshll.u32 %s731_s8, 6  ;;  %s11900_s8 = smov 31   ;;  %v740_v11 = vadd.s32 384, %v7506_v10  ;;  %v739_v13 = vadd.s32 256, %v7506_v10  ;;  %vm11962_vm9 = vcmp.lt.s32.totalorder %v7506_v10, 32  ;;  %vm11961_vm10 = vcmp.lt.s32.totalorder %v7506_v10, 33 }
  0x2a   : > { %s12336_s25 = smov 32   ;;  %s12343_s5 = sld [smem:[#allocation87_spill]] }
  0x2b   : > { %s7380_s7 = scalar_lea.vmem %s12132_s0, %s6595_s4  ;;  %s11906_s4 = smov 1   ;;  %v7517_v12 = vshra.s32 %v740_v11, 5  ;;  %v756_v14 = vand.u32 31, %v740_v11  ;;  %v7525_v16 = vshra.s32 %v739_v13, 5  ;;  %v755_v18 = vand.u32 31, %v739_v13 }
  0x2c   : > { %v7383_v0 = vld [vmem:[%s7380_s7 + $0x10] sm:$0xff]  ;;  %v7390_v1 = vld [vmem:[%s7380_s7 + $0x18] sm:$0xff]  ;;  %v7397_v2 = vld [vmem:[%s7380_s7 + $0x8] sm:$0xff]  ;;  %s11916_s0 = smov 96   ;;  %s12084_s28 = smov 112  }
  0x2d   : > { %1373 = vrot.lane.b32.xlu1 %v7383_v0, %s11910_s30  ;;  %1340 = vrot.lane.b32.xlu0 %v7383_v0, %s11912_s27  ;;  %v7412_v3 = vld [vmem:[%s7380_s7 + $0x20] sm:$0xff]  ;;  %v7446_v5 = vld [vmem:[%s7380_s7 + $0x38] sm:$0xff]  ;;  %v764_v15 = vadd.s32 4294967295, %v7517_v12  ;;  %v7527_v17 = vadd.s32 4294967295, %v756_v14  ;;  %v763_v19 = vadd.s32 4294967295, %v7525_v16  ;;  %v7539_v21 = vadd.s32 4294967295, %v755_v18 }
  0x2e   : > { %v7439_v4 = vld [vmem:[%s7380_s7] sm:$0xff]  ;;  %v7449_v6 = vld [vmem:[%s7380_s7 + $0x30] sm:$0xff]  ;;  %v7468_v8 = vld [vmem:[%s7380_s7 + $0x28] sm:$0xff]  ;;  %v7568_v28 = vadd.s32 1, %v756_v14  ;;  %vm956_vm12 = vcmp.ge.s32.totalorder %v7517_v12, 0  ;;  %vm964_vm13 = vcmp.lt.s32.totalorder %v7517_v12, 32 }
  0x2f   : > { %vm772_vm0 = vcmp.ge.s32.totalorder %v764_v15, 0  ;;  %vm780_vm1 = vcmp.lt.s32.totalorder %v764_v15, 32  ;;  %vm804_vm3 = vcmp.ge.s32.totalorder %v7527_v17, 0  ;;  %vm771_vm4 = vcmp.ge.s32.totalorder %v763_v19, 0  ;;  %vm7605_vm15 = vmand %vm956_vm12, %vm964_vm13  ;;  %s12095_s6 = smov 111   ;;  %s12610_s9 = sld [smem:[#allocation91_spill]] }
  0x30   : > { %vm7534_vm2 = vmand %vm772_vm0, %vm780_vm1  ;;  %vm779_vm5 = vcmp.lt.s32.totalorder %v763_v19, 32  ;;  %vm803_vm8 = vcmp.ge.s32.totalorder %v7539_v21, 0  ;;  %vm924_vm14 = vcmp.lt.s32.totalorder %v7568_v28, 32  ;;  %vm955_vm0 = vcmp.ge.s32.totalorder %v7525_v16, 0  ;;  %s12344_s24 = smov %s12343_s5  ;;  %s12612_s3 = smov 113  }
  0x31   : > { %1375 = vrot.lane.b32.xlu1 %v7390_v1, %s11910_s30  ;;  %1342 = vrot.lane.b32.xlu0 %v7390_v1, %s11912_s27  ;;  %vm812_vm6 = vmand %vm7534_vm2, %vm804_vm3  ;;  %v7566_v27 = vsel %vm7534_vm2, 1.0, %v11942_v25  ;;  %vm963_vm1 = vcmp.lt.s32.totalorder %v7525_v16, 32  ;;  %v7617_v43 = vadd.s32 1, %v755_v18  ;;  %vm11931_vm12 = vcmp.lt.s32.totalorder %v7506_v10, 1 }
  0x32   : > { %vm7549_vm7 = vmand %vm771_vm4, %vm779_vm5  ;;  %v7561_v26 = vsel %vm812_vm6, 1.0, %v11942_v25  ;;  %v1044_v18 = vadd.s32 1, %v7517_v12  ;;  %v1043_v20 = vadd.s32 1, %v7525_v16  ;;  %v7725_v16 = vadd.s32 128, %v7506_v10 }
  0x33   : > { %vm811_vm11 = vmand %vm7549_vm7, %vm803_vm8  ;;  %v7599_v36 = vsel %vm7549_vm7, 1.0, %v11942_v25 }
  0x34   : > { %v7594_v35 = vsel %vm811_vm11, 1.0, %v11942_v25  ;;  %vm7625_vm4 = vmand %vm7534_vm2, %vm924_vm14  ;;  %vm11930_vm2 = vcmp.lt.s32.totalorder %v7506_v10, 31  ;;  %vm923_vm11 = vcmp.lt.s32.totalorder %v7617_v43, 32  ;;  %12151 = vst [vmem:[#allocation16_spill] sm:$0xff] %v7725_v16 }
  0x35   : > { %1371 = vrot.lane.b32.xlu1 %v7397_v2, %s11910_s30  ;;  %1338 = vrot.lane.b32.xlu0 %v7397_v2, %s11912_s27  ;;  %vm980_vm5 = vmand %vm7605_vm15, %vm804_vm3  ;;  %v7657_v53 = vsel %vm7625_vm4, 1.0, %v11942_v25  ;;  %vm1052_vm4 = vcmp.ge.s32.totalorder %v1044_v18, 0 }
  0x36   : > { %vm7645_vm6 = vmand %vm955_vm0, %vm963_vm1  ;;  %v7663_v55 = vsel %vm980_vm5, 1.0, %v11942_v25  ;;  %vm11928_vm1 = vcmp.lt.s32.totalorder %v7506_v10, 127  ;;  %vm1060_vm5 = vcmp.lt.s32.totalorder %v1044_v18, 32 }
  0x37   : > { %12148 = vst [vmem:[#allocation13_spill] sm:$0xff] %v7663_v55  ;;  %vm979_vm13 = vmand %vm7645_vm6, %vm803_vm8 }
  0x38   : > { %vm931_vm0 = vmand %vm7549_vm7, %vm923_vm11  ;;  %v7687_v63 = vsel %vm979_vm13, 1.0, %v11942_v25  ;;  %vm1051_vm13 = vcmp.ge.s32.totalorder %v1043_v20, 0 }
  0x39   : > { %1408 = vrot.lane.b32.xlu1 %v7390_v1, %s11900_s8  ;;  %1406 = vrot.lane.b32.xlu0 %v7383_v0, %s11900_s8  ;;  %12149 = vst [vmem:[#allocation14_spill] sm:$0xff] %v7687_v63  ;;  %vm1020_vm7 = vmand %vm7605_vm15, %vm924_vm14 }
  0x3a   : > { %v7711_v19 = vsel %vm1020_vm7, 1.0, %v11942_v25  ;;  %vm1019_vm15 = vmand %vm7645_vm6, %vm923_vm11 }
  0x3b   : > { %12150 = vst [vmem:[#allocation15_spill] sm:$0xff] %v7711_v19  ;;  %vm7736_vm6 = vmand %vm1052_vm4, %vm1060_vm5  ;;  %vm11919_vm4 = vcmp.lt.s32.totalorder %v7506_v10, 97 }
  0x3d   : > { %1441 = vrot.lane.b32.xlu1 %v7390_v1, %s11906_s4  ;;  %1439 = vrot.lane.b32.xlu0 %v7383_v0, %s11906_s4 }
  0x41   : > { %1437 = vrot.lane.b32.xlu1 %v7397_v2, %s11906_s4  ;;  %1404 = vrot.lane.b32.xlu0 %v7397_v2, %s11900_s8  ;;  %s11902_s8 = smov 95  }
  0x45   : > { %1476 = vrot.lane.b32.xlu1 %v7412_v3, %s11904_s1  ;;  %1474 = vrot.lane.b32.xlu0 %v7390_v1, %s11904_s1 }
  0x49   : > { %1507 = vrot.lane.b32.xlu1 %v7390_v1, %s11908_s2  ;;  %1472 = vrot.lane.b32.xlu0 %v7383_v0, %s11904_s1 }
  0x4d   : > { %1540 = vrot.lane.b32.xlu1 %v7390_v1, %s11916_s0  ;;  %1509 = vrot.lane.b32.xlu0 %v7412_v3, %s11908_s2 }
  0x51   : > { %1505 = vrot.lane.b32.xlu1 %v7383_v0, %s11908_s2  ;;  %1542 = vrot.lane.b32.xlu0 %v7412_v3, %s11916_s0 }
  0x55   : > { %1571 = vrot.lane.b32.xlu1 %v7383_v0, %s11902_s8  ;;  %1538 = vrot.lane.b32.xlu0 %v7383_v0, %s11916_s0 }
  0x59   : > { %1575 = vrot.lane.b32.xlu1 %v7412_v3, %s11902_s8  ;;  %1573 = vrot.lane.b32.xlu0 %v7390_v1, %s11902_s8  ;;  %s12133_s8 = smov 31  }
  0x5d   : > { %1369 = vrot.lane.b32.xlu1 %v7439_v4, %s11910_s30  ;;  %1336 = vrot.lane.b32.xlu0 %v7439_v4, %s11912_s27 }
  0x61   : > { %1350 = vrot.lane.b32.xlu1 %v7446_v5, %s11912_s27  ;;  %1348 = vrot.lane.b32.xlu0 %v7449_v6, %s11912_s27 }
  0x65   : > { %1383 = vrot.lane.b32.xlu1 %v7446_v5, %s11910_s30  ;;  %1381 = vrot.lane.b32.xlu0 %v7449_v6, %s11910_s30 }
  0x69   : > { %1379 = vrot.lane.b32.xlu1 %v7468_v8, %s11910_s30  ;;  %1346 = vrot.lane.b32.xlu0 %v7468_v8, %s11912_s27 }
  0x6d   : > { %1435 = vrot.lane.b32.xlu1 %v7439_v4, %s11906_s4  ;;  %1402 = vrot.lane.b32.xlu0 %v7439_v4, %s12133_s8 }
  0x71   : > { %1416 = vrot.lane.b32.xlu1 %v7446_v5, %s12133_s8  ;;  %1414 = vrot.lane.b32.xlu0 %v7449_v6, %s12133_s8 }
  0x75   : > { %1449 = vrot.lane.b32.xlu1 %v7446_v5, %s11906_s4  ;;  %1447 = vrot.lane.b32.xlu0 %v7449_v6, %s11906_s4 }
  0x79   : > { %1445 = vrot.lane.b32.xlu1 %v7468_v8, %s11906_s4  ;;  %1412 = vrot.lane.b32.xlu0 %v7468_v8, %s12133_s8 }
  0x7d   : > { %1468 = vrot.lane.b32.xlu1 %v7439_v4, %s11904_s1  ;;  %1470 = vrot.lane.b32.xlu0 %v7397_v2, %s11904_s1 }
  0x81   : > { %1480 = vrot.lane.b32.xlu1 %v7449_v6, %s11904_s1  ;;  %1482 = vrot.lane.b32.xlu0 %v7446_v5, %s11904_s1  ;;  %s12134_s1 = smov 95  }
  0x85   : > { %1536 = vrot.lane.b32.xlu1 %v7397_v2, %s11916_s0  ;;  %1503 = vrot.lane.b32.xlu0 %v7397_v2, %s11908_s2 }
  0x89   : > { %1515 = vrot.lane.b32.xlu1 %v7446_v5, %s11908_s2  ;;  %1501 = vrot.lane.b32.xlu0 %v7439_v4, %s11908_s2 }
  0x8d   : > { %1548 = vrot.lane.b32.xlu1 %v7446_v5, %s11916_s0  ;;  %1534 = vrot.lane.b32.xlu0 %v7439_v4, %s11916_s0 }
  0x91   : > { %1546 = vrot.lane.b32.xlu1 %v7449_v6, %s11916_s0  ;;  %1513 = vrot.lane.b32.xlu0 %v7449_v6, %s11908_s2 }
  0x95   : > { %1569 = vrot.lane.b32.xlu1 %v7397_v2, %s12134_s1  ;;  %1567 = vrot.lane.b32.xlu0 %v7439_v4, %s12134_s1  ;;  %v7690_v2 = vsel %vm931_vm0, 1.0, %v11942_v25  ;;  %vm1059_vm0 = vcmp.lt.s32.totalorder %v1043_v20, 32 }
  0x96   : > { %vm7741_vm7 = vmand %vm1051_vm13, %vm1059_vm0  ;;  %vm11920_vm13 = vcmp.lt.s32.totalorder %v7506_v10, 96 }
  0x97   : > { %vm1075_vm5 = vmand %vm7741_vm7, %vm803_vm8 }
  0x98   : > { %vm7814_vm0 = vmand %vm7736_vm6, %vm924_vm14 }
  0x99   : > { %1581 = vrot.lane.b32.xlu1 %v7446_v5, %s12134_s1  ;;  %1579 = vrot.lane.b32.xlu0 %v7449_v6, %s12134_s1 }
  0x9d   : > { %1377 = vrot.lane.b32.xlu1 %v7412_v3, %s11910_s30  ;;  %1344 = vrot.lane.b32.xlu0 %v7412_v3, %s11912_s27  ;;  %s12144_s27 = sld [smem:[#allocation86_spill]]  ;;  %s12172_s30 = sld [smem:[#allocation85_spill]] }
  0x9f   : > { %v1374_v22 = vpop.permute.xlu1 %1373  ;;  %v1341_v23 = vpop.permute.xlu0 %1340 }
  0xa1   : > { %1443 = vrot.lane.b32.xlu1 %v7412_v3, %s11906_s4  ;;  %1410 = vrot.lane.b32.xlu0 %v7412_v3, %s12133_s8  ;;  %s12139_s4 = smov 127  }
  0xa3   : > { %v7570_v29 = vpop.permute.xlu1 %1375  ;;  %v7572_v30 = vpop.permute.xlu0 %1342  ;;  %s12145_s29 = smov %s12144_s27  ;;  %v1865_v47 = vld [vmem:[%s12144_s27 + $0x8] sm:$0xff]  ;;  %s12339_s27 = smov 96  }
  0xa4   : > { %v1357_v31 = vsel %vm11961_vm10, %v1341_v23, %v7572_v30  ;;  %v1390_v32 = vsel %vm11962_vm9, %v1374_v22, %v7570_v29  ;;  %v1864_v52 = vld [vmem:[%s12145_s29] sm:$0xff]  ;;  %v6366_v56 = vld [vmem:[%s12145_s29 + $0x10] sm:$0xff]  ;;  %v6367_v59 = vld [vmem:[%s12145_s29 + $0x18] sm:$0xff] }
  0xa5   : > { %1511 = vrot.lane.b32.xlu1 %v7468_v8, %s11908_s2  ;;  %1478 = vrot.lane.b32.xlu0 %v7468_v8, %s12139_s4  ;;  %v1364_v33 = vmul.f32 %v7561_v26, %v1357_v31  ;;  %v1397_v34 = vmul.f32 %v7566_v27, %v1390_v32  ;;  %v7728_v32 = vsel %vm1019_vm15, 1.0, %v11942_v25  ;;  %vm1076_vm15 = vmand %vm7736_vm6, %vm804_vm3  ;;  %s12337_s2 = smov 1  }
  0xa6   : > { %12152 = vst [vmem:[#allocation17_spill] sm:$0xff] %v7728_v32  ;;  %v7767_v51 = vsel %vm1076_vm15, 1.0, %v11942_v25  ;;  %vm1147_vm15 = vmand %vm7741_vm7, %vm923_vm11  ;;  %vm11925_vm11 = vcmp.lt.s32.totalorder %v7506_v10, 95 }
  0xa7   : > { %v7601_v37 = vpop.permute.xlu1 %1371  ;;  %v7603_v38 = vpop.permute.xlu0 %1338  ;;  %v1603_v39 = vpack.c.bf16 %v1397_v34, %v1364_v33  ;;  %12157 = vst [vmem:[#allocation18_spill] sm:$0xff] %v7767_v51  ;;  %v7850_v44 = vsel %vm1147_vm15, 1.0, %v11942_v25  ;;  %vm11927_vm15 = vcmask 1043456  }
  0xa8   : > { %v1391_v41 = vsel %vm11962_vm9, %v7601_v37, %v1374_v22  ;;  %v1358_v42 = vsel %vm11961_vm10, %v7603_v38, %v1341_v23  ;;  %12166 = vst [vmem:[#allocation23_spill] sm:$0xff] %v7850_v44 }
  0xa9   : > { %1719 = vmatprep.subr.bf16.mxu1 %v1603_v39  ;;  %1577 = vrot.lane.b32.xlu1 %v7468_v8, %s12134_s1  ;;  %v1363_v45 = vmul.f32 %v7594_v35, %v1358_v42  ;;  %v1396_v46 = vmul.f32 %v7599_v36, %v1391_v41 }
  0xaa   : > { %1544 = vrot.lane.b32.xlu0 %v7468_v8, %s11916_s0  ;;  %s12338_s0 = smov 97  }
  0xab   : > { %v7640_v48 = vpop.permute.xlu1 %1408  ;;  %v1407_v49 = vpop.permute.xlu0 %1406  ;;  %v1602_v50 = vpack.c.bf16 %v1396_v46, %v1363_v45  ;;  %v7746_v45 = vshra.s32 %v7725_v16, 5 }
  0xac   : > { %v1423_v54 = vsel %vm11930_vm2, %v1407_v49, %v7640_v48 }
  0xad   : > { %1720 = vmatpush1.bf16.msra.mxu1 %v1602_v50  ;;  %1873 = vperm.xlu1 %6799, %v1865_v47   ;;  %v1430_v61 = vmul.f32 %v7657_v53, %v1423_v54  ;;  %v754_v50 = vand.u32 31, %v7725_v16  ;;  %v762_v17 = vadd.s32 4294967295, %v7746_v45  ;;  %v7781_v54 = vsel %vm1075_vm5, 1.0, %v11942_v25 }
  0xae   : > { %1868 = vperm.xlu0 %6798, %v1864_v52   ;;  %12159 = vst [vmem:[#allocation20_spill] sm:$0xff] %v7781_v54 }
  0xaf   : > { %v7672_v57 = vpop.permute.xlu1 %1441  ;;  %v1440_v58 = vpop.permute.xlu0 %1439  ;;  %vm770_vm3 = vcmp.ge.s32.totalorder %v762_v17, 0  ;;  %vm778_vm8 = vcmp.lt.s32.totalorder %v762_v17, 32 }
  0xb0   : > { %v1456_v60 = vsel %vm11931_vm12, %v1440_v58, %v7672_v57  ;;  %vm7833_vm14 = vmand %vm770_vm3, %vm778_vm8 }
  0xb1   : > { %v1463_v62 = vmul.f32 %v7663_v55, %v1456_v60  ;;  %1897 = vperm.xlu1 %6799, %v6366_v56  }
  0xb2   : > { %1902 = vperm.xlu0 %6798, %v6367_v59   ;;  %v7788_v59 = vshra.s32 %v7506_v10, 5 }
  0xb3   : > { %v7692_v3 = vpop.permute.xlu1 %1437  ;;  %v7694_v8 = vpop.permute.xlu0 %1404  ;;  %v1611_v9 = vpack.c.bf16 %v1463_v62, %v1430_v61  ;;  %v7796_v61 = vsel %vm7741_vm7, 1.0, %v11942_v25  ;;  %v7800_v62 = vadd.s32 4294967295, %v754_v50 }
  0xb4   : > { %v1457_v11 = vsel %vm11931_vm12, %v7692_v3, %v1440_v58  ;;  %v1424_v13 = vsel %vm11930_vm2, %v7694_v8, %v1407_v49  ;;  %12160 = vst [vmem:[#allocation21_spill] sm:$0xff] %v7796_v61  ;;  %v761_v28 = vadd.s32 4294967295, %v7788_v59  ;;  %vm954_vm2 = vcmp.ge.s32.totalorder %v7746_v45, 0 }
  0xb5   : > { %v1462_v14 = vmul.f32 %v7687_v63, %v1457_v11  ;;  %v1429_v15 = vmul.f32 %v7690_v2, %v1424_v13  ;;  %1721 = vmatprep.subr.bf16.mxu1 %v1611_v9  ;;  %v7803_v9 = vadd.s32 768, %v7506_v10  ;;  %vm962_vm12 = vcmp.lt.s32.totalorder %v7746_v45, 32 }
  0xb6   : > { %vm769_vm8 = vcmp.ge.s32.totalorder %v761_v28, 0  ;;  %v12185_v63 = vmov 0.0  }
  0xb7   : > { %v7714_v22 = vpop.permute.xlu1 %1476  ;;  %v1475_v23 = vpop.permute.xlu0 %1474  ;;  %v1610_v24 = vpack.c.bf16 %v1462_v14, %v1429_v15 }
  0xb8   : > { %v1488_v31 = vsel %vm11928_vm1, %v1475_v23, %v7714_v22 }
  0xb9   : > { %v1496_v12 = vmul.f32 %v7711_v19, %v1488_v31  ;;  %1722 = vmatpush1.bf16.msra.mxu1 %v1610_v24 }
  0xbb   : > { %v1508_v33 = vpop.permute.xlu1 %1507  ;;  %v7730_v34 = vpop.permute.xlu0 %1472  ;;  %v1619_v39 = vpack.c.bf16 %v1496_v12, %v7390_v1  ;;  %v7749_v1 = vadd.s32 896, %v7506_v10 }
  0xbc   : > { %v1489_v40 = vsel %vm11928_vm1, %v7730_v34, %v1475_v23  ;;  %v11924_v23 = vand.u32 31, %v7506_v10 }
  0xbd   : > { %v1495_v42 = vmul.f32 %v7728_v32, %v1489_v40  ;;  %1723 = vmatprep.subr.bf16.mxu1 %v1619_v39  ;;  %v7778_v21 = vshra.s32 %v7749_v1, 5  ;;  %v11921_v18 = vand.u32 31, %v7749_v1  ;;  %v7839_v40 = vshra.s32 %v7803_v9, 5 }
  0xbf   : > { %v1541_v46 = vpop.permute.xlu1 %1540  ;;  %v7756_v47 = vpop.permute.xlu0 %1509  ;;  %v1618_v49 = vpack.c.bf16 %v1495_v42, %v7383_v0  ;;  %v7775_v0 = vsel %vm7736_vm6, 1.0, %v11942_v25  ;;  %v768_v20 = vadd.s32 4294967295, %v7778_v21  ;;  %vm11959_vm6 = vcmp.ge.s32.totalorder %v7800_v62, 0 }
  0xc0   : > { %v1521_v52 = vsel %vm11919_vm4, %v1508_v33, %v7756_v47  ;;  %12158 = vst [vmem:[#allocation19_spill] sm:$0xff] %v7775_v0  ;;  %v7846_v42 = vsel %vm7814_vm0, 1.0, %v11942_v25  ;;  %vm810_vm3 = vmand %vm7833_vm14, %vm11959_vm6  ;;  %v767_v15 = vadd.s32 4294967295, %v7839_v40  ;;  %vm777_vm0 = vcmp.lt.s32.totalorder %v761_v28, 32 }
  0xc1   : > { %1724 = vmatpush1.bf16.msra.mxu1 %v1618_v49  ;;  %v1529_v11 = vmul.f32 %v7767_v51, %v1521_v52  ;;  %12165 = vst [vmem:[#allocation22_spill] sm:$0xff] %v7846_v42  ;;  %vm776_vm7 = vcmp.ge.s32.totalorder %v768_v20, 0  ;;  %v7858_v49 = vadd.s32 4294967295, %v11924_v23  ;;  %vm784_vm5 = vcmp.lt.s32.totalorder %v768_v20, 32 }
  0xc3   : > { %v7783_v56 = vpop.permute.xlu1 %1505  ;;  %v7785_v58 = vpop.permute.xlu0 %1542 }
  0xc4   : > { %v1554_v60 = vsel %vm11920_vm13, %v1541_v46, %v7785_v58  ;;  %v1522_v14 = vsel %vm11919_vm4, %v7783_v56, %v1508_v33  ;;  %vm7877_vm4 = vmand %vm776_vm7, %vm784_vm5  ;;  %vm11966_vm5 = vcmp.ge.s32.totalorder %v7858_v49, 0 }
  0xc5   : > { %v1562_v13 = vmul.f32 %v7775_v0, %v1554_v60  ;;  %v1528_v43 = vmul.f32 %v7781_v54, %v1522_v14  ;;  %vm7895_vm7 = vmand %vm769_vm8, %vm777_vm0 }
  0xc6   : > { %vm809_vm0 = vmand %vm7895_vm7, %vm11966_vm5  ;;  %v7962_v16 = vsel %vm7895_vm7, 1.0, %v11942_v25 }
  0xc7   : > { %v7821_v24 = vpop.permute.xlu1 %1571  ;;  %v7823_v31 = vpop.permute.xlu0 %1538  ;;  %v1627_v12 = vpack.c.bf16 %v1562_v13, %v1529_v11  ;;  %v11926_v11 = vand.u32 31, %v7803_v9  ;;  %12179 = vst [vmem:[#allocation27_spill] sm:$0xff] %v7962_v16 }
  0xc8   : > { %v1555_v33 = vsel %vm11920_vm13, %v7823_v31, %v1541_v46  ;;  %v7854_v46 = vadd.s32 4294967295, %v11921_v18 }
  0xc9   : > { %v1561_v41 = vmul.f32 %v7796_v61, %v1555_v33  ;;  %1725 = vmatprep.subr.bf16.mxu1 %v1627_v12  ;;  %v7892_v20 = vadd.s32 4294967295, %v11926_v11 }
  0xca   : > { %vm11929_vm13 = vcmp.ge.s32.totalorder %v7854_v46, 0 }
  0xcb   : > { %v7860_v17 = vpop.permute.xlu1 %1575  ;;  %v1574_v52 = vpop.permute.xlu0 %1573  ;;  %v1626_v60 = vpack.c.bf16 %v1561_v41, %v1528_v43  ;;  %v7883_v41 = vsel %vm810_vm3, 1.0, %v11942_v25  ;;  %vm775_vm3 = vcmp.ge.s32.totalorder %v767_v15, 0  ;;  %vm816_vm8 = vmand %vm7877_vm4, %vm11929_vm13  ;;  %vm11960_vm13 = vcmp.ge.s32.totalorder %v7892_v20, 0 }
  0xcc   : > { %v1587_v13 = vsel %vm11925_vm11, %v1574_v52, %v7860_v17  ;;  %v1588_v14 = vsel %vm11925_vm11, %v7821_v24, %v1574_v52  ;;  %v7888_v52 = vsel %vm7833_vm14, 1.0, %v11942_v25  ;;  %vm783_vm11 = vcmp.lt.s32.totalorder %v767_v15, 32 }
  0xcd   : > { %v1595_v12 = vmul.f32 %v7846_v42, %v1587_v13  ;;  %1726 = vmatpush1.bf16.msra.mxu1 %v1626_v60  ;;  %v1594_v33 = vmul.f32 %v7850_v44, %v1588_v14  ;;  %12169 = vst [vmem:[#allocation24_spill] sm:$0xff] %v7888_v52  ;;  %vm7923_vm1 = vmand %vm775_vm3, %vm783_vm11  ;;  %v12180_v42 = vand.u32 31, %v7506_v10 }
  0xce   : > { %vm7955_vm11 = vmand %vm7923_vm1, %vm11960_vm13  ;;  %vm968_vm13 = vcmp.lt.s32.totalorder %v7778_v21, 32 }
  0xcf   : > { %v1635_v13 = vpack.c.bf16 %v1595_v12, %v1595_v12  ;;  %v1370_v60 = vpop.permute.xlu1 %1369  ;;  %v1337_v18 = vpop.permute.xlu0 %1336  ;;  %v1634_v14 = vpack.c.bf16 %v1594_v33, %v1594_v33  ;;  %v7966_v44 = vadd.s32 1, %v12180_v42  ;;  %vm7973_vm3 = vmand %vm954_vm2, %vm962_vm12  ;;  %v12184_v42 = vand.u32 31, %v7749_v1 }
  0xd0   : > { %v1359_v23 = vsel %vm11961_vm10, %v1337_v18, %v7603_v38  ;;  %v1392_v12 = vsel %vm11962_vm9, %v1370_v60, %v7601_v37  ;;  %v7917_v38 = vld [vmem:[%s12172_s30] sm:$0xff]   ;;  %vm8004_vm2 = vmand %vm7973_vm3, %vm11959_vm6  ;;  %vm960_vm6 = vcmp.ge.s32.totalorder %v7778_v21, 0  ;;  %s12566_s30 = sld [smem:[#allocation83_spill]] }
  0xd1   : > { %6360 = vmatprep.subr.msk.bf16.mxu1 %vm11927_vm15, %v1635_v13  ;;  %v1659_v28 = vsel %vm11927_vm15, %v1634_v14, 0  ;;  %v1362_v33 = vmul.f32 %v7883_v41, %v1359_v23  ;;  %v1395_v11 = vmul.f32 %v7888_v52, %v1392_v12  ;;  %vm11958_vm15 = vcmask 588800  }
  0xd2   : > { %1728 = vmatpush1.bf16.msra.mxu1 %v1659_v28  ;;  %v7932_v23 = vadd.s32 1, %v754_v50  ;;  %v7935_v12 = vsel %vm816_vm8, 1.0, %v11942_v25  ;;  %v7943_v28 = vsel %vm809_vm0, 1.0, %v11942_v25  ;;  %v7984_v51 = vadd.s32 1, %v12184_v42 }
  0xd3   : > { %v1351_v37 = vpop.permute.xlu1 %1350  ;;  %v1349_v15 = vpop.permute.xlu0 %1348  ;;  %v1601_v13 = vpack.c.bf16 %v1395_v11, %v1362_v33  ;;  %12175 = vst [vmem:[#allocation25_spill] sm:$0xff] %v7935_v12  ;;  %v7940_v11 = vsel %vm7877_vm4, 1.0, %v11942_v25  ;;  %vm921_vm12 = vcmp.lt.s32.totalorder %v7966_v44, 32 }
  0xd4   : > { %12176 = vst [vmem:[#allocation26_spill] sm:$0xff] %v7940_v11  ;;  %v1360_v33 = vsel %vm11961_vm10, %v1351_v37, %v1337_v18  ;;  %v1353_v50 = vsel %vm11961_vm10, %v1349_v15, %v1351_v37  ;;  %v12181_v18 = vmov 0   ;;  %vm11963_vm8 = vcmp.lt.s32.totalorder %v7932_v23, 32 }
  0xd5   : > { %1676 = vmatprep.subr.bf16.mxu0 %v1601_v13  ;;  %6361 = vmatmul.mubr.msk.bf16.vlgmr.msra.gmra.mrb[0].mxu1 %vm11958_vm15, %v7917_v38  ;;  %v1368_v54 = vmul.f32 %v7935_v12, %v1353_v50  ;;  %v1361_v32 = vmul.f32 %v7943_v28, %v1360_v33  ;;  %vm930_vm0 = vmand %vm7833_vm14, %vm11963_vm8  ;;  %vm961_vm15 = vcmp.lt.s32.totalorder %v7788_v59, 32  ;;  %vm959_vm8 = vcmp.ge.s32.totalorder %v7839_v40, 0 }
  0xd6   : > { %1837 = vmatprep.mubr.bf16.mxu1 %v12181_v18  ;;  %vm8033_vm14 = vmand %vm7895_vm7, %vm921_vm12  ;;  %v8044_v39 = vsel %vm930_vm0, 1.0, %v12185_v63  ;;  %vm12199_vm0 = vcmp.lt.s32.totalorder %v7506_v10, 31 }
  0xd7   : > { %v1384_v37 = vpop.permute.xlu1 %1383  ;;  %v1382_v52 = vpop.permute.xlu0 %1381  ;;  %12193 = vst [vmem:[#allocation31_spill] sm:$0xff] %v8044_v39  ;;  %vm8050_vm7 = vmand %vm960_vm6, %vm968_vm13  ;;  %vm967_vm13 = vcmp.lt.s32.totalorder %v7839_v40, 32 }
  0xd8   : > { %v1393_v25 = vsel %vm11962_vm9, %v1384_v37, %v1370_v60  ;;  %v1386_v61 = vsel %vm11962_vm9, %v1382_v52, %v1384_v37  ;;  %v7993_v60 = vsel %vm7923_vm1, 1.0, %v12185_v63  ;;  %v7998_v37 = vsel %vm7955_vm11, 1.0, %v12185_v63 }
  0xd9   : > { %v1401_v19 = vmul.f32 %v7940_v11, %v1386_v61  ;;  %v1394_v55 = vmul.f32 %v7962_v16, %v1393_v25  ;;  %12186 = vst [vmem:[#allocation28_spill] sm:$0xff] %v7993_v60  ;;  %12187 = vst [vmem:[#allocation29_spill] sm:$0xff] %v7998_v37  ;;  %vm953_vm11 = vcmp.ge.s32.totalorder %v7788_v59, 0 }
  0xdb   : > { %v8009_v25 = vpop.permute.xlu1 %1379  ;;  %v8011_v61 = vpop.permute.xlu0 %1346  ;;  %v1600_v33 = vpack.c.bf16 %v1394_v55, %v1361_v32  ;;  %v1607_v50 = vpack.c.bf16 %v1401_v19, %v1368_v54  ;;  %v8041_v54 = vsel %vm8004_vm2, 1.0, %v12185_v63  ;;  %vm12198_vm2 = vcmp.lt.s32.totalorder %v7506_v10, 1 }
  0xdc   : > { %v1387_v13 = vsel %vm11962_vm9, %v8009_v25, %v1382_v52  ;;  %v1354_v42 = vsel %vm11961_vm10, %v8011_v61, %v1349_v15  ;;  %vm928_vm10 = vcmp.lt.s32.totalorder %v7984_v51, 32  ;;  %12192 = vst [vmem:[#allocation30_spill] sm:$0xff] %v8041_v54  ;;  %vm8046_vm9 = vmand %vm953_vm11, %vm961_vm15  ;;  %vm12201_vm11 = vcmp.ge.s32.totalorder %v7854_v46, 0 }
  0xdd   : > { %v1400_v55 = vmul.f32 %v7993_v60, %v1387_v13  ;;  %v1367_v19 = vmul.f32 %v7998_v37, %v1354_v42  ;;  %1677 = vmatpush1.bf16.msra.mxu0 %v1600_v33  ;;  %1805 = vmatprep.subr.bf16.mxu1 %v1607_v50  ;;  %vm936_vm15 = vmand %vm7877_vm4, %vm928_vm10  ;;  %v12200_v42 = vand.u32 31, %v7803_v9 }
  0xde   : > { %vm977_vm6 = vmand %vm8046_vm9, %vm11966_vm5 }
  0xdf   : > { %v1606_v15 = vpack.c.bf16 %v1400_v55, %v1367_v19  ;;  %v1436_v7 = vpop.permute.xlu1 %1435  ;;  %v1403_v33 = vpop.permute.xlu0 %1402  ;;  %v8068_v55 = vadd.s32 1, %v12200_v42  ;;  %vm984_vm4 = vmand %vm8050_vm7, %vm12201_vm11  ;;  %vm12205_vm11 = vcmp.lt.s32.totalorder %v7506_v10, 31  ;;  %v8098_v42 = vsel %vm977_vm6, 1.0, %v12185_v63 }
  0xe0   : > { %v1458_v1 = vsel %vm12198_vm2, %v1436_v7, %v7692_v3  ;;  %v1425_v13 = vsel %vm12199_vm0, %v1403_v33, %v7694_v8  ;;  %vm8080_vm2 = vmand %vm959_vm8, %vm967_vm13  ;;  %vm12208_vm8 = vcmp.ge.s32.totalorder %v7892_v20, 0  ;;  %vm12213_vm6 = vcmp.lt.s32.totalorder %v7932_v23, 32 }
  0xe1   : > { %v1461_v19 = vmul.f32 %v8041_v54, %v1458_v1  ;;  %v1428_v11 = vmul.f32 %v8044_v39, %v1425_v13  ;;  %1806 = vmatpush1.bf16.msra.mxu1 %v1606_v15  ;;  %vm927_vm0 = vcmp.lt.s32.totalorder %v8068_v55, 32  ;;  %v8088_v15 = vsel %vm8033_vm14, 1.0, %v12185_v63  ;;  %vm12206_vm5 = vmmov %vm12205_vm11 }
  0xe2   : > { %v8091_v1 = vsel %vm936_vm15, 1.0, %v12185_v63  ;;  %vm983_vm14 = vmand %vm8080_vm2, %vm12208_vm8  ;;  %vm12215_vm8 = vcmp.lt.s32.totalorder %v7506_v10, 31 }
  0xe3   : > { %v1417_v3 = vpop.permute.xlu1 %1416  ;;  %v1415_v8 = vpop.permute.xlu0 %1414  ;;  %v1609_v9 = vpack.c.bf16 %v1461_v19, %v1428_v11  ;;  %12204 = vst [vmem:[#allocation32_spill] sm:$0xff] %v8091_v1  ;;  %v8101_v19 = vsel %vm984_vm4, 1.0, %v12185_v63  ;;  %vm935_vm15 = vmand %vm7923_vm1, %vm927_vm0  ;;  %v8121_v39 = vsel %vm983_vm14, 1.0, %v12185_v63 }
  0xe4   : > { %v1426_v13 = vsel %vm12205_vm11, %v1417_v3, %v1403_v33  ;;  %v1419_v11 = vsel %vm12206_vm5, %v1415_v8, %v1417_v3  ;;  %12207 = vst [vmem:[#allocation33_spill] sm:$0xff] %v8101_v19  ;;  %vm12209_vm5 = vcmp.lt.s32.totalorder %v7506_v10, 1  ;;  %12211 = vst [vmem:[#allocation34_spill] sm:$0xff] %v8121_v39  ;;  %v8124_v14 = vsel %vm935_vm15, 1.0, %v12185_v63 }
  0xe5   : > { %1678 = vmatprep.subr.bf16.mxu0 %v1609_v9  ;;  %vm12210_vm13 = vmmov %vm12209_vm5  ;;  %v1042_v9 = vadd.s32 1, %v7746_v45  ;;  %v1427_v12 = vmul.f32 %v8088_v15, %v1426_v13  ;;  %v1434_v37 = vmul.f32 %v8091_v1, %v1419_v11  ;;  %12212 = vst [vmem:[#allocation35_spill] sm:$0xff] %v8124_v14 }
  0xe6   : > { %vm1017_vm1 = vmand %vm8046_vm9, %vm921_vm12 }
  0xe7   : > { %v1450_v32 = vpop.permute.xlu1 %1449  ;;  %v1448_v60 = vpop.permute.xlu0 %1447  ;;  %vm1018_vm4 = vmand %vm7973_vm3, %vm12213_vm6  ;;  %vm1050_vm9 = vcmp.ge.s32.totalorder %v1042_v9, 0  ;;  %vm1058_vm14 = vcmp.lt.s32.totalorder %v1042_v9, 32 }
  0xe8   : > { %v1459_v33 = vsel %vm12209_vm5, %v1450_v32, %v1436_v7  ;;  %v1452_v3 = vsel %vm12210_vm13, %v1448_v60, %v1450_v32  ;;  %vm12214_vm11 = vmmov %vm12209_vm5  ;;  %v8150_v0 = vsel %vm1018_vm4, 1.0, %v12185_v63  ;;  %vm12217_vm5 = vcmp.lt.s32.totalorder %v7506_v10, 127 }
  0xe9   : > { %v1460_v54 = vmul.f32 %v8098_v42, %v1459_v33  ;;  %v1467_v16 = vmul.f32 %v8101_v19, %v1452_v3  ;;  %vm1023_vm3 = vmand %vm8080_vm2, %vm927_vm0 }
  0xea   : > { %vm1024_vm15 = vmand %vm8050_vm7, %vm928_vm10  ;;  %vm12223_vm7 = vcmp.ge.s32.totalorder %v7800_v62, 0  ;;  %v1047_v62 = vadd.s32 1, %v7839_v40 }
  0xeb   : > { %v8130_v45 = vpop.permute.xlu1 %1445  ;;  %v8132_v7 = vpop.permute.xlu0 %1412  ;;  %v1608_v13 = vpack.c.bf16 %v1460_v54, %v1427_v12  ;;  %v1615_v11 = vpack.c.bf16 %v1467_v16, %v1434_v37  ;;  %v8147_v16 = vsel %vm1017_vm1, 1.0, %v12185_v63  ;;  %v1041_v54 = vadd.s32 1, %v7788_v59  ;;  %vm12218_vm13 = vmmov %vm12217_vm5 }
  0xec   : > { %v1453_v32 = vsel %vm12214_vm11, %v8130_v45, %v1448_v60  ;;  %v1420_v52 = vsel %vm12215_vm8, %v8132_v7, %v1415_v8  ;;  %12216 = vst [vmem:[#allocation36_spill] sm:$0xff] %v8147_v16  ;;  %vm8166_vm1 = vmand %vm1050_vm9, %vm1058_vm14  ;;  %v8174_v59 = vsel %vm1023_vm3, 1.0, %v12185_v63 }
  0xed   : > { %v1466_v33 = vmul.f32 %v8121_v39, %v1453_v32  ;;  %v1433_v3 = vmul.f32 %v8124_v14, %v1420_v52  ;;  %1679 = vmatpush1.bf16.msra.mxu0 %v1608_v13  ;;  %1807 = vmatprep.subr.bf16.mxu1 %v1615_v11  ;;  %v1048_v13 = vadd.s32 1, %v7778_v21  ;;  %12221 = vst [vmem:[#allocation37_spill] sm:$0xff] %v8174_v59  ;;  %v8177_v32 = vsel %vm1024_vm15, 1.0, %v12185_v63  ;;  %vm1074_vm2 = vmand %vm8166_vm1, %vm12223_vm7 }
  0xee   : > { %12222 = vst [vmem:[#allocation38_spill] sm:$0xff] %v8177_v32  ;;  %vm1049_vm6 = vcmp.ge.s32.totalorder %v1041_v54, 0  ;;  %vm1057_vm4 = vcmp.lt.s32.totalorder %v1041_v54, 32  ;;  %vm12224_vm11 = vmmov %vm12217_vm5  ;;  %v8198_v54 = vsel %vm8166_vm1, 1.0, %v12185_v63  ;;  %vm12234_vm7 = vcmp.ge.s32.totalorder %v7858_v49, 0 }
  0xef   : > { %v1614_v12 = vpack.c.bf16 %v1466_v33, %v1433_v3  ;;  %v1469_v60 = vpop.permute.xlu1 %1468  ;;  %v1471_v37 = vpop.permute.xlu0 %1470  ;;  %v7109_v33 = vld [vmem:[%s7380_s7 + $0x8] sm:$0xff]  ;;  %vm12225_vm8 = vmmov %vm12217_vm5  ;;  %vm1056_vm9 = vcmp.ge.s32.totalorder %v1048_v13, 0  ;;  %vm1064_vm14 = vcmp.lt.s32.totalorder %v1048_v13, 32  ;;  %12226 = vst [vmem:[#allocation39_spill] sm:$0xff] %v8198_v54 }
  0xf0   : > { %v1490_v8 = vsel %vm12217_vm5, %v1471_v37, %v7730_v34  ;;  %v1491_v9 = vsel %vm12218_vm13, %v1469_v60, %v1471_v37  ;;  %vm8203_vm3 = vmand %vm1049_vm6, %vm1057_vm4  ;;  %vm12232_vm5 = vcmp.lt.s32.totalorder %v7506_v10, 96  ;;  %vm12233_vm13 = vcmp.lt.s32.totalorder %v7506_v10, 97 }
  0xf1   : > { %v1493_v11 = vmul.f32 %v8147_v16, %v1491_v9  ;;  %v1494_v50 = vmul.f32 %v8150_v0, %v1490_v8  ;;  %1808 = vmatpush1.bf16.msra.mxu1 %v1614_v12  ;;  %v8201_v9 = vsel %vm1074_vm2, 1.0, %v12185_v63  ;;  %vm8213_vm15 = vmand %vm1056_vm9, %vm1064_vm14  ;;  %vm1055_vm6 = vcmp.ge.s32.totalorder %v1047_v62, 0 }
  0xf2   : > { %12227 = vst [vmem:[#allocation40_spill] sm:$0xff] %v8201_v9  ;;  %vm1073_vm2 = vmand %vm8203_vm3, %vm12234_vm7  ;;  %vm1063_vm4 = vcmp.lt.s32.totalorder %v1047_v62, 32 }
  0xf3   : > { %v8179_v34 = vpop.permute.xlu1 %1480  ;;  %v1483_v52 = vpop.permute.xlu0 %1482  ;;  %v1617_v3 = vpack.c.bf16 %v1494_v50, %v7109_v33  ;;  %v1616_v37 = vpack.c.bf16 %v1493_v11, %v7439_v4  ;;  %v8208_v11 = vadd.s32 512, %v7506_v10  ;;  %vm8239_vm9 = vmand %vm1055_vm6, %vm1063_vm4  ;;  %vm12249_vm4 = vcmp.lt.s32.totalorder %v7932_v23, 32 }
  0xf4   : > { %v1485_v21 = vsel %vm12224_vm11, %v8179_v34, %v1483_v52  ;;  %v1492_v12 = vsel %vm12225_vm8, %v1483_v52, %v1469_v60  ;;  %vm12235_vm11 = vcmp.ge.s32.totalorder %v7854_v46, 0  ;;  %v8248_v46 = vsel %vm1073_vm2, 1.0, %v12185_v63  ;;  %vm12242_vm14 = vmmov %vm12233_vm13 }
  0xf5   : > { %v1499_v8 = vmul.f32 %v8174_v59, %v1485_v21  ;;  %v1500_v4 = vmul.f32 %v8177_v32, %v1492_v12  ;;  %1680 = vmatprep.subr.bf16.mxu0 %v1617_v3  ;;  %v8224_v12 = vadd.s32 640, %v7506_v10  ;;  %vm1080_vm8 = vmand %vm8213_vm15, %vm12235_vm11  ;;  %v757_v62 = vand.u32 31, %v8208_v11  ;;  %12238 = vst [vmem:[#allocation41_spill] sm:$0xff] %v8248_v46 }
  0xf6   : > { %1681 = vmatpush1.bf16.msra.mxu0 %v1616_v37  ;;  %v8272_v32 = vsel %vm8239_vm9, 1.0, %v12185_v63  ;;  %vm12246_vm2 = vcmp.lt.s32.totalorder %v7506_v10, 96  ;;  %vm8296_vm11 = vmand %vm8166_vm1, %vm12249_vm4 }
  0xf7   : > { %v1622_v50 = vpack.c.bf16 %v1499_v8, %v7449_v6  ;;  %v1537_v52 = vpop.permute.xlu1 %1536  ;;  %v1504_v40 = vpop.permute.xlu0 %1503  ;;  %v1623_v33 = vpack.c.bf16 %v1500_v4, %v7446_v5  ;;  %v8244_v49 = vshra.s32 %v8224_v12, 5  ;;  %12244 = vst [vmem:[#allocation45_spill] sm:$0xff] %v8272_v32  ;;  %vm12247_vm6 = vmmov %vm12246_vm2  ;;  %v8283_v19 = vadd.s32 4294967295, %v757_v62 }
  0xf8   : > { %v1556_v37 = vsel %vm12232_vm5, %v1537_v52, %v7823_v31  ;;  %v1523_v21 = vsel %vm12233_vm13, %v1504_v40, %v7783_v56  ;;  %v8237_v56 = vshra.s32 %v8208_v11, 5  ;;  %vm12243_vm5 = vmmov %vm12233_vm13  ;;  %vm12245_vm13 = vcmp.ge.s32.totalorder %v7892_v20, 0 }
  0xf9   : > { %v1560_v6 = vmul.f32 %v8198_v54, %v1556_v37  ;;  %v1527_v5 = vmul.f32 %v8201_v9, %v1523_v21  ;;  %1809 = vmatprep.subr.bf16.mxu1 %v1623_v33  ;;  %v8256_v33 = vsel %vm8203_vm3, 1.0, %v12185_v63  ;;  %v8261_v37 = vsel %vm8213_vm15, 1.0, %v12185_v63  ;;  %vm1079_vm7 = vmand %vm8239_vm9, %vm12245_vm13 }
  0xfa   : > { %1810 = vmatpush1.bf16.msra.mxu1 %v1622_v50  ;;  %v8251_v50 = vsel %vm1080_vm8, 1.0, %v12185_v63  ;;  %12240 = vst [vmem:[#allocation43_spill] sm:$0xff] %v8256_v33  ;;  %12241 = vst [vmem:[#allocation44_spill] sm:$0xff] %v8261_v37  ;;  %v8290_v54 = vsel %vm1079_vm7, 1.0, %v12185_v63  ;;  %vm12253_vm13 = vcmp.lt.s32.totalorder %v7506_v10, 97  ;;  %vm957_vm4 = vcmp.ge.s32.totalorder %v8237_v56, 0 }
  0xfb   : > { %v1516_v31 = vpop.permute.xlu1 %1515  ;;  %v1502_v13 = vpop.permute.xlu0 %1501  ;;  %v1625_v8 = vpack.c.bf16 %v1560_v6, %v1527_v5  ;;  %12239 = vst [vmem:[#allocation42_spill] sm:$0xff] %v8251_v50  ;;  %v765_v6 = vadd.s32 4294967295, %v8237_v56  ;;  %v758_v5 = vand.u32 31, %v8224_v12  ;;  %v766_v12 = vadd.s32 4294967295, %v8244_v49  ;;  %12248 = vst [vmem:[#allocation46_spill] sm:$0xff] %v8290_v54 }
  0xfc   : > { %v1524_v11 = vsel %vm12242_vm14, %v1502_v13, %v1504_v40  ;;  %v1525_v21 = vsel %vm12243_vm5, %v1516_v31, %v1502_v13  ;;  %vm1145_vm5 = vmand %vm8203_vm3, %vm921_vm12  ;;  %v8360_v4 = vadd.s32 1, %v757_v62  ;;  %v1045_v62 = vadd.s32 1, %v8237_v56 }
  0xfd   : > { %1682 = vmatprep.subr.bf16.mxu0 %v1625_v8  ;;  %v1526_v39 = vmul.f32 %v8248_v46, %v1524_v11  ;;  %v1533_v1 = vmul.f32 %v8251_v50, %v1525_v21  ;;  %vm773_vm8 = vcmp.ge.s32.totalorder %v765_v6, 0  ;;  %vm781_vm14 = vcmp.lt.s32.totalorder %v765_v6, 32  ;;  %vm12252_vm1 = vmmov %vm12246_vm2 }
  0xfe   : > { %vm8320_vm7 = vmand %vm8213_vm15, %vm928_vm10  ;;  %vm12000_vm10 = vcmp.ge.s32.totalorder %v8283_v19, 0  ;;  %v8347_v3 = vsel %vm1145_vm5, 1.0, %v12185_v63 }
  0xff   : > { %v1549_v8 = vpop.permute.xlu1 %1548  ;;  %v1535_v59 = vpop.permute.xlu0 %1534  ;;  %vm8333_vm12 = vmand %vm773_vm8, %vm781_vm14  ;;  %12261 = vst [vmem:[#allocation48_spill] sm:$0xff] %v8347_v3  ;;  %vm12264_vm14 = vcmp.lt.s32.totalorder %v7506_v10, 95 }
 0x100   : > { %v1557_v40 = vsel %vm12246_vm2, %v1535_v59, %v1537_v52  ;;  %v1558_v13 = vsel %vm12247_vm6, %v1549_v8, %v1535_v59  ;;  %v8300_v52 = vadd.s32 4294967295, %v758_v5  ;;  %vm774_vm2 = vcmp.ge.s32.totalorder %v766_v12, 0  ;;  %vm8342_vm3 = vmand %vm8239_vm9, %vm927_vm0 }
 0x101   : > { %v1559_v14 = vmul.f32 %v8256_v33, %v1557_v40  ;;  %v1566_v20 = vmul.f32 %v8261_v37, %v1558_v13  ;;  %vm782_vm6 = vcmp.lt.s32.totalorder %v766_v12, 32  ;;  %vm958_vm0 = vcmp.ge.s32.totalorder %v8244_v49, 0  ;;  %vm12265_vm5 = vmmov %vm12264_vm14 }
 0x102   : > { %vm11995_vm15 = vcmp.ge.s32.totalorder %v8300_v52, 0  ;;  %vm8354_vm8 = vmand %vm774_vm2, %vm782_vm6  ;;  %vm966_vm9 = vcmp.lt.s32.totalorder %v8244_v49, 32  ;;  %vm925_vm6 = vcmp.lt.s32.totalorder %v8360_v4, 32 }
 0x103   : > { %v8302_v11 = vpop.permute.xlu1 %1546  ;;  %v8304_v21 = vpop.permute.xlu0 %1513  ;;  %v1624_v40 = vpack.c.bf16 %v1559_v14, %v1526_v39  ;;  %v1631_v13 = vpack.c.bf16 %v1566_v20, %v1533_v1  ;;  %v8329_v14 = vsel %vm8296_vm11, 1.0, %v12185_v63  ;;  %vm965_vm11 = vcmp.lt.s32.totalorder %v8237_v56, 32  ;;  %vm8405_vm2 = vmand %vm958_vm0, %vm966_vm9 }
 0x104   : > { %v1551_v23 = vsel %vm12252_vm1, %v8302_v11, %v1549_v8  ;;  %v1518_v43 = vsel %vm12253_vm13, %v8304_v21, %v1516_v31  ;;  %12256 = vst [vmem:[#allocation47_spill] sm:$0xff] %v8329_v14  ;;  %vm8371_vm1 = vmand %vm8333_vm12, %vm12000_vm10  ;;  %v1046_v39 = vadd.s32 1, %v8244_v49  ;;  %vm1053_vm9 = vcmp.ge.s32.totalorder %v1045_v62, 0 }
 0x105   : > { %v1565_v44 = vmul.f32 %v8272_v32, %v1551_v23  ;;  %v1532_v1 = vmul.f32 %v8290_v54, %v1518_v43  ;;  %1683 = vmatpush1.bf16.msra.mxu0 %v1624_v40  ;;  %1811 = vmatprep.subr.bf16.mxu1 %v1631_v13  ;;  %v8375_v40 = vadd.s32 1, %v758_v5  ;;  %vm8384_vm13 = vmand %vm957_vm4, %vm965_vm11  ;;  %v8391_v5 = vsel %vm8320_vm7, 1.0, %v12185_v63 }
 0x106   : > { %12270 = vst [vmem:[#allocation49_spill] sm:$0xff] %v8391_v5  ;;  %v8396_v43 = vsel %vm8342_vm3, 1.0, %v12185_v63  ;;  %vm814_vm7 = vmand %vm8354_vm8, %vm11995_vm15 }
 0x107   : > { %v1630_v31 = vpack.c.bf16 %v1565_v44, %v1532_v1  ;;  %v1570_v6 = vpop.permute.xlu1 %1569  ;;  %v1568_v8 = vpop.permute.xlu0 %1567  ;;  %12271 = vst [vmem:[#allocation50_spill] sm:$0xff] %v8396_v43  ;;  %v8401_v44 = vsel %vm8333_vm12, 1.0, %v12185_v63  ;;  %vm12276_vm3 = vmmov %vm12265_vm5  ;;  %vm926_vm0 = vcmp.lt.s32.totalorder %v8375_v40, 32 }
 0x108   : > { %v1589_v20 = vsel %vm12264_vm14, %v1570_v6, %v7821_v24  ;;  %v1590_v59 = vsel %vm12265_vm5, %v1568_v8, %v1570_v6  ;;  %12272 = vst [vmem:[#allocation51_spill] sm:$0xff] %v8401_v44  ;;  %vm12277_vm4 = vmmov %vm12276_vm3  ;;  %vm12280_vm14 = vcmask 1043456  }
 0x109   : > { %v1593_v13 = vmul.f32 %v8329_v14, %v1589_v20  ;;  %1812 = vmatpush1.bf16.msra.mxu1 %v1630_v31  ;;  %v1592_v24 = vmul.f32 %v8347_v3, %v1590_v59  ;;  %v8415_v20 = vsel %vm8354_vm8, 1.0, %v12185_v63  ;;  %vm8431_vm11 = vmand %vm8384_vm13, %vm12000_vm10 }
 0x10a   : > { %12275 = vst [vmem:[#allocation52_spill] sm:$0xff] %v8415_v20  ;;  %vm12281_vm5 = vmmov %vm12280_vm14  ;;  %v8467_v12 = vsel %vm8431_vm11, 1.0, %v12185_v63  ;;  %vm12293_vm11 = vcmp.lt.s32.totalorder %v7506_v10, 33 }
 0x10b   : > { %v1633_v1 = vpack.c.bf16 %v1593_v13, %v1593_v13  ;;  %v1582_v31 = vpop.permute.xlu1 %1581  ;;  %v8410_v6 = vpop.permute.xlu0 %1579  ;;  %v1632_v60 = vpack.c.bf16 %v1592_v24, %v1592_v24  ;;  %12288 = vst [vmem:[#allocation55_spill] sm:$0xff] %v8467_v12  ;;  %vm12294_vm10 = vmmov %vm12293_vm11 }
 0x10c   : > { %v1591_v49 = vsel %vm12276_vm3, %v1582_v31, %v1568_v8  ;;  %v1584_v59 = vsel %vm12277_vm4, %v8410_v6, %v1582_v31  ;;  %vm8444_vm3 = vmand %vm8405_vm2, %vm11995_vm15  ;;  %vm1061_vm4 = vcmp.lt.s32.totalorder %v1045_v62, 32  ;;  %vm1062_vm15 = vcmp.lt.s32.totalorder %v1046_v39, 32 }
 0x10d   : > { %v1599_v24 = vmul.f32 %v8391_v5, %v1591_v49  ;;  %v1598_v32 = vmul.f32 %v8396_v43, %v1584_v59  ;;  %6358 = vmatprep.subr.msk.bf16.mxu0 %vm12280_vm14, %v1633_v1  ;;  %v1653_v8 = vsel %vm12281_vm5, %v1632_v60, 0  ;;  %v8451_v49 = vsel %vm8371_vm1, 1.0, %v12185_v63  ;;  %vm8460_vm14 = vmand %vm8333_vm12, %vm925_vm6 }
 0x10e   : > { %1685 = vmatpush1.bf16.msra.mxu0 %v1653_v8  ;;  %12284 = vst [vmem:[#allocation53_spill] sm:$0xff] %v8451_v49  ;;  %v8454_v59 = vsel %vm814_vm7, 1.0, %v12185_v63  ;;  %vm1054_vm5 = vcmp.ge.s32.totalorder %v1046_v39, 0  ;;  %vm8473_vm1 = vmand %vm8354_vm8, %vm926_vm0  ;;  %vm12291_vm12 = vcmp.lt.s32.totalorder %v7506_v10, 32  ;;  %v8512_v62 = vsel %vm8444_vm3, 1.0, %v12185_v63 }
 0x10f   : > { %12285 = vst [vmem:[#allocation54_spill] sm:$0xff] %v8454_v59  ;;  %v1639_v60 = vpack.c.bf16 %v1599_v24, %v1599_v24  ;;  %v1638_v8 = vpack.c.bf16 %v1598_v32, %v1598_v32  ;;  %v1378_v43 = vpop.permute.xlu1 %1377  ;;  %v1345_v5 = vpop.permute.xlu0 %1344  ;;  %vm12292_vm7 = vmmov %vm12291_vm12  ;;  %v8522_v39 = vsel %vm8473_vm1, 1.0, %v12185_v63 }
 0x110   : > { %v1388_v24 = vsel %vm12291_vm12, %v1378_v43, %v8009_v25  ;;  %v1389_v32 = vsel %vm12292_vm7, %v7570_v29, %v1378_v43  ;;  %v1355_v13 = vsel %vm12293_vm11, %v1345_v5, %v8011_v61  ;;  %v1356_v55 = vsel %vm12294_vm10, %v7572_v30, %v1345_v5  ;;  %vm8491_vm8 = vmand %vm1053_vm9, %vm1061_vm4  ;;  %12302 = vst [vmem:[#allocation56_spill] sm:$0xff] %v8512_v62 }
 0x111   : > { %v1398_v25 = vmul.f32 %v8401_v44, %v1389_v32  ;;  %v1399_v54 = vmul.f32 %v8415_v20, %v1388_v24  ;;  %v1365_v29 = vmul.f32 %v8451_v49, %v1356_v55  ;;  %v1366_v43 = vmul.f32 %v8454_v59, %v1355_v13  ;;  %vm8503_vm10 = vmand %vm1054_vm5, %vm1062_vm15  ;;  %12304 = vst [vmem:[#allocation58_spill] sm:$0xff] %v8522_v39 }
 0x112   : > { %vm12297_vm12 = vcmask 588800   ;;  %vm12300_vm9 = vcmask 1043456   ;;  %v8517_v5 = vsel %vm8460_vm14, 1.0, %v12185_v63  ;;  %vm8528_vm15 = vmand %vm8384_vm13, %vm925_vm6  ;;  %vm12307_vm14 = vcmp.lt.s32.totalorder %v7506_v10, 1 }
 0x113   : > { %6359 = vmatmul.mubr.msk.bf16.vlgmr.msra.gmra.mrb[0].mxu0 %vm12297_vm12, %v7917_v38  ;;  %6364 = vmatprep.subr.msk.bf16.mxu1 %vm12300_vm9, %v1639_v60  ;;  %vm12301_vm4 = vmmov %vm12300_vm9  ;;  %12303 = vst [vmem:[#allocation57_spill] sm:$0xff] %v8517_v5  ;;  %v1604_v31 = vpack.c.bf16 %v1398_v25, %v1365_v29  ;;  %v1444_v1 = vpop.permute.xlu1 %1443  ;;  %v1605_v24 = vpack.c.bf16 %v1399_v54, %v1366_v43  ;;  %vm12309_vm5 = vcmp.lt.s32.totalorder %v7506_v10, 31 }
 0x114   : > { %v1671_v61 = vsel %vm12301_vm4, %v1638_v8, 0  ;;  %1794 = vmatprep.mubr.bf16.mxu0 %v12181_v18  ;;  %v1411_v8 = vpop.permute.xlu0 %1410  ;;  %vm1022_vm3 = vmand %vm8405_vm2, %vm926_vm0  ;;  %v1454_v23 = vsel %vm12307_vm14, %v1444_v1, %v8130_v45  ;;  %vm12311_vm2 = vcmp.ge.s32.totalorder %v8283_v19, 0 }
 0x115   : > { %1814 = vmatpush1.bf16.msra.mxu1 %v1671_v61  ;;  %vm12308_vm13 = vmmov %vm12307_vm14  ;;  %v1421_v32 = vsel %vm12309_vm5, %v1411_v8, %v8132_v7  ;;  %v1465_v56 = vmul.f32 %v8512_v62, %v1454_v23  ;;  %1762 = vmatprep.subr.bf16.mxu0 %v1605_v24  ;;  %vm12316_vm14 = vcmp.lt.s32.totalorder %v7506_v10, 127  ;;  %v7110_v24 = vld [vmem:[%s7380_s7 + $0x20] sm:$0xff] }
 0x116   : > { %v1455_v51 = vsel %vm12308_vm13, %v7672_v57, %v1444_v1  ;;  %vm12310_vm1 = vmmov %vm12309_vm5  ;;  %v1432_v45 = vmul.f32 %v8522_v39, %v1421_v32  ;;  %1763 = vmatpush1.bf16.msra.mxu0 %v1604_v31  ;;  %v8569_v57 = vsel %vm1022_vm3, 1.0, %v12185_v63  ;;  %v8602_v31 = vsel %vm8491_vm8, 1.0, %v12185_v63  ;;  %v7111_v32 = vld [vmem:[%s7380_s7 + $0x28] sm:$0xff]  ;;  %s12335_s7 = smov 33  }
 0x117   : > { %v1422_v54 = vsel %vm12310_vm1, %v7640_v48, %v1411_v8  ;;  %v1464_v13 = vmul.f32 %v8467_v12, %v1455_v51  ;;  %vm1077_vm7 = vmand %vm8491_vm8, %vm12311_vm2  ;;  %v8566_v48 = vsel %vm8528_vm15, 1.0, %v12185_v63  ;;  %12315 = vst [vmem:[#allocation60_spill] sm:$0xff] %v8569_v57  ;;  %v1512_v7 = vpop.permute.xlu1 %1511  ;;  %v8607_v1 = vsel %vm8503_vm10, 1.0, %v12185_v63  ;;  %v8911_v12 = vld [vmem:[%s12343_s5 + $0x4] ss:$8 sps:$4 sm:$0xff]   ;;  %s12445_s5 = sld [smem:[#allocation90_spill]] }
 0x118   : > { %v1431_v55 = vmul.f32 %v8517_v5, %v1422_v54  ;;  %vm12312_vm11 = vmmov %vm12297_vm12  ;;  %vm12313_vm12 = vcmp.ge.s32.totalorder %v8300_v52, 0  ;;  %12314 = vst [vmem:[#allocation59_spill] sm:$0xff] %v8566_v48  ;;  %v1479_v25 = vpop.permute.xlu0 %1478  ;;  %v1613_v29 = vpack.c.bf16 %v1465_v56, %v1432_v45  ;;  %v8586_v40 = vsel %vm1077_vm7, 1.0, %v12185_v63 }
 0x119   : > { %6365 = vmatmul.mubr.msk.bf16.vlgmr.msra.gmra.mrb[4].mxu1 %vm12312_vm11, %v7917_v38  ;;  %vm1078_vm9 = vmand %vm8503_vm10, %vm12313_vm12  ;;  %v1486_v52 = vsel %vm12316_vm14, %v1479_v25, %v8179_v34  ;;  %12318 = vst [vmem:[#allocation61_spill] sm:$0xff] %v8586_v40  ;;  %vm12328_vm13 = vcmp.lt.s32.totalorder %v7506_v10, 96  ;;  %vm12330_vm1 = vcmask 1043456   ;;  %vm12351_vm12 = vcmp.lt.s32.totalorder %v7506_v10, 33 }
 0x11a   : > { %v1612_v19 = vpack.c.bf16 %v1464_v13, %v1431_v55  ;;  %vm1150_vm4 = vmand %vm8503_vm10, %vm926_vm0  ;;  %v8589_v61 = vsel %vm1078_vm9, 1.0, %v12185_v63  ;;  %v1498_v34 = vmul.f32 %v8569_v57, %v1486_v52  ;;  %1764 = vmatprep.subr.bf16.mxu0 %v1613_v29  ;;  %vm12320_vm0 = vcmp.lt.s32.totalorder %v7506_v10, 97  ;;  %12322 = vst [vmem:[#allocation64_spill] sm:$0xff] %v8602_v31 }
 0x11b   : > { %vm12317_vm15 = vmmov %vm12316_vm14  ;;  %12319 = vst [vmem:[#allocation62_spill] sm:$0xff] %v8589_v61  ;;  %v8597_v4 = vsel %vm1150_vm4, 1.0, %v12185_v63  ;;  %v1578_v51 = vpop.permute.xlu1 %1577 }
 0x11c   : > { %v1487_v43 = vsel %vm12317_vm15, %v7714_v22, %v1479_v25  ;;  %vm1149_vm3 = vmand %vm8491_vm8, %vm925_vm6  ;;  %v1520_v22 = vsel %vm12320_vm0, %v7756_v47, %v1512_v7  ;;  %1765 = vmatpush1.bf16.msra.mxu0 %v1612_v19  ;;  %12321 = vst [vmem:[#allocation63_spill] sm:$0xff] %v8597_v4  ;;  %v1621_v54 = vpack.c.bf16 %v1498_v34, %v7111_v32  ;;  %vm12326_vm8 = vcmp.lt.s32.totalorder %v7506_v10, 95  ;;  %v1545_v13 = vpop.permute.xlu0 %1544 }
 0x11d   : > { %v1497_v60 = vmul.f32 %v8566_v48, %v1487_v43  ;;  %12323 = vst [vmem:[#allocation65_spill] sm:$0xff] %v8607_v1  ;;  %vm12324_vm6 = vmmov %vm12320_vm0  ;;  %v8614_v23 = vsel %vm1149_vm3, 1.0, %v12185_v63  ;;  %v1585_v37 = vsel %vm12326_vm8, %v1578_v51, %v8410_v6  ;;  %v1530_v56 = vmul.f32 %v8586_v40, %v1520_v22  ;;  %s12446_s29 = smov %s12445_s5 }
 0x11e   : > { %v1519_v8 = vsel %vm12324_vm6, %v1512_v7, %v8304_v21  ;;  %12325 = vst [vmem:[#allocation66_spill] sm:$0xff] %v8614_v23  ;;  %vm12327_vm10 = vmmov %vm12326_vm8  ;;  %v1597_v21 = vmul.f32 %v8597_v4, %v1585_v37  ;;  %v1552_v55 = vsel %vm12328_vm13, %v1545_v13, %v8302_v11  ;;  %1766 = vmatprep.subr.bf16.mxu0 %v1621_v54  ;;  %vm12358_vm0 = vcmp.lt.s32.totalorder %v7506_v10, 32 }
 0x11f   : > { %v1620_v47 = vpack.c.bf16 %v1497_v60, %v7110_v24  ;;  %v1586_v30 = vsel %vm12327_vm10, %v7860_v17, %v1578_v51  ;;  %vm12329_vm5 = vmmov %vm12328_vm13  ;;  %v1531_v6 = vmul.f32 %v8589_v61, %v1519_v8  ;;  %v1564_v7 = vmul.f32 %v8607_v1, %v1552_v55  ;;  %12345 = vst [vmem:[#allocation72_spill] sm:$0xff] %v8911_v12 }
 0x120   : > { %v1553_v45 = vsel %vm12329_vm5, %v7785_v58, %v1545_v13  ;;  %v1596_v19 = vmul.f32 %v8614_v23, %v1586_v30  ;;  %v1637_v25 = vpack.c.bf16 %v1597_v21, %v1597_v21  ;;  %vm12331_vm2 = vmmov %vm12330_vm1  ;;  %vm12363_vm13 = vcmp.lt.s32.totalorder %v7506_v10, 31 }
 0x121   : > { %v1563_v17 = vmul.f32 %v8602_v31, %v1553_v45  ;;  %1767 = vmatpush1.bf16.msra.mxu0 %v1620_v47  ;;  %v1629_v52 = vpack.c.bf16 %v1564_v7, %v1531_v6  ;;  %vm12332_vm7 = vmmov %vm12312_vm11  ;;  %vm2527_vm11 = vcmask 130048  }
 0x122   : > { %v1636_v43 = vpack.c.bf16 %v1596_v19, %v1596_v19  ;;  %6374 = vmatprep.mubr.msk.bf16.mxu1 %vm2527_vm11, %v8911_v12  ;;  %vm12352_vm9 = vmmov %vm12351_vm12 }
 0x123   : > { %v1628_v29 = vpack.c.bf16 %v1563_v17, %v1530_v56  ;;  %1768 = vmatprep.subr.bf16.mxu0 %v1629_v52  ;;  %vm12353_vm4 = vmmov %vm12352_vm9 }
 0x124   : > { %v1665_v58 = vsel %vm12331_vm2, %v1636_v43, 0  ;;  %vm12355_vm14 = vmmov %vm12353_vm4 }
 0x125   : > { %1769 = vmatpush1.bf16.msra.mxu0 %v1628_v29  ;;  %vm12356_vm15 = vmmov %vm12353_vm4 }
 0x126   : > { %6362 = vmatprep.subr.msk.bf16.mxu0 %vm12330_vm1, %v1637_v25  ;;  %vm12357_vm3 = vmmov %vm12353_vm4 }
 0x127   : > { %vm12359_vm6 = vmmov %vm12358_vm0 }
 0x128   : > { %vm12360_vm8 = vmmov %vm12358_vm0 }
 0x129   : > { %1771 = vmatpush1.bf16.msra.mxu0 %v1665_v58  ;;  %vm12361_vm10 = vmmov %vm12358_vm0 }
 0x12a   : > { %vm12364_vm5 = vmmov %vm12363_vm13 }
 0x12b   : > { %vm12365_vm1 = vmmov %vm12364_vm5 }
 0x12c   : > { %6363 = vmatmul.mubr.msk.bf16.vlgmr.msra.gmra.mrb[4].mxu0 %vm12332_vm7, %v7917_v38  ;;  %v8643_v8 = vpop.permute.xlu1 %1873  ;;  %vm12366_vm2 = vmmov %vm12365_vm1  ;;  %vm12367_vm7 = vcmp.lt.s32.totalorder %v7506_v10, 1 }
 0x12d   : > { %v8645_v24 = vpop.permute.xlu0 %1868  ;;  %6372 = vmatprep.mubr.msk.bf16.mxu0 %vm2527_vm11, %v8911_v12 }
 0x130   : > { %v8648_v21 = vpop.permute.xlu1 %1897 }
 0x131   : > { %v8657_v17 = vpop.permute.xlu0 %1902 }
 0x1a8   : > { %v1753_v11 = vpop.f32.mrb[0].mxu1 }
 0x1a9   : > { %v8639_v60 = vpop.f32.mrb[1].mxu1  ;;  %v1850_v51 = vmax.f32 %v1753_v11, 0.0 }
 0x1aa   : > { %v1757_v34 = vpop.f32.mrb[2].mxu1 }
 0x1ab   : > { %v8641_v22 = vpop.f32.mrb[3].mxu1  ;;  %v1858_v30 = vmax.f32 %v1757_v34, 0.0  ;;  %v1878_v55 = vmul.f32 %v8645_v24, %v1850_v51 }
 0x1ad   : > { %v1886_v25 = vmul.f32 %v8643_v8, %v1858_v30  ;;  %v8672_v58 = vadd.f32 %v8648_v21, %v1878_v55  ;;  %v1859_v55 = vmax.f32 %v8641_v22, 0.0 }
 0x1af   : > { %v8677_v11 = vadd.f32 %v8657_v17, %v1886_v25 }
 0x1e6   : > { %v1710_v47 = vpop.f32.mrb[0].mxu0 }
 0x1e7   : > { %v1848_v32 = vmax.f32 %v1710_v47, 0.0  ;;  %v1712_v54 = vpop.f32.mrb[1].mxu0 }
 0x1e8   : > { %v1714_v37 = vpop.f32.mrb[2].mxu0 }
 0x1e9   : > { %v1876_v13 = vmul.f32 %v8645_v24, %v1848_v32  ;;  %v1856_v56 = vmax.f32 %v1714_v37, 0.0  ;;  %v1716_v38 = vpop.f32.mrb[3].mxu0  ;;  %v1849_v37 = vmax.f32 %v1712_v54, 0.0 }
 0x1ea   : > { %v1857_v30 = vmax.f32 %v1716_v38, 0.0 }
 0x1eb   : > { %v8652_v45 = vadd.f32 %v8648_v21, %v1876_v13  ;;  %v1884_v6 = vmul.f32 %v8643_v8, %v1856_v56  ;;  %v1851_v13 = vmax.f32 %v8639_v60, 0.0  ;;  %v1877_v56 = vmul.f32 %v8645_v24, %v1849_v37 }
 0x1ec   : > { %v8655_v19 = vpop.f32.mrb[4].mxu1  ;;  %v1887_v60 = vmul.f32 %v8643_v8, %v1859_v55 }
 0x1ed   : > { %12333 = vst [vmem:[#allocation67_spill] sm:$0xff] %v8652_v45  ;;  %v8659_v7 = vpop.f32.mrb[5].mxu1  ;;  %v8663_v29 = vadd.f32 %v8657_v17, %v1884_v6  ;;  %1921 = vrot.lane.b32.xlu1 %v8652_v45, %s12335_s7  ;;  %v1885_v6 = vmul.f32 %v8643_v8, %v1857_v30  ;;  %v1879_v54 = vmul.f32 %v8645_v24, %v1851_v13 }
 0x1ee   : > { %v8665_v52 = vpop.f32.mrb[6].mxu1  ;;  %v8741_v38 = vadd.f32 %v8648_v21, %v1877_v56  ;;  %v8757_v37 = vadd.f32 %v8657_v17, %v1887_v60 }
 0x1ef   : > { %12334 = vst [vmem:[#allocation68_spill] sm:$0xff] %v8663_v29  ;;  %v8669_v43 = vpop.f32.mrb[7].mxu1  ;;  %1923 = vrot.lane.b32.xlu0 %v8663_v29, %s12335_s7  ;;  %v8747_v25 = vadd.f32 %v8657_v17, %v1885_v6  ;;  %v8752_v22 = vadd.f32 %v8648_v21, %v1879_v54  ;;  %v1862_v33 = vmax.f32 %v8665_v52, 0.0 }
 0x1f0   : > { %v1863_v60 = vmax.f32 %v8669_v43, 0.0 }
 0x1f1   : > { %1929 = vrot.lane.b32.xlu1 %v8672_v58, %s12335_s7 }
 0x1f3   : > { %1931 = vrot.lane.b32.xlu0 %v8677_v11, %s12335_s7 }
 0x1f5   : > { %1985 = vrot.lane.b32.xlu1 %v8652_v45, %s12336_s25 }
 0x1f7   : > { %1987 = vrot.lane.b32.xlu0 %v8663_v29, %s12336_s25 }
 0x1f9   : > { %1993 = vrot.lane.b32.xlu1 %v8672_v58, %s12336_s25 }
 0x1fb   : > { %1995 = vrot.lane.b32.xlu0 %v8677_v11, %s12336_s25 }
 0x1fd   : > { %2049 = vrot.lane.b32.xlu1 %v8652_v45, %s12133_s8 }
 0x1ff   : > { %v8693_v34 = vpop.f32.mrb[4].mxu0  ;;  %2051 = vrot.lane.b32.xlu0 %v8663_v29, %s12133_s8 }
 0x200   : > { %v8697_v47 = vpop.f32.mrb[5].mxu0  ;;  %v1852_v30 = vmax.f32 %v8693_v34, 0.0 }
 0x201   : > { %v1800_v51 = vpop.f32.mrb[6].mxu0  ;;  %2057 = vrot.lane.b32.xlu1 %v8672_v58, %s12133_s8  ;;  %v1853_v5 = vmax.f32 %v8697_v47, 0.0 }
 0x202   : > { %v8701_v32 = vpop.f32.mrb[7].mxu0  ;;  %v1860_v13 = vmax.f32 %v1800_v51, 0.0  ;;  %v1880_v56 = vmul.f32 %v8645_v24, %v1852_v30  ;;  %v1855_v51 = vmax.f32 %v8659_v7, 0.0  ;;  %v1891_v7 = vmul.f32 %v8643_v8, %v1863_v60 }
 0x203   : > { %2059 = vrot.lane.b32.xlu0 %v8677_v11, %s12133_s8  ;;  %v1881_v59 = vmul.f32 %v8645_v24, %v1853_v5 }
 0x204   : > { %v1888_v55 = vmul.f32 %v8643_v8, %v1860_v13  ;;  %v8813_v6 = vadd.f32 %v8648_v21, %v1880_v56  ;;  %v1883_v13 = vmul.f32 %v8645_v24, %v1855_v51  ;;  %v8850_v51 = vadd.f32 %v8657_v17, %v1891_v7 }
 0x205   : > { %2113 = vrot.lane.b32.xlu1 %v8652_v45, %s12337_s2  ;;  %v8940_v12 = vadd.f32 %v8648_v21, %v1881_v59 }
 0x206   : > { %12340 = vst [vmem:[#allocation69_spill] sm:$0xff] %v8813_v6  ;;  %v8818_v34 = vadd.f32 %v8657_v17, %v1888_v55  ;;  %v8843_v43 = vadd.f32 %v8648_v21, %v1883_v13 }
 0x207   : > { %2115 = vrot.lane.b32.xlu0 %v8663_v29, %s12337_s2  ;;  %12348 = vst [vmem:[#allocation75_spill] sm:$0xff] %v8940_v12 }
 0x208   : > { %12341 = vst [vmem:[#allocation70_spill] sm:$0xff] %v8818_v34 }
 0x209   : > { %2121 = vrot.lane.b32.xlu1 %v8672_v58, %s12337_s2 }
 0x20b   : > { %2123 = vrot.lane.b32.xlu0 %v8677_v11, %s12337_s2 }
 0x20d   : > { %2185 = vrot.lane.b32.xlu1 %v8672_v58, %s12139_s4 }
 0x20f   : > { %2187 = vrot.lane.b32.xlu0 %v8677_v11, %s12139_s4 }
 0x211   : > { %2177 = vrot.lane.b32.xlu1 %v8652_v45, %s12139_s4 }
 0x213   : > { %2179 = vrot.lane.b32.xlu0 %v8663_v29, %s12139_s4 }
 0x215   : > { %2249 = vrot.lane.b32.xlu1 %v8672_v58, %s12338_s0 }
 0x217   : > { %2251 = vrot.lane.b32.xlu0 %v8677_v11, %s12338_s0 }
 0x219   : > { %2241 = vrot.lane.b32.xlu1 %v8652_v45, %s12338_s0 }
 0x21b   : > { %2243 = vrot.lane.b32.xlu0 %v8663_v29, %s12338_s0 }
 0x21d   : > { %2313 = vrot.lane.b32.xlu1 %v8672_v58, %s12339_s27 }
 0x21f   : > { %2315 = vrot.lane.b32.xlu0 %v8677_v11, %s12339_s27 }
 0x221   : > { %2305 = vrot.lane.b32.xlu1 %v8652_v45, %s12339_s27 }
 0x223   : > { %2307 = vrot.lane.b32.xlu0 %v8663_v29, %s12339_s27 }
 0x225   : > { %1925 = vrot.lane.b32.xlu1 %v8741_v38, %s12335_s7 }
 0x227   : > { %1927 = vrot.lane.b32.xlu0 %v8747_v25, %s12335_s7 }
 0x229   : > { %1933 = vrot.lane.b32.xlu1 %v8752_v22, %s12335_s7 }
 0x22b   : > { %1935 = vrot.lane.b32.xlu0 %v8757_v37, %s12335_s7 }
 0x22d   : > { %1989 = vrot.lane.b32.xlu1 %v8741_v38, %s12336_s25 }
 0x22f   : > { %1991 = vrot.lane.b32.xlu0 %v8747_v25, %s12336_s25 }
 0x231   : > { %1997 = vrot.lane.b32.xlu1 %v8752_v22, %s12336_s25 }
 0x233   : > { %1999 = vrot.lane.b32.xlu0 %v8757_v37, %s12336_s25 }
 0x235   : > { %2053 = vrot.lane.b32.xlu1 %v8741_v38, %s12133_s8 }
 0x237   : > { %2055 = vrot.lane.b32.xlu0 %v8747_v25, %s12133_s8 }
 0x239   : > { %2061 = vrot.lane.b32.xlu1 %v8752_v22, %s12133_s8 }
 0x23b   : > { %2063 = vrot.lane.b32.xlu0 %v8757_v37, %s12133_s8 }
 0x23d   : > { %2117 = vrot.lane.b32.xlu1 %v8741_v38, %s12337_s2 }
 0x23f   : > { %2119 = vrot.lane.b32.xlu0 %v8747_v25, %s12337_s2 }
 0x241   : > { %2125 = vrot.lane.b32.xlu1 %v8752_v22, %s12337_s2 }
 0x243   : > { %2127 = vrot.lane.b32.xlu0 %v8757_v37, %s12337_s2 }
 0x245   : > { %2181 = vrot.lane.b32.xlu1 %v8741_v38, %s12139_s4 }
 0x247   : > { %2183 = vrot.lane.b32.xlu0 %v8747_v25, %s12139_s4 }
 0x249   : > { %2189 = vrot.lane.b32.xlu1 %v8752_v22, %s12139_s4 }
 0x24b   : > { %2191 = vrot.lane.b32.xlu0 %v8757_v37, %s12139_s4 }
 0x24d   : > { %2245 = vrot.lane.b32.xlu1 %v8741_v38, %s12338_s0 }
 0x24f   : > { %2247 = vrot.lane.b32.xlu0 %v8747_v25, %s12338_s0 }
 0x251   : > { %2253 = vrot.lane.b32.xlu1 %v8752_v22, %s12338_s0 }
 0x253   : > { %2255 = vrot.lane.b32.xlu0 %v8757_v37, %s12338_s0 }
 0x255   : > { %2309 = vrot.lane.b32.xlu1 %v8741_v38, %s12339_s27 }
 0x257   : > { %2311 = vrot.lane.b32.xlu0 %v8747_v25, %s12339_s27 }
 0x259   : > { %2317 = vrot.lane.b32.xlu1 %v8752_v22, %s12339_s27 }
 0x25b   : > { %2319 = vrot.lane.b32.xlu0 %v8757_v37, %s12339_s27 }
 0x25d   : > { %2193 = vrot.lane.b32.xlu1 %v8813_v6, %s12139_s4 }
 0x25f   : > { %v8823_v54 = vpop.permute.xlu1 %1921  ;;  %2195 = vrot.lane.b32.xlu0 %v8818_v34, %s12139_s4 }
 0x261   : > { %2257 = vrot.lane.b32.xlu1 %v8813_v6, %s12338_s0  ;;  %v8830_v30 = vpop.permute.xlu0 %1923 }
 0x263   : > { %v8833_v56 = vpop.permute.xlu1 %1929  ;;  %2259 = vrot.lane.b32.xlu0 %v8818_v34, %s12338_s0 }
 0x265   : > { %2321 = vrot.lane.b32.xlu1 %v8813_v6, %s12339_s27  ;;  %v8840_v55 = vpop.permute.xlu0 %1931 }
 0x267   : > { %v8845_v63 = vpop.permute.xlu1 %1985  ;;  %2323 = vrot.lane.b32.xlu0 %v8818_v34, %s12339_s27 }
 0x269   : > { %1949 = vrot.lane.b32.xlu1 %v8843_v43, %s12335_s7  ;;  %v8854_v60 = vpop.permute.xlu0 %1987 }
 0x26b   : > { %v8856_v50 = vpop.permute.xlu1 %1993  ;;  %1951 = vrot.lane.b32.xlu0 %v8850_v51, %s12335_s7 }
 0x26d   : > { %2013 = vrot.lane.b32.xlu1 %v8843_v43, %s12336_s25  ;;  %v8862_v13 = vpop.permute.xlu0 %1995 }
 0x26f   : > { %v8864_v18 = vpop.permute.xlu1 %2049  ;;  %2015 = vrot.lane.b32.xlu0 %v8850_v51, %s12336_s25 }
 0x271   : > { %2077 = vrot.lane.b32.xlu1 %v8843_v43, %s12133_s8  ;;  %v8870_v7 = vpop.permute.xlu0 %2051 }
 0x273   : > { %v8872_v4 = vpop.permute.xlu1 %2057  ;;  %2079 = vrot.lane.b32.xlu0 %v8850_v51, %s12133_s8 }
 0x275   : > { %2141 = vrot.lane.b32.xlu1 %v8843_v43, %s12337_s2  ;;  %v8878_v23 = vpop.permute.xlu0 %2059 }
 0x277   : > { %v8880_v31 = vpop.permute.xlu1 %2113  ;;  %2143 = vrot.lane.b32.xlu0 %v8850_v51, %s12337_s2 }
 0x279   : > { %2373 = vrot.lane.b32.xlu1 %v8741_v38, %s12134_s1  ;;  %v8886_v1 = vpop.permute.xlu0 %2115 }
 0x27b   : > { %v8888_v40 = vpop.permute.xlu1 %2121  ;;  %2375 = vrot.lane.b32.xlu0 %v8747_v25, %s12134_s1 }
 0x27d   : > { %2377 = vrot.lane.b32.xlu1 %v8672_v58, %s12134_s1  ;;  %v8894_v61 = vpop.permute.xlu0 %2123 }
 0x27f   : > { %v8896_v48 = vpop.permute.xlu1 %2185  ;;  %2379 = vrot.lane.b32.xlu0 %v8677_v11, %s12134_s1 }
 0x281   : > { %2369 = vrot.lane.b32.xlu1 %v8652_v45, %s12134_s1  ;;  %v8902_v57 = vpop.permute.xlu0 %2187 }
 0x283   : > { %v8904_v62 = vpop.permute.xlu1 %2177  ;;  %2371 = vrot.lane.b32.xlu0 %v8663_v29, %s12134_s1 }
 0x284   : > { %12342 = vst [vmem:[#allocation71_spill] sm:$0xff] %v8904_v62 }
 0x285   : > { %2381 = vrot.lane.b32.xlu1 %v8752_v22, %s12134_s1  ;;  %v8915_v39 = vpop.permute.xlu0 %2179 }
 0x287   : > { %v8922_v20 = vpop.permute.xlu1 %2249  ;;  %2383 = vrot.lane.b32.xlu0 %v8757_v37, %s12134_s1 }
 0x289   : > { %2385 = vrot.lane.b32.xlu1 %v8813_v6, %s12134_s1  ;;  %v8928_v44 = vpop.permute.xlu0 %2251 }
 0x28b   : > { %v8931_v49 = vpop.permute.xlu1 %2241  ;;  %2387 = vrot.lane.b32.xlu0 %v8818_v34, %s12134_s1 }
 0x28c   : > { %12346 = vst [vmem:[#allocation73_spill] sm:$0xff] %v8931_v49 }
 0x28d   : > { %1937 = vrot.lane.b32.xlu1 %v8813_v6, %s12335_s7  ;;  %v8937_v47 = vpop.permute.xlu0 %2243 }
 0x28e   : > { %12347 = vst [vmem:[#allocation74_spill] sm:$0xff] %v8937_v47 }
 0x28f   : > { %v8942_v3 = vpop.permute.xlu1 %2313  ;;  %1939 = vrot.lane.b32.xlu0 %v8818_v34, %s12335_s7 }
 0x291   : > { %1941 = vrot.lane.b32.xlu1 %v8940_v12, %s12335_s7  ;;  %v8948_v5 = vpop.permute.xlu0 %2315 }
 0x293   : > { %v8950_v14 = vpop.permute.xlu1 %2305  ;;  %2003 = vrot.lane.b32.xlu0 %v8818_v34, %s12336_s25 }
 0x294   : > { %12349 = vst [vmem:[#allocation76_spill] sm:$0xff] %v8950_v14  ;;  %v1890_v14 = vmul.f32 %v8643_v8, %v1862_v33 }
 0x295   : > { %2001 = vrot.lane.b32.xlu1 %v8813_v6, %s12336_s25  ;;  %v8957_v59 = vpop.permute.xlu0 %2307 }
 0x296   : > { %12350 = vst [vmem:[#allocation77_spill] sm:$0xff] %v8957_v59  ;;  %v8984_v16 = vadd.f32 %v8657_v17, %v1890_v14 }
 0x297   : > { %v1926_v46 = vpop.permute.xlu1 %1925  ;;  %2067 = vrot.lane.b32.xlu0 %v8818_v34, %s12133_s8 }
 0x298   : > { %v1965_v49 = vsel %vm12351_vm12, %v8823_v54, %v1926_v46  ;;  %vm12369_vm12 = vmmov %vm12367_vm7 }
 0x299   : > { %2005 = vrot.lane.b32.xlu1 %v8940_v12, %s12336_s25  ;;  %v1928_v9 = vpop.permute.xlu0 %1927  ;;  %v1970_v59 = vmul.f32 %v7883_v41, %v1965_v49  ;;  %v1963_v49 = vsel %vm12356_vm15, %v1926_v46, %v8833_v56 }
 0x29a   : > { %v1966_v52 = vsel %vm12352_vm9, %v8830_v30, %v1928_v9  ;;  %v1964_v47 = vsel %vm12353_vm4, %v1928_v9, %v8840_v55  ;;  %v1971_v46 = vmul.f32 %v7594_v35, %v1963_v49  ;;  %vm12370_vm9 = vmmov %vm12367_vm7 }
 0x29b   : > { %v1978_v29 = vmul.f32 %v7883_v41, %v1966_v52  ;;  %v8975_v45 = vpop.permute.xlu1 %1933  ;;  %2131 = vrot.lane.b32.xlu0 %v8818_v34, %s12337_s2  ;;  %v1979_v52 = vmul.f32 %v7594_v35, %v1964_v47  ;;  %vm12373_vm4 = vmmov %vm12367_vm7 }
 0x29c   : > { %12354 = vst [vmem:[#allocation78_spill] sm:$0xff] %v8975_v45  ;;  %v1961_v33 = vsel %vm12355_vm14, %v8833_v56, %v8975_v45  ;;  %vm12375_vm14 = vcmp.lt.s32.totalorder %v7506_v10, 127 }
 0x29d   : > { %2065 = vrot.lane.b32.xlu1 %v8813_v6, %s12133_s8  ;;  %v8991_v41 = vpop.permute.xlu0 %1935  ;;  %v2434_v9 = vpack.c.bf16 %v1978_v29, %v1970_v59  ;;  %v1972_v14 = vmul.f32 %v7561_v26, %v1961_v33  ;;  %v1861_v29 = vmax.f32 %v8701_v32, 0.0  ;;  %v2435_v47 = vpack.c.bf16 %v1979_v52, %v1971_v46  ;;  %vm12377_vm15 = vmmov %vm12375_vm14 }
 0x29e   : > { %v1962_v34 = vsel %vm12357_vm3, %v8840_v55, %v8991_v41  ;;  %vm12378_vm3 = vmmov %vm12375_vm14 }
 0x29f   : > { %v1980_v45 = vmul.f32 %v7561_v26, %v1962_v34  ;;  %v9000_v62 = vpop.permute.xlu1 %1989  ;;  %2203 = vrot.lane.b32.xlu0 %v8984_v16, %s12139_s4  ;;  %2534 = vmatprep.subr.bf16.mxu0 %v2434_v9  ;;  %v1854_v9 = vmax.f32 %v8655_v19, 0.0 }
 0x2a0   : > { %v2027_v32 = vsel %vm12360_vm8, %v9000_v62, %v8856_v50 }
 0x2a1   : > { %2069 = vrot.lane.b32.xlu1 %v8940_v12, %s12133_s8  ;;  %v9008_v56 = vpop.permute.xlu0 %1991  ;;  %v2436_v55 = vpack.c.bf16 %v1980_v45, %v1972_v14  ;;  %v1889_v45 = vmul.f32 %v8643_v8, %v1861_v29 }
 0x2a2   : > { %v2028_v26 = vsel %vm12358_vm0, %v9008_v56, %v8862_v13  ;;  %vm12381_vm0 = vmmov %vm12378_vm3 }
 0x2a3   : > { %v9014_v34 = vpop.permute.xlu1 %1997  ;;  %2267 = vrot.lane.b32.xlu0 %v8984_v16, %s12338_s0  ;;  %2587 = vmatprep.subr.bf16.mxu1 %v2436_v55  ;;  %v2043_v33 = vmul.f32 %v7599_v36, %v2028_v26  ;;  %v9045_v46 = vadd.f32 %v8657_v17, %v1889_v45  ;;  %v1882_v55 = vmul.f32 %v8645_v24, %v1854_v9 }
 0x2a4   : > { %v2025_v35 = vsel %vm12359_vm6, %v8856_v50, %v9014_v34  ;;  %2588 = vmatpush1.bf16.msra.mxu1 %v2435_v47  ;;  %v2035_v50 = vmul.f32 %v7599_v36, %v2027_v32  ;;  %vm12382_vm6 = vcmp.lt.s32.totalorder %v7506_v10, 97 }
 0x2a5   : > { %2129 = vrot.lane.b32.xlu1 %v8813_v6, %s12337_s2  ;;  %v9029_v59 = vpop.permute.xlu0 %1999  ;;  %v2036_v8 = vmul.f32 %v7566_v27, %v2025_v35  ;;  %12362 = vst [vmem:[#allocation79_spill] sm:$0xff] %v9045_v46  ;;  %v9078_v45 = vadd.f32 %v8648_v21, %v1882_v55  ;;  %vm12385_vm8 = vmmov %vm12382_vm6 }
 0x2a6   : > { %v2026_v49 = vsel %vm12361_vm10, %v8862_v13, %v9029_v59  ;;  %v2443_v29 = vpack.c.bf16 %v2043_v33, %v2035_v50  ;;  %vm12386_vm10 = vmmov %vm12382_vm6 }
 0x2a7   : > { %v2044_v52 = vmul.f32 %v7566_v27, %v2026_v49  ;;  %v9039_v14 = vpop.permute.xlu1 %2053  ;;  %2331 = vrot.lane.b32.xlu0 %v8984_v16, %s12339_s27 }
 0x2a8   : > { %v2091_v24 = vsel %vm12365_vm1, %v9039_v14, %v8872_v4 }
 0x2a9   : > { %2133 = vrot.lane.b32.xlu1 %v8940_v12, %s12337_s2  ;;  %v9049_v13 = vpop.permute.xlu0 %2055  ;;  %v2444_v19 = vpack.c.bf16 %v2044_v52, %v2036_v8  ;;  %v2099_v49 = vmul.f32 %v7690_v2, %v2091_v24 }
 0x2aa   : > { %v2092_v27 = vsel %vm12363_vm13, %v9049_v13, %v8878_v23  ;;  %vm12388_vm13 = vmmov %vm12382_vm6 }
 0x2ab   : > { %v9056_v47 = vpop.permute.xlu1 %2061  ;;  %1943 = vrot.lane.b32.xlu0 %v9045_v46, %s12335_s7  ;;  %2589 = vmatprep.subr.bf16.mxu1 %v2444_v19  ;;  %v2107_v26 = vmul.f32 %v7690_v2, %v2092_v27  ;;  %v12372_v19 = vld [vmem:[#allocation14_spill] sm:$0xff]  ;;  %v12374_v27 = vld [vmem:[#allocation13_spill] sm:$0xff] }
 0x2ac   : > { %v2089_v36 = vsel %vm12364_vm5, %v8872_v4, %v9056_v47  ;;  %2590 = vmatpush1.bf16.msra.mxu1 %v2443_v29  ;;  %vm12389_vm5 = vcmp.lt.s32.totalorder %v7506_v10, 96 }
 0x2ad   : > { %2197 = vrot.lane.b32.xlu1 %v8940_v12, %s12139_s4  ;;  %v9070_v17 = vpop.permute.xlu0 %2063  ;;  %v2100_v32 = vmul.f32 %v7657_v53, %v2089_v36  ;;  %v2451_v8 = vpack.c.bf16 %v2107_v26, %v2099_v49  ;;  %vm12391_vm1 = vmmov %vm12389_vm5 }
 0x2ae   : > { %v2090_v35 = vsel %vm12366_vm2, %v8878_v23, %v9070_v17  ;;  %vm12392_vm2 = vmmov %vm12391_vm1 }
 0x2af   : > { %v2108_v33 = vmul.f32 %v7657_v53, %v2090_v35  ;;  %v9082_v4 = vpop.permute.xlu1 %2117  ;;  %2007 = vrot.lane.b32.xlu0 %v9045_v46, %s12336_s25 }
 0x2b0   : > { %v2155_v52 = vsel %vm12370_vm9, %v9082_v4, %v8888_v40  ;;  %vm12397_vm9 = vcmp.lt.s32.totalorder %v7506_v10, 33 }
 0x2b1   : > { %2201 = vrot.lane.b32.xlu1 %v9078_v45, %s12139_s4  ;;  %v9089_v9 = vpop.permute.xlu0 %2119  ;;  %v2452_v23 = vpack.c.bf16 %v2108_v33, %v2100_v32 }
 0x2b2   : > { %v2156_v21 = vsel %vm12367_vm7, %v9089_v9, %v8894_v61  ;;  %vm12394_vm7 = vmmov %vm12391_vm1 }
 0x2b3   : > { %v9095_v53 = vpop.permute.xlu1 %2125  ;;  %2071 = vrot.lane.b32.xlu0 %v9045_v46, %s12133_s8  ;;  %2591 = vmatprep.subr.bf16.mxu1 %v2452_v23  ;;  %v2171_v29 = vmul.f32 %v12372_v19, %v2156_v21 }
 0x2b4   : > { %12368 = vst [vmem:[#allocation80_spill] sm:$0xff] %v9095_v53  ;;  %v2153_v2 = vsel %vm12369_vm12, %v8888_v40, %v9095_v53  ;;  %2592 = vmatpush1.bf16.msra.mxu1 %v2451_v8  ;;  %v2163_v40 = vmul.f32 %v12372_v19, %v2155_v52  ;;  %v2467_v8 = vpack.c.bf16 %v8677_v11, %v8672_v58  ;;  %vm12395_vm12 = vcmp.lt.s32.totalorder %v7506_v10, 32 }
 0x2b5   : > { %2261 = vrot.lane.b32.xlu1 %v8940_v12, %s12338_s0  ;;  %v9109_v50 = vpop.permute.xlu0 %2127  ;;  %v2164_v36 = vmul.f32 %v12374_v27, %v2153_v2 }
 0x2b6   : > { %12371 = vst [vmem:[#allocation81_spill] sm:$0xff] %v9109_v50  ;;  %v2154_v55 = vsel %vm12373_vm4, %v8894_v61, %v9109_v50  ;;  %v2459_v33 = vpack.c.bf16 %v2171_v29, %v2163_v40  ;;  %v2468_v61 = vpack.c.bf16 %v8757_v37, %v8752_v22  ;;  %v12380_v40 = vld [vmem:[#allocation17_spill] sm:$0xff]  ;;  %vm12398_vm4 = vmmov %vm12395_vm12 }
 0x2b7   : > { %v2172_v24 = vmul.f32 %v12374_v27, %v2154_v55  ;;  %v9118_v26 = vpop.permute.xlu1 %2181  ;;  %2135 = vrot.lane.b32.xlu0 %v9045_v46, %s12337_s2 }
 0x2b9   : > { %2265 = vrot.lane.b32.xlu1 %v9078_v45, %s12338_s0  ;;  %v9125_v35 = vpop.permute.xlu0 %2183  ;;  %v2460_v32 = vpack.c.bf16 %v2172_v24, %v2164_v36 }
 0x2bb   : > { %v2190_v49 = vpop.permute.xlu1 %2189  ;;  %2199 = vrot.lane.b32.xlu0 %v9045_v46, %s12139_s4  ;;  %2593 = vmatprep.subr.bf16.mxu1 %v2460_v32 }
 0x2bc   : > { %2594 = vmatpush1.bf16.msra.mxu1 %v2459_v33  ;;  %v2217_v36 = vsel %vm12378_vm3, %v8896_v48, %v2190_v49  ;;  %vm12402_vm3 = vmmov %vm12398_vm4 }
 0x2bd   : > { %2325 = vrot.lane.b32.xlu1 %v8940_v12, %s12339_s27  ;;  %2595 = vmatprep.subr.bf16.mxu1 %v2468_v61  ;;  %v2192_v23 = vpop.permute.xlu0 %2191 }
 0x2be   : > { %v2218_v29 = vsel %vm12375_vm14, %v8902_v57, %v2192_v23  ;;  %vm12400_vm14 = vmmov %vm12397_vm9 }
 0x2bf   : > { %v9135_v21 = vpop.permute.xlu1 %2245  ;;  %2263 = vrot.lane.b32.xlu0 %v9045_v46, %s12338_s0  ;;  %v2235_v32 = vmul.f32 %v12380_v40, %v2218_v29 }
 0x2c0   : > { %2596 = vmatpush1.bf16.msra.mxu1 %v2467_v8  ;;  %v12383_v8 = vld [vmem:[#allocation15_spill] sm:$0xff] }
 0x2c1   : > { %2329 = vrot.lane.b32.xlu1 %v9078_v45, %s12339_s27  ;;  %v9141_v2 = vpop.permute.xlu0 %2247 }
 0x2c3   : > { %v2254_v22 = vpop.permute.xlu1 %2253  ;;  %2327 = vrot.lane.b32.xlu0 %v9045_v46, %s12339_s27 }
 0x2c5   : > { %2389 = vrot.lane.b32.xlu1 %v8940_v12, %s12134_s1  ;;  %v2256_v37 = vpop.permute.xlu0 %2255  ;;  %v12387_v12 = vld [vmem:[#allocation20_spill] sm:$0xff] }
 0x2c6   : > { %v2282_v61 = vsel %vm12382_vm6, %v8928_v44, %v2256_v37  ;;  %vm12405_vm6 = vmmov %vm12402_vm3 }
 0x2c7   : > { %v9147_v58 = vpop.permute.xlu1 %2309  ;;  %2391 = vrot.lane.b32.xlu0 %v9045_v46, %s12134_s1  ;;  %v2227_v46 = vmul.f32 %v12380_v40, %v2217_v36 }
 0x2c9   : > { %2393 = vrot.lane.b32.xlu1 %v9078_v45, %s12134_s1  ;;  %v9153_v11 = vpop.permute.xlu0 %2311 }
 0x2cb   : > { %v2318_v52 = vpop.permute.xlu1 %2317  ;;  %2395 = vrot.lane.b32.xlu0 %v8984_v16, %s12134_s1 }
 0x2cd   : > { %1945 = vrot.lane.b32.xlu1 %v9078_v45, %s12335_s7  ;;  %v2320_v19 = vpop.permute.xlu0 %2319 }
 0x2ce   : > { %v2346_v40 = vsel %vm12389_vm5, %v8948_v5, %v2320_v19 }
 0x2cf   : > { %v9162_v55 = vpop.permute.xlu1 %2193  ;;  %1947 = vrot.lane.b32.xlu0 %v8984_v16, %s12335_s7  ;;  %s12565_s7 = sld [smem:[#allocation89_spill]] }
 0x2d0   : > { %12376 = vst [vmem:[#allocation14_spill] sm:$0xff] %v9162_v55  ;;  %v2215_v27 = vsel %vm12377_vm15, %v2190_v49, %v9162_v55  ;;  %vm12401_vm15 = vcmp.lt.s32.totalorder %v7506_v10, 31 }
 0x2d1   : > { %2009 = vrot.lane.b32.xlu1 %v9078_v45, %s12336_s25  ;;  %v9174_v24 = vpop.permute.xlu0 %2195  ;;  %v2228_v6 = vmul.f32 %v12383_v8, %v2215_v27 }
 0x2d2   : > { %12379 = vst [vmem:[#allocation13_spill] sm:$0xff] %v9174_v24  ;;  %v2216_v33 = vsel %vm12381_vm0, %v2192_v23, %v9174_v24  ;;  %v2281_v23 = vsel %vm12386_vm10, %v8922_v20, %v2254_v22  ;;  %v2299_v24 = vmul.f32 %v12387_v12, %v2282_v61  ;;  %vm12403_vm0 = vmmov %vm12401_vm15 }
 0x2d3   : > { %v2236_v55 = vmul.f32 %v12383_v8, %v2216_v33  ;;  %v9185_v49 = vpop.permute.xlu1 %2257  ;;  %2011 = vrot.lane.b32.xlu0 %v8984_v16, %s12336_s25  ;;  %v2475_v8 = vpack.c.bf16 %v2235_v32, %v2227_v46  ;;  %vm12408_vm10 = vmmov %vm12403_vm0  ;;  %s12632_s25 = smov 15  }
 0x2d4   : > { %12384 = vst [vmem:[#allocation17_spill] sm:$0xff] %v9185_v49  ;;  %v2279_v29 = vsel %vm12385_vm8, %v2254_v22, %v9185_v49  ;;  %v12390_v49 = vld [vmem:[#allocation18_spill] sm:$0xff]  ;;  %vm12406_vm8 = vcmp.lt.s32.totalorder %v7506_v10, 1  ;;  %vm12411_vm5 = vmmov %vm12403_vm0 }
 0x2d5   : > { %2073 = vrot.lane.b32.xlu1 %v9078_v45, %s12133_s8  ;;  %v9198_v27 = vpop.permute.xlu0 %2259  ;;  %v2476_v33 = vpack.c.bf16 %v2236_v55, %v2228_v6  ;;  %v2292_v50 = vmul.f32 %v12390_v49, %v2279_v29  ;;  %v2291_v6 = vmul.f32 %v12387_v12, %v2281_v23  ;;  %v2030_v23 = vsel %vm12395_vm12, %v8854_v60, %v9008_v56 }
 0x2d6   : > { %v2280_v36 = vsel %vm12388_vm13, %v2256_v37, %v9198_v27  ;;  %v2345_v37 = vsel %vm12392_vm2, %v8942_v3, %v2318_v52  ;;  %v2029_v56 = vsel %vm12398_vm4, %v8845_v63, %v9000_v62  ;;  %vm12409_vm13 = vmmov %vm12406_vm8  ;;  %vm12418_vm4 = vcmp.lt.s32.totalorder %v7506_v10, 97 }
 0x2d7   : > { %v2300_v22 = vmul.f32 %v12390_v49, %v2280_v36  ;;  %v9209_v53 = vpop.permute.xlu1 %2321  ;;  %2075 = vrot.lane.b32.xlu0 %v8984_v16, %s12133_s8  ;;  %2597 = vmatprep.subr.bf16.mxu1 %v2476_v33  ;;  %v2483_v61 = vpack.c.bf16 %v2299_v24, %v2291_v6  ;;  %v12393_v49 = vld [vmem:[#allocation21_spill] sm:$0xff]  ;;  %v12396_v33 = vld [vmem:[#allocation19_spill] sm:$0xff]  ;;  %s12414_s8 = sld [smem:[#allocation88_spill]] }
 0x2d8   : > { %v2343_v46 = vsel %vm12391_vm1, %v2318_v52, %v9209_v53  ;;  %2598 = vmatpush1.bf16.msra.mxu1 %v2475_v8  ;;  %v2363_v29 = vmul.f32 %v12393_v49, %v2346_v40  ;;  %vm12412_vm1 = vmmov %vm12406_vm8 }
 0x2d9   : > { %2137 = vrot.lane.b32.xlu1 %v9078_v45, %s12337_s2  ;;  %v9222_v55 = vpop.permute.xlu0 %2323  ;;  %v2484_v32 = vpack.c.bf16 %v2300_v22, %v2292_v50  ;;  %v2356_v52 = vmul.f32 %v12396_v33, %v2343_v46  ;;  %v2355_v50 = vmul.f32 %v12393_v49, %v2345_v37  ;;  %v12399_v22 = vld [vmem:[#allocation24_spill] sm:$0xff]  ;;  %v2094_v37 = vsel %vm12401_vm15, %v8870_v7, %v9049_v13  ;;  %vm12413_vm2 = vmmov %vm12412_vm1 }
 0x2da   : > { %v2344_v12 = vsel %vm12394_vm7, %v2320_v19, %v9222_v55  ;;  %v2042_v6 = vmul.f32 %v12399_v22, %v2030_v23  ;;  %v2034_v49 = vmul.f32 %v12399_v22, %v2029_v56  ;;  %v2093_v13 = vsel %vm12403_vm0, %v8864_v18, %v9039_v14  ;;  %v12407_v14 = vld [vmem:[#allocation27_spill] sm:$0xff]  ;;  %vm12422_vm15 = vmmov %vm12418_vm4 }
 0x2db   : > { %v2364_v8 = vmul.f32 %v12396_v33, %v2344_v12  ;;  %v9234_v36 = vpop.permute.xlu1 %1949  ;;  %2139 = vrot.lane.b32.xlu0 %v8984_v16, %s12337_s2  ;;  %2599 = vmatprep.subr.bf16.mxu1 %v2484_v32  ;;  %v2491_v46 = vpack.c.bf16 %v2363_v29, %v2355_v50  ;;  %v12404_v12 = vld [vmem:[#allocation31_spill] sm:$0xff]  ;;  %vm12415_vm7 = vcmp.lt.s32.totalorder %v7506_v10, 127  ;;  %vm12428_vm0 = vcmp.lt.s32.totalorder %v7506_v10, 96 }
 0x2dc   : > { %v1967_v19 = vsel %vm12397_vm9, %v9234_v36, %v8823_v54  ;;  %2600 = vmatpush1.bf16.msra.mxu1 %v2483_v61  ;;  %v2106_v23 = vmul.f32 %v12404_v12, %v2094_v37  ;;  %v2098_v56 = vmul.f32 %v12404_v12, %v2093_v13  ;;  %vm12416_vm12 = vmmov %vm12415_vm7 }
 0x2dd   : > { %2205 = vrot.lane.b32.xlu1 %v8843_v43, %s12139_s4  ;;  %v9249_v24 = vpop.permute.xlu0 %1951  ;;  %v2492_v40 = vpack.c.bf16 %v2364_v8, %v2356_v52  ;;  %v1969_v62 = vmul.f32 %v7943_v28, %v1967_v19  ;;  %v2158_v52 = vsel %vm12406_vm8, %v8886_v1, %v9089_v9  ;;  %v2157_v9 = vsel %vm12409_vm13, %v8880_v31, %v9082_v4  ;;  %vm12417_vm9 = vmmov %vm12415_vm7 }
 0x2de   : > { %v1968_v54 = vsel %vm12400_vm14, %v9249_v24, %v8830_v30  ;;  %vm12420_vm14 = vmmov %vm12415_vm7  ;;  %vm12438_vm13 = vcmp.lt.s32.totalorder %v7506_v10, 95 }
 0x2df   : > { %v1977_v32 = vmul.f32 %v7943_v28, %v1968_v54  ;;  %v9262_v61 = vpop.permute.xlu1 %2013  ;;  %2207 = vrot.lane.b32.xlu0 %v8850_v51, %s12139_s4  ;;  %2601 = vmatprep.subr.bf16.mxu1 %v2492_v40  ;;  %vm12433_vm8 = vmmov %vm12428_vm0 }
 0x2e0   : > { %v2031_v30 = vsel %vm12402_vm3, %v9262_v61, %v8845_v63  ;;  %2602 = vmatpush1.bf16.msra.mxu1 %v2491_v46  ;;  %v2442_v63 = vpack.c.bf16 %v2042_v6, %v2034_v49  ;;  %v12410_v6 = vld [vmem:[#allocation30_spill] sm:$0xff]  ;;  %vm12426_vm3 = vmmov %vm12418_vm4 }
 0x2e1   : > { %v2433_v28 = vpack.c.bf16 %v1977_v32, %v1969_v62  ;;  %2269 = vrot.lane.b32.xlu1 %v8843_v43, %s12338_s0  ;;  %v9277_v29 = vpop.permute.xlu0 %2015  ;;  %v2033_v8 = vmul.f32 %v12407_v14, %v2031_v30  ;;  %v2170_v46 = vmul.f32 %v12410_v6, %v2158_v52  ;;  %v2162_v4 = vmul.f32 %v12410_v6, %v2157_v9  ;;  %v12421_v9 = vld [vmem:[#allocation36_spill] sm:$0xff] }
 0x2e2   : > { %v2032_v33 = vsel %vm12405_vm6, %v9277_v29, %v8854_v60  ;;  %vm12431_vm6 = vmmov %vm12426_vm3 }
 0x2e3   : > { %v2041_v50 = vmul.f32 %v12407_v14, %v2032_v33  ;;  %v9290_v19 = vpop.permute.xlu1 %2077  ;;  %2271 = vrot.lane.b32.xlu0 %v8850_v51, %s12338_s0  ;;  %2535 = vmatpush1.bf16.msra.mxu0 %v2433_v28  ;;  %v2458_v13 = vpack.c.bf16 %v2170_v46, %v2162_v4  ;;  %v2778_v28 = vld [vmem:[%s12414_s8] sm:$0xff]  ;;  %v12423_v46 = vld [vmem:[#allocation67_spill] sm:$0xff]  ;;  %s12103_s0 = smov 120  }
 0x2e4   : > { %v2095_v60 = vsel %vm12408_vm10, %v9290_v19, %v8864_v18  ;;  %2536 = vmatprep.subr.bf16.mxu0 %v2442_v63  ;;  %v2450_v18 = vpack.c.bf16 %v2106_v23, %v2098_v56  ;;  %vm12436_vm10 = vmmov %vm12428_vm0 }
 0x2e5   : > { %v2441_v40 = vpack.c.bf16 %v2041_v50, %v2033_v8  ;;  %2333 = vrot.lane.b32.xlu1 %v8843_v43, %s12339_s27  ;;  %v9305_v22 = vpop.permute.xlu0 %2079  ;;  %v2097_v37 = vmul.f32 %v8088_v15, %v2095_v60  ;;  %v2466_v8 = vpack.c.bf16 %v8747_v25, %v8741_v38  ;;  %v6380_v50 = vld [vmem:[%s12414_s8 + $0x20] sm:$0xff]  ;;  %v6381_v25 = vld [vmem:[%s12414_s8 + $0x28] sm:$0xff] }
 0x2e6   : > { %v2096_v54 = vsel %vm12411_vm5, %v9305_v22, %v8870_v7  ;;  %vm12440_vm5 = vmmov %vm12428_vm0 }
 0x2e7   : > { %v2105_v62 = vmul.f32 %v8088_v15, %v2096_v54  ;;  %v9314_v32 = vpop.permute.xlu1 %2141  ;;  %2335 = vrot.lane.b32.xlu0 %v8850_v51, %s12339_s27  ;;  %2537 = vmatpush1.bf16.msra.mxu0 %v2441_v40  ;;  %v12424_v54 = vld [vmem:[#allocation68_spill] sm:$0xff] }
 0x2e8   : > { %v2159_v49 = vsel %vm12412_vm1, %v9314_v32, %v8880_v31  ;;  %2538 = vmatprep.subr.bf16.mxu0 %v2450_v18  ;;  %v2220_v31 = vsel %vm12415_vm7, %v9125_v35, %v8902_v57  ;;  %v2219_v57 = vsel %vm12416_vm12, %v9118_v26, %v8896_v48  ;;  %v2284_v48 = vsel %vm12418_vm4, %v9141_v2, %v8928_v44  ;;  %vm12442_vm1 = vmmov %vm12438_vm13 }
 0x2e9   : > { %v2449_v7 = vpack.c.bf16 %v2105_v62, %v2097_v37  ;;  %2397 = vrot.lane.b32.xlu1 %v8843_v43, %s12134_s1  ;;  %v9325_v30 = vpop.permute.xlu0 %2143  ;;  %v2161_v12 = vmul.f32 %v8098_v42, %v2159_v49  ;;  %v2234_v14 = vmul.f32 %v8150_v0, %v2220_v31  ;;  %v2226_v38 = vmul.f32 %v8150_v0, %v2219_v57  ;;  %v12427_v37 = vld [vmem:[#allocation40_spill] sm:$0xff]  ;;  %v2780_v49 = vld [vmem:[%s12414_s8 + $0x10] sm:$0xff]  ;;  %vm12447_vm7 = vmmov %vm12442_vm1 }
 0x2ea   : > { %v2160_v15 = vsel %vm12413_vm2, %v9325_v30, %v8886_v1  ;;  %v2779_v1 = vld [vmem:[%s12414_s8 + $0x8] sm:$0xff]  ;;  %v2283_v44 = vsel %vm12422_vm15, %v9135_v21, %v8922_v20  ;;  %v2465_v18 = vpack.c.bf16 %v12424_v54, %v12423_v46  ;;  %v2298_v62 = vmul.f32 %v12427_v37, %v2284_v48  ;;  %v2781_v31 = vld [vmem:[%s12414_s8 + $0x18] sm:$0xff]  ;;  %vm12444_vm2 = vmmov %vm12442_vm1 }
 0x2eb   : > { %v2169_v23 = vmul.f32 %v8098_v42, %v2160_v15  ;;  %v9340_v33 = vpop.permute.xlu1 %2373  ;;  %2399 = vrot.lane.b32.xlu0 %v8850_v51, %s12134_s1  ;;  %2539 = vmatpush1.bf16.msra.mxu0 %v2449_v7  ;;  %v2222_v42 = vsel %vm12417_vm9, %v8915_v39, %v9125_v35  ;;  %v12419_v35 = vld [vmem:[#allocation71_spill] sm:$0xff]  ;;  %v2474_v4 = vpack.c.bf16 %v2234_v14, %v2226_v38  ;;  %v12439_v38 = vld [vmem:[#allocation76_spill] sm:$0xff]  ;;  %vm12448_vm12 = vmmov %vm12442_vm1  ;;  %vm12456_vm15 = vcmp.lt.s32.totalorder %v7506_v10, 33 }
 0x2ec   : > { %2540 = vmatprep.subr.bf16.mxu0 %v2458_v13  ;;  %v2221_v60 = vsel %vm12420_vm14, %v12419_v35, %v9118_v26  ;;  %v2233_v40 = vmul.f32 %v12421_v9, %v2222_v42  ;;  %v12425_v26 = vld [vmem:[#allocation74_spill] sm:$0xff]  ;;  %v2348_v20 = vsel %vm12428_vm0, %v9153_v11, %v8948_v5  ;;  %v2347_v5 = vsel %vm12433_vm8, %v9147_v58, %v8942_v3  ;;  %v12437_v42 = vld [vmem:[#allocation39_spill] sm:$0xff]  ;;  %vm12449_vm9 = vmmov %vm12442_vm1 }
 0x2ed   : > { %v2457_v63 = vpack.c.bf16 %v2169_v23, %v2161_v12  ;;  %2784 = vperm.xlu1 %6799, %v2778_v28   ;;  %v2376_v52 = vpop.permute.xlu0 %2375  ;;  %v2286_v0 = vsel %vm12426_vm3, %v12425_v26, %v9141_v2  ;;  %v2225_v7 = vmul.f32 %v12421_v9, %v2221_v60  ;;  %v12430_v2 = vld [vmem:[#allocation73_spill] sm:$0xff]  ;;  %v2290_v28 = vmul.f32 %v12427_v37, %v2283_v44  ;;  %v6383_v9 = vld [vmem:[%s12414_s8 + $0x38] sm:$0xff]  ;;  %vm12451_vm4 = vmmov %vm12442_vm1 }
 0x2ee   : > { %v2285_v13 = vsel %vm12431_vm6, %v12430_v2, %v9135_v21  ;;  %v12432_v23 = vld [vmem:[#allocation41_spill] sm:$0xff]  ;;  %v2362_v14 = vmul.f32 %v12437_v42, %v2348_v20  ;;  %v12441_v44 = vld [vmem:[#allocation43_spill] sm:$0xff]  ;;  %vm12453_vm14 = vmmov %vm12442_vm1  ;;  %vm12463_vm8 = vcmp.lt.s32.totalorder %v7506_v10, 32 }
 0x2ef   : > { %v9365_v56 = vpop.permute.xlu1 %2377  ;;  %2789 = vperm.xlu0 %6798, %v2779_v1   ;;  %2541 = vmatpush1.bf16.msra.mxu0 %v2457_v63  ;;  %v2473_v12 = vpack.c.bf16 %v2233_v40, %v2225_v7  ;;  %v2297_v1 = vmul.f32 %v12432_v23, %v2286_v0  ;;  %v12435_v21 = vld [vmem:[#allocation77_spill] sm:$0xff]  ;;  %v2289_v48 = vmul.f32 %v12432_v23, %v2285_v13  ;;  %v12443_v0 = vld [vmem:[#allocation47_spill] sm:$0xff]  ;;  %vm12457_vm3 = vmmov %vm12456_vm15 }
 0x2f0   : > { %2542 = vmatprep.subr.bf16.mxu0 %v2466_v8  ;;  %v2350_v63 = vsel %vm12436_vm10, %v12435_v21, %v9153_v11  ;;  %v2482_v8 = vpack.c.bf16 %v2298_v62, %v2290_v28  ;;  %v2349_v11 = vsel %vm12440_vm5, %v12439_v38, %v9147_v58  ;;  %v2411_v54 = vsel %vm12442_vm1, %v9340_v33, %v9365_v56  ;;  %vm12459_vm0 = vmmov %vm12457_vm3 }
 0x2f1   : > { %2841 = vperm.xlu1 %6799, %v6380_v50   ;;  %v2380_v6 = vpop.permute.xlu0 %2379  ;;  %v6382_v50 = vld [vmem:[%s12414_s8 + $0x30] sm:$0xff]  ;;  %v2481_v40 = vpack.c.bf16 %v2297_v1, %v2289_v48  ;;  %v2361_v46 = vmul.f32 %v12441_v44, %v2350_v63  ;;  %v2418_v13 = vmul.f32 %v12443_v0, %v2411_v54  ;;  %vm12461_vm6 = vmmov %vm12459_vm0  ;;  %vm12469_vm1 = vcmp.lt.s32.totalorder %v7506_v10, 31  ;;  %s12093_s8 = smov 16  }
 0x2f2   : > { %v2412_v3 = vsel %vm12438_vm13, %v2376_v52, %v2380_v6  ;;  %v9483_v54 = vld [vmem:[%s12344_s24 + $0x14] ss:$8 sps:$4 sm:$0xff]   ;;  %vm12464_vm10 = vmmov %vm12463_vm8 }
 0x2f3   : > { %v9395_v15 = vpop.permute.xlu1 %2369  ;;  %2846 = vperm.xlu0 %6798, %v6381_v25   ;;  %2543 = vmatpush1.bf16.msra.mxu0 %v2465_v18  ;;  %v2354_v25 = vmul.f32 %v12437_v42, %v2347_v5  ;;  %v2426_v37 = vmul.f32 %v12443_v0, %v2412_v3  ;;  %vm12465_vm13 = vmmov %vm12463_vm8 }
 0x2f4   : > { %12429 = vst [vmem:[#allocation15_spill] sm:$0xff] %v9395_v15  ;;  %2544 = vmatprep.subr.bf16.mxu0 %v2474_v4  ;;  %v3084_v4 = vld [vmem:[%s12445_s5] sm:$0xff]  ;;  %vm12467_vm5 = vmmov %vm12463_vm8 }
 0x2f5   : > { %2794 = vperm.xlu1 %6799, %v2780_v49   ;;  %v9410_v57 = vpop.permute.xlu0 %2371  ;;  %v2490_v62 = vpack.c.bf16 %v2362_v14, %v2354_v25  ;;  %v2353_v49 = vmul.f32 %v12441_v44, %v2349_v11  ;;  %v2498_v14 = vpack.c.bf16 %v2426_v37, %v2418_v13  ;;  %v9476_v44 = vld [vmem:[%s12344_s24] ss:$8 sps:$4 sm:$0xff]  }
 0x2f6   : > { %12434 = vst [vmem:[#allocation20_spill] sm:$0xff] %v9410_v57  ;;  %v2414_v58 = vsel %vm12444_vm2, %v9410_v57, %v2376_v52  ;;  %v2413_v52 = vsel %vm12448_vm12, %v9395_v15, %v9340_v33  ;;  %v12452_v33 = vld [vmem:[#allocation23_spill] sm:$0xff]  ;;  %vm12470_vm2 = vmmov %vm12469_vm1 }
 0x2f7   : > { %v2382_v60 = vpop.permute.xlu1 %2381  ;;  %2799 = vperm.xlu0 %6798, %v2781_v31   ;;  %2545 = vmatpush1.bf16.msra.mxu0 %v2473_v12  ;;  %v2489_v31 = vpack.c.bf16 %v2361_v46, %v2353_v49  ;;  %v12450_v12 = vld [vmem:[#allocation48_spill] sm:$0xff]  ;;  %vm12473_vm12 = vmmov %vm12469_vm1 }
 0x2f8   : > { %2546 = vmatprep.subr.bf16.mxu0 %v2482_v8  ;;  %v2425_v23 = vmul.f32 %v12450_v12, %v2414_v58  ;;  %v2409_v1 = vsel %vm12451_vm4, %v9365_v56, %v2382_v60  ;;  %v2417_v8 = vmul.f32 %v12450_v12, %v2413_v52  ;;  %v9494_v58 = vld [vmem:[%s12344_s24 + $0x10] ss:$8 sps:$4 sm:$0xff]   ;;  %s12097_s24 = smov 17  }
 0x2f9   : > { %2851 = vperm.xlu1 %6799, %v6382_v50   ;;  %v2384_v18 = vpop.permute.xlu0 %2383  ;;  %v12454_v50 = vld [vmem:[#allocation22_spill] sm:$0xff]  ;;  %v2419_v56 = vmul.f32 %v12452_v33, %v2409_v1 }
 0x2fa   : > { %v2410_v7 = vsel %vm12447_vm7, %v2380_v6, %v2384_v18  ;;  %v6388_v6 = vld [vmem:[%s12446_s29 + $0x8] sm:$0xff]  ;;  %vm12471_vm7 = vmmov %vm12469_vm1  ;;  %s12613_s29 = smov 112  }
 0x2fb   : > { %v9446_v20 = vpop.permute.xlu1 %2385  ;;  %2856 = vperm.xlu0 %6798, %v6383_v9   ;;  %2547 = vmatpush1.bf16.msra.mxu0 %v2481_v40  ;;  %v2427_v63 = vmul.f32 %v12452_v33, %v2410_v7  ;;  %v12455_v7 = vld [vmem:[#allocation72_spill] sm:$0xff]  ;;  %v12458_v33 = vld [vmem:[#allocation78_spill] sm:$0xff] }
 0x2fc   : > { %v2407_v28 = vsel %vm12449_vm9, %v2382_v60, %v9446_v20  ;;  %2548 = vmatprep.subr.bf16.mxu0 %v2490_v62  ;;  %v2497_v60 = vpack.c.bf16 %v2425_v23, %v2417_v8  ;;  %vm12476_vm9 = vcmp.lt.s32.totalorder %v7506_v10, 1 }
 0x2fd   : > { %3087 = vperm.xlu1 %6799, %v3084_v4   ;;  %v9463_v5 = vpop.permute.xlu0 %2387  ;;  %v2420_v48 = vmul.f32 %v12454_v50, %v2407_v28  ;;  %v2499_v40 = vpack.c.bf16 %v2427_v63, %v2419_v56  ;;  %vm12477_vm4 = vmmov %vm12476_vm9 }
 0x2fe   : > { %v2408_v42 = vsel %vm12453_vm14, %v2384_v18, %v9463_v5  ;;  %vm12479_vm14 = vmmov %vm12477_vm4 }
 0x2ff   : > { %v2428_v3 = vmul.f32 %v12454_v50, %v2408_v42  ;;  %v1938_v11 = vpop.permute.xlu1 %1937  ;;  %3102 = vperm.xlu0 %6798, %v6388_v6   ;;  %2549 = vmatpush1.bf16.msra.mxu0 %v2489_v31 }
 0x300   : > { %2550 = vmatprep.subr.bf16.mxu0 %v2498_v14  ;;  %v1959_v63 = vsel %vm12459_vm0, %v12458_v33, %v1938_v11  ;;  %v12460_v14 = vld [vmem:[#allocation53_spill] sm:$0xff] }
 0x301   : > { %v1940_v25 = vpop.permute.xlu0 %1939  ;;  %v2500_v9 = vpack.c.bf16 %v2428_v3, %v2420_v48  ;;  %v12462_v48 = vld [vmem:[#allocation54_spill] sm:$0xff] }
 0x302   : > { %v1960_v12 = vsel %vm12456_vm15, %v8991_v41, %v1940_v25  ;;  %vm12481_vm15 = vmmov %vm12477_vm4 }
 0x303   : > { %v9478_v46 = vpop.permute.xlu1 %1941  ;;  %2551 = vmatpush1.bf16.msra.mxu0 %v2497_v60  ;;  %2603 = vmatprep.subr.bf16.mxu1 %v2500_v9  ;;  %v1981_v8 = vmul.f32 %v12460_v14, %v1960_v12  ;;  %v1973_v9 = vmul.f32 %v12460_v14, %v1959_v63 }
 0x304   : > { %2604 = vmatpush1.bf16.msra.mxu1 %v2499_v40  ;;  %v1957_v1 = vsel %vm12457_vm3, %v1938_v11, %v9478_v46  ;;  %vm12483_vm3 = vcmp.lt.s32.totalorder %v7506_v10, 127 }
 0x305   : > { %v2004_v18 = vpop.permute.xlu0 %2003  ;;  %v1974_v41 = vmul.f32 %v12462_v48, %v1957_v1  ;;  %v2437_v12 = vpack.c.bf16 %v1981_v8, %v1973_v9  ;;  %v12466_v1 = vld [vmem:[#allocation51_spill] sm:$0xff]  ;;  %vm12484_vm0 = vmmov %vm12483_vm3 }
 0x306   : > { %2567 = vmatmul.mubr.bf16.vlgmr.msra.gmra.mrb[8].mxu0 %v9476_v44  ;;  %v2024_v40 = vsel %vm12465_vm13, %v9029_v59, %v2004_v18 }
 0x307   : > { %v2002_v0 = vpop.permute.xlu1 %2001  ;;  %2620 = vmatmul.mubr.bf16.vlgmr.msra.gmra.mrb[8].mxu1 %v9476_v44  ;;  %6373 = vmatprep.mubr.msk.bf16.mxu0 %vm2527_vm11, %v9483_v54  ;;  %v2045_v59 = vmul.f32 %v12466_v1, %v2024_v40  ;;  %v12474_v40 = vld [vmem:[#allocation58_spill] sm:$0xff] }
 0x308   : > { %6375 = vmatprep.mubr.msk.bf16.mxu1 %vm2527_vm11, %v9483_v54  ;;  %v2023_v3 = vsel %vm12463_vm8, %v9014_v34, %v2002_v0  ;;  %vm12491_vm8 = vmmov %vm12484_vm0 }
 0x309   : > { %v2068_v37 = vpop.permute.xlu0 %2067  ;;  %v2037_v33 = vmul.f32 %v12466_v1, %v2023_v3  ;;  %v12475_v1 = vld [vmem:[#allocation80_spill] sm:$0xff] }
 0x30b   : > { %v9496_v62 = vpop.permute.xlu1 %2005 }
 0x30c   : > { %v2021_v11 = vsel %vm12464_vm10, %v2002_v0, %v9496_v62  ;;  %vm12492_vm10 = vcmp.lt.s32.totalorder %v7506_v10, 97 }
 0x30d   : > { %v2132_v4 = vpop.permute.xlu0 %2131  ;;  %vm12494_vm13 = vmmov %vm12492_vm10 }
 0x30e   : > { %2577 = vmatmul.mubr.bf16.gmra.mrb[12].mxu0 %v9494_v58 }
 0x30f   : > { %v2066_v49 = vpop.permute.xlu1 %2065  ;;  %2630 = vmatmul.mubr.bf16.gmra.mrb[12].mxu1 %v9494_v58  ;;  %6376 = vmatprep.mubr.msk.bf16.mxu0 %vm2527_vm11, %v12455_v7 }
 0x310   : > { %6378 = vmatprep.mubr.msk.bf16.mxu1 %vm2527_vm11, %v12455_v7  ;;  %v2087_v0 = vsel %vm12469_vm1, %v9056_v47, %v2066_v49  ;;  %v2445_v47 = vpack.c.bf16 %v2045_v59, %v2037_v33  ;;  %v12480_v59 = vld [vmem:[#allocation55_spill] sm:$0xff] }
 0x311   : > { %v9504_v13 = vpop.permute.xlu0 %2203 }
 0x313   : > { %v9506_v52 = vpop.permute.xlu1 %2069 }
 0x314   : > { %v2085_v8 = vsel %vm12470_vm2, %v2066_v49, %v9506_v52  ;;  %vm12502_vm2 = vcmp.lt.s32.totalorder %v7506_v10, 96 }
 0x315   : > { %v9508_v28 = vpop.permute.xlu0 %2267 }
 0x317   : > { %v2130_v6 = vpop.permute.xlu1 %2129 }
 0x318   : > { %v2151_v49 = vsel %vm12476_vm9, %v12475_v1, %v2130_v6  ;;  %vm12506_vm9 = vmmov %vm12502_vm2 }
 0x319   : > { %v9510_v31 = vpop.permute.xlu0 %2331 }
 0x31b   : > { %v9515_v23 = vpop.permute.xlu1 %2133 }
 0x31c   : > { %v2149_v33 = vsel %vm12477_vm4, %v2130_v6, %v9515_v23  ;;  %vm12508_vm4 = vcmp.lt.s32.totalorder %v7506_v10, 95 }
 0x31d   : > { %v9523_v42 = vpop.permute.xlu0 %1943 }
 0x31e   : > { %v1958_v50 = vsel %vm12461_vm6, %v1940_v25, %v9523_v42  ;;  %vm12486_vm6 = vmmov %vm12484_vm0 }
 0x31f   : > { %v1982_v56 = vmul.f32 %v12462_v48, %v1958_v50  ;;  %v2198_v60 = vpop.permute.xlu1 %2197  ;;  %v12468_v50 = vld [vmem:[#allocation52_spill] sm:$0xff] }
 0x320   : > { %v2038_v63 = vmul.f32 %v12468_v50, %v2021_v11 }
 0x321   : > { %v9541_v25 = vpop.permute.xlu0 %2007  ;;  %v2438_v7 = vpack.c.bf16 %v1982_v56, %v1974_v41  ;;  %v12472_v56 = vld [vmem:[#allocation57_spill] sm:$0xff] }
 0x322   : > { %v2022_v34 = vsel %vm12467_vm5, %v2004_v18, %v9541_v25  ;;  %v2088_v18 = vsel %vm12471_vm7, %v9070_v17, %v2068_v37  ;;  %v2101_v9 = vmul.f32 %v12472_v56, %v2087_v0  ;;  %vm12497_vm5 = vmmov %vm12492_vm10 }
 0x323   : > { %v2046_v14 = vmul.f32 %v12468_v50, %v2022_v34  ;;  %v9552_v48 = vpop.permute.xlu1 %2201  ;;  %2640 = vmatprep.subr.bf16.mxu0 %v2438_v7  ;;  %v2102_v7 = vmul.f32 %v12474_v40, %v2085_v8  ;;  %v2109_v17 = vmul.f32 %v12472_v56, %v2088_v18  ;;  %v12478_v50 = vld [vmem:[#allocation81_spill] sm:$0xff]  ;;  %v2165_v8 = vmul.f32 %v12480_v59, %v2151_v49  ;;  %v12482_v18 = vld [vmem:[#allocation56_spill] sm:$0xff]  ;;  %vm12500_vm1 = vmmov %vm12497_vm5 }
 0x324   : > { %2641 = vmatpush1.bf16.msra.mxu0 %v2437_v12  ;;  %v2166_v56 = vmul.f32 %v12482_v18, %v2149_v33  ;;  %v12485_v49 = vld [vmem:[#allocation13_spill] sm:$0xff]  ;;  %vm12503_vm7 = vmmov %vm12502_vm2 }
 0x325   : > { %v9561_v41 = vpop.permute.xlu0 %2071  ;;  %v2446_v3 = vpack.c.bf16 %v2046_v14, %v2038_v63  ;;  %v2453_v14 = vpack.c.bf16 %v2109_v17, %v2101_v9  ;;  %v2211_v9 = vsel %vm12483_vm3, %v2198_v60, %v9552_v48  ;;  %v12487_v17 = vld [vmem:[#allocation60_spill] sm:$0xff]  ;;  %vm12512_vm3 = vmmov %vm12508_vm4 }
 0x326   : > { %v2086_v11 = vsel %vm12473_vm12, %v2068_v37, %v9561_v41  ;;  %v2152_v37 = vsel %vm12479_vm14, %v12478_v50, %v2132_v4  ;;  %vm12504_vm12 = vmmov %vm12502_vm2 }
 0x327   : > { %v2110_v12 = vmul.f32 %v12474_v40, %v2086_v11  ;;  %v2262_v34 = vpop.permute.xlu1 %2261  ;;  %2642 = vmatprep.subr.bf16.mxu0 %v2446_v3  ;;  %vm12509_vm14 = vmmov %vm12508_vm4 }
 0x328   : > { %2643 = vmatpush1.bf16.msra.mxu0 %v2445_v47  ;;  %v2173_v47 = vmul.f32 %v12480_v59, %v2152_v37  ;;  %v12488_v37 = vld [vmem:[#allocation75_spill] sm:$0xff]  ;;  %v12490_v59 = vld [vmem:[#allocation14_spill] sm:$0xff] }
 0x329   : > { %v9579_v63 = vpop.permute.xlu0 %2135  ;;  %v2454_v0 = vpack.c.bf16 %v2110_v12, %v2102_v7 }
 0x32a   : > { %v2150_v3 = vsel %vm12481_vm15, %v2132_v4, %v9579_v63  ;;  %v2461_v7 = vpack.c.bf16 %v2173_v47, %v2165_v8  ;;  %v2213_v8 = vsel %vm12491_vm8, %v12490_v59, %v2198_v60  ;;  %vm12510_vm15 = vmmov %vm12508_vm4 }
 0x32b   : > { %v2174_v11 = vmul.f32 %v12482_v18, %v2150_v3  ;;  %v9587_v6 = vpop.permute.xlu1 %2265  ;;  %2644 = vmatprep.subr.bf16.mxu0 %v2454_v0  ;;  %v12489_v0 = vld [vmem:[#allocation79_spill] sm:$0xff]  ;;  %v2230_v3 = vmul.f32 %v12487_v17, %v2211_v9  ;;  %v12498_v9 = vld [vmem:[#allocation62_spill] sm:$0xff] }
 0x32c   : > { %2645 = vmatpush1.bf16.msra.mxu0 %v2453_v14  ;;  %v2470_v14 = vpack.c.bf16 %v12489_v0, %v12488_v37 }
 0x32d   : > { %v2200_v40 = vpop.permute.xlu0 %2199  ;;  %v2462_v1 = vpack.c.bf16 %v2174_v11, %v2166_v56  ;;  %v2275_v56 = vsel %vm12492_vm10, %v2262_v34, %v9587_v6  ;;  %v12493_v11 = vld [vmem:[#allocation59_spill] sm:$0xff] }
 0x32e   : > { %v2212_v4 = vsel %vm12484_vm0, %v2200_v40, %v9504_v13  ;;  %v2214_v12 = vsel %vm12486_vm6, %v12485_v49, %v2200_v40  ;;  %v2229_v0 = vmul.f32 %v12493_v11, %v2213_v8  ;;  %v2294_v59 = vmul.f32 %v12498_v9, %v2275_v56 }
 0x32f   : > { %v2238_v33 = vmul.f32 %v12487_v17, %v2212_v4  ;;  %v2326_v50 = vpop.permute.xlu1 %2325  ;;  %2646 = vmatprep.subr.bf16.mxu0 %v2462_v1  ;;  %v2237_v47 = vmul.f32 %v12493_v11, %v2214_v12  ;;  %v12495_v1 = vld [vmem:[#allocation69_spill] sm:$0xff]  ;;  %vm12514_vm0 = vcmp.lt.s32.totalorder %v7506_v10, 33 }
 0x330   : > { %2647 = vmatpush1.bf16.msra.mxu0 %v2461_v7  ;;  %v12496_v7 = vld [vmem:[#allocation70_spill] sm:$0xff]  ;;  %v12499_v12 = vld [vmem:[#allocation17_spill] sm:$0xff]  ;;  %vm12515_vm6 = vmmov %vm12514_vm0 }
 0x331   : > { %v2264_v18 = vpop.permute.xlu0 %2263  ;;  %2648 = vmatprep.subr.bf16.mxu0 %v2470_v14  ;;  %v2469_v4 = vpack.c.bf16 %v12496_v7, %v12495_v1  ;;  %v2478_v37 = vpack.c.bf16 %v2238_v33, %v2230_v3  ;;  %v2277_v14 = vsel %vm12500_vm1, %v12499_v12, %v2262_v34  ;;  %v2477_v1 = vpack.c.bf16 %v2237_v47, %v2229_v0  ;;  %v12501_v7 = vld [vmem:[#allocation61_spill] sm:$0xff]  ;;  %vm12516_vm8 = vmmov %vm12514_vm0 }
 0x332   : > { %v2276_v40 = vsel %vm12494_vm13, %v2264_v18, %v9508_v28  ;;  %v2278_v60 = vsel %vm12497_vm5, %v9198_v27, %v2264_v18  ;;  %v12505_v34 = vld [vmem:[#allocation65_spill] sm:$0xff]  ;;  %v2293_v11 = vmul.f32 %v12501_v7, %v2277_v14  ;;  %v2341_v47 = vsel %vm12506_vm9, %v9209_v53, %v2326_v50  ;;  %v12511_v14 = vld [vmem:[#allocation66_spill] sm:$0xff]  ;;  %vm12517_vm10 = vmmov %vm12514_vm0 }
 0x333   : > { %v2302_v49 = vmul.f32 %v12498_v9, %v2276_v40  ;;  %v9619_v17 = vpop.permute.xlu1 %2329  ;;  %v2301_v15 = vmul.f32 %v12501_v7, %v2278_v60  ;;  %v12507_v9 = vld [vmem:[#allocation64_spill] sm:$0xff]  ;;  %vm12520_vm13 = vcmp.lt.s32.totalorder %v7506_v10, 32 }
 0x334   : > { %2649 = vmatpush1.bf16.msra.mxu0 %v2469_v4  ;;  %v2339_v27 = vsel %vm12502_vm2, %v2326_v50, %v9619_v17  ;;  %v2357_v0 = vmul.f32 %v12507_v9, %v2341_v47  ;;  %vm12521_vm5 = vmmov %vm12520_vm13 }
 0x335   : > { %v2328_v57 = vpop.permute.xlu0 %2327  ;;  %2650 = vmatprep.subr.bf16.mxu0 %v2478_v37  ;;  %v2486_v56 = vpack.c.bf16 %v2302_v49, %v2294_v59  ;;  %v2358_v40 = vmul.f32 %v12505_v34, %v2339_v27  ;;  %v2485_v60 = vpack.c.bf16 %v2301_v15, %v2293_v11  ;;  %vm12523_vm1 = vmmov %vm12521_vm5 }
 0x336   : > { %v2340_v33 = vsel %vm12503_vm7, %v2328_v57, %v9510_v31  ;;  %v2342_v8 = vsel %vm12504_vm12, %v9222_v55, %v2328_v57  ;;  %vm12524_vm2 = vmmov %vm12523_vm1  ;;  %vm12526_vm7 = vcmp.lt.s32.totalorder %v7506_v10, 31 }
 0x337   : > { %v2366_v3 = vmul.f32 %v12505_v34, %v2340_v33  ;;  %v2390_v18 = vpop.permute.xlu1 %2389  ;;  %v2365_v37 = vmul.f32 %v12507_v9, %v2342_v8  ;;  %vm12527_vm12 = vmmov %vm12526_vm7 }
 0x338   : > { %2651 = vmatpush1.bf16.msra.mxu0 %v2477_v1  ;;  %v2405_v15 = vsel %vm12510_vm15, %v9446_v20, %v2390_v18  ;;  %v12513_v1 = vld [vmem:[#allocation63_spill] sm:$0xff]  ;;  %vm12528_vm9 = vmmov %vm12526_vm7 }
 0x339   : > { %v2392_v4 = vpop.permute.xlu0 %2391  ;;  %2652 = vmatprep.subr.bf16.mxu0 %v2486_v56  ;;  %v2494_v49 = vpack.c.bf16 %v2366_v3, %v2358_v40  ;;  %v2493_v12 = vpack.c.bf16 %v2365_v37, %v2357_v0  ;;  %v2421_v8 = vmul.f32 %v12511_v14, %v2405_v15  ;;  %v12518_v40 = vld [vmem:[#allocation29_spill] sm:$0xff] }
 0x33a   : > { %v2406_v55 = vsel %vm12508_vm4, %v9463_v5, %v2392_v4  ;;  %vm12529_vm4 = vmmov %vm12526_vm7 }
 0x33b   : > { %v9646_v57 = vpop.permute.xlu1 %2393  ;;  %v2429_v5 = vmul.f32 %v12511_v14, %v2406_v55 }
 0x33c   : > { %v2403_v53 = vsel %vm12509_vm14, %v2390_v18, %v9646_v57  ;;  %2653 = vmatpush1.bf16.msra.mxu0 %v2485_v60  ;;  %v12519_v60 = vld [vmem:[#allocation25_spill] sm:$0xff]  ;;  %vm12532_vm14 = vcmp.lt.s32.totalorder %v7506_v10, 1 }
 0x33d   : > { %v9655_v50 = vpop.permute.xlu0 %2395  ;;  %2654 = vmatprep.subr.bf16.mxu0 %v2494_v49  ;;  %v2422_v7 = vmul.f32 %v12513_v1, %v2403_v53  ;;  %v2501_v56 = vpack.c.bf16 %v2429_v5, %v2421_v8  ;;  %v12522_v53 = vld [vmem:[#allocation28_spill] sm:$0xff]  ;;  %v12525_v5 = vld [vmem:[#allocation26_spill] sm:$0xff]  ;;  %vm12533_vm15 = vmmov %vm12532_vm14 }
 0x33e   : > { %v2404_v59 = vsel %vm12512_vm3, %v2392_v4, %v9655_v50  ;;  %vm12535_vm3 = vmmov %vm12532_vm14 }
 0x33f   : > { %v2430_v27 = vmul.f32 %v12513_v1, %v2404_v59  ;;  %v1946_v33 = vpop.permute.xlu1 %1945 }
 0x340   : > { %v1953_v20 = vsel %vm12514_vm0, %v1946_v33, %v9234_v36  ;;  %v1955_v34 = vsel %vm12515_vm6, %v9478_v46, %v1946_v33  ;;  %2655 = vmatpush1.bf16.msra.mxu0 %v2493_v12  ;;  %vm12536_vm0 = vmmov %vm12535_vm3  ;;  %vm12539_vm6 = vcmp.lt.s32.totalorder %v7506_v10, 127 }
 0x341   : > { %v1948_v3 = vpop.permute.xlu0 %1947  ;;  %v2502_v18 = vpack.c.bf16 %v2430_v27, %v2422_v7  ;;  %v1975_v4 = vmul.f32 %v12518_v40, %v1955_v34  ;;  %v1976_v36 = vmul.f32 %v12519_v60, %v1953_v20 }
 0x342   : > { %v1954_v11 = vsel %vm12516_vm8, %v1948_v3, %v9249_v24  ;;  %v1956_v47 = vsel %vm12517_vm10, %v9523_v42, %v1948_v3  ;;  %v12531_v3 = vld [vmem:[#allocation32_spill] sm:$0xff]  ;;  %vm12540_vm8 = vmmov %vm12539_vm6 }
 0x343   : > { %v1983_v9 = vmul.f32 %v12518_v40, %v1956_v47  ;;  %v1984_v46 = vmul.f32 %v12519_v60, %v1954_v11  ;;  %v2010_v37 = vpop.permute.xlu1 %2009  ;;  %2656 = vmatprep.subr.bf16.mxu0 %v2502_v18  ;;  %v12534_v60 = vld [vmem:[#allocation34_spill] sm:$0xff]  ;;  %vm12541_vm10 = vmmov %vm12539_vm6 }
 0x344   : > { %v2017_v55 = vsel %vm12520_vm13, %v2010_v37, %v9262_v61  ;;  %v2019_v24 = vsel %vm12521_vm5, %v9496_v62, %v2010_v37  ;;  %2657 = vmatpush1.bf16.msra.mxu0 %v2501_v56  ;;  %v12537_v37 = vld [vmem:[#allocation33_spill] sm:$0xff]  ;;  %vm12543_vm13 = vmmov %vm12539_vm6  ;;  %vm12545_vm5 = vcmp.lt.s32.totalorder %v7506_v10, 97 }
 0x345   : > { %v2439_v42 = vpack.c.bf16 %v1983_v9, %v1975_v4  ;;  %v2012_v49 = vpop.permute.xlu0 %2011  ;;  %v2440_v0 = vpack.c.bf16 %v1984_v46, %v1976_v36  ;;  %v2039_v15 = vmul.f32 %v12522_v53, %v2019_v24  ;;  %v2040_v61 = vmul.f32 %v12525_v5, %v2017_v55 }
 0x346   : > { %v2018_v12 = vsel %vm12523_vm1, %v2012_v49, %v9277_v29  ;;  %v2020_v14 = vsel %vm12524_vm2, %v9541_v25, %v2012_v49  ;;  %vm12546_vm1 = vmmov %vm12545_vm5 }
 0x347   : > { %v2047_v59 = vmul.f32 %v12522_v53, %v2020_v14  ;;  %v2048_v62 = vmul.f32 %v12525_v5, %v2018_v12  ;;  %v2074_v1 = vpop.permute.xlu1 %2073  ;;  %2673 = vmatmul.mubr.bf16.vlgmr.msra.gmra.mrb[16].mxu0 %v9476_v44  ;;  %2693 = vmatprep.subr.bf16.mxu1 %v2440_v0  ;;  %v12542_v12 = vld [vmem:[#allocation38_spill] sm:$0xff]  ;;  %vm12547_vm2 = vmmov %vm12546_vm1 }
 0x348   : > { %v2081_v7 = vsel %vm12526_vm7, %v2074_v1, %v9290_v19  ;;  %v2083_v29 = vsel %vm12527_vm12, %v9506_v52, %v2074_v1  ;;  %2694 = vmatpush1.bf16.msra.mxu1 %v2439_v42  ;;  %6377 = vmatprep.mubr.msk.bf16.mxu0 %vm2527_vm11, %v9483_v54  ;;  %v12530_v19 = vld [vmem:[#allocation35_spill] sm:$0xff]  ;;  %v12538_v42 = vmov 0   ;;  %vm12549_vm7 = vmmov %vm12546_vm1  ;;  %vm12551_vm12 = vcmp.lt.s32.totalorder %v7506_v10, 96 }
 0x349   : > { %v2447_v25 = vpack.c.bf16 %v2047_v59, %v2039_v15  ;;  %v2076_v27 = vpop.permute.xlu0 %2075  ;;  %v2448_v33 = vpack.c.bf16 %v2048_v62, %v2040_v61  ;;  %v2103_v34 = vmul.f32 %v12530_v19, %v2083_v29  ;;  %v2104_v18 = vmul.f32 %v12531_v3, %v2081_v7  ;;  %v12544_v62 = vld [vmem:[#allocation37_spill] sm:$0xff] }
 0x34a   : > { %v2082_v8 = vsel %vm12528_vm9, %v2076_v27, %v9305_v22  ;;  %v2084_v20 = vsel %vm12529_vm4, %v9561_v41, %v2076_v27  ;;  %v2472_v61 = vpack.c.bf16 %v8850_v51, %v8843_v43  ;;  %v2471_v43 = vpack.c.bf16 %v8984_v16, %v9078_v45  ;;  %v12550_v45 = vld [vmem:[#allocation46_spill] sm:$0xff]  ;;  %vm12552_vm9 = vmmov %vm12551_vm12 }
 0x34b   : > { %v2111_v52 = vmul.f32 %v12530_v19, %v2084_v20  ;;  %v2112_v56 = vmul.f32 %v12531_v3, %v2082_v8  ;;  %v2138_v11 = vpop.permute.xlu1 %2137  ;;  %2695 = vmatprep.subr.bf16.mxu1 %v2448_v33  ;;  %vm12553_vm4 = vmmov %vm12552_vm9 }
 0x34c   : > { %v2145_v47 = vsel %vm12532_vm14, %v2138_v11, %v9314_v32  ;;  %v2147_v22 = vsel %vm12533_vm15, %v9515_v23, %v2138_v11  ;;  %2696 = vmatpush1.bf16.msra.mxu1 %v2447_v25  ;;  %vm12555_vm14 = vmmov %vm12553_vm4  ;;  %vm12558_vm15 = vcmp.lt.s32.totalorder %v7506_v10, 95 }
 0x34d   : > { %v2455_v41 = vpack.c.bf16 %v2111_v52, %v2103_v34  ;;  %v2140_v40 = vpop.permute.xlu0 %2139  ;;  %v2456_v4 = vpack.c.bf16 %v2112_v56, %v2104_v18  ;;  %v2167_v36 = vmul.f32 %v12534_v60, %v2147_v22  ;;  %v2168_v32 = vmul.f32 %v12537_v37, %v2145_v47  ;;  %v12556_v22 = vld [vmem:[#allocation45_spill] sm:$0xff] }
 0x34e   : > { %v2146_v9 = vsel %vm12535_vm3, %v2140_v40, %v9325_v30  ;;  %v2148_v46 = vsel %vm12536_vm0, %v9579_v63, %v2140_v40  ;;  %v12557_v40 = vld [vmem:[#allocation15_spill] sm:$0xff]  ;;  %vm12560_vm3 = vmmov %vm12558_vm15 }
 0x34f   : > { %v2175_v55 = vmul.f32 %v12534_v60, %v2148_v46  ;;  %v2176_v23 = vmul.f32 %v12537_v37, %v2146_v9  ;;  %v2206_v24 = vpop.permute.xlu1 %2205  ;;  %2683 = vmatmul.mubr.bf16.gmra.mrb[20].mxu0 %v9494_v58  ;;  %2697 = vmatprep.subr.bf16.mxu1 %v2456_v4  ;;  %v12559_v4 = vld [vmem:[#allocation20_spill] sm:$0xff]  ;;  %vm12561_vm0 = vmmov %vm12560_vm3 }
 0x350   : > { %2698 = vmatpush1.bf16.msra.mxu1 %v2455_v41  ;;  %2944 = vmatprep.mubr.bf16.mxu0 %v12538_v42  ;;  %v2223_v63 = vsel %vm12539_vm6, %v2206_v24, %v12419_v35  ;;  %v2209_v35 = vsel %vm12543_vm13, %v9552_v48, %v2206_v24  ;;  %v12548_v48 = vld [vmem:[#allocation42_spill] sm:$0xff]  ;;  %vm12563_vm6 = vmmov %vm12561_vm0 }
 0x351   : > { %v2463_v49 = vpack.c.bf16 %v2175_v55, %v2167_v36  ;;  %v2208_v0 = vpop.permute.xlu0 %2207  ;;  %v2464_v30 = vpack.c.bf16 %v2176_v23, %v2168_v32  ;;  %v2232_v59 = vmul.f32 %v12542_v12, %v2223_v63  ;;  %v2231_v33 = vmul.f32 %v12544_v62, %v2209_v35  ;;  %v12564_v24 = vld [vmem:[#allocation50_spill] sm:$0xff]  ;;  %vm12567_vm13 = vmmov %vm12541_vm10 }
 0x352   : > { %v2224_v53 = vsel %vm12540_vm8, %v2208_v0, %v8915_v39  ;;  %v2210_v15 = vsel %vm12541_vm10, %v9504_v13, %v2208_v0  ;;  %vm12088_vm8 = vcmask 261120  }
 0x353   : > { %v2240_v14 = vmul.f32 %v12542_v12, %v2224_v53  ;;  %v2270_v5 = vpop.permute.xlu1 %2269  ;;  %2699 = vmatprep.subr.bf16.mxu1 %v2464_v30  ;;  %v2239_v1 = vmul.f32 %v12544_v62, %v2210_v15 }
 0x354   : > { %2700 = vmatpush1.bf16.msra.mxu1 %v2463_v49  ;;  %v2287_v13 = vsel %vm12545_vm5, %v2270_v5, %v12430_v2  ;;  %v2273_v2 = vsel %vm12549_vm7, %v9587_v6, %v2270_v5  ;;  %v12554_v6 = vld [vmem:[#allocation44_spill] sm:$0xff]  ;;  %vm12568_vm5 = vmmov %vm12553_vm4 }
 0x355   : > { %2701 = vmatprep.subr.bf16.mxu1 %v2472_v61  ;;  %v2272_v39 = vpop.permute.xlu0 %2271  ;;  %v2480_v27 = vpack.c.bf16 %v2240_v14, %v2232_v59  ;;  %v2479_v16 = vpack.c.bf16 %v2239_v1, %v2231_v33  ;;  %v2295_v56 = vmul.f32 %v12550_v45, %v2273_v2  ;;  %vm12571_vm7 = vmmov %vm12553_vm4 }
 0x356   : > { %v2288_v7 = vsel %vm12546_vm1, %v2272_v39, %v12425_v26  ;;  %v2274_v51 = vsel %vm12547_vm2, %v9508_v28, %v2272_v39  ;;  %v2296_v26 = vmul.f32 %v12548_v48, %v2287_v13  ;;  %vm12569_vm1 = vmmov %vm12561_vm0 }
 0x357   : > { %v2304_v29 = vmul.f32 %v12548_v48, %v2288_v7  ;;  %v2334_v25 = vpop.permute.xlu1 %2333  ;;  %v2303_v20 = vmul.f32 %v12550_v45, %v2274_v51  ;;  %vm12570_vm2 = vmmov %vm12561_vm0 }
 0x358   : > { %2702 = vmatpush1.bf16.msra.mxu1 %v2471_v43  ;;  %v2351_v28 = vsel %vm12551_vm12, %v2334_v25, %v12439_v38  ;;  %v2337_v11 = vsel %vm12555_vm14, %v9619_v17, %v2334_v25  ;;  %v12562_v17 = vld [vmem:[#allocation49_spill] sm:$0xff]  ;;  %vm12572_vm12 = vmmov %vm12541_vm10 }
 0x359   : > { %2703 = vmatprep.subr.bf16.mxu1 %v2480_v27  ;;  %v2336_v8 = vpop.permute.xlu0 %2335  ;;  %v2488_v52 = vpack.c.bf16 %v2304_v29, %v2296_v26  ;;  %v2360_v38 = vmul.f32 %v12554_v6, %v2351_v28  ;;  %v2359_v37 = vmul.f32 %v12556_v22, %v2337_v11  ;;  %vm12574_vm14 = vmmov %vm12561_vm0 }
 0x35a   : > { %v2352_v19 = vsel %vm12552_vm9, %v2336_v8, %v12435_v21  ;;  %v2338_v34 = vsel %vm12553_vm4, %v9510_v31, %v2336_v8  ;;  %v2487_v21 = vpack.c.bf16 %v2303_v20, %v2295_v56  ;;  %vm12573_vm9 = vmmov %vm12541_vm10 }
 0x35b   : > { %v2368_v3 = vmul.f32 %v12554_v6, %v2352_v19  ;;  %v2398_v18 = vpop.permute.xlu1 %2397  ;;  %v2367_v41 = vmul.f32 %v12556_v22, %v2338_v34 }
 0x35c   : > { %2704 = vmatpush1.bf16.msra.mxu1 %v2479_v16  ;;  %v2415_v31 = vsel %vm12558_vm15, %v2398_v18, %v12557_v40  ;;  %v2401_v32 = vsel %vm12563_vm6, %v9646_v57, %v2398_v18  ;;  %vm12575_vm15 = vmmov %vm12553_vm4 }
 0x35d   : > { %2705 = vmatprep.subr.bf16.mxu1 %v2488_v52  ;;  %v2400_v47 = vpop.permute.xlu0 %2399  ;;  %v2496_v46 = vpack.c.bf16 %v2368_v3, %v2360_v38  ;;  %v2424_v55 = vmul.f32 %v12562_v17, %v2415_v31  ;;  %v2495_v23 = vpack.c.bf16 %v2367_v41, %v2359_v37  ;;  %v2423_v30 = vmul.f32 %v12564_v24, %v2401_v32 }
 0x35e   : > { %v2416_v60 = vsel %vm12560_vm3, %v2400_v47, %v12559_v4  ;;  %v2402_v36 = vsel %vm12561_vm0, %v9655_v50, %v2400_v47  ;;  %vm12576_vm3 = vmmov %vm12561_vm0 }
 0x35f   : > { %v2432_v9 = vmul.f32 %v12562_v17, %v2416_v60  ;;  %v2431_v49 = vmul.f32 %v12564_v24, %v2402_v36  ;;  %vm12577_vm0 = vmmov %vm12573_vm9 }
 0x360   : > { %2706 = vmatpush1.bf16.msra.mxu1 %v2487_v21  ;;  %vm12578_vm6 = vmmov %vm12577_vm0 }
 0x361   : > { %2707 = vmatprep.subr.bf16.mxu1 %v2496_v46  ;;  %v2504_v0 = vpack.c.bf16 %v2432_v9, %v2424_v55  ;;  %v2503_v50 = vpack.c.bf16 %v2431_v49, %v2423_v30 }
 0x364   : > { %2708 = vmatpush1.bf16.msra.mxu1 %v2495_v23 }
 0x365   : > { %2709 = vmatprep.subr.bf16.mxu1 %v2504_v0 }
 0x368   : > { %2710 = vmatpush1.bf16.msra.mxu1 %v2503_v50 }
 0x36b   : > { %2726 = vmatmul.mubr.bf16.vlgmr.msra.gmra.mrb[16].mxu1 %v9476_v44 }
 0x36c   : > { %6379 = vmatprep.mubr.msk.bf16.mxu1 %vm2527_vm11, %v9483_v54  ;;  %v9806_v57 = vpop.permute.xlu1 %2784 }
 0x36e   : > { %v9808_v63 = vpop.permute.xlu0 %2789 }
 0x370   : > { %v9810_v53 = vpop.permute.xlu1 %2841 }
 0x372   : > { %v9812_v15 = vpop.permute.xlu0 %2846 }
 0x373   : > { %2736 = vmatmul.mubr.bf16.gmra.mrb[20].mxu1 %v9494_v58 }
 0x374   : > { %2985 = vmatprep.mubr.bf16.mxu1 %v12538_v42  ;;  %v9821_v8 = vpop.permute.xlu1 %2794 }
 0x376   : > { %v9826_v28 = vpop.permute.xlu0 %2799 }
 0x3d9   : > { %v2568_v12 = vpop.f32.mrb[8].mxu0 }
 0x3da   : > { %v2746_v14 = vmax.f32 %v2568_v12, 0.0  ;;  %v2570_v5 = vpop.f32.mrb[9].mxu0  ;;  %v2621_v61 = vpop.f32.mrb[8].mxu1 }
 0x3db   : > { %v2747_v44 = vmax.f32 %v2570_v5, 0.0  ;;  %v2748_v35 = vmax.f32 %v2621_v61, 0.0  ;;  %v2572_v59 = vpop.f32.mrb[10].mxu0  ;;  %v2623_v54 = vpop.f32.mrb[9].mxu1 }
 0x3dc   : > { %v2802_v58 = vmul.f32 %v9806_v57, %v2746_v14  ;;  %v2754_v39 = vmax.f32 %v2572_v59, 0.0  ;;  %v2749_v62 = vmax.f32 %v2623_v54, 0.0  ;;  %v2574_v1 = vpop.f32.mrb[11].mxu0  ;;  %v2625_v13 = vpop.f32.mrb[10].mxu1 }
 0x3dd   : > { %v2803_v7 = vmul.f32 %v9806_v57, %v2747_v44  ;;  %v2804_v43 = vmul.f32 %v9806_v57, %v2748_v35  ;;  %v2755_v51 = vmax.f32 %v2574_v1, 0.0  ;;  %v2756_v48 = vmax.f32 %v2625_v13, 0.0  ;;  %v2627_v29 = vpop.f32.mrb[11].mxu1  ;;  %v9839_v14 = vpop.permute.xlu1 %2851 }
 0x3de   : > { %v2810_v25 = vmul.f32 %v9808_v63, %v2754_v39  ;;  %v2805_v27 = vmul.f32 %v9806_v57, %v2749_v62  ;;  %v2757_v33 = vmax.f32 %v2627_v29, 0.0  ;;  %v2859_v16 = vadd.f32 %v9810_v53, %v2802_v58  ;;  %v9841_v5 = vpop.permute.xlu0 %2856 }
 0x3df   : > { %v2811_v2 = vmul.f32 %v9808_v63, %v2755_v51  ;;  %v2812_v26 = vmul.f32 %v9808_v63, %v2756_v48  ;;  %v2860_v19 = vadd.f32 %v9810_v53, %v2803_v7  ;;  %v2861_v34 = vadd.f32 %v9810_v53, %v2804_v43 }
 0x3e0   : > { %v2867_v45 = vadd.f32 %v9812_v15, %v2810_v25  ;;  %v2813_v20 = vmul.f32 %v9808_v63, %v2757_v33  ;;  %v2862_v56 = vadd.f32 %v9810_v53, %v2805_v27  ;;  %v9857_v25 = vld [vmem:[%s12565_s7] sm:$0xf]  ;;  %s12669_s7 = sld [smem:[#allocation84_spill]] }
 0x3e1   : > { %v2868_v6 = vadd.f32 %v9812_v15, %v2811_v2  ;;  %v2869_v3 = vadd.f32 %v9812_v15, %v2812_v26  ;;  %v2578_v18 = vpop.f32.mrb[12].mxu0 }
 0x3e2   : > { %v2892_v52 = vpack.c.bf16 %v2867_v45, %v2859_v16  ;;  %v2870_v11 = vadd.f32 %v9812_v15, %v2813_v20  ;;  %v2762_v38 = vmax.f32 %v2578_v18, 0.0  ;;  %v2580_v47 = vpop.f32.mrb[13].mxu0  ;;  %v2631_v21 = vpop.f32.mrb[12].mxu1 }
 0x3e3   : > { %v2894_v22 = vpack.c.bf16 %v2869_v3, %v2861_v34  ;;  %v2763_v41 = vmax.f32 %v2580_v47, 0.0  ;;  %v2764_v40 = vmax.f32 %v2631_v21, 0.0  ;;  %v2582_v31 = vpop.f32.mrb[14].mxu0  ;;  %v2633_v4 = vpop.f32.mrb[13].mxu1  ;;  %v2893_v60 = vpack.c.bf16 %v2868_v6, %v2860_v19 }
 0x3e4   : > { %v2818_v36 = vmul.f32 %v9821_v8, %v2762_v38  ;;  %v2770_v17 = vmax.f32 %v2582_v31, 0.0  ;;  %v2765_v9 = vmax.f32 %v2633_v4, 0.0  ;;  %v2584_v46 = vpop.f32.mrb[15].mxu0  ;;  %v2635_v37 = vpop.f32.mrb[14].mxu1  ;;  %v2895_v32 = vpack.c.bf16 %v2870_v11, %v2862_v56 }
 0x3e5   : > { %v2819_v55 = vmul.f32 %v9821_v8, %v2763_v41  ;;  %v2820_v23 = vmul.f32 %v9821_v8, %v2764_v40  ;;  %v2771_v24 = vmax.f32 %v2584_v46, 0.0  ;;  %v2772_v49 = vmax.f32 %v2635_v37, 0.0  ;;  %v2637_v0 = vpop.f32.mrb[15].mxu1  ;;  %2912 = vmatprep.subr.bf16.mxu0 %v2893_v60 }
 0x3e6   : > { %v2826_v30 = vmul.f32 %v9826_v28, %v2770_v17  ;;  %v2821_v50 = vmul.f32 %v9821_v8, %v2765_v9  ;;  %v2773_v12 = vmax.f32 %v2637_v0, 0.0  ;;  %2913 = vmatpush1.bf16.msra.mxu0 %v2892_v52  ;;  %2953 = vmatprep.subr.bf16.mxu1 %v2895_v32  ;;  %v2875_v35 = vadd.f32 %v9839_v14, %v2818_v36 }
 0x3e7   : > { %v2827_v61 = vmul.f32 %v9826_v28, %v2771_v24  ;;  %v2828_v44 = vmul.f32 %v9826_v28, %v2772_v49  ;;  %2954 = vmatpush1.bf16.msra.mxu1 %v2894_v22  ;;  %v2876_v58 = vadd.f32 %v9839_v14, %v2819_v55  ;;  %v2877_v39 = vadd.f32 %v9839_v14, %v2820_v23 }
 0x3e8   : > { %v2883_v59 = vadd.f32 %v9841_v5, %v2826_v30  ;;  %v2829_v54 = vmul.f32 %v9826_v28, %v2773_v12  ;;  %v2878_v7 = vadd.f32 %v9839_v14, %v2821_v50 }
 0x3e9   : > { %v2884_v62 = vadd.f32 %v9841_v5, %v2827_v61  ;;  %v2885_v1 = vadd.f32 %v9841_v5, %v2828_v44 }
 0x3ea   : > { %v2900_v13 = vpack.c.bf16 %v2883_v59, %v2875_v35  ;;  %v2886_v43 = vadd.f32 %v9841_v5, %v2829_v54 }
 0x3eb   : > { %v2902_v51 = vpack.c.bf16 %v2885_v1, %v2877_v39  ;;  %v2901_v48 = vpack.c.bf16 %v2884_v62, %v2876_v58 }
 0x3ec   : > { %v2903_v29 = vpack.c.bf16 %v2886_v43, %v2878_v7 }
 0x3ed   : > { %2914 = vmatprep.subr.bf16.mxu0 %v2901_v48 }
 0x3ee   : > { %2915 = vmatpush1.bf16.msra.mxu0 %v2900_v13  ;;  %2955 = vmatprep.subr.bf16.mxu1 %v2903_v29 }
 0x3ef   : > { %2956 = vmatpush1.bf16.msra.mxu1 %v2902_v51 }
 0x3f1   : > { %6384 = vmatmul.mubr.msk.bf16.vlgmr.msra.gmra.mrb[24].mxu0 %vm12088_vm8, %v9857_v25 }
 0x3f2   : > { %6385 = vmatmul.mubr.msk.bf16.vlgmr.msra.gmra.mrb[24].mxu1 %vm12088_vm8, %v9857_v25  ;;  %3026 = vmatprep.mubr.bf16.mxu0 %v12538_v42 }
 0x3f3   : > { %3067 = vmatprep.mubr.bf16.mxu1 %v12538_v42 }
 0x41a   : > { %v2674_v27 = vpop.f32.mrb[16].mxu0 }
 0x41b   : > { %v2750_v33 = vmax.f32 %v2674_v27, 0.0  ;;  %v2676_v2 = vpop.f32.mrb[17].mxu0 }
 0x41c   : > { %v2751_v26 = vmax.f32 %v2676_v2, 0.0  ;;  %v2678_v16 = vpop.f32.mrb[18].mxu0 }
 0x41d   : > { %v2806_v45 = vmul.f32 %v9806_v57, %v2750_v33  ;;  %v2758_v20 = vmax.f32 %v2678_v16, 0.0  ;;  %v2680_v19 = vpop.f32.mrb[19].mxu0 }
 0x41e   : > { %v2807_v34 = vmul.f32 %v9806_v57, %v2751_v26  ;;  %v2759_v6 = vmax.f32 %v2680_v19, 0.0 }
 0x41f   : > { %v2814_v3 = vmul.f32 %v9808_v63, %v2758_v20  ;;  %v2863_v52 = vadd.f32 %v9810_v53, %v2806_v45 }
 0x420   : > { %v2815_v18 = vmul.f32 %v9808_v63, %v2759_v6  ;;  %v2864_v11 = vadd.f32 %v9810_v53, %v2807_v34 }
 0x421   : > { %v2871_v56 = vadd.f32 %v9812_v15, %v2814_v3 }
 0x422   : > { %v2872_v38 = vadd.f32 %v9812_v15, %v2815_v18  ;;  %v2684_v47 = vpop.f32.mrb[20].mxu0 }
 0x423   : > { %v2896_v21 = vpack.c.bf16 %v2871_v56, %v2863_v52  ;;  %v2766_v22 = vmax.f32 %v2684_v47, 0.0  ;;  %v2686_v41 = vpop.f32.mrb[21].mxu0  ;;  %v6878_v47 = vld [vmem:[%s12566_s30 + $0x34] ss:$8 sps:$4 sm:$0xff]  }
 0x424   : > { %v2767_v40 = vmax.f32 %v2686_v41, 0.0  ;;  %v2688_v31 = vpop.f32.mrb[22].mxu0  ;;  %v2897_v4 = vpack.c.bf16 %v2872_v38, %v2864_v11  ;;  %v6873_v38 = vld [vmem:[%s12566_s30 + $0x20] ss:$8 sps:$4 sm:$0xff]  }
 0x425   : > { %v2822_v60 = vmul.f32 %v9821_v8, %v2766_v22  ;;  %v2774_v36 = vmax.f32 %v2688_v31, 0.0  ;;  %v2690_v17 = vpop.f32.mrb[23].mxu0  ;;  %v6881_v22 = vld [vmem:[%s12566_s30 + $0x44] ss:$8 sps:$4 sm:$0xff]   ;;  %v6879_v41 = vld [vmem:[%s12566_s30 + $0x40] ss:$8 sps:$4 sm:$0xff]  }
 0x426   : > { %v2823_v9 = vmul.f32 %v9821_v8, %v2767_v40  ;;  %v2775_v46 = vmax.f32 %v2690_v17, 0.0  ;;  %2994 = vmatprep.subr.bf16.mxu0 %v2897_v4  ;;  %v6884_v40 = vld [vmem:[%s12566_s30 + $0x54] ss:$8 sps:$4 sm:$0xff]   ;;  %v6882_v31 = vld [vmem:[%s12566_s30 + $0x50] ss:$8 sps:$4 sm:$0xff]  }
 0x427   : > { %v2830_v37 = vmul.f32 %v9826_v28, %v2774_v36  ;;  %2995 = vmatpush1.bf16.msra.mxu0 %v2896_v21  ;;  %v2879_v55 = vadd.f32 %v9839_v14, %v2822_v60  ;;  %v6876_v21 = vld [vmem:[%s12566_s30 + $0x30] ss:$8 sps:$4 sm:$0xff]   ;;  %v6887_v4 = vld [vmem:[%s12566_s30 + $0x64] ss:$8 sps:$4 sm:$0xff]   ;;  %v6885_v60 = vld [vmem:[%s12566_s30 + $0x60] ss:$8 sps:$4 sm:$0xff]  }
 0x428   : > { %v2831_v32 = vmul.f32 %v9826_v28, %v2775_v46  ;;  %v2880_v24 = vadd.f32 %v9839_v14, %v2823_v9  ;;  %v6890_v36 = vld [vmem:[%s12566_s30 + $0x74] ss:$8 sps:$4 sm:$0xff]   ;;  %v6888_v17 = vld [vmem:[%s12566_s30 + $0x70] ss:$8 sps:$4 sm:$0xff]   ;;  %v6893_v9 = vld [vmem:[%s12566_s30 + $0x84] ss:$8 sps:$4 sm:$0xff]  }
 0x429   : > { %v2887_v23 = vadd.f32 %v9841_v5, %v2830_v37  ;;  %v6891_v46 = vld [vmem:[%s12566_s30 + $0x80] ss:$8 sps:$4 sm:$0xff]   ;;  %v6894_v37 = vld [vmem:[%s12566_s30 + $0x90] ss:$8 sps:$4 sm:$0xff]  }
 0x42a   : > { %v2888_v49 = vadd.f32 %v9841_v5, %v2831_v32  ;;  %v6896_v32 = vld [vmem:[%s12566_s30 + $0x94] ss:$8 sps:$4 sm:$0xff]  }
 0x42b   : > { %v2904_v0 = vpack.c.bf16 %v2887_v23, %v2879_v55  ;;  %v6897_v55 = vld [vmem:[%s12566_s30 + $0xa0] ss:$8 sps:$4 sm:$0xff]   ;;  %v6899_v23 = vld [vmem:[%s12566_s30 + $0xa4] ss:$8 sps:$4 sm:$0xff]  }
 0x42c   : > { %v2905_v30 = vpack.c.bf16 %v2888_v49, %v2880_v24  ;;  %v6900_v24 = vld [vmem:[%s12566_s30 + $0xb0] ss:$8 sps:$4 sm:$0xff]   ;;  %v6902_v49 = vld [vmem:[%s12566_s30 + $0xb4] ss:$8 sps:$4 sm:$0xff]  }
 0x42e   : > { %2996 = vmatprep.subr.bf16.mxu0 %v2905_v30  ;;  %v6905_v30 = vld [vmem:[%s12566_s30 + $0xc4] ss:$8 sps:$4 sm:$0xff]  }
 0x42f   : > { %2997 = vmatpush1.bf16.msra.mxu0 %v2904_v0  ;;  %v6903_v0 = vld [vmem:[%s12566_s30 + $0xc0] ss:$8 sps:$4 sm:$0xff]  }
 0x432   : > { %6386 = vmatmul.mubr.msk.bf16.vlgmr.msra.gmra.mrb[28].mxu0 %vm12088_vm8, %v9857_v25 }
 0x43e   : > { %v2727_v50 = vpop.f32.mrb[16].mxu1 }
 0x43f   : > { %v2752_v12 = vmax.f32 %v2727_v50, 0.0  ;;  %v2729_v61 = vpop.f32.mrb[17].mxu1  ;;  %v6908_v50 = vld [vmem:[%s12566_s30 + $0xd4] ss:$8 sps:$4 sm:$0xff]  }
 0x440   : > { %v2753_v44 = vmax.f32 %v2729_v61, 0.0  ;;  %v2731_v35 = vpop.f32.mrb[18].mxu1  ;;  %v9986_v61 = vpop.permute.xlu1 %3087 }
 0x441   : > { %v2808_v59 = vmul.f32 %v9806_v57, %v2752_v12  ;;  %v2760_v54 = vmax.f32 %v2731_v35, 0.0  ;;  %v2733_v58 = vpop.f32.mrb[19].mxu1  ;;  %v6906_v12 = vld [vmem:[%s12566_s30 + $0xd0] ss:$8 sps:$4 sm:$0xff]  }
 0x442   : > { %v2809_v39 = vmul.f32 %v9806_v57, %v2753_v44  ;;  %v2761_v62 = vmax.f32 %v2733_v58, 0.0 }
 0x443   : > { %v2816_v1 = vmul.f32 %v9808_v63, %v2760_v54  ;;  %v2865_v7 = vadd.f32 %v9810_v53, %v2808_v59 }
 0x444   : > { %v2817_v13 = vmul.f32 %v9808_v63, %v2761_v62  ;;  %v2866_v51 = vadd.f32 %v9810_v53, %v2809_v39 }
 0x445   : > { %v2873_v43 = vadd.f32 %v9812_v15, %v2816_v1 }
 0x446   : > { %v2874_v48 = vadd.f32 %v9812_v15, %v2817_v13  ;;  %v2737_v29 = vpop.f32.mrb[20].mxu1  ;;  %v6911_v13 = vld [vmem:[%s12566_s30 + $0xe4] ss:$8 sps:$4 sm:$0xff]  }
 0x447   : > { %v2898_v27 = vpack.c.bf16 %v2873_v43, %v2865_v7  ;;  %v2768_v33 = vmax.f32 %v2737_v29, 0.0  ;;  %v2739_v2 = vpop.f32.mrb[21].mxu1  ;;  %v3103_v29 = vpop.permute.xlu0 %3102 }
 0x448   : > { %v2769_v26 = vmax.f32 %v2739_v2, 0.0  ;;  %v2741_v16 = vpop.f32.mrb[22].mxu1  ;;  %v2899_v57 = vpack.c.bf16 %v2874_v48, %v2866_v51  ;;  %v6909_v48 = vld [vmem:[%s12566_s30 + $0xe0] ss:$8 sps:$4 sm:$0xff]  }
 0x449   : > { %v2824_v45 = vmul.f32 %v9821_v8, %v2768_v33  ;;  %v2776_v20 = vmax.f32 %v2741_v16, 0.0  ;;  %v2743_v19 = vpop.f32.mrb[23].mxu1 }
 0x44a   : > { %v2825_v63 = vmul.f32 %v9821_v8, %v2769_v26  ;;  %v2777_v34 = vmax.f32 %v2743_v19, 0.0  ;;  %3035 = vmatprep.subr.bf16.mxu1 %v2899_v57  ;;  %v6867_v8 = vld [vmem:[%s12566_s30] ss:$8 sps:$4 sm:$0xff]  }
 0x44b   : > { %v2832_v6 = vmul.f32 %v9826_v28, %v2776_v20  ;;  %3036 = vmatpush1.bf16.msra.mxu1 %v2898_v27  ;;  %v2881_v15 = vadd.f32 %v9839_v14, %v2824_v45  ;;  %v6914_v45 = vld [vmem:[%s12566_s30 + $0xf4] ss:$8 sps:$4 sm:$0xff]   ;;  %v6912_v20 = vld [vmem:[%s12566_s30 + $0xf0] ss:$8 sps:$4 sm:$0xff]  }
 0x44c   : > { %v2833_v53 = vmul.f32 %v9826_v28, %v2777_v34  ;;  %v2882_v18 = vadd.f32 %v9839_v14, %v2825_v63  ;;  %v6869_v28 = vld [vmem:[%s12566_s30 + $0x4] ss:$8 sps:$4 sm:$0xff]   ;;  %v6870_v14 = vld [vmem:[%s12566_s30 + $0x10] ss:$8 sps:$4 sm:$0xff]  }
 0x44d   : > { %v2889_v3 = vadd.f32 %v9841_v5, %v2832_v6  ;;  %3985 = vmatprep.subr.bf16.mxu0 %v6869_v28  ;;  %v6917_v63 = vld [vmem:[%s12566_s30 + $0x104] ss:$8 sps:$4 sm:$0xff]  }
 0x44e   : > { %v2890_v52 = vadd.f32 %v9841_v5, %v2833_v53  ;;  %3986 = vmatpush1.bf16.msra.mxu0 %v6867_v8  ;;  %v6872_v5 = vld [vmem:[%s12566_s30 + $0x14] ss:$8 sps:$4 sm:$0xff]  }
 0x44f   : > { %v2906_v56 = vpack.c.bf16 %v2889_v3, %v2881_v15  ;;  %3987 = vmatprep.subr.bf16.mxu0 %v6872_v5 }
 0x450   : > { %v2907_v11 = vpack.c.bf16 %v2890_v52, %v2882_v18 }
 0x452   : > { %3037 = vmatprep.subr.bf16.mxu1 %v2907_v11  ;;  %3988 = vmatpush1.bf16.msra.mxu0 %v6870_v14 }
 0x453   : > { %3038 = vmatpush1.bf16.msra.mxu1 %v2906_v56 }
 0x456   : > { %6387 = vmatmul.mubr.msk.bf16.vlgmr.msra.gmra.mrb[28].mxu1 %vm12088_vm8, %v9857_v25  ;;  %v6875_v25 = vld [vmem:[%s12566_s30 + $0x24] ss:$8 sps:$4 sm:$0xff]  }
 0x457   : > { %4277 = vmatprep.mubr.bf16.mxu1 %v12538_v42  ;;  %3989 = vmatprep.subr.bf16.mxu0 %v6875_v25 }
 0x458   : > { %3990 = vmatpush1.bf16.msra.mxu0 %v6873_v38 }
 0x459   : > { %3991 = vmatprep.subr.bf16.mxu0 %v6878_v47 }
 0x45c   : > { %3992 = vmatpush1.bf16.msra.mxu0 %v6876_v21 }
 0x45d   : > { %3993 = vmatprep.subr.bf16.mxu0 %v6881_v22 }
 0x460   : > { %3994 = vmatpush1.bf16.msra.mxu0 %v6879_v41 }
 0x461   : > { %3995 = vmatprep.subr.bf16.mxu0 %v6884_v40 }
 0x464   : > { %3996 = vmatpush1.bf16.msra.mxu0 %v6882_v31 }
 0x465   : > { %3997 = vmatprep.subr.bf16.mxu0 %v6887_v4 }
 0x468   : > { %3998 = vmatpush1.bf16.msra.mxu0 %v6885_v60 }
 0x469   : > { %3999 = vmatprep.subr.bf16.mxu0 %v6890_v36 }
 0x46c   : > { %4000 = vmatpush1.bf16.msra.mxu0 %v6888_v17 }
 0x46d   : > { %4001 = vmatprep.subr.bf16.mxu0 %v6893_v9 }
 0x470   : > { %4002 = vmatpush1.bf16.msra.mxu0 %v6891_v46 }
 0x471   : > { %4003 = vmatprep.subr.bf16.mxu0 %v6896_v32 }
 0x474   : > { %4004 = vmatpush1.bf16.msra.mxu0 %v6894_v37 }
 0x475   : > { %4005 = vmatprep.subr.bf16.mxu0 %v6899_v23 }
 0x478   : > { %4006 = vmatpush1.bf16.msra.mxu0 %v6897_v55 }
 0x479   : > { %4007 = vmatprep.subr.bf16.mxu0 %v6902_v49 }
 0x47c   : > { %4008 = vmatpush1.bf16.msra.mxu0 %v6900_v24 }
 0x47d   : > { %4009 = vmatprep.subr.bf16.mxu0 %v6905_v30 }
 0x480   : > { %4010 = vmatpush1.bf16.msra.mxu0 %v6903_v0 }
 0x481   : > { %4011 = vmatprep.subr.bf16.mxu0 %v6908_v50 }
 0x484   : > { %4012 = vmatpush1.bf16.msra.mxu0 %v6906_v12 }
 0x485   : > { %4013 = vmatprep.subr.bf16.mxu0 %v6911_v13 }
 0x488   : > { %4014 = vmatpush1.bf16.msra.mxu0 %v6909_v48  ;;  %v6915_v48 = vld [vmem:[%s12566_s30 + $0x100] ss:$8 sps:$4 sm:$0xff]  }
 0x489   : > { %4015 = vmatprep.subr.bf16.mxu0 %v6914_v45  ;;  %v6924_v45 = vld [vmem:[%s12566_s30 + $0x130] ss:$8 sps:$4 sm:$0xff]  }
 0x48c   : > { %4016 = vmatpush1.bf16.msra.mxu0 %v6912_v20  ;;  %v6929_v20 = vld [vmem:[%s12566_s30 + $0x144] ss:$8 sps:$4 sm:$0xff]  }
 0x48d   : > { %4026 = vmatprep.subr.bf16.mxu0 %v6917_v63  ;;  %v6932_v63 = vld [vmem:[%s12566_s30 + $0x154] ss:$8 sps:$4 sm:$0xff]  }
 0x4c4   : > { %v2946_v44 = vpop.f32.mrb[24].mxu0 }
 0x4c5   : > { %v3076_v35 = vmax.f32 %v2946_v44, 0.0  ;;  %v2948_v59 = vpop.f32.mrb[25].mxu0  ;;  %v2987_v54 = vpop.f32.mrb[24].mxu1 }
 0x4c6   : > { %v3077_v58 = vmax.f32 %v2948_v59, 0.0  ;;  %v3078_v39 = vmax.f32 %v2987_v54, 0.0  ;;  %v2950_v62 = vpop.f32.mrb[26].mxu0  ;;  %v2989_v1 = vpop.f32.mrb[25].mxu1 }
 0x4c7   : > { %v3090_v7 = vmul.f32 %v9986_v61, %v3076_v35  ;;  %v2951_v43 = vpop.f32.mrb[27].mxu0  ;;  %v2991_v51 = vpop.f32.mrb[26].mxu1  ;;  %v3079_v34 = vmax.f32 %v2989_v1, 0.0 }
 0x4c8   : > { %v3091_v27 = vmul.f32 %v9986_v61, %v3077_v58  ;;  %v3092_v33 = vmul.f32 %v9986_v61, %v3078_v39  ;;  %v2992_v2 = vpop.f32.mrb[27].mxu1 }
 0x4c9   : > { %v9997_v26 = vadd.f32 %v3103_v29, %v3090_v7  ;;  %v3093_v53 = vmul.f32 %v9986_v61, %v3079_v34  ;;  %v6923_v2 = vld [vmem:[%s12566_s30 + $0x124] ss:$8 sps:$4 sm:$0xff]   ;;  %v6930_v34 = vld [vmem:[%s12566_s30 + $0x150] ss:$8 sps:$4 sm:$0xff]  }
 0x4ca   : > { %v9999_v16 = vadd.f32 %v3103_v29, %v3091_v27  ;;  %v10001_v57 = vadd.f32 %v3103_v29, %v3092_v33  ;;  %v6920_v27 = vld [vmem:[%s12566_s30 + $0x114] ss:$8 sps:$4 sm:$0xff]   ;;  %v6918_v33 = vld [vmem:[%s12566_s30 + $0x110] ss:$8 sps:$4 sm:$0xff]  }
 0x4cb   : > { %3241 = vrot.lane.b32.xlu0 %v9997_v26, %s12139_s4  ;;  %v10025_v11 = vadd.f32 %v3103_v29, %v3093_v53  ;;  %v6933_v53 = vld [vmem:[%s12566_s30 + $0x160] ss:$8 sps:$4 sm:$0xff]  }
 0x4cc   : > { %v6800_v19 = vpack.i.bf16 %v10001_v57, %v9999_v16 }
 0x4ce   : > { %6801 = vrot.lane.b32.xlu1 %v6800_v19, %s12139_s4 }
 0x4cf   : > { %6806 = vrot.lane.b32.xlu0 %v6800_v19, %s12339_s27 }
 0x4d2   : > { %6811 = vrot.lane.b32.xlu1 %v6800_v19, %s12134_s1  ;;  %v6927_v19 = vld [vmem:[%s12566_s30 + $0x140] ss:$8 sps:$4 sm:$0xff]  }
 0x4d3   : > { %3297 = vrot.lane.b32.xlu0 %v9997_v26, %s12134_s1 }
 0x4d6   : > { %3273 = vrot.lane.b32.xlu1 %v9997_v26, %s12339_s27 }
 0x505   : > { %v3028_v6 = vpop.f32.mrb[28].mxu0 }
 0x506   : > { %v3080_v15 = vmax.f32 %v3028_v6, 0.0  ;;  %v3030_v3 = vpop.f32.mrb[29].mxu0  ;;  %v6935_v6 = vld [vmem:[%s12566_s30 + $0x164] ss:$8 sps:$4 sm:$0xff]  }
 0x507   : > { %v3032_v18 = vpop.f32.mrb[30].mxu0  ;;  %v3081_v14 = vmax.f32 %v3030_v3, 0.0  ;;  %v6936_v3 = vld [vmem:[%s12566_s30 + $0x170] ss:$8 sps:$4 sm:$0xff]  }
 0x508   : > { %v3094_v52 = vmul.f32 %v9986_v61, %v3080_v15  ;;  %v3033_v56 = vpop.f32.mrb[31].mxu0  ;;  %v6938_v15 = vld [vmem:[%s12566_s30 + $0x174] ss:$8 sps:$4 sm:$0xff]   ;;  %v6941_v18 = vld [vmem:[%s12566_s30 + $0x184] ss:$8 sps:$4 sm:$0xff]  }
 0x509   : > { %v3095_v25 = vmul.f32 %v9986_v61, %v3081_v14  ;;  %v6944_v56 = vld [vmem:[%s12566_s30 + $0x194] ss:$8 sps:$4 sm:$0xff]   ;;  %v6947_v14 = vld [vmem:[%s12566_s30 + $0x1a4] ss:$8 sps:$4 sm:$0xff]  }
 0x50a   : > { %v10027_v8 = vadd.f32 %v3103_v29, %v3094_v52  ;;  %v6939_v52 = vld [vmem:[%s12566_s30 + $0x180] ss:$8 sps:$4 sm:$0xff]  }
 0x50b   : > { %v10036_v31 = vadd.f32 %v3103_v29, %v3095_v25  ;;  %v6950_v25 = vld [vmem:[%s12566_s30 + $0x1b4] ss:$8 sps:$4 sm:$0xff]  }
 0x50c   : > { %v6820_v28 = vpack.i.bf16 %v10027_v8, %v10025_v11 }
 0x50e   : > { %6821 = vrot.lane.b32.xlu0 %v6820_v28, %s12339_s27  ;;  %6816 = vrot.lane.b32.xlu1 %v6820_v28, %s12139_s4 }
 0x512   : > { %6826 = vrot.lane.b32.xlu1 %v6820_v28, %s12134_s1  ;;  %v6942_v28 = vld [vmem:[%s12566_s30 + $0x190] ss:$8 sps:$4 sm:$0xff]  }
 0x529   : > { %v3069_v5 = vpop.f32.mrb[28].mxu1 }
 0x52a   : > { %v3082_v38 = vmax.f32 %v3069_v5, 0.0  ;;  %v3071_v47 = vpop.f32.mrb[29].mxu1  ;;  %v6945_v5 = vld [vmem:[%s12566_s30 + $0x1a0] ss:$8 sps:$4 sm:$0xff]  }
 0x52b   : > { %v3073_v21 = vpop.f32.mrb[30].mxu1  ;;  %v3083_v41 = vmax.f32 %v3071_v47, 0.0  ;;  %v6953_v47 = vld [vmem:[%s12566_s30 + $0x1c4] ss:$8 sps:$4 sm:$0xff]  }
 0x52c   : > { %v3096_v22 = vmul.f32 %v9986_v61, %v3082_v38  ;;  %v3074_v40 = vpop.f32.mrb[31].mxu1  ;;  %v6948_v38 = vld [vmem:[%s12566_s30 + $0x1b0] ss:$8 sps:$4 sm:$0xff]   ;;  %v6951_v21 = vld [vmem:[%s12566_s30 + $0x1c0] ss:$8 sps:$4 sm:$0xff]  }
 0x52d   : > { %v3097_v60 = vmul.f32 %v9986_v61, %v3083_v41 }
 0x52e   : > { %v10038_v4 = vadd.f32 %v3103_v29, %v3096_v22  ;;  %v6956_v22 = vld [vmem:[%s12566_s30 + $0x1d4] ss:$8 sps:$4 sm:$0xff]  }
 0x52f   : > { %v10045_v17 = vadd.f32 %v3103_v29, %v3097_v60 }
 0x530   : > { %v6835_v36 = vpack.i.bf16 %v10038_v4, %v10036_v31 }
 0x532   : > { %6836 = vrot.lane.b32.xlu1 %v6835_v36, %s12339_s27  ;;  %6831 = vrot.lane.b32.xlu0 %v6835_v36, %s12139_s4 }
 0x536   : > { %3255 = vrot.lane.b32.xlu1 %v10045_v17, %s12139_s4  ;;  %6841 = vrot.lane.b32.xlu0 %v6835_v36, %s12134_s1 }
 0x53a   : > { %3311 = vrot.lane.b32.xlu1 %v10045_v17, %s12134_s1  ;;  %3287 = vrot.lane.b32.xlu0 %v10045_v17, %s12339_s27  ;;  %s12091_s1 = smov 15   ;;  %s12086_s27 = smov 113  }
 0x53d   : > { %v10054_v9 = vpop.permute.xlu0 %3241 }
 0x540   : > { %v10056_v46 = vpop.permute.xlu1 %6801 }
 0x541   : > { %v6804_v37 = vunpack.i.h.bf16 %v10056_v46  ;;  %v6803_v32 = vunpack.i.l.bf16 %v10056_v46  ;;  %v10060_v55 = vpop.permute.xlu0 %6806  ;;  %v6962_v46 = vld [vmem:[%s12566_s30 + $0x1f4] ss:$8 sps:$4 sm:$0xff]  }
 0x542   : > { %v6809_v23 = vunpack.i.h.bf16 %v10060_v55  ;;  %v6808_v24 = vunpack.i.l.bf16 %v10060_v55 }
 0x543   : > { %v3262_v50 = vsel %vm12541_vm10, %v6803_v32, %v6804_v37  ;;  %v3263_v61 = vsel %vm12567_vm13, %v10054_v9, %v6803_v32  ;;  %v6954_v32 = vld [vmem:[%s12566_s30 + $0x1d0] ss:$8 sps:$4 sm:$0xff]   ;;  %vm12579_vm10 = vmmov %vm12553_vm4 }
 0x544   : > { %v10064_v49 = vpop.permute.xlu1 %6811  ;;  %v3294_v44 = vsel %vm12568_vm5, %v6808_v24, %v6809_v23  ;;  %v3266_v54 = vmax.f32 %v9999_v16, %v3262_v50  ;;  %v3265_v1 = vmax.f32 %v9997_v26, %v3263_v61  ;;  %v6921_v26 = vld [vmem:[%s12566_s30 + $0x120] ss:$8 sps:$4 sm:$0xff]   ;;  %v6926_v16 = vld [vmem:[%s12566_s30 + $0x134] ss:$8 sps:$4 sm:$0xff]   ;;  %vm12580_vm13 = vmmov %vm12577_vm0 }
 0x545   : > { %v6814_v0 = vunpack.i.h.bf16 %v10064_v49  ;;  %v6813_v30 = vunpack.i.l.bf16 %v10064_v49  ;;  %v10072_v12 = vpop.permute.xlu0 %3297  ;;  %v6960_v49 = vld [vmem:[%s12566_s30 + $0x1f0] ss:$8 sps:$4 sm:$0xff]   ;;  %vm12581_vm5 = vmmov %vm12569_vm1 }
 0x547   : > { %v3318_v35 = vsel %vm12569_vm1, %v6813_v30, %v6814_v0  ;;  %v3319_v39 = vsel %vm12570_vm2, %v10072_v12, %v6813_v30  ;;  %vm12582_vm1 = vmmov %vm12553_vm4 }
 0x548   : > { %v10085_v59 = vpop.permute.xlu1 %3273  ;;  %v3322_v58 = vmax.f32 %v3294_v44, %v3318_v35 }
 0x549   : > { %v3295_v62 = vsel %vm12571_vm7, %v10085_v59, %v6808_v24  ;;  %v6959_v24 = vld [vmem:[%s12566_s30 + $0x1e4] ss:$8 sps:$4 sm:$0xff]   ;;  %vm12583_vm7 = vmmov %vm12570_vm2 }
 0x54a   : > { %v3321_v13 = vmax.f32 %v3295_v62, %v3319_v39  ;;  %v3330_v7 = vmax.f32 %v3266_v54, %v3322_v58  ;;  %v6957_v58 = vld [vmem:[%s12566_s30 + $0x1e0] ss:$8 sps:$4 sm:$0xff]  }
 0x54c   : > { %v3329_v43 = vmax.f32 %v3265_v1, %v3321_v13  ;;  %v3338_v51 = vpack.c.bf16 %v3330_v7, %v3330_v7 }
 0x54e   : > { %v3337_v29 = vpack.c.bf16 %v3329_v43, %v3329_v43  ;;  %4017 = vmatprep.mubr.bf16.mxu0 %v3338_v51 }
 0x550   : > { %4018 = vmatmul.mubr.bf16.vlgmr.msra.gmra.mrb[32].mxu0 %v3337_v29 }
 0x551   : > { %4027 = vmatpush1.bf16.msra.mxu0 %v6915_v48  ;;  %v6965_v48 = vld [vmem:[%s12566_s30 + $0x204] ss:$8 sps:$4 sm:$0xff]  }
 0x552   : > { %4028 = vmatprep.subr.bf16.mxu0 %v6920_v27 }
 0x555   : > { %4029 = vmatpush1.bf16.msra.mxu0 %v6918_v33  ;;  %v6966_v33 = vld [vmem:[%s12566_s30 + $0x210] ss:$8 sps:$4 sm:$0xff]  }
 0x556   : > { %4030 = vmatprep.subr.bf16.mxu0 %v6923_v2  ;;  %v6971_v2 = vld [vmem:[%s12566_s30 + $0x224] ss:$8 sps:$4 sm:$0xff]  }
 0x559   : > { %4031 = vmatpush1.bf16.msra.mxu0 %v6921_v26  ;;  %v6969_v26 = vld [vmem:[%s12566_s30 + $0x220] ss:$8 sps:$4 sm:$0xff]  }
 0x55a   : > { %4032 = vmatprep.subr.bf16.mxu0 %v6926_v16  ;;  %v6974_v16 = vld [vmem:[%s12566_s30 + $0x234] ss:$8 sps:$4 sm:$0xff]  }
 0x55d   : > { %4033 = vmatpush1.bf16.msra.mxu0 %v6924_v45  ;;  %v6972_v45 = vld [vmem:[%s12566_s30 + $0x230] ss:$8 sps:$4 sm:$0xff]  }
 0x55e   : > { %4034 = vmatprep.subr.bf16.mxu0 %v6929_v20  ;;  %v6977_v20 = vld [vmem:[%s12566_s30 + $0x244] ss:$8 sps:$4 sm:$0xff]  }
 0x561   : > { %4035 = vmatpush1.bf16.msra.mxu0 %v6927_v19  ;;  %v6975_v19 = vld [vmem:[%s12566_s30 + $0x240] ss:$8 sps:$4 sm:$0xff]  }
 0x562   : > { %4036 = vmatprep.subr.bf16.mxu0 %v6932_v63  ;;  %v6980_v63 = vld [vmem:[%s12566_s30 + $0x254] ss:$8 sps:$4 sm:$0xff]  }
 0x565   : > { %4037 = vmatpush1.bf16.msra.mxu0 %v6930_v34  ;;  %v6978_v34 = vld [vmem:[%s12566_s30 + $0x250] ss:$8 sps:$4 sm:$0xff]  }
 0x566   : > { %4038 = vmatprep.subr.bf16.mxu0 %v6935_v6  ;;  %v6983_v6 = vld [vmem:[%s12566_s30 + $0x264] ss:$8 sps:$4 sm:$0xff]  }
 0x569   : > { %4039 = vmatpush1.bf16.msra.mxu0 %v6933_v53 }
 0x56a   : > { %4040 = vmatprep.subr.bf16.mxu0 %v6938_v15 }
 0x56d   : > { %4041 = vmatpush1.bf16.msra.mxu0 %v6936_v3 }
 0x56e   : > { %4042 = vmatprep.subr.bf16.mxu0 %v6941_v18 }
 0x571   : > { %4043 = vmatpush1.bf16.msra.mxu0 %v6939_v52  ;;  %v6981_v52 = vld [vmem:[%s12566_s30 + $0x260] ss:$8 sps:$4 sm:$0xff]  }
 0x572   : > { %4044 = vmatprep.subr.bf16.mxu0 %v6944_v56 }
 0x575   : > { %4045 = vmatpush1.bf16.msra.mxu0 %v6942_v28  ;;  %v6986_v28 = vld [vmem:[%s12566_s30 + $0x274] ss:$8 sps:$4 sm:$0xff]  }
 0x576   : > { %4046 = vmatprep.subr.bf16.mxu0 %v6947_v14 }
 0x579   : > { %4047 = vmatpush1.bf16.msra.mxu0 %v6945_v5 }
 0x57a   : > { %4048 = vmatprep.subr.bf16.mxu0 %v6950_v25 }
 0x57d   : > { %4049 = vmatpush1.bf16.msra.mxu0 %v6948_v38 }
 0x57e   : > { %4050 = vmatprep.subr.bf16.mxu0 %v6953_v47 }
 0x580   : > { %v10173_v41 = vpop.permute.xlu0 %6821  ;;  %v10175_v40 = vpop.permute.xlu1 %6816 }
 0x581   : > { %4051 = vmatpush1.bf16.msra.mxu0 %v6951_v21  ;;  %v6819_v60 = vunpack.i.h.bf16 %v10175_v40  ;;  %v6818_v36 = vunpack.i.l.bf16 %v10175_v40  ;;  %v6824_v30 = vunpack.i.h.bf16 %v10173_v41  ;;  %v6823_v50 = vunpack.i.l.bf16 %v10173_v41  ;;  %v6989_v40 = vld [vmem:[%s12566_s30 + $0x284] ss:$8 sps:$4 sm:$0xff]  }
 0x582   : > { %4052 = vmatprep.subr.bf16.mxu0 %v6956_v22  ;;  %v6984_v22 = vld [vmem:[%s12566_s30 + $0x270] ss:$8 sps:$4 sm:$0xff]  }
 0x583   : > { %v3261_v44 = vsel %vm12572_vm12, %v6804_v37, %v6818_v36  ;;  %v3260_v39 = vsel %vm12573_vm9, %v6818_v36, %v6819_v60  ;;  %v3293_v37 = vsel %vm12553_vm4, %v6809_v23, %v6823_v50  ;;  %v3292_v1 = vsel %vm12575_vm15, %v6823_v50, %v6824_v30  ;;  %vm12584_vm12 = vmmov %vm12582_vm1 }
 0x584   : > { %v10187_v61 = vpop.permute.xlu1 %6826  ;;  %v3267_v55 = vmax.f32 %v10001_v57, %v3261_v44  ;;  %v3268_v23 = vmax.f32 %v10025_v11, %v3260_v39  ;;  %v6963_v57 = vld [vmem:[%s12566_s30 + $0x200] ss:$8 sps:$4 sm:$0xff]   ;;  %v6968_v11 = vld [vmem:[%s12566_s30 + $0x214] ss:$8 sps:$4 sm:$0xff]   ;;  %vm12585_vm9 = vmmov %vm12570_vm2 }
 0x585   : > { %4053 = vmatpush1.bf16.msra.mxu0 %v6954_v32  ;;  %v6829_v35 = vunpack.i.h.bf16 %v10187_v61  ;;  %v6828_v54 = vunpack.i.l.bf16 %v10187_v61  ;;  %vm12586_vm4 = vmmov %vm12582_vm1 }
 0x586   : > { %4054 = vmatprep.subr.bf16.mxu0 %v6959_v24 }
 0x587   : > { %v3317_v62 = vsel %vm12574_vm14, %v6814_v0, %v6828_v54  ;;  %v3316_v13 = vsel %vm12576_vm3, %v6828_v54, %v6829_v35  ;;  %vm12587_vm14 = vmmov %vm12577_vm0 }
 0x588   : > { %v3323_v7 = vmax.f32 %v3293_v37, %v3317_v62  ;;  %v3324_v43 = vmax.f32 %v3292_v1, %v3316_v13  ;;  %v6987_v37 = vld [vmem:[%s12566_s30 + $0x280] ss:$8 sps:$4 sm:$0xff]  }
 0x589   : > { %4055 = vmatpush1.bf16.msra.mxu0 %v6957_v58 }
 0x58a   : > { %4056 = vmatprep.subr.bf16.mxu0 %v6962_v46  ;;  %v3332_v0 = vmax.f32 %v3268_v23, %v3324_v43  ;;  %v3331_v51 = vmax.f32 %v3267_v55, %v3323_v7  ;;  %v6990_v23 = vld [vmem:[%s12566_s30 + $0x290] ss:$8 sps:$4 sm:$0xff]   ;;  %v6993_v43 = vld [vmem:[%s12566_s30 + $0x2a0] ss:$8 sps:$4 sm:$0xff]  }
 0x58c   : > { %v3340_v29 = vpack.c.bf16 %v3332_v0, %v3332_v0  ;;  %v3339_v27 = vpack.c.bf16 %v3331_v51, %v3331_v51  ;;  %v6996_v0 = vld [vmem:[%s12566_s30 + $0x2b0] ss:$8 sps:$4 sm:$0xff]   ;;  %v7001_v51 = vld [vmem:[%s12566_s30 + $0x2c4] ss:$8 sps:$4 sm:$0xff]  }
 0x58d   : > { %4057 = vmatpush1.bf16.msra.mxu0 %v6960_v49  ;;  %v6998_v49 = vld [vmem:[%s12566_s30 + $0x2b4] ss:$8 sps:$4 sm:$0xff]  }
 0x58e   : > { %4058 = vmatprep.mubr.bf16.mxu0 %v3340_v29  ;;  %4067 = vmatprep.subr.bf16.mxu0 %v6965_v48  ;;  %v6999_v48 = vld [vmem:[%s12566_s30 + $0x2c0] ss:$8 sps:$4 sm:$0xff]   ;;  %v7004_v29 = vld [vmem:[%s12566_s30 + $0x2d4] ss:$8 sps:$4 sm:$0xff]  }
 0x590   : > { %4059 = vmatmul.mubr.bf16.vlgmr.msra.gmra.mrb[32].mxu0 %v3339_v27  ;;  %v7002_v27 = vld [vmem:[%s12566_s30 + $0x2d0] ss:$8 sps:$4 sm:$0xff]  }
 0x591   : > { %4068 = vmatpush1.bf16.msra.mxu0 %v6963_v57  ;;  %v7007_v57 = vld [vmem:[%s12566_s30 + $0x2e4] ss:$8 sps:$4 sm:$0xff]  }
 0x592   : > { %4069 = vmatprep.subr.bf16.mxu0 %v6968_v11 }
 0x595   : > { %4070 = vmatpush1.bf16.msra.mxu0 %v6966_v33 }
 0x596   : > { %4071 = vmatprep.subr.bf16.mxu0 %v6971_v2  ;;  %v7005_v2 = vld [vmem:[%s12566_s30 + $0x2e0] ss:$8 sps:$4 sm:$0xff]  }
 0x599   : > { %4072 = vmatpush1.bf16.msra.mxu0 %v6969_v26 }
 0x59a   : > { %4073 = vmatprep.subr.bf16.mxu0 %v6974_v16  ;;  %v7010_v16 = vld [vmem:[%s12566_s30 + $0x2f4] ss:$8 sps:$4 sm:$0xff]  }
 0x59d   : > { %4074 = vmatpush1.bf16.msra.mxu0 %v6972_v45 }
 0x59e   : > { %4075 = vmatprep.subr.bf16.mxu0 %v6977_v20  ;;  %v7013_v20 = vld [vmem:[%s12566_s30 + $0x304] ss:$8 sps:$4 sm:$0xff]  }
 0x5a1   : > { %4076 = vmatpush1.bf16.msra.mxu0 %v6975_v19 }
 0x5a2   : > { %4077 = vmatprep.subr.bf16.mxu0 %v6980_v63 }
 0x5a4   : > { %v6837_v53 = vpop.permute.xlu1 %6836  ;;  %v6832_v15 = vpop.permute.xlu0 %6831 }
 0x5a5   : > { %4078 = vmatpush1.bf16.msra.mxu0 %v6978_v34  ;;  %v6834_v3 = vunpack.i.h.bf16 %v6832_v15  ;;  %v6833_v18 = vunpack.i.l.bf16 %v6832_v15  ;;  %v6838_v56 = vunpack.i.l.bf16 %v6837_v53  ;;  %v6839_v14 = vunpack.i.h.bf16 %v6837_v53  ;;  %v7019_v53 = vld [vmem:[%s12566_s30 + $0x324] ss:$8 sps:$4 sm:$0xff]   ;;  %v7017_v15 = vld [vmem:[%s12566_s30 + $0x320] ss:$8 sps:$4 sm:$0xff]  }
 0x5a6   : > { %4079 = vmatprep.subr.bf16.mxu0 %v6983_v6  ;;  %v7014_v6 = vld [vmem:[%s12566_s30 + $0x310] ss:$8 sps:$4 sm:$0xff]  }
 0x5a7   : > { %v3259_v38 = vsel %vm12577_vm0, %v6819_v60, %v6833_v18  ;;  %v3258_v36 = vsel %vm12578_vm6, %v6833_v18, %v6834_v3  ;;  %v3291_v32 = vsel %vm12579_vm10, %v6824_v30, %v6838_v56  ;;  %v3290_v50 = vsel %vm12582_vm1, %v6838_v56, %v6839_v14  ;;  %v7020_v18 = vld [vmem:[%s12566_s30 + $0x330] ss:$8 sps:$4 sm:$0xff]   ;;  %v7023_v56 = vld [vmem:[%s12566_s30 + $0x340] ss:$8 sps:$4 sm:$0xff]  }
 0x5a8   : > { %v3256_v5 = vpop.permute.xlu1 %3255  ;;  %v6842_v25 = vpop.permute.xlu0 %6841  ;;  %v3269_v30 = vmax.f32 %v10027_v8, %v3259_v38  ;;  %v3270_v39 = vmax.f32 %v10036_v31, %v3258_v36  ;;  %v6992_v31 = vld [vmem:[%s12566_s30 + $0x294] ss:$8 sps:$4 sm:$0xff]  }
 0x5a9   : > { %4080 = vmatpush1.bf16.msra.mxu0 %v6981_v52  ;;  %v6844_v47 = vunpack.i.h.bf16 %v6842_v25  ;;  %v6843_v21 = vunpack.i.l.bf16 %v6842_v25  ;;  %v3257_v60 = vsel %vm12580_vm13, %v6834_v3, %v3256_v5  ;;  %v3264_v26 = vsel %vm12587_vm14, %v3256_v5, %v10054_v9  ;;  %v7011_v9 = vld [vmem:[%s12566_s30 + $0x300] ss:$8 sps:$4 sm:$0xff]   ;;  %v7022_v3 = vld [vmem:[%s12566_s30 + $0x334] ss:$8 sps:$4 sm:$0xff]   ;;  %v7025_v52 = vld [vmem:[%s12566_s30 + $0x344] ss:$8 sps:$4 sm:$0xff]  }
 0x5aa   : > { %4081 = vmatprep.subr.bf16.mxu0 %v6986_v28  ;;  %v3271_v62 = vmax.f32 %v10038_v4, %v3257_v60  ;;  %v6995_v4 = vld [vmem:[%s12566_s30 + $0x2a4] ss:$8 sps:$4 sm:$0xff]   ;;  %v7028_v28 = vld [vmem:[%s12566_s30 + $0x354] ss:$8 sps:$4 sm:$0xff]   ;;  %v7029_v25 = vld [vmem:[%s12566_s30 + $0x360] ss:$8 sps:$4 sm:$0xff]  }
 0x5ab   : > { %v3315_v24 = vsel %vm12581_vm5, %v6829_v35, %v6843_v21  ;;  %v3314_v41 = vsel %vm12570_vm2, %v6843_v21, %v6844_v47  ;;  %v7031_v5 = vld [vmem:[%s12566_s30 + $0x364] ss:$8 sps:$4 sm:$0xff]   ;;  %v7034_v38 = vld [vmem:[%s12566_s30 + $0x374] ss:$8 sps:$4 sm:$0xff]   ;;  %v7041_v60 = vld [vmem:[%s12566_s30 + $0x3a0] ss:$8 sps:$4 sm:$0xff]  }
 0x5ac   : > { %v3325_v44 = vmax.f32 %v3291_v32, %v3315_v24  ;;  %v3312_v54 = vpop.permute.xlu1 %3311  ;;  %v3288_v58 = vpop.permute.xlu0 %3287  ;;  %v3326_v46 = vmax.f32 %v3290_v50, %v3314_v41  ;;  %v7037_v21 = vld [vmem:[%s12566_s30 + $0x384] ss:$8 sps:$4 sm:$0xff]   ;;  %v7040_v36 = vld [vmem:[%s12566_s30 + $0x394] ss:$8 sps:$4 sm:$0xff]   ;;  %v7038_v32 = vld [vmem:[%s12566_s30 + $0x390] ss:$8 sps:$4 sm:$0xff]  }
 0x5ad   : > { %4082 = vmatpush1.bf16.msra.mxu0 %v6984_v22  ;;  %v3313_v61 = vsel %vm12583_vm7, %v6844_v47, %v3312_v54  ;;  %v3289_v35 = vsel %vm12584_vm12, %v6839_v14, %v3288_v58  ;;  %v3320_v11 = vsel %vm12585_vm9, %v3312_v54, %v10072_v12  ;;  %v3296_v33 = vsel %vm12586_vm4, %v3288_v58, %v10085_v59  ;;  %v7008_v59 = vld [vmem:[%s12566_s30 + $0x2f0] ss:$8 sps:$4 sm:$0xff]   ;;  %v7035_v22 = vld [vmem:[%s12566_s30 + $0x380] ss:$8 sps:$4 sm:$0xff]   ;;  %v7046_v24 = vld [vmem:[%s12566_s30 + $0x3b4] ss:$8 sps:$4 sm:$0xff]  }
 0x5ae   : > { %v3327_v8 = vmax.f32 %v3289_v35, %v3313_v61  ;;  %4083 = vmatprep.subr.bf16.mxu0 %v6989_v40  ;;  %v3334_v1 = vmax.f32 %v3270_v39, %v3326_v46  ;;  %v3333_v13 = vmax.f32 %v3269_v30, %v3325_v44  ;;  %v3328_v45 = vmax.f32 %v3296_v33, %v3320_v11  ;;  %v7026_v14 = vld [vmem:[%s12566_s30 + $0x350] ss:$8 sps:$4 sm:$0xff]   ;;  %v7043_v40 = vld [vmem:[%s12566_s30 + $0x3a4] ss:$8 sps:$4 sm:$0xff]   ;;  %v7047_v30 = vld [vmem:[%s12566_s30 + $0x3c0] ss:$8 sps:$4 sm:$0xff]  }
 0x5af   : > { %v3272_v12 = vmax.f32 %v10045_v17, %v3264_v26  ;;  %v7016_v17 = vld [vmem:[%s12566_s30 + $0x314] ss:$8 sps:$4 sm:$0xff]   ;;  %v7032_v47 = vld [vmem:[%s12566_s30 + $0x370] ss:$8 sps:$4 sm:$0xff]   ;;  %v7049_v41 = vld [vmem:[%s12566_s30 + $0x3c4] ss:$8 sps:$4 sm:$0xff]  }
 0x5b0   : > { %v10310_v55 = vmax.f32 %v3271_v62, %v3327_v8  ;;  %v3342_v7 = vpack.c.bf16 %v3334_v1, %v3334_v1  ;;  %v3341_v63 = vpack.c.bf16 %v3333_v13, %v3333_v13  ;;  %v7044_v50 = vld [vmem:[%s12566_s30 + $0x3b0] ss:$8 sps:$4 sm:$0xff]   ;;  %v7052_v44 = vld [vmem:[%s12566_s30 + $0x3d4] ss:$8 sps:$4 sm:$0xff]   ;;  %v7055_v58 = vld [vmem:[%s12566_s30 + $0x3e4] ss:$8 sps:$4 sm:$0xff]  }
 0x5b1   : > { %4084 = vmatpush1.bf16.msra.mxu0 %v6987_v37  ;;  %v3336_v19 = vmax.f32 %v3272_v12, %v3328_v45  ;;  %v7050_v54 = vld [vmem:[%s12566_s30 + $0x3d0] ss:$8 sps:$4 sm:$0xff]   ;;  %v7053_v39 = vld [vmem:[%s12566_s30 + $0x3e0] ss:$8 sps:$4 sm:$0xff]   ;;  %v7058_v46 = vld [vmem:[%s12566_s30 + $0x3f4] ss:$8 sps:$4 sm:$0xff]  }
 0x5b2   : > { %4099 = vmatprep.mubr.bf16.mxu0 %v3342_v7  ;;  %4085 = vmatprep.subr.bf16.mxu0 %v6992_v31  ;;  %v7056_v61 = vld [vmem:[%s12566_s30 + $0x3f0] ss:$8 sps:$4 sm:$0xff]   ;;  %v3343_v35 = vpack.c.bf16 %v10310_v55, %v10310_v55  ;;  %v4292_v31 = vld [vmem:[%s11878_s10] sm:$0xff]  ;;  %v4293_v13 = vld [vmem:[%s11878_s10 + $0x8] sm:$0xff]  ;;  %vm4153_vm12 = vcmp.lt.s32.totalorder %v7506_v10, 17  ;;  %v12593_v45 = vmov 0.0  }
 0x5b3   : > { %v3344_v34 = vpack.c.bf16 %v3336_v19, %v3336_v19  ;;  %v6520_v55 = vld [vmem:[%s11878_s10 + $0x10] sm:$0xff]  ;;  %v6521_v7 = vld [vmem:[%s11878_s10 + $0x18] sm:$0xff] }
 0x5b5   : > { %4086 = vmatpush1.bf16.msra.mxu0 %v6990_v23  ;;  %v1169_v23 = vshra.s32 %v7506_v10, 4 }
 0x5b6   : > { %4087 = vmatprep.subr.bf16.mxu0 %v6995_v4  ;;  %v12588_v4 = vld [vmem:[#allocation16_spill] sm:$0xff] }
 0x5b7   : > { %vm1221_vm4 = vcmp.ge.s32.totalorder %v1169_v23, 0  ;;  %vm1223_vm14 = vcmp.lt.s32.totalorder %v1169_v23, 16 }
 0x5b9   : > { %4088 = vmatpush1.bf16.msra.mxu0 %v6993_v43  ;;  %v1170_v43 = vshra.s32 %v12588_v4, 4 }
 0x5ba   : > { %4089 = vmatprep.subr.bf16.mxu0 %v6998_v49  ;;  %v1171_v49 = vand.u32 15, %v7506_v10 }
 0x5bc   : > { %v10525_v33 = vadd.s32 1, %v1171_v49 }
 0x5bd   : > { %4090 = vmatpush1.bf16.msra.mxu0 %v6996_v0  ;;  %v1172_v0 = vand.u32 15, %v12588_v4 }
 0x5be   : > { %4091 = vmatprep.subr.bf16.mxu0 %v7001_v51  ;;  %v1173_v51 = vadd.s32 4294967295, %v1169_v23  ;;  %vm1213_vm9 = vcmp.lt.s32.totalorder %v10525_v33, 16 }
 0x5bf   : > { %v10535_v26 = vadd.s32 1, %v1172_v0 }
 0x5c0   : > { %vm1175_vm15 = vcmp.ge.s32.totalorder %v1173_v51, 0  ;;  %vm1177_vm3 = vcmp.lt.s32.totalorder %v1173_v51, 16 }
 0x5c1   : > { %4092 = vmatpush1.bf16.msra.mxu0 %v6999_v48  ;;  %v1174_v48 = vadd.s32 4294967295, %v1170_v43  ;;  %vm10515_vm10 = vmand %vm1175_vm15, %vm1177_vm3  ;;  %vm12090_vm15 = vcmp.lt.s32.totalorder %v7506_v10, 16  ;;  %vm1222_vm3 = vcmp.ge.s32.totalorder %v1170_v43, 0 }
 0x5c2   : > { %4093 = vmatprep.subr.bf16.mxu0 %v7004_v29  ;;  %v10511_v29 = vadd.s32 4294967295, %v1171_v49 }
 0x5c3   : > { %vm1176_vm0 = vcmp.ge.s32.totalorder %v1174_v48, 0  ;;  %vm1178_vm6 = vcmp.lt.s32.totalorder %v1174_v48, 16 }
 0x5c4   : > { %vm1183_vm13 = vcmp.ge.s32.totalorder %v10511_v29, 0  ;;  %vm10520_vm5 = vmand %vm1176_vm0, %vm1178_vm6  ;;  %vm1224_vm0 = vcmp.lt.s32.totalorder %v1170_v43, 16  ;;  %vm1214_vm6 = vcmp.lt.s32.totalorder %v10535_v26, 16 }
 0x5c5   : > { %4094 = vmatpush1.bf16.msra.mxu0 %v7002_v27  ;;  %v10513_v27 = vadd.s32 4294967295, %v1172_v0  ;;  %vm1185_vm2 = vmand %vm10515_vm10, %vm1183_vm13 }
 0x5c6   : > { %4095 = vmatprep.subr.bf16.mxu0 %v7007_v57  ;;  %v10540_v12 = vsel %vm1185_vm2, 1.0, %v12593_v45  ;;  %vm10565_vm2 = vmand %vm10515_vm10, %vm1213_vm9 }
 0x5c7   : > { %vm1184_vm1 = vcmp.ge.s32.totalorder %v10513_v27, 0  ;;  %vm10577_vm8 = vmand %vm1222_vm3, %vm1224_vm0 }
 0x5c8   : > { %vm1186_vm7 = vmand %vm10520_vm5, %vm1184_vm1 }
 0x5c9   : > { %4096 = vmatpush1.bf16.msra.mxu0 %v7005_v2  ;;  %vm1228_vm3 = vmand %vm10577_vm8, %vm1184_vm1 }
 0x5ca   : > { %4097 = vmatprep.subr.bf16.mxu0 %v7010_v16  ;;  %vm1238_vm0 = vmand %vm10577_vm8, %vm1214_vm6 }
 0x5cd   : > { %4098 = vmatpush1.bf16.msra.mxu0 %v7008_v59  ;;  %v10543_v59 = vsel %vm1186_vm7, 1.0, %v12593_v45  ;;  %vm10569_vm7 = vmand %vm1221_vm4, %vm1223_vm14  ;;  %vm12089_vm14 = vcmp.lt.s32.totalorder %v7506_v10, 15 }
 0x5ce   : > { %4108 = vmatprep.subr.bf16.mxu0 %v7013_v20  ;;  %v10548_v20 = vsel %vm10515_vm10, 1.0, %v12593_v45  ;;  %vm1216_vm10 = vmand %vm10520_vm5, %vm1214_vm6 }
 0x5cf   : > { %vm1227_vm4 = vmand %vm10569_vm7, %vm1183_vm13 }
 0x5d0   : > { %4100 = vmatmul.mubr.bf16.vlgmr.msra.gmra.mrb[32].mxu0 %v3341_v63 }
 0x5d1   : > { %4109 = vmatpush1.bf16.msra.mxu0 %v7011_v9  ;;  %4140 = vmatprep.mubr.bf16.mxu0 %v3344_v34 }
 0x5d2   : > { %4110 = vmatprep.subr.bf16.mxu0 %v7016_v17  ;;  %v10558_v17 = vsel %vm10520_vm5, 1.0, %v12593_v45  ;;  %vm1237_vm5 = vmand %vm10569_vm7, %vm1213_vm9 }
 0x5d5   : > { %4111 = vmatpush1.bf16.msra.mxu0 %v7014_v6 }
 0x5d6   : > { %4112 = vmatprep.subr.bf16.mxu0 %v7019_v53 }
 0x5d9   : > { %4113 = vmatpush1.bf16.msra.mxu0 %v7017_v15 }
 0x5da   : > { %4114 = vmatprep.subr.bf16.mxu0 %v7022_v3 }
 0x5dd   : > { %4115 = vmatpush1.bf16.msra.mxu0 %v7020_v18 }
 0x5de   : > { %4116 = vmatprep.subr.bf16.mxu0 %v7025_v52 }
 0x5e1   : > { %4117 = vmatpush1.bf16.msra.mxu0 %v7023_v56 }
 0x5e2   : > { %4118 = vmatprep.subr.bf16.mxu0 %v7028_v28 }
 0x5e5   : > { %4119 = vmatpush1.bf16.msra.mxu0 %v7026_v14 }
 0x5e6   : > { %4120 = vmatprep.subr.bf16.mxu0 %v7031_v5 }
 0x5e9   : > { %4121 = vmatpush1.bf16.msra.mxu0 %v7029_v25 }
 0x5ea   : > { %4122 = vmatprep.subr.bf16.mxu0 %v7034_v38 }
 0x5ed   : > { %4123 = vmatpush1.bf16.msra.mxu0 %v7032_v47 }
 0x5ee   : > { %4124 = vmatprep.subr.bf16.mxu0 %v7037_v21  ;;  %v1243_v21 = vadd.s32 1, %v1169_v23 }
 0x5f1   : > { %4125 = vmatpush1.bf16.msra.mxu0 %v7035_v22  ;;  %v1244_v22 = vadd.s32 1, %v1170_v43 }
 0x5f2   : > { %4126 = vmatprep.subr.bf16.mxu0 %v7040_v36  ;;  %v10601_v36 = vsel %vm10565_vm2, 1.0, %v12593_v45  ;;  %vm1245_vm2 = vcmp.ge.s32.totalorder %v1243_v21, 0 }
 0x5f5   : > { %4127 = vmatpush1.bf16.msra.mxu0 %v7038_v32  ;;  %v10604_v32 = vsel %vm1216_vm10, 1.0, %v12593_v45  ;;  %vm1247_vm10 = vcmp.lt.s32.totalorder %v1243_v21, 16 }
 0x5f6   : > { %4128 = vmatprep.subr.bf16.mxu0 %v7043_v40  ;;  %vm10638_vm8 = vmand %vm1245_vm2, %vm1247_vm10  ;;  %vm4196_vm2 = vcmp.lt.s32.totalorder %v7506_v10, 113 }
 0x5f9   : > { %4129 = vmatpush1.bf16.msra.mxu0 %v7041_v60 }
 0x5fa   : > { %4130 = vmatprep.subr.bf16.mxu0 %v7046_v24 }
 0x5fd   : > { %4131 = vmatpush1.bf16.msra.mxu0 %v7044_v50  ;;  %v10611_v50 = vsel %vm1227_vm4, 1.0, %v12593_v45 }
 0x5fe   : > { %4132 = vmatprep.subr.bf16.mxu0 %v7049_v41  ;;  %v10614_v41 = vsel %vm1228_vm3, 1.0, %v12593_v45  ;;  %vm1246_vm3 = vcmp.ge.s32.totalorder %v1244_v22, 0 }
 0x601   : > { %4133 = vmatpush1.bf16.msra.mxu0 %v7047_v30 }
 0x602   : > { %4134 = vmatprep.subr.bf16.mxu0 %v7052_v44 }
 0x605   : > { %4135 = vmatpush1.bf16.msra.mxu0 %v7050_v54 }
 0x606   : > { %4136 = vmatprep.subr.bf16.mxu0 %v7055_v58 }
 0x609   : > { %4137 = vmatpush1.bf16.msra.mxu0 %v7053_v39 }
 0x60a   : > { %4138 = vmatprep.subr.bf16.mxu0 %v7058_v46 }
 0x60d   : > { %4139 = vmatpush1.bf16.msra.mxu0 %v7056_v61 }
 0x610   : > { %4141 = vmatmul.mubr.bf16.vlgmr.msra.gmra.mrb[32].mxu0 %v3343_v35 }
 0x6e3   : > { %v10459_v37 = vpop.f32.mrb[32].mxu0 }
 0x6e4   : > { %4149 = vrot.lane.b32.xlu0 %v10459_v37, %s12097_s24  ;;  %v10463_v62 = vpop.f32.mrb[33].mxu0 }
 0x6e5   : > { %4151 = vrot.lane.b32.xlu1 %v10463_v62, %s12097_s24  ;;  %v4146_v8 = vpop.f32.mrb[34].mxu0 }
 0x6e6   : > { %v4147_v1 = vpop.f32.mrb[35].mxu0  ;;  %v10633_v8 = vsel %vm1237_vm5, 1.0, %v12593_v45 }
 0x6e7   : > { %v10636_v1 = vsel %vm1238_vm0, 1.0, %v12593_v45  ;;  %vm1251_vm0 = vmand %vm10638_vm8, %vm1183_vm13  ;;  %vm4205_vm13 = vcmp.lt.s32.totalorder %v7506_v10, 112 }
 0x6e8   : > { %4158 = vrot.lane.b32.xlu0 %v10459_v37, %s12093_s8 }
 0x6e9   : > { %4160 = vrot.lane.b32.xlu1 %v10463_v62, %s12093_s8 }
 0x6ec   : > { %4167 = vrot.lane.b32.xlu0 %v10459_v37, %s12091_s1 }
 0x6ed   : > { %4169 = vrot.lane.b32.xlu1 %v10463_v62, %s12091_s1 }
 0x6f0   : > { %4176 = vrot.lane.b32.xlu0 %v10459_v37, %s12337_s2 }
 0x6f1   : > { %4178 = vrot.lane.b32.xlu1 %v10463_v62, %s12337_s2 }
 0x6f4   : > { %4184 = vrot.lane.b32.xlu0 %v10459_v37, %s12139_s4 }
 0x6f5   : > { %4186 = vrot.lane.b32.xlu1 %v10463_v62, %s12139_s4 }
 0x6f8   : > { %4192 = vrot.lane.b32.xlu0 %v10459_v37, %s12086_s27 }
 0x6f9   : > { %4194 = vrot.lane.b32.xlu1 %v10463_v62, %s12086_s27  ;;  %s12630_s27 = smov 17  }
 0x6fc   : > { %4201 = vrot.lane.b32.xlu0 %v10459_v37, %s12084_s28 }
 0x6fd   : > { %4203 = vrot.lane.b32.xlu1 %v10463_v62, %s12084_s28  ;;  %s12631_s28 = smov 16  }
 0x700   : > { %4210 = vrot.lane.b32.xlu0 %v10459_v37, %s12095_s6 }
 0x701   : > { %4212 = vrot.lane.b32.xlu1 %v10463_v62, %s12095_s6 }
 0x704   : > { %4296 = vperm.xlu0 %6798, %v4292_v31  }
 0x705   : > { %4301 = vperm.xlu1 %6799, %v4293_v13  }
 0x708   : > { %4313 = vperm.xlu0 %6798, %v6520_v55  }
 0x709   : > { %4318 = vperm.xlu1 %6799, %v6521_v7  }
 0x756   : > { %v4150_v2 = vpop.permute.xlu0 %4149 }
 0x757   : > { %v4152_v16 = vpop.permute.xlu1 %4151 }
 0x758   : > { %v4154_v19 = vsel %vm4153_vm12, %v4150_v2, %v4152_v16  ;;  %v4155_v9 = vsel %vm4153_vm12, %v4152_v16, %v4150_v2  ;;  %v10664_v2 = vsel %vm1251_vm0, 1.0, %v12593_v45  ;;  %vm12618_vm0 = vcmp.lt.s32.totalorder %v7506_v10, 15 }
 0x759   : > { %v4156_v52 = vmul.f32 %v10540_v12, %v4155_v9  ;;  %v4157_v56 = vmul.f32 %v10543_v59, %v4154_v19 }
 0x75a   : > { %v4159_v63 = vpop.permute.xlu0 %4158 }
 0x75b   : > { %v4161_v6 = vpop.permute.xlu1 %4160 }
 0x75c   : > { %v4163_v15 = vsel %vm12090_vm15, %v4159_v63, %v4161_v6  ;;  %v4164_v3 = vsel %vm12090_vm15, %v4161_v6, %v4159_v63  ;;  %vm1248_vm15 = vcmp.lt.s32.totalorder %v1244_v22, 16 }
 0x75d   : > { %v4165_v28 = vmul.f32 %v10548_v20, %v4164_v3  ;;  %v4166_v14 = vmul.f32 %v10558_v17, %v4163_v15  ;;  %vm10642_vm7 = vmand %vm1246_vm3, %vm1248_vm15  ;;  %vm12611_vm3 = vcmask 588800  }
 0x75e   : > { %v4168_v5 = vpop.permute.xlu0 %4167  ;;  %vm1252_vm15 = vmand %vm10642_vm7, %vm1184_vm1  ;;  %v10682_v19 = vsel %vm10642_vm7, 1.0, %v12593_v45 }
 0x75f   : > { %v4219_v25 = vpack.c.bf16 %v4165_v28, %v4156_v52  ;;  %v4170_v38 = vpop.permute.xlu1 %4169  ;;  %v4220_v47 = vpack.c.bf16 %v4166_v14, %v4157_v56  ;;  %v10667_v29 = vsel %vm1252_vm15, 1.0, %v12593_v45  ;;  %vm1269_vm1 = vmand %vm10638_vm8, %vm1213_vm9  ;;  %vm12608_vm9 = vcmask 1043456  }
 0x760   : > { %v4172_v40 = vsel %vm12089_vm14, %v4168_v5, %v4170_v38  ;;  %v4173_v60 = vsel %vm12089_vm14, %v4170_v38, %v4168_v5  ;;  %vm12600_vm14 = vcmp.lt.s32.totalorder %v7506_v10, 1  ;;  %vm1270_vm10 = vmand %vm10642_vm7, %vm1214_vm6  ;;  %v10702_v3 = vsel %vm1269_vm1, 1.0, %v12593_v45 }
 0x761   : > { %4245 = vmatprep.subr.bf16.mxu1 %v4220_v47  ;;  %vm12601_vm4 = vmmov %vm12600_vm14  ;;  %v4174_v58 = vmul.f32 %v10601_v36, %v4173_v60  ;;  %v4175_v39 = vmul.f32 %v10604_v32, %v4172_v40  ;;  %v10705_v18 = vsel %vm1270_vm10, 1.0, %v12593_v45  ;;  %v7059_v40 = vld [vmem:[%s12610_s9] sm:$0xff]   ;;  %s12678_s9 = smov 121  }
 0x762   : > { %v4177_v24 = vpop.permute.xlu0 %4176  ;;  %4246 = vmatpush1.bf16.msra.mxu1 %v4219_v25  ;;  %vm12609_vm6 = vmmov %vm12608_vm9 }
 0x763   : > { %v4179_v30 = vpop.permute.xlu1 %4178  ;;  %vm12619_vm15 = vmmov %vm12618_vm0 }
 0x764   : > { %v4180_v44 = vsel %vm12600_vm14, %v4177_v24, %v4179_v30  ;;  %v4181_v54 = vsel %vm12601_vm4, %v4179_v30, %v4177_v24  ;;  %vm12606_vm14 = vcmp.lt.s32.totalorder %v7506_v10, 127  ;;  %vm4214_vm4 = vcmp.lt.s32.totalorder %v7506_v10, 111  ;;  %vm12620_vm1 = vmmov %vm12618_vm0 }
 0x765   : > { %v4182_v46 = vmul.f32 %v10611_v50, %v4181_v54  ;;  %v4183_v61 = vmul.f32 %v10614_v41, %v4180_v44  ;;  %vm12607_vm5 = vmmov %vm12606_vm14 }
 0x766   : > { %v4185_v35 = vpop.permute.xlu0 %4184  ;;  %vm12621_vm10 = vmmov %vm12618_vm0 }
 0x767   : > { %v4221_v13 = vpack.c.bf16 %v4182_v46, %v4174_v58  ;;  %v4187_v55 = vpop.permute.xlu1 %4186  ;;  %v4222_v7 = vpack.c.bf16 %v4183_v61, %v4175_v39 }
 0x768   : > { %v4188_v4 = vsel %vm12606_vm14, %v4185_v35, %v4187_v55  ;;  %v4189_v43 = vsel %vm12607_vm5, %v4187_v55, %v4185_v35 }
 0x769   : > { %v4190_v49 = vmul.f32 %v10633_v8, %v4188_v4  ;;  %v4191_v0 = vmul.f32 %v10636_v1, %v4189_v43  ;;  %4247 = vmatprep.subr.bf16.mxu1 %v4222_v7 }
 0x76a   : > { %v4193_v51 = vpop.permute.xlu0 %4192  ;;  %4248 = vmatpush1.bf16.msra.mxu1 %v4221_v13 }
 0x76b   : > { %v4223_v48 = vpack.c.bf16 %v4190_v49, %v10459_v37  ;;  %v4195_v57 = vpop.permute.xlu1 %4194  ;;  %v4224_v11 = vpack.c.bf16 %v4191_v0, %v10463_v62  ;;  %v10677_v62 = vsel %vm10638_vm8, 1.0, %v12593_v45  ;;  %vm12614_vm8 = vcmp.lt.s32.totalorder %v7506_v10, 16 }
 0x76c   : > { %v4197_v27 = vsel %vm4196_vm2, %v4193_v51, %v4195_v57  ;;  %v4198_v37 = vsel %vm4196_vm2, %v4195_v57, %v4193_v51  ;;  %vm12615_vm7 = vmmov %vm12614_vm8 }
 0x76d   : > { %4249 = vmatprep.subr.bf16.mxu1 %v4224_v11  ;;  %v4199_v6 = vmul.f32 %v10664_v2, %v4197_v27  ;;  %v4200_v33 = vmul.f32 %v10667_v29, %v4198_v37  ;;  %v7060_v11 = vld [vmem:[%s11879_s11 + $0x4] ss:$8 sps:$4 sm:$0xff]   ;;  %vm12616_vm14 = vmmov %vm12615_vm7 }
 0x76e   : > { %v4202_v16 = vpop.permute.xlu0 %4201  ;;  %4250 = vmatpush1.bf16.msra.mxu1 %v4223_v48  ;;  %v4560_v27 = vld [vmem:[%s11880_s12] sm:$0xff]  ;;  %v4561_v37 = vld [vmem:[%s11880_s12 + $0x8] sm:$0xff]  ;;  %vm12617_vm5 = vmmov %vm12615_vm7 }
 0x76f   : > { %v4204_v9 = vpop.permute.xlu1 %4203 }
 0x770   : > { %v4206_v63 = vsel %vm4205_vm13, %v4202_v16, %v4204_v9  ;;  %v4207_v34 = vsel %vm4205_vm13, %v4204_v9, %v4202_v16  ;;  %v6528_v16 = vld [vmem:[%s11880_s12 + $0x20] sm:$0xff]  ;;  %v6529_v9 = vld [vmem:[%s11880_s12 + $0x28] sm:$0xff] }
 0x771   : > { %v4208_v53 = vmul.f32 %v10677_v62, %v4206_v63  ;;  %v4209_v15 = vmul.f32 %v10682_v19, %v4207_v34  ;;  %v4562_v63 = vld [vmem:[%s11880_s12 + $0x10] sm:$0xff]  ;;  %v4563_v34 = vld [vmem:[%s11880_s12 + $0x18] sm:$0xff] }
 0x772   : > { %v4211_v26 = vpop.permute.xlu0 %4210 }
 0x773   : > { %v4225_v52 = vpack.c.bf16 %v4208_v53, %v4199_v6  ;;  %v4213_v56 = vpop.permute.xlu1 %4212  ;;  %v4226_v28 = vpack.c.bf16 %v4209_v15, %v4200_v33  ;;  %v6530_v6 = vld [vmem:[%s11880_s12 + $0x30] sm:$0xff]  ;;  %v6531_v33 = vld [vmem:[%s11880_s12 + $0x38] sm:$0xff] }
 0x774   : > { %v4215_v14 = vsel %vm4214_vm4, %v4211_v26, %v4213_v56  ;;  %v4216_v5 = vsel %vm4214_vm4, %v4213_v56, %v4211_v26 }
 0x775   : > { %v4217_v25 = vmul.f32 %v10702_v3, %v4215_v14  ;;  %v4218_v38 = vmul.f32 %v10705_v18, %v4216_v5  ;;  %4251 = vmatprep.subr.bf16.mxu1 %v4226_v28 }
 0x776   : > { %4252 = vmatpush1.bf16.msra.mxu1 %v4225_v52 }
 0x777   : > { %v4227_v47 = vpack.c.bf16 %v4217_v25, %v4217_v25  ;;  %v4228_v21 = vpack.c.bf16 %v4218_v38, %v4218_v38 }
 0x779   : > { %6518 = vmatprep.subr.msk.bf16.mxu1 %vm12608_vm9, %v4228_v21  ;;  %v4240_v22 = vsel %vm12609_vm6, %v4227_v47, 0  ;;  %vm12622_vm9 = vcmp.lt.s32.totalorder %v7506_v10, 1 }
 0x77a   : > { %4254 = vmatpush1.bf16.msra.mxu1 %v4240_v22  ;;  %vm12623_vm6 = vmmov %vm12622_vm9 }
 0x77d   : > { %6519 = vmatmul.mubr.msk.bf16.vlgmr.msra.gmra.mrb[32].mxu1 %vm12611_vm3, %v7059_v40  ;;  %vm12624_vm3 = vmmov %vm12623_vm6 }
 0x77e   : > { %6526 = vmatprep.mubr.msk.bf16.mxu1 %vm2527_vm11, %v7060_v11 }
 0x783   : > { %v4297_v60 = vpop.permute.xlu0 %4296 }
 0x784   : > { %v4302_v24 = vpop.permute.xlu1 %4301 }
 0x787   : > { %v4314_v31 = vpop.permute.xlu0 %4313 }
 0x788   : > { %v4319_v4 = vpop.permute.xlu1 %4318 }
 0x850   : > { %v4279_v30 = vpop.f32.mrb[32].mxu1 }
 0x851   : > { %v4288_v44 = vmax.f32 %v4279_v30, 0.0  ;;  %v4281_v54 = vpop.f32.mrb[33].mxu1 }
 0x852   : > { %v4289_v58 = vmax.f32 %v4281_v54, 0.0  ;;  %v4283_v39 = vpop.f32.mrb[34].mxu1 }
 0x853   : > { %v4304_v46 = vmul.f32 %v4297_v60, %v4288_v44  ;;  %v4290_v61 = vmax.f32 %v4283_v39, 0.0  ;;  %v4285_v35 = vpop.f32.mrb[35].mxu1 }
 0x854   : > { %v4305_v13 = vmul.f32 %v4297_v60, %v4289_v58  ;;  %v4291_v55 = vmax.f32 %v4285_v35, 0.0 }
 0x855   : > { %v10719_v7 = vadd.f32 %v4314_v31, %v4304_v46  ;;  %v4306_v23 = vmul.f32 %v4302_v24, %v4290_v61 }
 0x856   : > { %v4307_v43 = vmul.f32 %v4302_v24, %v4291_v55  ;;  %v10725_v0 = vadd.f32 %v4314_v31, %v4305_v13 }
 0x857   : > { %v10721_v49 = vadd.f32 %v4319_v4, %v4306_v23  ;;  %4325 = vrot.lane.b32.xlu0 %v10719_v7, %s12097_s24 }
 0x858   : > { %v10727_v51 = vadd.f32 %v4319_v4, %v4307_v43 }
 0x859   : > { %4327 = vrot.lane.b32.xlu1 %v10721_v49, %s12097_s24  ;;  %v4461_v48 = vpack.c.bf16 %v10721_v49, %v10719_v7 }
 0x85a   : > { %v4462_v57 = vpack.c.bf16 %v10727_v51, %v10725_v0 }
 0x85b   : > { %4341 = vrot.lane.b32.xlu0 %v10719_v7, %s12093_s8 }
 0x85d   : > { %4343 = vrot.lane.b32.xlu1 %v10721_v49, %s12093_s8 }
 0x85f   : > { %4357 = vrot.lane.b32.xlu0 %v10719_v7, %s12091_s1 }
 0x861   : > { %4359 = vrot.lane.b32.xlu1 %v10721_v49, %s12091_s1 }
 0x863   : > { %4373 = vrot.lane.b32.xlu0 %v10719_v7, %s12337_s2 }
 0x865   : > { %4375 = vrot.lane.b32.xlu1 %v10721_v49, %s12337_s2 }
 0x867   : > { %4389 = vrot.lane.b32.xlu0 %v10719_v7, %s12139_s4 }
 0x869   : > { %4391 = vrot.lane.b32.xlu1 %v10721_v49, %s12139_s4 }
 0x86b   : > { %4405 = vrot.lane.b32.xlu0 %v10719_v7, %s12612_s3 }
 0x86d   : > { %4407 = vrot.lane.b32.xlu1 %v10721_v49, %s12612_s3 }
 0x86f   : > { %4421 = vrot.lane.b32.xlu0 %v10719_v7, %s12613_s29 }
 0x871   : > { %4423 = vrot.lane.b32.xlu1 %v10721_v49, %s12613_s29 }
 0x873   : > { %4329 = vrot.lane.b32.xlu0 %v10725_v0, %s12097_s24 }
 0x875   : > { %4331 = vrot.lane.b32.xlu1 %v10727_v51, %s12097_s24  ;;  %s12682_s24 = smov 7  }
 0x877   : > { %4345 = vrot.lane.b32.xlu0 %v10725_v0, %s12093_s8 }
 0x879   : > { %4347 = vrot.lane.b32.xlu1 %v10727_v51, %s12093_s8  ;;  %s12633_s8 = smov 111  }
 0x87b   : > { %4361 = vrot.lane.b32.xlu0 %v10725_v0, %s12091_s1 }
 0x87d   : > { %4363 = vrot.lane.b32.xlu1 %v10727_v51, %s12091_s1  ;;  %s12679_s1 = smov 119  }
 0x87f   : > { %4377 = vrot.lane.b32.xlu0 %v10725_v0, %s12337_s2 }
 0x881   : > { %4379 = vrot.lane.b32.xlu1 %v10727_v51, %s12337_s2 }
 0x883   : > { %4437 = vrot.lane.b32.xlu0 %v10719_v7, %s12095_s6 }
 0x885   : > { %4439 = vrot.lane.b32.xlu1 %v10721_v49, %s12095_s6 }
 0x887   : > { %4393 = vrot.lane.b32.xlu0 %v10725_v0, %s12139_s4 }
 0x889   : > { %4395 = vrot.lane.b32.xlu1 %v10727_v51, %s12139_s4 }
 0x88b   : > { %4409 = vrot.lane.b32.xlu0 %v10725_v0, %s12612_s3 }
 0x88d   : > { %4411 = vrot.lane.b32.xlu1 %v10727_v51, %s12612_s3 }
 0x88f   : > { %4425 = vrot.lane.b32.xlu0 %v10725_v0, %s12613_s29 }
 0x891   : > { %4427 = vrot.lane.b32.xlu1 %v10727_v51, %s12613_s29 }
 0x893   : > { %4441 = vrot.lane.b32.xlu0 %v10725_v0, %s12095_s6 }
 0x895   : > { %4443 = vrot.lane.b32.xlu1 %v10727_v51, %s12095_s6  ;;  %s728_s6 = sand.u32 1, %s7166_s26  }
 0x897   : > { %4566 = vperm.xlu0 %6798, %v4560_v27  }
 0x899   : > { %4571 = vperm.xlu1 %6799, %v4561_v37  }
 0x89b   : > { %4599 = vperm.xlu0 %6798, %v6528_v16  }
 0x89d   : > { %4604 = vperm.xlu1 %6799, %v6529_v9  }
 0x89f   : > { %4576 = vperm.xlu0 %6798, %v4562_v63  }
 0x8a1   : > { %4581 = vperm.xlu1 %6799, %v4563_v34  }
 0x8a3   : > { %4609 = vperm.xlu0 %6798, %v6530_v6  }
 0x8a5   : > { %4614 = vperm.xlu1 %6799, %v6531_v33  }
 0x8c9   : > { %v4326_v53 = vpop.permute.xlu0 %4325 }
 0x8cb   : > { %v4328_v15 = vpop.permute.xlu1 %4327 }
 0x8cd   : > { %v4342_v26 = vpop.permute.xlu0 %4341 }
 0x8cf   : > { %v4344_v52 = vpop.permute.xlu1 %4343 }
 0x8d1   : > { %v4358_v56 = vpop.permute.xlu0 %4357 }
 0x8d3   : > { %v4360_v28 = vpop.permute.xlu1 %4359 }
 0x8d5   : > { %v4374_v14 = vpop.permute.xlu0 %4373 }
 0x8d7   : > { %v4376_v5 = vpop.permute.xlu1 %4375 }
 0x8d9   : > { %v10823_v25 = vpop.permute.xlu0 %4389 }
 0x8db   : > { %v10825_v38 = vpop.permute.xlu1 %4391 }
 0x8dd   : > { %v10827_v47 = vpop.permute.xlu0 %4405 }
 0x8df   : > { %v10829_v21 = vpop.permute.xlu1 %4407 }
 0x8e1   : > { %v10831_v22 = vpop.permute.xlu0 %4421 }
 0x8e3   : > { %v10833_v40 = vpop.permute.xlu1 %4423 }
 0x8e5   : > { %v4330_v60 = vpop.permute.xlu0 %4329 }
 0x8e6   : > { %v4333_v24 = vsel %vm4153_vm12, %v4326_v53, %v4330_v60  ;;  %v4335_v30 = vsel %vm4153_vm12, %v4330_v60, %v4326_v53 }
 0x8e7   : > { %v4332_v44 = vpop.permute.xlu1 %4331  ;;  %v4337_v39 = vmul.f32 %v10540_v12, %v4335_v30  ;;  %v4338_v46 = vmul.f32 %v10543_v59, %v4333_v24 }
 0x8e8   : > { %v4334_v54 = vsel %vm4153_vm12, %v4328_v15, %v4332_v44  ;;  %v4336_v58 = vsel %vm4153_vm12, %v4332_v44, %v4328_v15 }
 0x8e9   : > { %v4339_v61 = vmul.f32 %v10540_v12, %v4336_v58  ;;  %v4340_v35 = vmul.f32 %v10543_v59, %v4334_v54  ;;  %v4346_v31 = vpop.permute.xlu0 %4345 }
 0x8ea   : > { %v4349_v13 = vsel %vm12614_vm8, %v4342_v26, %v4346_v31  ;;  %v4351_v55 = vsel %vm12615_vm7, %v4346_v31, %v4342_v26  ;;  %vm12625_vm8 = vmmov %vm12624_vm3  ;;  %vm12626_vm7 = vcmp.lt.s32.totalorder %v7506_v10, 127 }
 0x8eb   : > { %v4453_v23 = vpack.c.bf16 %v4339_v61, %v4337_v39  ;;  %v4348_v4 = vpop.permute.xlu1 %4347  ;;  %v4454_v43 = vpack.c.bf16 %v4340_v35, %v4338_v46  ;;  %v4353_v37 = vmul.f32 %v10548_v20, %v4351_v55  ;;  %v4354_v16 = vmul.f32 %v10558_v17, %v4349_v13 }
 0x8ec   : > { %v4350_v11 = vsel %vm12616_vm14, %v4344_v52, %v4348_v4  ;;  %v4352_v27 = vsel %vm12617_vm5, %v4348_v4, %v4344_v52  ;;  %vm12627_vm14 = vmmov %vm12626_vm7 }
 0x8ed   : > { %v4355_v9 = vmul.f32 %v10548_v20, %v4352_v27  ;;  %v4356_v63 = vmul.f32 %v10558_v17, %v4350_v11  ;;  %v4362_v34 = vpop.permute.xlu0 %4361  ;;  %4499 = vmatprep.subr.bf16.mxu1 %v4454_v43  ;;  %vm12628_vm5 = vmmov %vm12626_vm7 }
 0x8ee   : > { %v4365_v6 = vsel %vm12618_vm0, %v4358_v56, %v4362_v34  ;;  %v4367_v33 = vsel %vm12619_vm15, %v4362_v34, %v4358_v56  ;;  %4500 = vmatpush1.bf16.msra.mxu1 %v4453_v23  ;;  %vm12629_vm0 = vmmov %vm12628_vm5  ;;  %vm12634_vm15 = vcmp.lt.s32.totalorder %v7506_v10, 16 }
 0x8ef   : > { %v4455_v53 = vpack.c.bf16 %v4355_v9, %v4353_v37  ;;  %v4364_v15 = vpop.permute.xlu1 %4363  ;;  %v4456_v26 = vpack.c.bf16 %v4356_v63, %v4354_v16  ;;  %v4369_v24 = vmul.f32 %v10601_v36, %v4367_v33  ;;  %v4370_v30 = vmul.f32 %v10604_v32, %v4365_v6 }
 0x8f0   : > { %v4366_v52 = vsel %vm12620_vm1, %v4360_v28, %v4364_v15  ;;  %v4368_v60 = vsel %vm12621_vm10, %v4364_v15, %v4360_v28  ;;  %vm12635_vm1 = vmmov %vm12634_vm15 }
 0x8f1   : > { %v4371_v44 = vmul.f32 %v10601_v36, %v4368_v60  ;;  %v4372_v54 = vmul.f32 %v10604_v32, %v4366_v52  ;;  %v4378_v58 = vpop.permute.xlu0 %4377  ;;  %4501 = vmatprep.subr.bf16.mxu1 %v4456_v26  ;;  %vm12636_vm10 = vmmov %vm12635_vm1 }
 0x8f2   : > { %v4381_v56 = vsel %vm12622_vm9, %v4374_v14, %v4378_v58  ;;  %v4383_v39 = vsel %vm12623_vm6, %v4378_v58, %v4374_v14  ;;  %4502 = vmatpush1.bf16.msra.mxu1 %v4455_v53  ;;  %vm12637_vm9 = vmmov %vm12635_vm1 }
 0x8f3   : > { %v4457_v46 = vpack.c.bf16 %v4371_v44, %v4369_v24  ;;  %v4380_v61 = vpop.permute.xlu1 %4379  ;;  %v4458_v28 = vpack.c.bf16 %v4372_v54, %v4370_v30  ;;  %v4385_v13 = vmul.f32 %v10611_v50, %v4383_v39  ;;  %v4386_v55 = vmul.f32 %v10614_v41, %v4381_v56  ;;  %vm12639_vm6 = vmmov %vm12635_vm1 }
 0x8f4   : > { %v4382_v35 = vsel %vm12624_vm3, %v4376_v5, %v4380_v61  ;;  %v4384_v31 = vsel %vm12625_vm8, %v4380_v61, %v4376_v5  ;;  %vm12640_vm3 = vmmov %vm12635_vm1 }
 0x8f5   : > { %v4387_v23 = vmul.f32 %v10611_v50, %v4384_v31  ;;  %v4388_v4 = vmul.f32 %v10614_v41, %v4382_v35  ;;  %v4438_v43 = vpop.permute.xlu0 %4437  ;;  %4503 = vmatprep.subr.bf16.mxu1 %v4458_v28 }
 0x8f6   : > { %4504 = vmatpush1.bf16.msra.mxu1 %v4457_v46 }
 0x8f7   : > { %v4459_v14 = vpack.c.bf16 %v4387_v23, %v4385_v13  ;;  %v4440_v11 = vpop.permute.xlu1 %4439  ;;  %v4460_v27 = vpack.c.bf16 %v4388_v4, %v4386_v55 }
 0x8f9   : > { %v4394_v37 = vpop.permute.xlu0 %4393  ;;  %4505 = vmatprep.subr.bf16.mxu1 %v4460_v27 }
 0x8fa   : > { %v4397_v5 = vsel %vm12626_vm7, %v10823_v25, %v4394_v37  ;;  %v4399_v16 = vsel %vm12627_vm14, %v4394_v37, %v10823_v25  ;;  %4506 = vmatpush1.bf16.msra.mxu1 %v4459_v14  ;;  %vm12643_vm14 = vmmov %vm12635_vm1 }
 0x8fb   : > { %4507 = vmatprep.subr.bf16.mxu1 %v4462_v57  ;;  %v4396_v9 = vpop.permute.xlu1 %4395  ;;  %v4401_v6 = vmul.f32 %v10633_v8, %v4397_v5  ;;  %v4402_v33 = vmul.f32 %v10636_v1, %v4399_v16 }
 0x8fc   : > { %v4398_v63 = vsel %vm12628_vm5, %v10825_v38, %v4396_v9  ;;  %v4400_v34 = vsel %vm12629_vm0, %v4396_v9, %v10825_v38  ;;  %vm12644_vm5 = vmmov %vm12635_vm1 }
 0x8fd   : > { %v4403_v25 = vmul.f32 %v10633_v8, %v4398_v63  ;;  %v4404_v53 = vmul.f32 %v10636_v1, %v4400_v34  ;;  %v4410_v15 = vpop.permute.xlu0 %4409  ;;  %v7062_v63 = vld [vmem:[%s11879_s11] ss:$8 sps:$4 sm:$0xff]   ;;  %v7065_v34 = vld [vmem:[%s11879_s11 + $0x10] ss:$8 sps:$4 sm:$0xff]  }
 0x8fe   : > { %v4413_v0 = vsel %vm4196_vm2, %v10827_v47, %v4410_v15  ;;  %v4415_v51 = vsel %vm4196_vm2, %v4410_v15, %v10827_v47  ;;  %4508 = vmatpush1.bf16.msra.mxu1 %v4461_v48 }
 0x8ff   : > { %v4463_v57 = vpack.c.bf16 %v4403_v25, %v4401_v6  ;;  %v4412_v38 = vpop.permute.xlu1 %4411  ;;  %v4464_v26 = vpack.c.bf16 %v4404_v53, %v4402_v33  ;;  %v4417_v24 = vmul.f32 %v10664_v2, %v4413_v0  ;;  %v4418_v30 = vmul.f32 %v10667_v29, %v4415_v51 }
 0x900   : > { %v4414_v52 = vsel %vm4196_vm2, %v10829_v21, %v4412_v38  ;;  %v4416_v60 = vsel %vm4196_vm2, %v4412_v38, %v10829_v21 }
 0x901   : > { %v4419_v47 = vmul.f32 %v10664_v2, %v4414_v52  ;;  %v4420_v7 = vmul.f32 %v10667_v29, %v4416_v60  ;;  %v4426_v49 = vpop.permute.xlu0 %4425  ;;  %4509 = vmatprep.subr.bf16.mxu1 %v4464_v26 }
 0x902   : > { %v4429_v48 = vsel %vm4205_vm13, %v10831_v22, %v4426_v49  ;;  %v4431_v44 = vsel %vm4205_vm13, %v4426_v49, %v10831_v22  ;;  %4510 = vmatpush1.bf16.msra.mxu1 %v4463_v57 }
 0x903   : > { %v4465_v21 = vpack.c.bf16 %v4419_v47, %v4417_v24  ;;  %v4428_v54 = vpop.permute.xlu1 %4427  ;;  %v4466_v58 = vpack.c.bf16 %v4420_v7, %v4418_v30  ;;  %v4433_v46 = vmul.f32 %v10677_v62, %v4429_v48  ;;  %v4434_v61 = vmul.f32 %v10682_v19, %v4431_v44 }
 0x904   : > { %v4430_v56 = vsel %vm4205_vm13, %v10833_v40, %v4428_v54  ;;  %v4432_v39 = vsel %vm4205_vm13, %v4428_v54, %v10833_v40 }
 0x905   : > { %v4435_v28 = vmul.f32 %v10677_v62, %v4430_v56  ;;  %v4436_v22 = vmul.f32 %v10682_v19, %v4432_v39  ;;  %v4442_v35 = vpop.permute.xlu0 %4441  ;;  %4511 = vmatprep.subr.bf16.mxu1 %v4466_v58 }
 0x906   : > { %v4445_v31 = vsel %vm4214_vm4, %v4438_v43, %v4442_v35  ;;  %v4447_v13 = vsel %vm4214_vm4, %v4442_v35, %v4438_v43  ;;  %4512 = vmatpush1.bf16.msra.mxu1 %v4465_v21 }
 0x907   : > { %v4467_v55 = vpack.c.bf16 %v4435_v28, %v4433_v46  ;;  %v4444_v23 = vpop.permute.xlu1 %4443  ;;  %v4468_v40 = vpack.c.bf16 %v4436_v22, %v4434_v61  ;;  %v4449_v27 = vmul.f32 %v10702_v3, %v4445_v31  ;;  %v4450_v37 = vmul.f32 %v10705_v18, %v4447_v13 }
 0x908   : > { %v4446_v4 = vsel %vm4214_vm4, %v4440_v11, %v4444_v23  ;;  %v4448_v14 = vsel %vm4214_vm4, %v4444_v23, %v4440_v11  ;;  %v7063_v11 = vld [vmem:[%s11879_s11 + $0x14] ss:$8 sps:$4 sm:$0xff]  }
 0x909   : > { %v4451_v5 = vmul.f32 %v10702_v3, %v4446_v4  ;;  %v4452_v16 = vmul.f32 %v10705_v18, %v4448_v14  ;;  %4513 = vmatprep.subr.bf16.mxu1 %v4468_v40 }
 0x90a   : > { %4514 = vmatpush1.bf16.msra.mxu1 %v4467_v55 }
 0x90b   : > { %v4469_v43 = vpack.c.bf16 %v4451_v5, %v4449_v27  ;;  %v4470_v9 = vpack.c.bf16 %v4452_v16, %v4450_v37 }
 0x90d   : > { %4515 = vmatprep.subr.bf16.mxu1 %v4470_v9 }
 0x90e   : > { %4516 = vmatpush1.bf16.msra.mxu1 %v4469_v43  ;;  %v7068_v43 = vld [vmem:[%s11881_s13 + $0x4] ss:$12 sps:$4 sm:$0xff]  }
 0x911   : > { %4532 = vmatmul.mubr.bf16.vlgmr.msra.gmra.mrb[36].mxu1 %v7062_v63 }
 0x912   : > { %6527 = vmatprep.mubr.msk.bf16.mxu1 %vm2527_vm11, %v7063_v11 }
 0x916   : > { %v4567_v6 = vpop.permute.xlu0 %4566 }
 0x918   : > { %v4572_v33 = vpop.permute.xlu1 %4571 }
 0x919   : > { %4542 = vmatmul.mubr.bf16.gmra.mrb[40].mxu1 %v7065_v34 }
 0x91a   : > { %v4600_v26 = vpop.permute.xlu0 %4599  ;;  %4993 = vmatprep.mubr.bf16.mxu1 %v7068_v43 }
 0x91c   : > { %v4605_v24 = vpop.permute.xlu1 %4604 }
 0x91e   : > { %v4577_v61 = vpop.permute.xlu0 %4576 }
 0x920   : > { %v4582_v22 = vpop.permute.xlu1 %4581 }
 0x922   : > { %v4610_v13 = vpop.permute.xlu0 %4609 }
 0x924   : > { %v4615_v23 = vpop.permute.xlu1 %4614 }
 0x9e4   : > { %v4533_v25 = vpop.f32.mrb[36].mxu1 }
 0x9e5   : > { %v4552_v53 = vmax.f32 %v4533_v25, 0.0  ;;  %v4535_v15 = vpop.f32.mrb[37].mxu1  ;;  %v5075_v25 = vld [vmem:[%s11882_s14] sm:$0xff] }
 0x9e6   : > { %v4537_v0 = vpop.f32.mrb[38].mxu1  ;;  %v4553_v44 = vmax.f32 %v4535_v15, 0.0  ;;  %v5076_v15 = vld [vmem:[%s11882_s14 + $0x8] sm:$0xff] }
 0x9e7   : > { %v4584_v51 = vmul.f32 %v4567_v6, %v4552_v53  ;;  %v4554_v57 = vmax.f32 %v4537_v0, 0.0  ;;  %v4539_v38 = vpop.f32.mrb[39].mxu1 }
 0x9e8   : > { %v4555_v21 = vmax.f32 %v4539_v38, 0.0  ;;  %v4585_v54 = vmul.f32 %v4567_v6, %v4553_v44  ;;  %v6541_v38 = vld [vmem:[%s11882_s14 + $0x28] sm:$0xff] }
 0x9e9   : > { %v10959_v52 = vadd.f32 %v4600_v26, %v4584_v51  ;;  %v4586_v60 = vmul.f32 %v4572_v33, %v4554_v57  ;;  %v6540_v51 = vld [vmem:[%s11882_s14 + $0x20] sm:$0xff] }
 0x9ea   : > { %v4587_v58 = vmul.f32 %v4572_v33, %v4555_v21  ;;  %v10981_v56 = vadd.f32 %v4600_v26, %v4585_v54  ;;  %v6542_v54 = vld [vmem:[%s11882_s14 + $0x30] sm:$0xff] }
 0x9eb   : > { %v10961_v30 = vadd.f32 %v4605_v24, %v4586_v60  ;;  %4625 = vrot.lane.b32.xlu0 %v10959_v52, %s12630_s27  ;;  %v5077_v60 = vld [vmem:[%s11882_s14 + $0x10] sm:$0xff] }
 0x9ec   : > { %v4543_v47 = vpop.f32.mrb[40].mxu1  ;;  %v10985_v39 = vadd.f32 %v4605_v24, %v4587_v58 }
 0x9ed   : > { %4627 = vrot.lane.b32.xlu1 %v10961_v30, %s12630_s27  ;;  %v4545_v7 = vpop.f32.mrb[41].mxu1  ;;  %v4556_v46 = vmax.f32 %v4543_v47, 0.0 }
 0x9ee   : > { %v4547_v49 = vpop.f32.mrb[42].mxu1  ;;  %v4557_v4 = vmax.f32 %v4545_v7, 0.0 }
 0x9ef   : > { %4657 = vrot.lane.b32.xlu0 %v10959_v52, %s12631_s28  ;;  %v4549_v48 = vpop.f32.mrb[43].mxu1  ;;  %v4558_v28 = vmax.f32 %v4547_v49, 0.0  ;;  %v4588_v35 = vmul.f32 %v4577_v61, %v4556_v46  ;;  %v5078_v49 = vld [vmem:[%s11882_s14 + $0x18] sm:$0xff] }
 0x9f0   : > { %v4559_v14 = vmax.f32 %v4549_v48, 0.0  ;;  %v4589_v27 = vmul.f32 %v4577_v61, %v4557_v4  ;;  %v5191_v4 = vld [vmem:[%s11884_s16] sm:$0xff] }
 0x9f1   : > { %4659 = vrot.lane.b32.xlu1 %v10961_v30, %s12631_s28  ;;  %v4590_v31 = vmul.f32 %v4582_v22, %v4558_v28  ;;  %v11001_v55 = vadd.f32 %v4610_v13, %v4588_v35  ;;  %v6543_v35 = vld [vmem:[%s11882_s14 + $0x38] sm:$0xff] }
 0x9f2   : > { %v4591_v37 = vmul.f32 %v4582_v22, %v4559_v14  ;;  %v11021_v5 = vadd.f32 %v4610_v13, %v4589_v27  ;;  %v6545_v27 = vld [vmem:[%s11884_s16 + $0x8] sm:$0xff] }
 0x9f3   : > { %4689 = vrot.lane.b32.xlu0 %v10959_v52, %s12632_s25  ;;  %v11005_v40 = vadd.f32 %v4615_v23, %v4590_v31 }
 0x9f4   : > { %v11025_v16 = vadd.f32 %v4615_v23, %v4591_v37 }
 0x9f5   : > { %4691 = vrot.lane.b32.xlu1 %v10961_v30, %s12632_s25 }
 0x9f7   : > { %4721 = vrot.lane.b32.xlu0 %v10959_v52, %s12337_s2 }
 0x9f9   : > { %4723 = vrot.lane.b32.xlu1 %v10961_v30, %s12337_s2 }
 0x9fb   : > { %4753 = vrot.lane.b32.xlu0 %v10959_v52, %s12139_s4 }
 0x9fd   : > { %4755 = vrot.lane.b32.xlu1 %v10961_v30, %s12139_s4 }
 0x9ff   : > { %4633 = vrot.lane.b32.xlu0 %v10981_v56, %s12630_s27 }
 0xa01   : > { %4635 = vrot.lane.b32.xlu1 %v10985_v39, %s12630_s27 }
 0xa03   : > { %4665 = vrot.lane.b32.xlu0 %v10981_v56, %s12631_s28 }
 0xa05   : > { %4667 = vrot.lane.b32.xlu1 %v10985_v39, %s12631_s28 }
 0xa07   : > { %4697 = vrot.lane.b32.xlu0 %v10981_v56, %s12632_s25 }
 0xa09   : > { %4699 = vrot.lane.b32.xlu1 %v10985_v39, %s12632_s25 }
 0xa0b   : > { %4729 = vrot.lane.b32.xlu0 %v10981_v56, %s12337_s2 }
 0xa0d   : > { %4731 = vrot.lane.b32.xlu1 %v10985_v39, %s12337_s2 }
 0xa0f   : > { %4629 = vrot.lane.b32.xlu0 %v11001_v55, %s12630_s27 }
 0xa11   : > { %4631 = vrot.lane.b32.xlu1 %v11005_v40, %s12630_s27 }
 0xa13   : > { %4661 = vrot.lane.b32.xlu0 %v11001_v55, %s12631_s28 }
 0xa15   : > { %4663 = vrot.lane.b32.xlu1 %v11005_v40, %s12631_s28 }
 0xa17   : > { %4693 = vrot.lane.b32.xlu0 %v11001_v55, %s12632_s25 }
 0xa19   : > { %4695 = vrot.lane.b32.xlu1 %v11005_v40, %s12632_s25 }
 0xa1b   : > { %4725 = vrot.lane.b32.xlu0 %v11001_v55, %s12337_s2 }
 0xa1d   : > { %4727 = vrot.lane.b32.xlu1 %v11005_v40, %s12337_s2 }
 0xa1f   : > { %4637 = vrot.lane.b32.xlu0 %v11021_v5, %s12630_s27 }
 0xa21   : > { %4639 = vrot.lane.b32.xlu1 %v11025_v16, %s12630_s27  ;;  %s12105_s27 = smov 7  }
 0xa23   : > { %4761 = vrot.lane.b32.xlu0 %v10981_v56, %s12139_s4 }
 0xa25   : > { %4763 = vrot.lane.b32.xlu1 %v10985_v39, %s12139_s4 }
 0xa27   : > { %4669 = vrot.lane.b32.xlu0 %v11021_v5, %s12631_s28 }
 0xa29   : > { %4671 = vrot.lane.b32.xlu1 %v11025_v16, %s12631_s28  ;;  %s12099_s28 = smov 121  }
 0xa2b   : > { %4701 = vrot.lane.b32.xlu0 %v11021_v5, %s12632_s25 }
 0xa2d   : > { %4759 = vrot.lane.b32.xlu1 %v11005_v40, %s12139_s4 }
 0xa2f   : > { %4733 = vrot.lane.b32.xlu0 %v11021_v5, %s12337_s2 }
 0xa31   : > { %4703 = vrot.lane.b32.xlu1 %v11025_v16, %s12632_s25  ;;  %s12101_s25 = smov 119  }
 0xa33   : > { %4757 = vrot.lane.b32.xlu0 %v11001_v55, %s12139_s4 }
 0xa35   : > { %4787 = vrot.lane.b32.xlu1 %v10961_v30, %s12612_s3 }
 0xa37   : > { %4765 = vrot.lane.b32.xlu0 %v11021_v5, %s12139_s4 }
 0xa39   : > { %4735 = vrot.lane.b32.xlu1 %v11025_v16, %s12337_s2 }
 0xa3b   : > { %4785 = vrot.lane.b32.xlu0 %v10959_v52, %s12612_s3 }
 0xa3d   : > { %4795 = vrot.lane.b32.xlu1 %v10985_v39, %s12612_s3 }
 0xa3f   : > { %4793 = vrot.lane.b32.xlu0 %v10981_v56, %s12612_s3 }
 0xa41   : > { %4791 = vrot.lane.b32.xlu1 %v11005_v40, %s12612_s3 }
 0xa43   : > { %4789 = vrot.lane.b32.xlu0 %v11001_v55, %s12612_s3 }
 0xa45   : > { %4819 = vrot.lane.b32.xlu1 %v10961_v30, %s12613_s29 }
 0xa47   : > { %4797 = vrot.lane.b32.xlu0 %v11021_v5, %s12612_s3 }
 0xa49   : > { %4767 = vrot.lane.b32.xlu1 %v11025_v16, %s12139_s4 }
 0xa4b   : > { %4817 = vrot.lane.b32.xlu0 %v10959_v52, %s12613_s29 }
 0xa4d   : > { %4827 = vrot.lane.b32.xlu1 %v10985_v39, %s12613_s29 }
 0xa4f   : > { %4825 = vrot.lane.b32.xlu0 %v10981_v56, %s12613_s29 }
 0xa51   : > { %4799 = vrot.lane.b32.xlu1 %v11025_v16, %s12612_s3  ;;  %s12683_s3 = smov 120  }
 0xa53   : > { %4821 = vrot.lane.b32.xlu0 %v11001_v55, %s12613_s29 }
 0xa55   : > { %4823 = vrot.lane.b32.xlu1 %v11005_v40, %s12613_s29 }
 0xa57   : > { %4829 = vrot.lane.b32.xlu0 %v11021_v5, %s12613_s29 }
 0xa59   : > { %4831 = vrot.lane.b32.xlu1 %v11025_v16, %s12613_s29 }
 0xa5b   : > { %4849 = vrot.lane.b32.xlu0 %v10959_v52, %s12633_s8 }
 0xa5d   : > { %v4626_v9 = vpop.permute.xlu0 %4625  ;;  %4851 = vrot.lane.b32.xlu1 %v10961_v30, %s12633_s8 }
 0xa5f   : > { %v4628_v63 = vpop.permute.xlu1 %4627  ;;  %4857 = vrot.lane.b32.xlu0 %v10981_v56, %s12633_s8 }
 0xa61   : > { %v11096_v11 = vpop.permute.xlu0 %4657  ;;  %4859 = vrot.lane.b32.xlu1 %v10985_v39, %s12633_s8 }
 0xa63   : > { %v11100_v34 = vpop.permute.xlu1 %4659  ;;  %4853 = vrot.lane.b32.xlu0 %v11001_v55, %s12633_s8 }
 0xa65   : > { %v11104_v6 = vpop.permute.xlu0 %4689  ;;  %4855 = vrot.lane.b32.xlu1 %v11005_v40, %s12633_s8 }
 0xa67   : > { %v11108_v33 = vpop.permute.xlu1 %4691  ;;  %4861 = vrot.lane.b32.xlu0 %v11021_v5, %s12633_s8 }
 0xa69   : > { %v11115_v53 = vpop.permute.xlu0 %4721  ;;  %4863 = vrot.lane.b32.xlu1 %v11025_v16, %s12633_s8 }
 0xa6b   : > { %v11122_v0 = vpop.permute.xlu1 %4723  ;;  %5081 = vperm.xlu0 %6798, %v5075_v25  }
 0xa6d   : > { %v11127_v57 = vpop.permute.xlu0 %4753  ;;  %5086 = vperm.xlu1 %6799, %v5076_v15  }
 0xa6f   : > { %v11132_v26 = vpop.permute.xlu1 %4755  ;;  %5114 = vperm.xlu0 %6798, %v6540_v51  }
 0xa71   : > { %v4634_v24 = vpop.permute.xlu0 %4633  ;;  %5119 = vperm.xlu1 %6799, %v6541_v38  }
 0xa72   : > { %v4641_v47 = vsel %vm4153_vm12, %v4626_v9, %v4634_v24  ;;  %v4645_v7 = vsel %vm4153_vm12, %v4634_v24, %v4626_v9 }
 0xa73   : > { %v4636_v48 = vpop.permute.xlu1 %4635  ;;  %5091 = vperm.xlu0 %6798, %v5077_v60   ;;  %v4649_v58 = vmul.f32 %v10540_v12, %v4645_v7  ;;  %v4650_v46 = vmul.f32 %v10543_v59, %v4641_v47 }
 0xa74   : > { %v4642_v44 = vsel %vm4153_vm12, %v4628_v63, %v4636_v48  ;;  %v4646_v21 = vsel %vm4153_vm12, %v4636_v48, %v4628_v63 }
 0xa75   : > { %v4651_v61 = vmul.f32 %v10540_v12, %v4646_v21  ;;  %v4652_v28 = vmul.f32 %v10543_v59, %v4642_v44  ;;  %v4666_v22 = vpop.permute.xlu0 %4665  ;;  %5096 = vperm.xlu1 %6799, %v5078_v49  }
 0xa76   : > { %v4673_v21 = vsel %vm12635_vm1, %v11096_v11, %v4666_v22 }
 0xa77   : > { %v4881_v31 = vpack.c.bf16 %v4651_v61, %v4649_v58  ;;  %v4668_v13 = vpop.permute.xlu1 %4667  ;;  %5124 = vperm.xlu0 %6798, %v6542_v54   ;;  %v4882_v23 = vpack.c.bf16 %v4652_v28, %v4650_v46 }
 0xa78   : > { %v4674_v7 = vsel %vm12634_vm15, %v11100_v34, %v4668_v13  ;;  %v4678_v58 = vsel %vm12636_vm10, %v4668_v13, %v11100_v34  ;;  %v4677_v34 = vsel %vm12637_vm9, %v4666_v22, %v11096_v11  ;;  %v4682_v13 = vmul.f32 %v10558_v17, %v4673_v21 }
 0xa79   : > { %v4698_v14 = vpop.permute.xlu0 %4697  ;;  %4961 = vmatprep.subr.bf16.mxu1 %v4882_v23  ;;  %5129 = vperm.xlu1 %6799, %v6543_v35   ;;  %v4684_v46 = vmul.f32 %v10558_v17, %v4674_v7  ;;  %vm12646_vm15 = vcmp.lt.s32.totalorder %v7506_v10, 1 }
 0xa7a   : > { %4962 = vmatpush1.bf16.msra.mxu1 %v4881_v31  ;;  %vm12649_vm9 = vmmov %vm12646_vm15 }
 0xa7b   : > { %v4700_v37 = vpop.permute.xlu1 %4699  ;;  %5194 = vperm.xlu0 %6798, %v5191_v4  }
 0xa7d   : > { %v11164_v43 = vpop.permute.xlu0 %4729  ;;  %5203 = vperm.xlu1 %6799, %v6545_v27  }
 0xa7f   : > { %v11166_v9 = vpop.permute.xlu1 %4731 }
 0xa81   : > { %v4630_v63 = vpop.permute.xlu0 %4629 }
 0xa83   : > { %v4632_v25 = vpop.permute.xlu1 %4631 }
 0xa85   : > { %v4662_v15 = vpop.permute.xlu0 %4661 }
 0xa87   : > { %v4664_v51 = vpop.permute.xlu1 %4663 }
 0xa89   : > { %v4694_v38 = vpop.permute.xlu0 %4693 }
 0xa8b   : > { %v11168_v60 = vpop.permute.xlu1 %4695 }
 0xa8d   : > { %v11170_v24 = vpop.permute.xlu0 %4725 }
 0xa8f   : > { %v11172_v47 = vpop.permute.xlu1 %4727 }
 0xa91   : > { %v4638_v49 = vpop.permute.xlu0 %4637 }
 0xa92   : > { %v4643_v48 = vsel %vm4153_vm12, %v4630_v63, %v4638_v49  ;;  %v4647_v44 = vsel %vm4153_vm12, %v4638_v49, %v4630_v63  ;;  %v4683_v63 = vmul.f32 %v10548_v20, %v4678_v58 }
 0xa93   : > { %v4640_v54 = vpop.permute.xlu1 %4639  ;;  %v4653_v35 = vmul.f32 %v10540_v12, %v4647_v44  ;;  %v4654_v31 = vmul.f32 %v10543_v59, %v4643_v48  ;;  %v4681_v48 = vmul.f32 %v10548_v20, %v4677_v34  ;;  %v4886_v44 = vpack.c.bf16 %v4684_v46, %v4682_v13 }
 0xa94   : > { %v4644_v61 = vsel %vm4153_vm12, %v4632_v25, %v4640_v54  ;;  %v4648_v28 = vsel %vm4153_vm12, %v4640_v54, %v4632_v25  ;;  %vm12638_vm12 = vcmp.lt.s32.totalorder %v7506_v10, 15 }
 0xa95   : > { %v4655_v23 = vmul.f32 %v10540_v12, %v4648_v28  ;;  %v4656_v4 = vmul.f32 %v10543_v59, %v4644_v61  ;;  %v11196_v27 = vpop.permute.xlu0 %4761  ;;  %v4706_v12 = vsel %vm12638_vm12, %v11108_v33, %v4700_v37  ;;  %v4885_v21 = vpack.c.bf16 %v4683_v63, %v4681_v48  ;;  %vm12641_vm8 = vmmov %vm12638_vm12 }
 0xa96   : > { %v4705_v54 = vsel %vm12641_vm8, %v11104_v6, %v4698_v14  ;;  %vm12642_vm7 = vmmov %vm12641_vm8  ;;  %v4716_v46 = vmul.f32 %v10604_v32, %v4706_v12 }
 0xa97   : > { %v4883_v7 = vpack.c.bf16 %v4655_v23, %v4653_v35  ;;  %v11203_v25 = vpop.permute.xlu1 %4763  ;;  %v4884_v49 = vpack.c.bf16 %v4656_v4, %v4654_v31  ;;  %v4710_v61 = vsel %vm12642_vm7, %v4700_v37, %v11108_v33  ;;  %vm12645_vm0 = vmmov %vm12642_vm7  ;;  %v4714_v37 = vmul.f32 %v10604_v32, %v4705_v54 }
 0xa98   : > { %v4709_v33 = vsel %vm12645_vm0, %v4698_v14, %v11104_v6  ;;  %v4715_v13 = vmul.f32 %v10601_v36, %v4710_v61  ;;  %vm12647_vm1 = vmmov %vm12645_vm0 }
 0xa99   : > { %v4670_v59 = vpop.permute.xlu0 %4669  ;;  %4963 = vmatprep.subr.bf16.mxu1 %v4884_v49  ;;  %v4713_v49 = vmul.f32 %v10601_v36, %v4709_v33  ;;  %v4890_v48 = vpack.c.bf16 %v4716_v46, %v4714_v37  ;;  %vm12648_vm10 = vmmov %vm12645_vm0 }
 0xa9a   : > { %v4675_v11 = vsel %vm12639_vm6, %v4662_v15, %v4670_v59  ;;  %v4679_v22 = vsel %vm12640_vm3, %v4670_v59, %v4662_v15  ;;  %4964 = vmatpush1.bf16.msra.mxu1 %v4883_v7  ;;  %v4737_v59 = vsel %vm12649_vm9, %v11115_v53, %v11164_v43  ;;  %vm12650_vm12 = vmmov %vm12649_vm9 }
 0xa9b   : > { %4965 = vmatprep.subr.bf16.mxu1 %v4886_v44  ;;  %v4672_v58 = vpop.permute.xlu1 %4671  ;;  %v4685_v35 = vmul.f32 %v10548_v20, %v4679_v22  ;;  %v4686_v31 = vmul.f32 %v10558_v17, %v4675_v11  ;;  %v4889_v12 = vpack.c.bf16 %v4715_v13, %v4713_v49  ;;  %v4742_v11 = vsel %vm12650_vm12, %v11166_v9, %v11122_v0  ;;  %vm12651_vm6 = vmmov %vm12645_vm0 }
 0xa9c   : > { %v4676_v28 = vsel %vm12643_vm14, %v4664_v51, %v4672_v58  ;;  %v4680_v15 = vsel %vm12644_vm5, %v4672_v58, %v4664_v51  ;;  %vm12652_vm3 = vmmov %vm12645_vm0 }
 0xa9d   : > { %v4687_v23 = vmul.f32 %v10548_v20, %v4680_v15  ;;  %v4688_v4 = vmul.f32 %v10558_v17, %v4676_v28  ;;  %v4702_v34 = vpop.permute.xlu0 %4701  ;;  %v4738_v20 = vsel %vm12646_vm15, %v11122_v0, %v11166_v9  ;;  %vm12653_vm8 = vmmov %vm12649_vm9  ;;  %v4746_v9 = vmul.f32 %v10614_v41, %v4737_v59 }
 0xa9e   : > { %4966 = vmatpush1.bf16.msra.mxu1 %v4885_v21  ;;  %v4707_v6 = vsel %vm12647_vm1, %v4694_v38, %v4702_v34  ;;  %v4711_v14 = vsel %vm12648_vm10, %v4702_v34, %v4694_v38  ;;  %v4748_v22 = vmul.f32 %v10614_v41, %v4738_v20  ;;  %v4741_v0 = vsel %vm12653_vm8, %v11164_v43, %v11115_v53  ;;  %vm12654_vm7 = vmmov %vm12653_vm8 }
 0xa9f   : > { %v4887_v63 = vpack.c.bf16 %v4687_v23, %v4685_v35  ;;  %v11233_v51 = vpop.permute.xlu1 %4759  ;;  %v4888_v7 = vpack.c.bf16 %v4688_v4, %v4686_v31  ;;  %v4717_v54 = vmul.f32 %v10601_v36, %v4711_v14  ;;  %v4718_v58 = vmul.f32 %v10604_v32, %v4707_v6  ;;  %vm12655_vm14 = vmmov %vm12654_vm7 }
 0xaa0   : > { %v4747_v31 = vmul.f32 %v10611_v50, %v4742_v11  ;;  %vm12656_vm5 = vmmov %vm12654_vm7  ;;  %v4898_v14 = vpack.c.bf16 %v10985_v39, %v10981_v56  ;;  %vm12658_vm15 = vcmp.lt.s32.totalorder %v7506_v10, 127  ;;  %v4897_v56 = vpack.c.bf16 %v10961_v30, %v10959_v52 }
 0xaa1   : > { %v4734_v17 = vpop.permute.xlu0 %4733  ;;  %4967 = vmatprep.subr.bf16.mxu1 %v4888_v7  ;;  %vm12657_vm0 = vmmov %vm12656_vm5  ;;  %v4899_v30 = vpack.c.bf16 %v11005_v40, %v11001_v55 }
 0xaa2   : > { %4968 = vmatpush1.bf16.msra.mxu1 %v4887_v63  ;;  %v4739_v4 = vsel %vm12654_vm7, %v11170_v24, %v4734_v17  ;;  %v4743_v53 = vsel %vm12655_vm14, %v4734_v17, %v11170_v24  ;;  %vm12659_vm1 = vmmov %vm12658_vm15 }
 0xaa3   : > { %4969 = vmatprep.subr.bf16.mxu1 %v4890_v48  ;;  %v4704_v44 = vpop.permute.xlu1 %4703  ;;  %v4749_v13 = vmul.f32 %v10611_v50, %v4743_v53  ;;  %v4750_v63 = vmul.f32 %v10614_v41, %v4739_v4  ;;  %vm12660_vm10 = vmmov %vm12659_vm1 }
 0xaa4   : > { %v4708_v38 = vsel %vm12651_vm6, %v11168_v60, %v4704_v44  ;;  %v4712_v21 = vsel %vm12652_vm3, %v4704_v44, %v11168_v60  ;;  %v4900_v44 = vpack.c.bf16 %v11025_v16, %v11021_v5  ;;  %vm12661_vm9 = vmmov %vm12659_vm1 }
 0xaa5   : > { %v4719_v61 = vmul.f32 %v10601_v36, %v4712_v21  ;;  %v4720_v46 = vmul.f32 %v10604_v32, %v4708_v38  ;;  %v4758_v28 = vpop.permute.xlu0 %4757  ;;  %v4894_v36 = vpack.c.bf16 %v4748_v22, %v4746_v9  ;;  %v4745_v32 = vmul.f32 %v10611_v50, %v4741_v0  ;;  %vm12662_vm12 = vmmov %vm12659_vm1 }
 0xaa6   : > { %4970 = vmatpush1.bf16.msra.mxu1 %v4889_v12  ;;  %v4770_v12 = vsel %vm12660_vm10, %v11132_v26, %v11203_v25  ;;  %v4769_v11 = vsel %vm12661_vm9, %v11127_v57, %v11196_v27  ;;  %vm12663_vm6 = vmmov %vm12659_vm1 }
 0xaa7   : > { %v4891_v15 = vpack.c.bf16 %v4719_v61, %v4717_v54  ;;  %v11268_v35 = vpop.permute.xlu1 %4787  ;;  %v4892_v60 = vpack.c.bf16 %v4720_v46, %v4718_v58  ;;  %v4893_v34 = vpack.c.bf16 %v4747_v31, %v4745_v32  ;;  %v4779_v38 = vmul.f32 %v10633_v8, %v4770_v12  ;;  %vm12664_vm3 = vmmov %vm12659_vm1 }
 0xaa8   : > { %v4777_v5 = vmul.f32 %v10633_v8, %v4769_v11  ;;  %vm12665_vm8 = vmmov %vm12659_vm1 }
 0xaa9   : > { %v4766_v23 = vpop.permute.xlu0 %4765  ;;  %4971 = vmatprep.subr.bf16.mxu1 %v4892_v60 }
 0xaaa   : > { %4972 = vmatpush1.bf16.msra.mxu1 %v4891_v15  ;;  %v4771_v52 = vsel %vm12662_vm12, %v4758_v28, %v4766_v23  ;;  %v4901_v21 = vpack.c.bf16 %v4779_v38, %v4777_v5 }
 0xaab   : > { %4973 = vmatprep.subr.bf16.mxu1 %v4894_v36  ;;  %v4736_v43 = vpop.permute.xlu1 %4735  ;;  %v4781_v54 = vmul.f32 %v10633_v8, %v4771_v52 }
 0xaac   : > { %v4740_v33 = vsel %vm12656_vm5, %v11172_v47, %v4736_v43  ;;  %v4744_v37 = vsel %vm12657_vm0, %v4736_v43, %v11172_v47  ;;  %v4774_v47 = vsel %vm12658_vm15, %v11203_v25, %v11132_v26  ;;  %vm12670_vm5 = vmmov %vm12659_vm1 }
 0xaad   : > { %v4751_v7 = vmul.f32 %v10611_v50, %v4744_v37  ;;  %v4752_v24 = vmul.f32 %v10614_v41, %v4740_v33  ;;  %v4786_v49 = vpop.permute.xlu0 %4785  ;;  %v4773_v41 = vsel %vm12659_vm1, %v11196_v27, %v11127_v57  ;;  %v4780_v39 = vmul.f32 %v10636_v1, %v4774_v47  ;;  %vm12671_vm0 = vmmov %vm12659_vm1 }
 0xaae   : > { %4974 = vmatpush1.bf16.msra.mxu1 %v4893_v34  ;;  %v4778_v22 = vmul.f32 %v10636_v1, %v4773_v41  ;;  %v4775_v57 = vsel %vm12663_vm6, %v4766_v23, %v4758_v28 }
 0xaaf   : > { %v4895_v20 = vpack.c.bf16 %v4751_v7, %v4749_v13  ;;  %v4796_v17 = vpop.permute.xlu1 %4795  ;;  %v4896_v48 = vpack.c.bf16 %v4752_v24, %v4750_v63  ;;  %v4782_v28 = vmul.f32 %v10636_v1, %v4775_v57 }
 0xab0   : > { %v4902_v25 = vpack.c.bf16 %v4780_v39, %v4778_v22  ;;  %v4806_v55 = vsel %vm4196_vm2, %v4796_v17, %v11268_v35  ;;  %v4802_v31 = vsel %vm4196_vm2, %v11268_v35, %v4796_v17 }
 0xab1   : > { %v4794_v6 = vpop.permute.xlu0 %4793  ;;  %4975 = vmatprep.subr.bf16.mxu1 %v4896_v48  ;;  %v4812_v23 = vmul.f32 %v10667_v29, %v4806_v55  ;;  %v7066_v55 = vld [vmem:[%s11881_s13] ss:$12 sps:$4 sm:$0xff]  }
 0xab2   : > { %4976 = vmatpush1.bf16.msra.mxu1 %v4895_v20  ;;  %v4805_v27 = vsel %vm4196_vm2, %v4794_v6, %v4786_v49  ;;  %v4801_v40 = vsel %vm4196_vm2, %v4786_v49, %v4794_v6 }
 0xab3   : > { %4977 = vmatprep.subr.bf16.mxu1 %v4898_v14  ;;  %v4792_v50 = vpop.permute.xlu1 %4791  ;;  %v4810_v0 = vmul.f32 %v10667_v29, %v4805_v27  ;;  %v4809_v36 = vmul.f32 %v10664_v2, %v4801_v40 }
 0xab5   : > { %v4790_v59 = vpop.permute.xlu0 %4789  ;;  %v4906_v34 = vpack.c.bf16 %v4812_v23, %v4810_v0 }
 0xab6   : > { %4978 = vmatpush1.bf16.msra.mxu1 %v4897_v56 }
 0xab7   : > { %v4820_v26 = vpop.permute.xlu1 %4819  ;;  %4979 = vmatprep.subr.bf16.mxu1 %v4900_v44 }
 0xab9   : > { %v4798_v16 = vpop.permute.xlu0 %4797 }
 0xaba   : > { %4980 = vmatpush1.bf16.msra.mxu1 %v4899_v30  ;;  %v4803_v53 = vsel %vm4196_vm2, %v4790_v59, %v4798_v16 }
 0xabb   : > { %v4768_v58 = vpop.permute.xlu1 %4767  ;;  %4981 = vmatprep.subr.bf16.mxu1 %v4902_v25  ;;  %v4813_v37 = vmul.f32 %v10664_v2, %v4803_v53 }
 0xabc   : > { %v4772_v61 = vsel %vm12664_vm3, %v11233_v51, %v4768_v58  ;;  %v4776_v46 = vsel %vm12665_vm8, %v4768_v58, %v11233_v51 }
 0xabd   : > { %v4783_v9 = vmul.f32 %v10633_v8, %v4772_v61  ;;  %v4784_v15 = vmul.f32 %v10636_v1, %v4776_v46  ;;  %v4818_v60 = vpop.permute.xlu0 %4817  ;;  %v4811_v8 = vmul.f32 %v10664_v2, %v4802_v31  ;;  %v4807_v1 = vsel %vm4196_vm2, %v4798_v16, %v4790_v59 }
 0xabe   : > { %4982 = vmatpush1.bf16.msra.mxu1 %v4901_v21  ;;  %v4814_v63 = vmul.f32 %v10667_v29, %v4807_v1 }
 0xabf   : > { %v4903_v32 = vpack.c.bf16 %v4783_v9, %v4781_v54  ;;  %v4828_v51 = vpop.permute.xlu1 %4827  ;;  %v4904_v4 = vpack.c.bf16 %v4784_v15, %v4782_v28  ;;  %v4905_v33 = vpack.c.bf16 %v4811_v8, %v4809_v36 }
 0xac0   : > { %v4838_v7 = vsel %vm4205_vm13, %v4828_v51, %v4820_v26  ;;  %v4834_v47 = vsel %vm4205_vm13, %v4820_v26, %v4828_v51 }
 0xac1   : > { %v4826_v43 = vpop.permute.xlu0 %4825  ;;  %4983 = vmatprep.subr.bf16.mxu1 %v4904_v4  ;;  %v4844_v41 = vmul.f32 %v10682_v19, %v4838_v7  ;;  %v4843_v11 = vmul.f32 %v10677_v62, %v4834_v47  ;;  %v7071_v4 = vld [vmem:[%s11881_s13 + $0x18] ss:$12 sps:$4 sm:$0xff]  }
 0xac2   : > { %v4837_v35 = vsel %vm4205_vm13, %v4826_v43, %v4818_v60  ;;  %4984 = vmatpush1.bf16.msra.mxu1 %v4903_v32  ;;  %v4833_v20 = vsel %vm4205_vm13, %v4818_v60, %v4826_v43 }
 0xac3   : > { %v4800_v13 = vpop.permute.xlu1 %4799  ;;  %4985 = vmatprep.subr.bf16.mxu1 %v4906_v34  ;;  %v4842_v17 = vmul.f32 %v10682_v19, %v4837_v35 }
 0xac4   : > { %v4804_v24 = vsel %vm4196_vm2, %v4792_v50, %v4800_v13  ;;  %v4808_v49 = vsel %vm4196_vm2, %v4800_v13, %v4792_v50  ;;  %v4841_v50 = vmul.f32 %v10677_v62, %v4833_v20  ;;  %vm12666_vm2 = vcmask 261120  }
 0xac5   : > { %v4815_v48 = vmul.f32 %v10664_v2, %v4804_v24  ;;  %v4816_v6 = vmul.f32 %v10667_v29, %v4808_v49  ;;  %v4822_v14 = vpop.permute.xlu0 %4821  ;;  %v4910_v44 = vpack.c.bf16 %v4844_v41, %v4842_v17  ;;  %v7072_v24 = vld [vmem:[%s11881_s13 + $0x8] ss:$12 sps:$4 sm:$0xff]   ;;  %vm12667_vm7 = vmmov %vm12666_vm2 }
 0xac6   : > { %4986 = vmatpush1.bf16.msra.mxu1 %v4905_v33  ;;  %v4909_v38 = vpack.c.bf16 %v4843_v11, %v4841_v50  ;;  %vm12668_vm14 = vmmov %vm12666_vm2 }
 0xac7   : > { %v4907_v12 = vpack.c.bf16 %v4815_v48, %v4813_v37  ;;  %v4824_v56 = vpop.permute.xlu1 %4823  ;;  %v4908_v39 = vpack.c.bf16 %v4816_v6, %v4814_v63 }
 0xac9   : > { %v4830_v59 = vpop.permute.xlu0 %4829  ;;  %4987 = vmatprep.subr.bf16.mxu1 %v4908_v39 }
 0xaca   : > { %v4835_v2 = vsel %vm4205_vm13, %v4822_v14, %v4830_v59  ;;  %v4839_v29 = vsel %vm4205_vm13, %v4830_v59, %v4822_v14  ;;  %4988 = vmatpush1.bf16.msra.mxu1 %v4907_v12 }
 0xacb   : > { %v4832_v22 = vpop.permute.xlu1 %4831  ;;  %4989 = vmatprep.subr.bf16.mxu1 %v4910_v44  ;;  %v4845_v30 = vmul.f32 %v10677_v62, %v4835_v2  ;;  %v4846_v5 = vmul.f32 %v10682_v19, %v4839_v29 }
 0xacc   : > { %v4836_v26 = vsel %vm4205_vm13, %v4824_v56, %v4832_v22  ;;  %v4840_v52 = vsel %vm4205_vm13, %v4832_v22, %v4824_v56 }
 0xacd   : > { %v4847_v16 = vmul.f32 %v10677_v62, %v4836_v26  ;;  %v4848_v25 = vmul.f32 %v10682_v19, %v4840_v52  ;;  %v4850_v57 = vpop.permute.xlu0 %4849  ;;  %v7069_v62 = vld [vmem:[%s11881_s13 + $0x1c] ss:$12 sps:$4 sm:$0xff]  }
 0xace   : > { %4990 = vmatpush1.bf16.msra.mxu1 %v4909_v38 }
 0xacf   : > { %v4911_v27 = vpack.c.bf16 %v4847_v16, %v4845_v30  ;;  %v4852_v21 = vpop.permute.xlu1 %4851  ;;  %v4912_v54 = vpack.c.bf16 %v4848_v25, %v4846_v5 }
 0xad1   : > { %v4858_v58 = vpop.permute.xlu0 %4857  ;;  %4991 = vmatprep.subr.bf16.mxu1 %v4912_v54 }
 0xad2   : > { %v4865_v40 = vsel %vm4214_vm4, %v4850_v57, %v4858_v58  ;;  %v4869_v61 = vsel %vm4214_vm4, %v4858_v58, %v4850_v57  ;;  %4992 = vmatpush1.bf16.msra.mxu1 %v4911_v27 }
 0xad3   : > { %v4860_v19 = vpop.permute.xlu1 %4859  ;;  %v4873_v0 = vmul.f32 %v10702_v3, %v4865_v40  ;;  %v4874_v9 = vmul.f32 %v10705_v18, %v4869_v61 }
 0xad4   : > { %v4866_v46 = vsel %vm4214_vm4, %v4852_v21, %v4860_v19  ;;  %v4870_v28 = vsel %vm4214_vm4, %v4860_v19, %v4852_v21 }
 0xad5   : > { %v4875_v15 = vmul.f32 %v10702_v3, %v4866_v46  ;;  %v4876_v60 = vmul.f32 %v10705_v18, %v4870_v28  ;;  %v4854_v31 = vpop.permute.xlu0 %4853  ;;  %4994 = vmatmul.mubr.bf16.vlgmr.msra.gmra.mrb[44].mxu1 %v7066_v55 }
 0xad6   : > { %5003 = vmatprep.mubr.bf16.mxu1 %v7069_v62 }
 0xad7   : > { %v4913_v23 = vpack.c.bf16 %v4875_v15, %v4873_v0  ;;  %v4856_v36 = vpop.permute.xlu1 %4855  ;;  %v4914_v32 = vpack.c.bf16 %v4876_v60, %v4874_v9 }
 0xad9   : > { %v4862_v51 = vpop.permute.xlu0 %4861  ;;  %5014 = vmatprep.subr.bf16.mxu1 %v4914_v32  ;;  %v7074_v32 = vld [vmem:[%s12669_s7 + $0x40] sm:$0xff]  }
 0xada   : > { %v4867_v53 = vsel %vm4214_vm4, %v4854_v31, %v4862_v51  ;;  %v4871_v8 = vsel %vm4214_vm4, %v4862_v51, %v4854_v31  ;;  %5015 = vmatpush1.bf16.msra.mxu1 %v4913_v23  ;;  %v7075_v51 = vld [vmem:[%s12669_s7] sm:$0xff]  }
 0xadb   : > { %v4864_v1 = vpop.permute.xlu1 %4863  ;;  %v4877_v35 = vmul.f32 %v10702_v3, %v4867_v53  ;;  %v4878_v33 = vmul.f32 %v10705_v18, %v4871_v8  ;;  %v7077_v53 = vld [vmem:[%s12669_s7 + $0x8] sm:$0xff]   ;;  %v7078_v8 = vld [vmem:[%s12669_s7 + $0x50] sm:$0xff]  }
 0xadc   : > { %v4868_v43 = vsel %vm4214_vm4, %v4856_v36, %v4864_v1  ;;  %v4872_v34 = vsel %vm4214_vm4, %v4864_v1, %v4856_v36  ;;  %v5140_v36 = vld [vmem:[%s11883_s15] sm:$0xf]  ;;  %v7079_v1 = vld [vmem:[%s12669_s7 + $0x10] sm:$0xff]  }
 0xadd   : > { %v4879_v37 = vmul.f32 %v10702_v3, %v4868_v43  ;;  %v4880_v13 = vmul.f32 %v10705_v18, %v4872_v34  ;;  %5004 = vmatmul.mubr.bf16.gmra.mrb[48].mxu1 %v7071_v4  ;;  %v7073_v3 = vld [vmem:[%s11881_s13 + $0x20] ss:$12 sps:$4 sm:$0xff]   ;;  %v7080_v43 = vld [vmem:[%s12669_s7 + $0x58] sm:$0xff]  }
 0xade   : > { %5046 = vmatprep.mubr.bf16.mxu1 %v12538_v42  ;;  %v7076_v4 = vld [vmem:[%s12669_s7 + $0x48] sm:$0xff]   ;;  %v7081_v34 = vld [vmem:[%s12669_s7 + $0x18] sm:$0xff]  }
 0xadf   : > { %v4915_v63 = vpack.c.bf16 %v4879_v37, %v4877_v35  ;;  %v4916_v7 = vpack.c.bf16 %v4880_v13, %v4878_v33  ;;  %v7082_v35 = vld [vmem:[%s12669_s7 + $0x60] sm:$0xff]   ;;  %v7084_v37 = vld [vmem:[%s12669_s7 + $0x68] sm:$0xff]  }
 0xae0   : > { %v7083_v33 = vld [vmem:[%s12669_s7 + $0x20] sm:$0xff]   ;;  %v7085_v13 = vld [vmem:[%s12669_s7 + $0x28] sm:$0xff]  }
 0xae1   : > { %5016 = vmatprep.subr.bf16.mxu1 %v4916_v7 }
 0xae2   : > { %5017 = vmatpush1.bf16.msra.mxu1 %v4915_v63 }
 0xae5   : > { %6538 = vmatmul.mubr.msk.bf16.vlgmr.msra.gmra.mrb[44].mxu1 %vm12666_vm2, %v7072_v24 }
 0xae6   : > { %5056 = vmatprep.mubr.bf16.mxu1 %v12538_v42 }
 0xaea   : > { %v5082_v18 = vpop.permute.xlu0 %5081 }
 0xaec   : > { %v5087_v49 = vpop.permute.xlu1 %5086 }
 0xaed   : > { %6539 = vmatmul.mubr.msk.bf16.gmra.mrb[48].mxu1 %vm12667_vm7, %v7073_v3  ;;  %v7086_v3 = vld [vmem:[%s12669_s7 + $0x70] sm:$0xff]  }
 0xaee   : > { %5180 = vmatprep.mubr.bf16.mxu1 %v12538_v42  ;;  %v5115_v17 = vpop.permute.xlu0 %5114 }
 0xaf0   : > { %v5120_v14 = vpop.permute.xlu1 %5119 }
 0xaf2   : > { %v5092_v2 = vpop.permute.xlu0 %5091 }
 0xaf4   : > { %v5097_v38 = vpop.permute.xlu1 %5096 }
 0xaf6   : > { %v5125_v19 = vpop.permute.xlu0 %5124 }
 0xaf8   : > { %v5130_v46 = vpop.permute.xlu1 %5129 }
 0xbb8   : > { %v5048_v20 = vpop.f32.mrb[44].mxu1 }
 0xbb9   : > { %v5067_v48 = vmax.f32 %v5048_v20, 0.0  ;;  %v5050_v6 = vpop.f32.mrb[45].mxu1 }
 0xbba   : > { %v5068_v47 = vmax.f32 %v5050_v6, 0.0  ;;  %v5052_v41 = vpop.f32.mrb[46].mxu1 }
 0xbbb   : > { %v5099_v12 = vmul.f32 %v5082_v18, %v5067_v48  ;;  %v5069_v56 = vmax.f32 %v5052_v41, 0.0  ;;  %v5054_v39 = vpop.f32.mrb[47].mxu1  ;;  %v7088_v41 = vld [vmem:[%s12669_s7 + $0x78] sm:$0xff]  }
 0xbbc   : > { %v5100_v50 = vmul.f32 %v5082_v18, %v5068_v47  ;;  %v5070_v59 = vmax.f32 %v5054_v39, 0.0  ;;  %v5195_v18 = vpop.permute.xlu0 %5194 }
 0xbbd   : > { %v5101_v44 = vmul.f32 %v5087_v49, %v5069_v56  ;;  %v5132_v29 = vadd.f32 %v5115_v17, %v5099_v12  ;;  %v7089_v12 = vld [vmem:[%s12669_s7 + $0x38] sm:$0xff]  }
 0xbbe   : > { %v5102_v11 = vmul.f32 %v5087_v49, %v5070_v59  ;;  %v5133_v26 = vadd.f32 %v5115_v17, %v5100_v50  ;;  %v7087_v17 = vld [vmem:[%s12669_s7 + $0x30] sm:$0xff]  }
 0xbbf   : > { %v5134_v22 = vadd.f32 %v5120_v14, %v5101_v44 }
 0xbc0   : > { %v5135_v52 = vadd.f32 %v5120_v14, %v5102_v11  ;;  %v5058_v30 = vpop.f32.mrb[48].mxu1  ;;  %v5204_v14 = vpop.permute.xlu1 %5203 }
 0xbc1   : > { %v5141_v5 = vpack.c.bf16 %v5134_v22, %v5132_v29  ;;  %v5071_v16 = vmax.f32 %v5058_v30, 0.0  ;;  %v5060_v25 = vpop.f32.mrb[49].mxu1 }
 0xbc2   : > { %v5072_v57 = vmax.f32 %v5060_v25, 0.0  ;;  %v5062_v27 = vpop.f32.mrb[50].mxu1  ;;  %v5142_v21 = vpack.c.bf16 %v5135_v52, %v5133_v26 }
 0xbc3   : > { %v5103_v54 = vmul.f32 %v5092_v2, %v5071_v16  ;;  %v5073_v58 = vmax.f32 %v5062_v27, 0.0  ;;  %v5064_v55 = vpop.f32.mrb[51].mxu1 }
 0xbc4   : > { %v5104_v40 = vmul.f32 %v5092_v2, %v5072_v57  ;;  %v5074_v61 = vmax.f32 %v5064_v55, 0.0  ;;  %5148 = vmatprep.subr.bf16.mxu1 %v5142_v21 }
 0xbc5   : > { %v5105_v62 = vmul.f32 %v5097_v38, %v5073_v58  ;;  %5149 = vmatpush1.bf16.msra.mxu1 %v5141_v5  ;;  %v5136_v0 = vadd.f32 %v5125_v19, %v5103_v54 }
 0xbc6   : > { %v5106_v28 = vmul.f32 %v5097_v38, %v5074_v61  ;;  %v5137_v15 = vadd.f32 %v5125_v19, %v5104_v40 }
 0xbc7   : > { %v5138_v9 = vadd.f32 %v5130_v46, %v5105_v62 }
 0xbc8   : > { %v5139_v60 = vadd.f32 %v5130_v46, %v5106_v28 }
 0xbc9   : > { %v5143_v31 = vpack.c.bf16 %v5138_v9, %v5136_v0 }
 0xbca   : > { %v5144_v23 = vpack.c.bf16 %v5139_v60, %v5137_v15  ;;  %v5488_v60 = vld [vmem:[%s11886_s18 + $0x8] sm:$0xff] }
 0xbcc   : > { %5150 = vmatprep.subr.bf16.mxu1 %v5144_v23  ;;  %v6565_v23 = vld [vmem:[%s11886_s18 + $0x18] sm:$0xff] }
 0xbcd   : > { %5151 = vmatpush1.bf16.msra.mxu1 %v5143_v31  ;;  %v5487_v31 = vld [vmem:[%s11886_s18] sm:$0xff] }
 0xbce   : > { %6596 = vmatprep.subr.bf16.mxu1 %v7074_v32  ;;  %v1275_v32 = vshra.s32 %v7506_v10, 3 }
 0xbd0   : > { %6544 = vmatmul.mubr.msk.bf16.vlgmr.msra.gmra.mrb[52].mxu1 %vm12668_vm14, %v5140_v36  ;;  %v6564_v36 = vld [vmem:[%s11886_s18 + $0x10] sm:$0xff]  ;;  %vm1301_vm9 = vcmp.ge.s32.totalorder %v1275_v32, 0  ;;  %vm1302_vm12 = vcmp.lt.s32.totalorder %v1275_v32, 8 }
 0xbd1   : > { %6597 = vmatpush3.bf16.msra.mxu1 %v7075_v51  ;;  %v1276_v51 = vand.u32 7, %v7506_v10  ;;  %vm11527_vm3 = vmand %vm1301_vm9, %vm1302_vm12  ;;  %vm12677_vm9 = vcmask 588800  }
 0xbd2   : > { %6598 = vmatprep.subr.bf16.mxu1 %v7076_v4  ;;  %v1277_v4 = vadd.s32 4294967295, %v1275_v32 }
 0xbd4   : > { %vm1279_vm15 = vcmp.lt.s32.totalorder %v1277_v4, 8 }
 0xbd5   : > { %6599 = vmatpush3.bf16.msra.mxu1 %v7077_v53  ;;  %v1281_v53 = vadd.s32 4294967295, %v1276_v51 }
 0xbd6   : > { %6600 = vmatprep.subr.bf16.mxu1 %v7078_v8  ;;  %v1294_v8 = vadd.s32 1, %v1276_v51  ;;  %v6575_v51 = vld [vmem:[%s11888_s20 + $0x38] sm:$0xff] }
 0xbd7   : > { %vm1282_vm10 = vcmp.ge.s32.totalorder %v1281_v53, 0 }
 0xbd8   : > { %vm1297_vm8 = vcmp.lt.s32.totalorder %v1294_v8, 8  ;;  %vm1304_vm2 = vmand %vm11527_vm3, %vm1282_vm10 }
 0xbd9   : > { %6601 = vmatpush3.bf16.msra.mxu1 %v7079_v1 }
 0xbda   : > { %6602 = vmatprep.subr.bf16.mxu1 %v7080_v43  ;;  %v1312_v43 = vadd.s32 1, %v1275_v32  ;;  %v6574_v32 = vld [vmem:[%s11888_s20 + $0x30] sm:$0xff] }
 0xbdc   : > { %vm1313_vm14 = vcmp.ge.s32.totalorder %v1312_v43, 0 }
 0xbdd   : > { %6603 = vmatpush3.bf16.msra.mxu1 %v7081_v34 }
 0xbde   : > { %6604 = vmatprep.subr.bf16.mxu1 %v7082_v35 }
 0xbe1   : > { %6605 = vmatpush3.bf16.msra.mxu1 %v7083_v33 }
 0xbe2   : > { %6606 = vmatprep.subr.bf16.mxu1 %v7084_v37 }
 0xbe5   : > { %6607 = vmatpush3.bf16.msra.mxu1 %v7085_v13 }
 0xbe6   : > { %6608 = vmatprep.subr.bf16.mxu1 %v7086_v3 }
 0xbe9   : > { %6609 = vmatpush3.bf16.msra.mxu1 %v7087_v17 }
 0xbea   : > { %6610 = vmatprep.subr.bf16.mxu1 %v7088_v41 }
 0xbed   : > { %6611 = vmatpush3.bf16.msra.mxu1 %v7089_v12 }
 0xbee   : > { %6664 = vmatprep.subr.bf16.mxu1 %v12593_v45 }
 0xca3   : > { %v5182_v63 = vpop.f32.mrb[52].mxu1 }
 0xca4   : > { %v5189_v7 = vmax.f32 %v5182_v63, 0.0  ;;  %v5184_v24 = vpop.f32.mrb[53].mxu1 }
 0xca5   : > { %v5190_v49 = vmax.f32 %v5184_v24, 0.0  ;;  %v5186_v20 = vpop.f32.mrb[54].mxu1 }
 0xca6   : > { %v5197_v48 = vmul.f32 %v5195_v18, %v5189_v7  ;;  %v5187_v6 = vpop.f32.mrb[55].mxu1  ;;  %v11544_v7 = vsel %vm1304_vm2, 1.0, %v12593_v45 }
 0xca7   : > { %v5198_v47 = vmul.f32 %v5195_v18, %v5190_v49 }
 0xca8   : > { %v5206_v56 = vadd.f32 %v5204_v14, %v5197_v48 }
 0xca9   : > { %v5207_v39 = vadd.f32 %v5204_v14, %v5198_v47 }
 0xcab   : > { %v6850_v50 = vpack.i.bf16 %v5207_v39, %v5206_v56 }
 0xcad   : > { %6851 = vrot.lane.b32.xlu1 %v6850_v50, %s12613_s29  ;;  %6846 = vrot.lane.b32.xlu0 %v6850_v50, %s12139_s4  ;;  %s12107_s29 = smov 8  }
 0xcb1   : > { %6856 = vrot.lane.b32.xlu0 %v6850_v50, %s12633_s8  ;;  %s12109_s8 = smov 9  }
 0xd1f   : > { %v6852_v59 = vpop.permute.xlu1 %6851  ;;  %v6847_v44 = vpop.permute.xlu0 %6846 }
 0xd20   : > { %v6849_v11 = vunpack.i.h.bf16 %v6847_v44  ;;  %v6848_v2 = vunpack.i.l.bf16 %v6847_v44  ;;  %v6854_v29 = vunpack.i.h.bf16 %v6852_v59  ;;  %v6853_v22 = vunpack.i.l.bf16 %v6852_v59 }
 0xd22   : > { %v5244_v26 = vsel %vm12670_vm5, %v6848_v2, %v6849_v11  ;;  %v5245_v52 = vsel %vm12671_vm0, %v6849_v11, %v6848_v2  ;;  %v5252_v16 = vsel %vm4205_vm13, %v6853_v22, %v6854_v29  ;;  %v5253_v25 = vsel %vm4205_vm13, %v6854_v29, %v6853_v22 }
 0xd23   : > { %v6857_v38 = vpop.permute.xlu0 %6856  ;;  %v5246_v21 = vmax.f32 %v5206_v56, %v5244_v26  ;;  %v5247_v58 = vmax.f32 %v5207_v39, %v5245_v52  ;;  %vm7196_vm13 = vmmov 0   ;;  %vm1314_vm5 = vcmp.lt.s32.totalorder %v1312_v43, 8 }
 0xd24   : > { %v6859_v30 = vunpack.i.h.bf16 %v6857_v38  ;;  %v6858_v5 = vunpack.i.l.bf16 %v6857_v38  ;;  %vm11549_vm0 = vmand %vm1313_vm14, %vm1314_vm5 }
 0xd25   : > { %v11579_v50 = vsel %vm11549_vm0, 1.0, %v12593_v45 }
 0xd26   : > { %v5258_v57 = vsel %vm4214_vm4, %v6858_v5, %v6859_v30  ;;  %v5259_v27 = vsel %vm4214_vm4, %v6859_v30, %v6858_v5  ;;  %vm1278_vm4 = vcmp.ge.s32.totalorder %v1277_v4, 0  ;;  %v7090_v30 = vld [vmem:[%s11885_s17] sm:$0xff]  }
 0xd27   : > { %v5260_v54 = vmax.f32 %v5252_v16, %v5258_v57  ;;  %v5261_v55 = vmax.f32 %v5253_v25, %v5259_v27  ;;  %vm1280_vm1 = vmand %vm1278_vm4, %vm1279_vm15 }
 0xd28   : > { %vm1283_vm6 = vmand %vm1280_vm1, %vm1282_vm10  ;;  %v11532_v34 = vsel %vm1280_vm1, 1.0, %v12593_v45 }
 0xd29   : > { %v5263_v40 = vmax.f32 %v5247_v58, %v5261_v55  ;;  %v5262_v61 = vmax.f32 %v5246_v21, %v5260_v54  ;;  %v11535_v35 = vsel %vm1283_vm6, 1.0, %v12593_v45  ;;  %vm1298_vm7 = vmand %vm1280_vm1, %vm1297_vm8  ;;  %vm6028_vm6 = vcmp.lt.s32.totalorder %v7506_v10, 64 }
 0xd2a   : > { %v11547_v24 = vsel %vm1298_vm7, 1.0, %v12593_v45  ;;  %vm1309_vm4 = vmand %vm11527_vm3, %vm1297_vm8  ;;  %vm6181_vm7 = vcmask 73728  }
 0xd2b   : > { %v5265_v62 = vpack.c.bf16 %v5263_v40, %v5263_v40  ;;  %v5264_v19 = vpack.c.bf16 %v5262_v61, %v5262_v61  ;;  %vm1316_vm15 = vmand %vm11549_vm0, %vm1282_vm10  ;;  %v11563_v6 = vsel %vm1309_vm4, 1.0, %v12593_v45  ;;  %vm12676_vm10 = vcmask 1043456  }
 0xd2c   : > { %vm1325_vm1 = vmand %vm11549_vm0, %vm1297_vm8  ;;  %v11570_v56 = vsel %vm1316_vm15, 1.0, %v12593_v45 }
 0xd2d   : > { %5394 = vmatprep.mubr.bf16.mxu1 %v5265_v62  ;;  %v11573_v39 = vsel %vm1325_vm1, 1.0, %v12593_v45 }
 0xd2e   : > { %5395 = vmatmul.mubr.bf16.vlgmr.msra.gmra.mrb[56].mxu1 %v5264_v19 }
 0xd2f   : > { %6674 = vmatprep.mubr.msk.bf16.mxu1 %vm7196_vm13, %v12593_v45 }
 0xe01   : > { %v6612_v46 = vpop.f32.mrb[56].mxu1 }
 0xe02   : > { %v6613_v28 = vpop.f32.mrb[57].mxu1 }
 0xe03   : > { %v11492_v0 = vadd.f32 %v6613_v28, %v6612_v46  ;;  %v6615_v9 = vpop.f32.mrb[58].mxu1 }
 0xe04   : > { %v6616_v15 = vpop.f32.mrb[59].mxu1  ;;  %v5654_v9 = vld [vmem:[%s11888_s20] sm:$0xff] }
 0xe05   : > { %5405 = vrot.lane.b32.xlu0 %v11492_v0, %s12107_s29  ;;  %5402 = vrot.lane.b32.xlu1 %v11492_v0, %s12109_s8  ;;  %v5655_v15 = vld [vmem:[%s11888_s20 + $0x8] sm:$0xff] }
 0xe09   : > { %5411 = vrot.lane.b32.xlu0 %v11492_v0, %s12337_s2  ;;  %5408 = vrot.lane.b32.xlu1 %v11492_v0, %s12105_s27 }
 0xe0d   : > { %5417 = vrot.lane.b32.xlu0 %v11492_v0, %s12099_s28  ;;  %5414 = vrot.lane.b32.xlu1 %v11492_v0, %s12139_s4  ;;  %s12680_s28 = smov 9  }
 0xe11   : > { %5423 = vrot.lane.b32.xlu0 %v11492_v0, %s12101_s25  ;;  %5420 = vrot.lane.b32.xlu1 %v11492_v0, %s12103_s0  ;;  %s12681_s25 = smov 8  }
 0xe15   : > { %5496 = vperm.xlu0 %6798, %v5488_v60   ;;  %5491 = vperm.xlu1 %6799, %v5487_v31   ;;  %v6572_v60 = vld [vmem:[%s11888_s20 + $0x20] sm:$0xff]  ;;  %v6573_v31 = vld [vmem:[%s11888_s20 + $0x28] sm:$0xff] }
 0xe19   : > { %5511 = vperm.xlu0 %6798, %v6565_v23   ;;  %5506 = vperm.xlu1 %6799, %v6564_v36   ;;  %v5656_v23 = vld [vmem:[%s11888_s20 + $0x10] sm:$0xff]  ;;  %v5657_v36 = vld [vmem:[%s11888_s20 + $0x18] sm:$0xff] }
 0xe77   : > { %v5406_v33 = vpop.permute.xlu0 %5405  ;;  %v5403_v37 = vpop.permute.xlu1 %5402 }
 0xe78   : > { %v5407_v13 = vmul.f32 %v11532_v34, %v5406_v33  ;;  %v5404_v63 = vmul.f32 %v11535_v35, %v5403_v37 }
 0xe7a   : > { %v5426_v18 = vpack.c.bf16 %v5407_v13, %v5404_v63 }
 0xe7b   : > { %v5412_v49 = vpop.permute.xlu0 %5411  ;;  %v5409_v20 = vpop.permute.xlu1 %5408 }
 0xe7c   : > { %v5413_v17 = vmul.f32 %v11544_v7, %v5412_v49  ;;  %v5410_v48 = vmul.f32 %v11547_v24, %v5409_v20  ;;  %6665 = vmatpush3.bf16.msra.mxu1 %v5426_v18 }
 0xe7d   : > { %6666 = vmatprep.subr.bf16.mxu1 %v12593_v45 }
 0xe7e   : > { %v5427_v14 = vpack.c.bf16 %v5413_v17, %v5410_v48 }
 0xe7f   : > { %v5418_v47 = vpop.permute.xlu0 %5417  ;;  %v5415_v41 = vpop.permute.xlu1 %5414 }
 0xe80   : > { %v5416_v12 = vmul.f32 %v11563_v6, %v5415_v41  ;;  %6667 = vmatpush3.bf16.msra.mxu1 %v5427_v14  ;;  %v5419_v2 = vmul.f32 %v11570_v56, %v5418_v47 }
 0xe81   : > { %6668 = vmatprep.subr.bf16.mxu1 %v12593_v45 }
 0xe82   : > { %v5428_v59 = vpack.c.bf16 %v5416_v12, %v11492_v0  ;;  %v7091_v0 = vld [vmem:[%s11887_s19 + $0x4] ss:$8 sps:$4 sm:$0xff]  }
 0xe83   : > { %v5424_v44 = vpop.permute.xlu0 %5423  ;;  %v5421_v11 = vpop.permute.xlu1 %5420 }
 0xe84   : > { %v5425_v29 = vmul.f32 %v11573_v39, %v5424_v44  ;;  %v5422_v22 = vmul.f32 %v11579_v50, %v5421_v11  ;;  %6669 = vmatpush3.bf16.msra.mxu1 %v5428_v59 }
 0xe85   : > { %6670 = vmatprep.subr.bf16.mxu1 %v12593_v45 }
 0xe86   : > { %v5429_v38 = vpack.c.bf16 %v5422_v22, %v5419_v2  ;;  %v5430_v26 = vpack.c.bf16 %v5425_v29, %v5425_v29 }
 0xe88   : > { %6671 = vmatpush3.bf16.msra.mxu1 %v5429_v38  ;;  %v5442_v52 = vsel %vm12676_vm10, %v5430_v26, 0 }
 0xe89   : > { %6672 = vmatprep.subr.bf16.mxu1 %v12593_v45 }
 0xe8c   : > { %6673 = vmatpush3.bf16.msra.mxu1 %v5442_v52 }
 0xe8d   : > { %5601 = vmatprep.subr.bf16.mxu1 %v12538_v42 }
 0xe8f   : > { %6675 = vmatmul.mubr.msk.bf16.vlgmr.msra.gmra.mrb[60].mxu1 %vm12677_vm9, %v7090_v30 }
 0xe90   : > { %6570 = vmatprep.mubr.msk.bf16.mxu1 %vm2527_vm11, %v7091_v0 }
 0xe94   : > { %v5492_v5 = vpop.permute.xlu1 %5491  ;;  %v5497_v16 = vpop.permute.xlu0 %5496 }
 0xe98   : > { %v5507_v40 = vpop.permute.xlu1 %5506  ;;  %v5512_v19 = vpop.permute.xlu0 %5511 }
 0xf62   : > { %v5478_v25 = vpop.f32.mrb[60].mxu1 }
 0xf63   : > { %v5485_v57 = vmax.f32 %v5478_v25, 0.0  ;;  %v6676_v27 = vpop.f32.mrb[61].mxu1 }
 0xf64   : > { %v5481_v21 = vpop.f32.mrb[62].mxu1 }
 0xf65   : > { %v5499_v54 = vmul.f32 %v5492_v5, %v5485_v57  ;;  %v5486_v58 = vmax.f32 %v5481_v21, 0.0  ;;  %v6677_v55 = vpop.f32.mrb[63].mxu1 }
 0xf67   : > { %v11593_v61 = vadd.f32 %v5507_v40, %v5499_v54  ;;  %v5500_v62 = vmul.f32 %v5497_v16, %v5486_v58 }
 0xf69   : > { %v11595_v46 = vadd.f32 %v5512_v19, %v5500_v62  ;;  %5516 = vrot.lane.b32.xlu1 %v11593_v61, %s12109_s8  ;;  %v7093_v62 = vld [vmem:[%s11887_s19] ss:$8 sps:$4 sm:$0xff]   ;;  %v7094_v19 = vld [vmem:[%s11887_s19 + $0x14] ss:$8 sps:$4 sm:$0xff]  }
 0xf6b   : > { %5518 = vrot.lane.b32.xlu0 %v11595_v46, %s12109_s8  ;;  %v5568_v28 = vpack.c.bf16 %v11595_v46, %v11593_v61 }
 0xf6d   : > { %5522 = vrot.lane.b32.xlu1 %v11593_v61, %s12107_s29 }
 0xf6f   : > { %5524 = vrot.lane.b32.xlu0 %v11595_v46, %s12107_s29 }
 0xf71   : > { %5528 = vrot.lane.b32.xlu1 %v11593_v61, %s12105_s27 }
 0xf73   : > { %5530 = vrot.lane.b32.xlu0 %v11595_v46, %s12105_s27 }
 0xf75   : > { %5534 = vrot.lane.b32.xlu1 %v11593_v61, %s12337_s2 }
 0xf77   : > { %5536 = vrot.lane.b32.xlu0 %v11595_v46, %s12337_s2 }
 0xf79   : > { %5540 = vrot.lane.b32.xlu1 %v11593_v61, %s12139_s4 }
 0xf7b   : > { %5542 = vrot.lane.b32.xlu0 %v11595_v46, %s12139_s4 }
 0xf7d   : > { %5546 = vrot.lane.b32.xlu1 %v11593_v61, %s12678_s9 }
 0xf7f   : > { %5548 = vrot.lane.b32.xlu0 %v11595_v46, %s12678_s9 }
 0xf81   : > { %5552 = vrot.lane.b32.xlu1 %v11593_v61, %s12103_s0 }
 0xf83   : > { %5554 = vrot.lane.b32.xlu0 %v11595_v46, %s12103_s0 }
 0xf85   : > { %5558 = vrot.lane.b32.xlu1 %v11593_v61, %s12679_s1 }
 0xf87   : > { %5560 = vrot.lane.b32.xlu0 %v11595_v46, %s12679_s1  ;;  %v7096_v46 = vld [vmem:[%s11887_s19 + $0x10] ss:$8 sps:$4 sm:$0xff]  }
 0xf89   : > { %5660 = vperm.xlu1 %6799, %v5654_v9  }
 0xf8b   : > { %5665 = vperm.xlu0 %6798, %v5655_v15  }
 0xf8d   : > { %5689 = vperm.xlu1 %6799, %v6572_v60  }
 0xf8f   : > { %5694 = vperm.xlu0 %6798, %v6573_v31  }
 0xf91   : > { %5670 = vperm.xlu1 %6799, %v5656_v23  }
 0xf93   : > { %5675 = vperm.xlu0 %6798, %v5657_v36  }
 0xf95   : > { %5699 = vperm.xlu1 %6799, %v6574_v32  }
 0xf97   : > { %5704 = vperm.xlu0 %6798, %v6575_v51  }
 0xfdb   : > { %v5517_v4 = vpop.permute.xlu1 %5516 }
 0xfdc   : > { %v5520_v8 = vmul.f32 %v11535_v35, %v5517_v4 }
 0xfdd   : > { %v5519_v53 = vpop.permute.xlu0 %5518 }
 0xfde   : > { %v5521_v1 = vmul.f32 %v11535_v35, %v5519_v53 }
 0xfdf   : > { %v5523_v43 = vpop.permute.xlu1 %5522 }
 0xfe0   : > { %v5564_v33 = vpack.c.bf16 %v5521_v1, %v5520_v8  ;;  %v5526_v13 = vmul.f32 %v11532_v34, %v5523_v43 }
 0xfe1   : > { %v5525_v37 = vpop.permute.xlu0 %5524 }
 0xfe2   : > { %v5527_v63 = vmul.f32 %v11532_v34, %v5525_v37  ;;  %5602 = vmatpush1.bf16.msra.mxu1 %v5564_v33 }
 0xfe3   : > { %v5529_v3 = vpop.permute.xlu1 %5528  ;;  %5603 = vmatprep.subr.bf16.mxu1 %v12538_v42 }
 0xfe4   : > { %v5565_v18 = vpack.c.bf16 %v5527_v63, %v5526_v13  ;;  %v5532_v20 = vmul.f32 %v11547_v24, %v5529_v3 }
 0xfe5   : > { %v5531_v49 = vpop.permute.xlu0 %5530 }
 0xfe6   : > { %v5533_v17 = vmul.f32 %v11547_v24, %v5531_v49  ;;  %5604 = vmatpush1.bf16.msra.mxu1 %v5565_v18 }
 0xfe7   : > { %v5535_v48 = vpop.permute.xlu1 %5534  ;;  %5605 = vmatprep.subr.bf16.mxu1 %v12538_v42 }
 0xfe8   : > { %v5566_v14 = vpack.c.bf16 %v5533_v17, %v5532_v20  ;;  %v5538_v41 = vmul.f32 %v11544_v7, %v5535_v48 }
 0xfe9   : > { %v5537_v47 = vpop.permute.xlu0 %5536 }
 0xfea   : > { %v5539_v12 = vmul.f32 %v11544_v7, %v5537_v47  ;;  %5606 = vmatpush1.bf16.msra.mxu1 %v5566_v14 }
 0xfeb   : > { %v5541_v59 = vpop.permute.xlu1 %5540  ;;  %5607 = vmatprep.subr.bf16.mxu1 %v12538_v42 }
 0xfec   : > { %v5567_v44 = vpack.c.bf16 %v5539_v12, %v5538_v41  ;;  %v5544_v38 = vmul.f32 %v11563_v6, %v5541_v59  ;;  %v7099_v59 = vld [vmem:[%s11889_s21 + $0x4] ss:$12 sps:$4 sm:$0xff]  }
 0xfed   : > { %v5543_v11 = vpop.permute.xlu0 %5542 }
 0xfee   : > { %5608 = vmatpush1.bf16.msra.mxu1 %v5567_v44  ;;  %v5545_v29 = vmul.f32 %v11563_v6, %v5543_v11  ;;  %v7100_v44 = vld [vmem:[%s11889_s21 + $0x8] ss:$12 sps:$4 sm:$0xff]   ;;  %v5971_v11 = vld [vmem:[%s11890_s22] sm:$0xff] }
 0xfef   : > { %v5547_v2 = vpop.permute.xlu1 %5546  ;;  %5609 = vmatprep.subr.bf16.mxu1 %v12538_v42 }
 0xff0   : > { %v5569_v26 = vpack.c.bf16 %v5545_v29, %v5544_v38  ;;  %v5550_v16 = vmul.f32 %v11570_v56, %v5547_v2  ;;  %v5972_v2 = vld [vmem:[%s11890_s22 + $0x8] sm:$0xff]  ;;  %v6584_v29 = vld [vmem:[%s11890_s22 + $0x20] sm:$0xff]  ;;  %v5973_v38 = vld [vmem:[%s11890_s22 + $0x10] sm:$0xff] }
 0xff1   : > { %v5549_v22 = vpop.permute.xlu0 %5548 }
 0xff2   : > { %5610 = vmatpush1.bf16.msra.mxu1 %v5568_v28  ;;  %v5551_v52 = vmul.f32 %v11570_v56, %v5549_v22  ;;  %v6585_v22 = vld [vmem:[%s11890_s22 + $0x28] sm:$0xff] }
 0xff3   : > { %5611 = vmatprep.subr.bf16.mxu1 %v12538_v42  ;;  %v5553_v30 = vpop.permute.xlu1 %5552 }
 0xff4   : > { %v5570_v25 = vpack.c.bf16 %v5551_v52, %v5550_v16  ;;  %v5556_v21 = vmul.f32 %v11579_v50, %v5553_v30  ;;  %v6586_v52 = vld [vmem:[%s11890_s22 + $0x30] sm:$0xff]  ;;  %v6587_v30 = vld [vmem:[%s11890_s22 + $0x38] sm:$0xff] }
 0xff5   : > { %v5555_v5 = vpop.permute.xlu0 %5554 }
 0xff6   : > { %5612 = vmatpush1.bf16.msra.mxu1 %v5569_v26  ;;  %v5557_v57 = vmul.f32 %v11579_v50, %v5555_v5  ;;  %v5974_v26 = vld [vmem:[%s11890_s22 + $0x18] sm:$0xff] }
 0xff7   : > { %5613 = vmatprep.subr.bf16.mxu1 %v12538_v42  ;;  %v5559_v54 = vpop.permute.xlu1 %5558 }
 0xff8   : > { %v5571_v58 = vpack.c.bf16 %v5557_v57, %v5556_v21  ;;  %v5562_v40 = vmul.f32 %v11573_v39, %v5559_v54 }
 0xff9   : > { %v5561_v27 = vpop.permute.xlu0 %5560 }
 0xffa   : > { %5614 = vmatpush1.bf16.msra.mxu1 %v5570_v25  ;;  %v5563_v55 = vmul.f32 %v11573_v39, %v5561_v27 }
 0xffb   : > { %5615 = vmatprep.subr.bf16.mxu1 %v12538_v42 }
 0xffc   : > { %v5572_v61 = vpack.c.bf16 %v5563_v55, %v5562_v40 }
 0xffe   : > { %5616 = vmatpush1.bf16.msra.mxu1 %v5571_v58 }
 0xfff   : > { %5617 = vmatprep.subr.bf16.mxu1 %v12538_v42 }
0x1002   : > { %5618 = vmatpush1.bf16.msra.mxu1 %v5572_v61 }
0x1005   : > { %5634 = vmatmul.mubr.bf16.vlgmr.msra.gmra.mrb[64].mxu1 %v7093_v62 }
0x1006   : > { %6571 = vmatprep.mubr.msk.bf16.mxu1 %vm2527_vm11, %v7094_v19  ;;  %vm12684_vm11 = vcmask 261120  }
0x1007   : > { %6682 = vmatprep.mubr.msk.bf16.mxu0 %vm12684_vm11, %v7100_v44  ;;  %vm12685_vm12 = vmmov %vm12684_vm11 }
0x1008   : > { %v5661_v28 = vpop.permute.xlu1 %5660  ;;  %vm12686_vm3 = vmmov %vm12684_vm11 }
0x1009   : > { %vm6712_vm8 = vmpackc.low %vm12686_vm3, %vm12686_vm3 }
0x100a   : > { %v5666_v42 = vpop.permute.xlu0 %5665  ;;  %vm12687_vm2 = vmmov %vm12686_vm3 }
0x100c   : > { %v5690_v9 = vpop.permute.xlu1 %5689 }
0x100d   : > { %5642 = vmatmul.mubr.bf16.gmra.mrb[68].mxu1 %v7096_v46 }
0x100e   : > { %v5695_v31 = vpop.permute.xlu0 %5694  ;;  %5901 = vmatprep.mubr.bf16.mxu1 %v7099_v59 }
0x1010   : > { %v5671_v8 = vpop.permute.xlu1 %5670 }
0x1012   : > { %v5676_v43 = vpop.permute.xlu0 %5675 }
0x1014   : > { %v5700_v48 = vpop.permute.xlu1 %5699 }
0x1016   : > { %v5705_v14 = vpop.permute.xlu0 %5704 }
0x10d8   : > { %v5635_v0 = vpop.f32.mrb[64].mxu1 }
0x10d9   : > { %v5650_v15 = vmax.f32 %v5635_v0, 0.0  ;;  %v5637_v60 = vpop.f32.mrb[65].mxu1 }
0x10da   : > { %v5638_v23 = vpop.f32.mrb[66].mxu1 }
0x10db   : > { %v5678_v36 = vmul.f32 %v5661_v28, %v5650_v15  ;;  %v5651_v32 = vmax.f32 %v5638_v23, 0.0  ;;  %v5640_v51 = vpop.f32.mrb[67].mxu1 }
0x10dd   : > { %v5707_v4 = vadd.f32 %v5690_v9, %v5678_v36  ;;  %v5679_v53 = vmul.f32 %v5666_v42, %v5651_v32 }
0x10df   : > { %v5708_v1 = vadd.f32 %v5695_v31, %v5679_v53  ;;  %5711 = vrot.lane.b32.xlu1 %v5707_v4, %s12680_s28 }
0x10e0   : > { %v5643_v33 = vpop.f32.mrb[68].mxu1 }
0x10e1   : > { %v5652_v37 = vmax.f32 %v5643_v33, 0.0  ;;  %5713 = vrot.lane.b32.xlu0 %v5708_v1, %s12680_s28  ;;  %v5645_v13 = vpop.f32.mrb[69].mxu1  ;;  %v5815_v63 = vpack.c.bf16 %v5708_v1, %v5707_v4 }
0x10e2   : > { %v5646_v3 = vpop.f32.mrb[70].mxu1 }
0x10e3   : > { %v5680_v18 = vmul.f32 %v5671_v8, %v5652_v37  ;;  %v5653_v49 = vmax.f32 %v5646_v3, 0.0  ;;  %5759 = vrot.lane.b32.xlu1 %v5707_v4, %s12139_s4  ;;  %6624 = vmatprep.subr.bf16.mxu1 %v5815_v63  ;;  %v5648_v20 = vpop.f32.mrb[71].mxu1 }
0x10e5   : > { %v5681_v17 = vmul.f32 %v5676_v43, %v5653_v49  ;;  %5761 = vrot.lane.b32.xlu0 %v5708_v1, %s12139_s4  ;;  %v5709_v47 = vadd.f32 %v5700_v48, %v5680_v18 }
0x10e7   : > { %v5710_v41 = vadd.f32 %v5705_v14, %v5681_v17  ;;  %5723 = vrot.lane.b32.xlu1 %v5707_v4, %s12681_s25 }
0x10e9   : > { %5725 = vrot.lane.b32.xlu0 %v5708_v1, %s12681_s25  ;;  %v5816_v12 = vpack.c.bf16 %v5710_v41, %v5709_v47 }
0x10eb   : > { %5771 = vrot.lane.b32.xlu1 %v5707_v4, %s12678_s9 }
0x10ed   : > { %5773 = vrot.lane.b32.xlu0 %v5708_v1, %s12678_s9 }
0x10ef   : > { %5735 = vrot.lane.b32.xlu1 %v5707_v4, %s12682_s24 }
0x10f1   : > { %5737 = vrot.lane.b32.xlu0 %v5708_v1, %s12682_s24 }
0x10f3   : > { %5783 = vrot.lane.b32.xlu1 %v5707_v4, %s12683_s3 }
0x10f5   : > { %5785 = vrot.lane.b32.xlu0 %v5708_v1, %s12683_s3 }
0x10f7   : > { %5747 = vrot.lane.b32.xlu1 %v5707_v4, %s12337_s2 }
0x10f9   : > { %5749 = vrot.lane.b32.xlu0 %v5708_v1, %s12337_s2 }
0x10fb   : > { %5795 = vrot.lane.b32.xlu1 %v5707_v4, %s12679_s1 }
0x10fd   : > { %5797 = vrot.lane.b32.xlu0 %v5708_v1, %s12679_s1 }
0x10ff   : > { %5715 = vrot.lane.b32.xlu1 %v5709_v47, %s12680_s28 }
0x1101   : > { %5717 = vrot.lane.b32.xlu0 %v5710_v41, %s12680_s28  ;;  %s729_s28 = scalar_lea.vmem [#allocation2], %s728_s6 }
0x1103   : > { %5763 = vrot.lane.b32.xlu1 %v5709_v47, %s12139_s4 }
0x1105   : > { %5765 = vrot.lane.b32.xlu0 %v5710_v41, %s12139_s4  ;;  %s7201_s4 = smov [#allocation2]  }
0x1106   : > { %s7116_s27 = sshll.u32 %s7201_s4, 4  ;;  %s7117_s27 = int_to_ptr.vmem [resolvable:$false] %s7116_s27 }
0x1107   : > { %5727 = vrot.lane.b32.xlu1 %v5709_v47, %s12681_s25 }
0x1109   : > { %5729 = vrot.lane.b32.xlu0 %v5710_v41, %s12681_s25  ;;  %s6208_s25 = sshll.u32 %s729_s28, 4  ;;  %s11827_s25 = int_to_ptr.vmem [resolvable:$true] %s6208_s25 }
0x110a   : > { %s7112_s8 = scalar_lea.vmem %s11827_s25, 16  ;;  %p7119_p0 = scmp.lt.s32.totalorder %s11827_s25, %s7117_s27 }
0x110b   : > { %5775 = vrot.lane.b32.xlu1 %v5709_v47, %s12678_s9  ;;  %p7113_p11 = scmp.ne.s32.totalorder %s11827_s25, %s7112_s8 }
0x110d   : > { %5777 = vrot.lane.b32.xlu0 %v5710_v41, %s12678_s9  ;;  %s12688_s9 = sld [smem:[#allocation8_spill]]  ;;  %p7114_p12 = pnand %p7113_p11, %p7365_p5 }
0x110f   : > { %5739 = vrot.lane.b32.xlu1 %v5709_v47, %s12682_s24  ;;  %p7115_p13 = pneg %p7114_p12 }
0x1111   : > { %5741 = vrot.lane.b32.xlu0 %v5710_v41, %s12682_s24 }
0x1113   : > { %5787 = vrot.lane.b32.xlu1 %v5709_v47, %s12683_s3  ;;  %s6592_s5 = sshll.u32 %s12688_s9, 4  ;;  %s7118_s9 = scalar_lea.vmem %s7117_s27, 32 }
0x1114   : > { %p7120_p1 = scmp.lt.s32.totalorder %s7118_s9, %s7112_s8 }
0x1115   : > { %5789 = vrot.lane.b32.xlu0 %v5710_v41, %s12683_s3  ;;  %s12690_s3 = sld [smem:[#allocation92_spill]] }
0x1116   : > { %p7121_p2 = por %p7120_p1, %p7119_p0 }
0x1117   : > { %5751 = vrot.lane.b32.xlu1 %v5709_v47, %s12337_s2 }
0x1118   : > { %p7122_p3 = pnand %p7121_p2, %p7115_p13 }
0x1119   : > { %5753 = vrot.lane.b32.xlu0 %v5710_v41, %s12337_s2 }
0x111b   : > { %5799 = vrot.lane.b32.xlu1 %v5709_v47, %s12679_s1  ;;  %s11825_s29 = scalar_lea.hbm %s12690_s3, %s6592_s5 }
0x111d   : > { %5801 = vrot.lane.b32.xlu0 %v5710_v41, %s12679_s1  ;;  %s6196_s1 = scalar_lea.sflag [#allocation3], %s728_s6 }
0x111f   : > { %5977 = vperm.xlu1 %6799, %v5971_v11  }
0x1121   : > { %5982 = vperm.xlu0 %6798, %v5972_v2  }
0x1123   : > { %6006 = vperm.xlu1 %6799, %v6584_v29  }
0x1125   : > { %6011 = vperm.xlu0 %6798, %v6585_v22  }
0x1127   : > { %5987 = vperm.xlu1 %6799, %v5973_v38  }
0x1129   : > { %5992 = vperm.xlu0 %6798, %v5974_v26  }
0x112b   : > { %6016 = vperm.xlu1 %6799, %v6586_v52  }
0x112d   : > { %6021 = vperm.xlu0 %6798, %v6587_v30  }
0x1151   : > { %v5712_v5 = vpop.permute.xlu1 %5711 }
0x1152   : > { %v5719_v25 = vmul.f32 %v11535_v35, %v5712_v5 }
0x1153   : > { %v5714_v16 = vpop.permute.xlu0 %5713 }
0x1154   : > { %v5720_v57 = vmul.f32 %v11535_v35, %v5714_v16 }
0x1155   : > { %v5760_v27 = vpop.permute.xlu1 %5759 }
0x1156   : > { %v5807_v21 = vpack.c.bf16 %v5720_v57, %v5719_v25  ;;  %v5767_v8 = vmul.f32 %v11563_v6, %v5760_v27 }
0x1157   : > { %v5762_v54 = vpop.permute.xlu0 %5761 }
0x1158   : > { %6625 = vmatpush3.bf16.msra.mxu1 %v5807_v21  ;;  %v5768_v32 = vmul.f32 %v11563_v6, %v5762_v54 }
0x1159   : > { %v5724_v58 = vpop.permute.xlu1 %5723  ;;  %6626 = vmatprep.subr.bf16.mxu1 %v5816_v12 }
0x115a   : > { %v5817_v37 = vpack.c.bf16 %v5768_v32, %v5767_v8  ;;  %v5731_v63 = vmul.f32 %v11532_v34, %v5724_v58 }
0x115b   : > { %v5726_v55 = vpop.permute.xlu0 %5725 }
0x115c   : > { %v5732_v43 = vmul.f32 %v11532_v34, %v5726_v55 }
0x115d   : > { %v5772_v40 = vpop.permute.xlu1 %5771 }
0x115e   : > { %v5779_v41 = vmul.f32 %v11570_v56, %v5772_v40 }
0x115f   : > { %v5774_v61 = vpop.permute.xlu0 %5773 }
0x1160   : > { %v5780_v17 = vmul.f32 %v11570_v56, %v5774_v61 }
0x1161   : > { %v5736_v62 = vpop.permute.xlu1 %5735 }
0x1162   : > { %v5819_v44 = vpack.c.bf16 %v5780_v17, %v5779_v41  ;;  %v5743_v2 = vmul.f32 %v11547_v24, %v5736_v62 }
0x1163   : > { %v5738_v19 = vpop.permute.xlu0 %5737 }
0x1164   : > { %v5744_v59 = vmul.f32 %v11547_v24, %v5738_v19 }
0x1165   : > { %v5784_v46 = vpop.permute.xlu1 %5783 }
0x1166   : > { %v5791_v25 = vmul.f32 %v11579_v50, %v5784_v46 }
0x1167   : > { %v5786_v28 = vpop.permute.xlu0 %5785 }
0x1168   : > { %v5792_v52 = vmul.f32 %v11579_v50, %v5786_v28 }
0x1169   : > { %v5748_v42 = vpop.permute.xlu1 %5747 }
0x116a   : > { %v5821_v21 = vpack.c.bf16 %v5792_v52, %v5791_v25  ;;  %v5755_v58 = vmul.f32 %v11544_v7, %v5748_v42  ;;  %v7097_v42 = vld [vmem:[%s11889_s21] ss:$12 sps:$4 sm:$0xff]  }
0x116b   : > { %v5750_v0 = vpop.permute.xlu0 %5749 }
0x116c   : > { %v5756_v27 = vmul.f32 %v11544_v7, %v5750_v0 }
0x116d   : > { %v5796_v9 = vpop.permute.xlu1 %5795 }
0x116e   : > { %v5803_v60 = vmul.f32 %v11573_v39, %v5796_v9 }
0x116f   : > { %v5798_v15 = vpop.permute.xlu0 %5797 }
0x1170   : > { %v5804_v31 = vmul.f32 %v11573_v39, %v5798_v15 }
0x1171   : > { %v5716_v23 = vpop.permute.xlu1 %5715 }
0x1172   : > { %v5823_v36 = vpack.c.bf16 %v5804_v31, %v5803_v60  ;;  %v5721_v4 = vmul.f32 %v11535_v35, %v5716_v23  ;;  %v7102_v31 = vld [vmem:[%s11889_s21 + $0x1c] ss:$12 sps:$4 sm:$0xff]  }
0x1173   : > { %v5718_v51 = vpop.permute.xlu0 %5717 }
0x1174   : > { %v5722_v53 = vmul.f32 %v11535_v35, %v5718_v51  ;;  %6678 = vmatprep.subr.bf16.mxu0 %v5823_v36  ;;  %v5809_v35 = vpack.c.bf16 %v5732_v43, %v5731_v63 }
0x1175   : > { %6679 = vmatpush3.bf16.msra.mxu0 %v5823_v36  ;;  %v5764_v1 = vpop.permute.xlu1 %5763  ;;  %v7104_v36 = vld [vmem:[%s11889_s21 + $0x18] ss:$12 sps:$4 sm:$0xff]  }
0x1176   : > { %v5808_v33 = vpack.c.bf16 %v5722_v53, %v5721_v4  ;;  %v5769_v3 = vmul.f32 %v11563_v6, %v5764_v1 }
0x1177   : > { %v5766_v13 = vpop.permute.xlu0 %5765 }
0x1178   : > { %v5770_v18 = vmul.f32 %v11563_v6, %v5766_v13  ;;  %6627 = vmatpush3.bf16.msra.mxu1 %v5808_v33 }
0x1179   : > { %v5728_v49 = vpop.permute.xlu1 %5727  ;;  %6628 = vmatprep.subr.bf16.mxu1 %v5817_v37 }
0x117a   : > { %v5818_v20 = vpack.c.bf16 %v5770_v18, %v5769_v3  ;;  %v5733_v14 = vmul.f32 %v11532_v34, %v5728_v49 }
0x117b   : > { %v5730_v48 = vpop.permute.xlu0 %5729 }
0x117c   : > { %v5734_v47 = vmul.f32 %v11532_v34, %v5730_v48  ;;  %6629 = vmatpush3.bf16.msra.mxu1 %v5809_v35  ;;  %v5811_v34 = vpack.c.bf16 %v5744_v59, %v5743_v2 }
0x117d   : > { %v5776_v12 = vpop.permute.xlu1 %5775  ;;  %6630 = vmatprep.subr.bf16.mxu1 %v5818_v20 }
0x117e   : > { %v5810_v6 = vpack.c.bf16 %v5734_v47, %v5733_v14  ;;  %v5781_v29 = vmul.f32 %v11570_v56, %v5776_v12 }
0x117f   : > { %v5778_v11 = vpop.permute.xlu0 %5777 }
0x1180   : > { %v5782_v22 = vmul.f32 %v11570_v56, %v5778_v11  ;;  %6631 = vmatpush3.bf16.msra.mxu1 %v5810_v6 }
0x1181   : > { %v5740_v38 = vpop.permute.xlu1 %5739  ;;  %6632 = vmatprep.subr.bf16.mxu1 %v5819_v44 }
0x1182   : > { %v5820_v26 = vpack.c.bf16 %v5782_v22, %v5781_v29  ;;  %v5745_v5 = vmul.f32 %v11547_v24, %v5740_v38 }
0x1183   : > { %v5742_v30 = vpop.permute.xlu0 %5741 }
0x1184   : > { %v5746_v16 = vmul.f32 %v11547_v24, %v5742_v30  ;;  %6633 = vmatpush3.bf16.msra.mxu1 %v5811_v34  ;;  %v5813_v24 = vpack.c.bf16 %v5756_v27, %v5755_v58  ;;  %v6100_v58 = vld [vmem:[%s11891_s23] sm:$0xff] }
0x1185   : > { %v5788_v57 = vpop.permute.xlu1 %5787  ;;  %6634 = vmatprep.subr.bf16.mxu1 %v5820_v26 }
0x1186   : > { %v5812_v56 = vpack.c.bf16 %v5746_v16, %v5745_v5  ;;  %v5793_v55 = vmul.f32 %v11579_v50, %v5788_v57 }
0x1187   : > { %v5790_v54 = vpop.permute.xlu0 %5789 }
0x1188   : > { %v5794_v40 = vmul.f32 %v11579_v50, %v5790_v54  ;;  %6635 = vmatpush3.bf16.msra.mxu1 %v5812_v56 }
0x1189   : > { %v5752_v61 = vpop.permute.xlu1 %5751  ;;  %6636 = vmatprep.subr.bf16.mxu1 %v5821_v21 }
0x118a   : > { %v5822_v62 = vpack.c.bf16 %v5794_v40, %v5793_v55  ;;  %v5757_v46 = vmul.f32 %v11544_v7, %v5752_v61  ;;  %v6101_v55 = vld [vmem:[%s11891_s23 + $0x8] sm:$0x3]  ;;  %v7200_v61 = vmov 0.015625  }
0x118b   : > { %v5754_v19 = vpop.permute.xlu0 %5753  ;;  %v6711_v40 = vpack.c.bf16 %v6101_v55, %v6100_v58 }
0x118c   : > { %v5758_v28 = vmul.f32 %v11544_v7, %v5754_v19  ;;  %6637 = vmatpush3.bf16.msra.mxu1 %v5813_v24  ;;  %v7101_v7 = vld [vmem:[%s11889_s21 + $0x20] ss:$12 sps:$4 sm:$0xff]  }
0x118d   : > { %v5800_v0 = vpop.permute.xlu1 %5799  ;;  %6638 = vmatprep.subr.bf16.mxu1 %v5822_v62 }
0x118e   : > { %v5814_v9 = vpack.c.bf16 %v5758_v28, %v5757_v46  ;;  %v5805_v50 = vmul.f32 %v11573_v39, %v5800_v0 }
0x118f   : > { %v5802_v15 = vpop.permute.xlu0 %5801 }
0x1190   : > { %v5806_v60 = vmul.f32 %v11573_v39, %v5802_v15  ;;  %6639 = vmatpush3.bf16.msra.mxu1 %v5814_v9  ;;  %v7199_v39 = vmov 0.0|0.0  }
0x1192   : > { %v5824_v23 = vpack.c.bf16 %v5806_v60, %v5805_v50 }
0x1193   : > { %5902 = vmatmul.mubr.bf16.vlgmr.msra.gmra.mrb[72].mxu1 %v7097_v42 }
0x1194   : > { %6680 = vmatprep.subr.bf16.mxu0 %v5824_v23  ;;  %5909 = vmatprep.mubr.bf16.mxu1 %v7102_v31 }
0x1195   : > { %6681 = vmatpush3.bf16.msra.mxu0 %v5824_v23 }
0x1196   : > { %6704 = vmatprep.subr.bf16.mxu0 %v7199_v39 }
0x1198   : > { %6683 = vmatmul.mubr.msk.bf16.vlgmr.msra.gmra.mrb[36].mxu0 %vm12685_vm12, %v7101_v7 }
0x1199   : > { %6694 = vmatprep.mubr.msk.f32.mxu0 %vm7196_vm13, %v12593_v45 }
0x119b   : > { %5910 = vmatmul.mubr.bf16.gmra.mrb[76].mxu1 %v7104_v36 }
0x119e   : > { %v5978_v32 = vpop.permute.xlu1 %5977 }
0x11a0   : > { %v5983_v4 = vpop.permute.xlu0 %5982 }
0x11a2   : > { %v6007_v13 = vpop.permute.xlu1 %6006 }
0x11a4   : > { %v6012_v3 = vpop.permute.xlu0 %6011 }
0x11a6   : > { %v5988_v2 = vpop.permute.xlu1 %5987 }
0x11a8   : > { %v5993_v29 = vpop.permute.xlu0 %5992 }
0x11aa   : > { %v6017_v57 = vpop.permute.xlu1 %6016 }
0x11ac   : > { %v6022_v27 = vpop.permute.xlu0 %6021 }
0x1266   : > { %v6640_v51 = vpop.f32.mrb[72].mxu1 }
0x1267   : > { %v6641_v53 = vpop.f32.mrb[73].mxu1 }
0x1268   : > { %v6642_v8 = vadd.f32 %v6641_v53, %v6640_v51  ;;  %v6643_v1 = vpop.f32.mrb[74].mxu1 }
0x1269   : > { %v6644_v43 = vpop.f32.mrb[75].mxu1 }
0x126a   : > { %v6645_v33 = vadd.f32 %v6644_v43, %v6643_v1 }
0x126b   : > { %v6684_v37 = vpop.f32.mrb[36].mxu0 }
0x126c   : > { %v5952_v63 = vpop.f32.mrb[37].mxu0 }
0x126d   : > { %v5953_v18 = vadd.f32 %v6642_v8, %v5952_v63  ;;  %v6685_v49 = vpop.f32.mrb[38].mxu0 }
0x126e   : > { %v6646_v35 = vpop.f32.mrb[76].mxu1  ;;  %v5955_v20 = vpop.f32.mrb[39].mxu0 }
0x126f   : > { %v5967_v17 = vmax.f32 %v5953_v18, 0.0  ;;  %v5956_v48 = vadd.f32 %v6645_v33, %v5955_v20  ;;  %v6647_v14 = vpop.f32.mrb[77].mxu1 }
0x1270   : > { %v6648_v47 = vadd.f32 %v6647_v14, %v6646_v35  ;;  %v6649_v41 = vpop.f32.mrb[78].mxu1 }
0x1271   : > { %v5995_v12 = vmul.f32 %v5978_v32, %v5967_v17  ;;  %v5968_v59 = vmax.f32 %v5956_v48, 0.0  ;;  %v6650_v6 = vpop.f32.mrb[79].mxu1 }
0x1272   : > { %v5961_v44 = vadd.f32 %v6684_v37, %v6648_v47  ;;  %v6651_v11 = vadd.f32 %v6650_v6, %v6649_v41 }
0x1273   : > { %v5996_v22 = vmul.f32 %v5983_v4, %v5968_v59  ;;  %v6024_v26 = vadd.f32 %v6007_v13, %v5995_v12 }
0x1274   : > { %v5969_v38 = vmax.f32 %v5961_v44, 0.0  ;;  %v5964_v34 = vadd.f32 %v6685_v49, %v6651_v11 }
0x1275   : > { %v6025_v52 = vadd.f32 %v6012_v3, %v5996_v22 }
0x1276   : > { %v5997_v30 = vmul.f32 %v5988_v2, %v5969_v38  ;;  %v5970_v5 = vmax.f32 %v5964_v34, 0.0 }
0x1277   : > { %v6705_v16 = vpack.c.bf16 %v6025_v52, %v6024_v26 }
0x1278   : > { %v5998_v25 = vmul.f32 %v5993_v29, %v5970_v5  ;;  %v6026_v56 = vadd.f32 %v6017_v57, %v5997_v30 }
0x1279   : > { %6706 = vmatpush3.bf16.xpose.msra.mxu0 %v6705_v16 }
0x127a   : > { %v6027_v21 = vadd.f32 %v6022_v27, %v5998_v25  ;;  %6707 = vmatprep.subr.bf16.mxu0 %v7199_v39 }
0x127c   : > { %v6708_v54 = vpack.c.bf16 %v6027_v21, %v6026_v56 }
0x1281   : > { %6709 = vmatpush3.bf16.xpose.msra.mxu0 %v6708_v54 }
0x1282   : > { %6710 = vmatprep.subr.bf16.mxu0 %v7199_v39 }
0x1288   : > { %6695 = vmatmul.mubr.msk.f32.vlgmr.msra.gmra.mrb[40].mxu0 %vm6028_vm6, %v7200_v61 }
0x1289   : > { %6713 = vmatpush3.bf16.xpose.msk.msra.mxu0 %vm6712_vm8, %v6711_v40  ;;  %6701 = vmatprep.mubr.msk.f32.mxu0 %vm7196_vm13, %v12593_v45 }
0x135b   : > { %v6096_v24 = vpop.f32.mrb[40].mxu0 }
0x135c   : > { %6702 = vmatmul.mubr.msk.f32.vlgmr.msra.gmra.mrb[42].mxu0 %vm12687_vm2, %v6096_v24  ;;  %v6696_v62 = vpop.f32.mrb[41].mxu0 }
0x142f   : > { %v6177_v19 = vpop.f32.mrb[42].mxu0 }
0x1430   : > { %v6182_v10 = vsel %vm6181_vm7, %v6177_v19, -inf  ;;  %v6703_v46 = vpop.f32.mrb[43].mxu0 }
0x1431   : > { %6183 = vmax.xlane.f32.xlu1 %v6182_v10 }
0x14be   : > { %v6184_v28 = vpop.xlane.xlu1 %6183 }
0x14bf   : > { %v6185_v0 = vsub.f32 %v6177_v19, %v6184_v28 }
0x14c1   : > { %v6186_v9 = vmul.f32 1.442695, %v6185_v0 }
0x14c3   : > { %7105 = vpow2.f32 %v6186_v9 }
0x14cd   : > { %v7106_v15 = vpop.eup %7105 }
0x14ce   : > { %v6188_v42 = vsel %vm6181_vm7, %v7106_v15, 0.0 }
0x14cf   : > { %6189 = vadd.xlane.f32.xlu0 %v6188_v42 }
0x155c   : > { %v6190_v45 = vpop.xlane.xlu0 %6189 }
0x155d   : > { %7107 = vlog2.f32 %v6190_v45 }
0x1567   : > { %v7108_v50 = vpop.eup %7107 }
0x1568   : > { %v6192_v60 = vmul.f32 0.6931472, %v7108_v50 }
0x156a   : > { %v6193_v31 = vsub.f32 %v6185_v0, %v6192_v60 }
0x156c   : > { %6194 = vst.msk [vmem:[%s729_s28] sm:$0x1] %vm6181_vm7, %v6193_v31 }
0x156d   : > { %7125 = shalt.err (!%p7122_p3)
}
0x156e   : > { %s7126_s6 = scalar_lea.hbm %s11825_s29, 16  ;;  %s7130_s24 = scalar_lea.hbm %s12690_s3, 32 }
0x156f   : > { %p7127_p4 = scmp.ne.s32.totalorder %s11825_s29, %s7126_s6  ;;  %p7131_p9 = scmp.lt.u32.totalorder %s11825_s29, %s12690_s3 }
0x1570   : > { %p7132_p10 = scmp.lt.u32.totalorder %s7130_s24, %s7126_s6  ;;  %p7134_p12 = scmp.lt.u32.totalorder %s7126_s6, %s11825_s29 }
0x1571   : > { %p7128_p7 = pnand %p7127_p4, %p7365_p5 }
0x1572   : > { %p7133_p11 = por %p7132_p10, %p7131_p9 }
0x1573   : > { %p7129_p8 = pneg %p7128_p7 }
0x1574   : > { %p7135_p13 = por %p7134_p12, %p7133_p11 }
0x1576   : > { %p7136_p0 = pnand %p7135_p13, %p7129_p8 }
0x1578   : > { %7139 = shalt.err (!%p7136_p0)
}
0x1579   : > { %6734 = dma.vmem_to_hbm [thread:$0]  (%p7365_p5), %s11827_s25, 16, %s11825_s29, %s6196_s1  }
0x157a PF: > { %s12691_s8 = sld [smem:[#allocation7_spill]]  ;;  %s12692_s27 = sld [smem:[#allocation5_spill]] }
0x1580   : > { %p6740_p1 = scmp.ge.s32.totalorder %s12691_s8, 2  ;;  %s6220_s5 = sand.u32 1, %s12692_s27  }
0x1581   : > { %s6221_s28 = scalar_lea.sflag [#allocation3], %s6220_s5 }
0x1582   : > { %p6737_p2 = pnand %p6740_p1, %p7369_p6 }
0x1584   : > { %7157 = dma.done.wait (!%p6737_p2), %s6221_s28, 16  }
0x1585   : > { %7159 = vsyncadd (!%p6737_p2), %s6221_s28, 4294967280  ;;  %s12694_s28 = sld [smem:[#allocation9_spill]]  ;;  %s12695_s6 = sld [smem:[#allocation6_spill]] }
0x1586   : > { %s12696_s27 = sld [smem:[#allocation10_spill]]  ;;  %s12697_s5 = smov %s7166_s26 }
0x158b   : > { %p34_p3 = scmp.ge.s32.totalorder %s12694_s28, 4   ;;  %s12698_s26 = smov %s12695_s6 }
0x158d   :  { %36 = sbr.rel (!%p34_p3) target bundleno = 15 (0xf), region = 161 }
0x1594   :  { %6225 = vsyncpa [#allocation3], 1 }
0x1595   :  { %6227 = vsyncpa [#allocation3 + $0x1], 1 }

</bundles_post_ra>
